<compile_context>
chip_gen: v7x
topology: tpu7x:2x2x1
jax: 0.10.0
libtpu: 0.0.40
codegen_flags: <defaults>
</compile_context>

<pallas_src>
import jax
import jax.numpy as jnp
from jax.experimental import pallas as pl
from jax.experimental.pallas import tpu as pltpu

LANE = 128        # lane width / minimum alignment of minor dims
MXU = 256         # v6e / v7x MXU tile edge -> pad hidden feature dim to this


def _round_up(v, m):
    return ((v + m - 1) // m) * m


# ------------------------------------------------------------------ kernel ---

def fused_dgn_tile_kernel(x_ref, adj_ref, valid_ref,
                          w_emb_ref, b_emb_ref, w_conv_ref, b_conv_ref,
                          w1a_ref, w1b_ref, w1c_ref, b1_ref, w2_ref, b2_ref,
                          o_ref):
    """Full DGN_GraphProp forward for ONE tile of GPT graphs (TN node rows).

    Shapes (padded; F = padded hidden, Dp = padded input, TN = GPT * npg):
      x_ref     [TN, Dp]   bf16     adj_ref   [1, TN, TN] bf16 (diag block)
      valid_ref [TN, 1]    f32      w_emb_ref [Dp, F]     bf16
      b_emb_ref [1, F]     f32      w_conv    [L, F, F]   bf16
      b_conv    [L, 1, F]  f32      w1{a,b,c} [F, H2p]    bf16
      b1        [1, H2p]   f32      w2        [H2p, Op]   bf16
      b2        [1, Op]    f32      o_ref     [GPT, Op]   f32
    """
    # ---- embedding (bf16 operands, f32 accumulate, bf16 carry) --------------
    h = jnp.dot(x_ref[...], w_emb_ref[...],
                preferred_element_type=jnp.float32) + b_emb_ref[...]
    h = h.astype(jnp.bfloat16)

    adj = adj_ref[0]                                   # bf16 [TN, TN]
    num_layers = w_conv_ref.shape[0]
    for l in range(num_layers):                        # static unroll
        xw = jnp.dot(h, w_conv_ref[l],
                     preferred_element_type=jnp.float32)             # [TN, F]
        agg = jnp.dot(adj, xw.astype(jnp.bfloat16),
                      preferred_element_type=jnp.float32)             # [TN, F]
        # tanh epilogue in f32 (EUP); carry h in bf16 between layers.
        h = jnp.tanh(agg + b_conv_ref[l]).astype(jnp.bfloat16)

    # ---- per-graph pooling via reshape-reduce (blocks are npg rows each) ----
    valid = valid_ref[...]                             # [TN, 1] f32
    h32 = h.astype(jnp.float32)                        # [TN, F]
    tn, feat = h32.shape
    gpt = o_ref.shape[0]
    npg = tn // gpt

    cnt = jnp.sum(valid.reshape(gpt, npg, 1), axis=1)              # [GPT, 1]
    inv_cnt = jnp.where(cnt > 0.0, 1.0 / cnt, 0.0)

    add_p = jnp.sum((h32 * valid).reshape(gpt, npg, feat), axis=1)  # [GPT, F]
    mean_p = add_p * inv_cnt

    neg = jnp.float32(-1e30)
    hm = jnp.where(valid > 0.0, h32, neg).reshape(gpt, npg, feat)
    max_p = jnp.max(hm, axis=1)                                     # [GPT, F]
    max_p = jnp.where(cnt > 0.0, max_p, 0.0)           # empty-graph guard

    # ---- readout MLP: split-weight matmuls replace the [add|max|mean] concat
    h1 = (jnp.dot(add_p.astype(jnp.bfloat16), w1a_ref[...],
                  preferred_element_type=jnp.float32)
          + jnp.dot(max_p.astype(jnp.bfloat16), w1b_ref[...],
                    preferred_element_type=jnp.float32)
          + jnp.dot(mean_p.astype(jnp.bfloat16), w1c_ref[...],
                    preferred_element_type=jnp.float32)
          + b1_ref[...])
    h1 = jnp.where(h1 > 0.0, h1, 0.01 * h1)            # LeakyReLU
    out = jnp.dot(h1.astype(jnp.bfloat16), w2_ref[...],
                  preferred_element_type=jnp.float32) + b2_ref[...]
    o_ref[...] = jnp.where(out > 0.0, out, 0.01 * out)  # LeakyReLU


# ----------------------------------------------------------------- wrapper ---

def dgn_graphprop_forward(x_pad, adj_blocks, valid, params_pad,
                          graphs_per_tile, output_dim):
    (w_emb, b_emb, w_conv, b_conv, w1a, w1b, w1c, b1, w2, b2) = params_pad
    num_tiles, tn, _ = adj_blocks.shape
    gpt = graphs_per_tile
    num_graphs = num_tiles * gpt
    d_pad = x_pad.shape[1]
    o_pad = w2.shape[1]
    feat = w_emb.shape[1]

    def full(arr):
        nd = arr.ndim
        return pl.BlockSpec(arr.shape, lambda t: (0,) * nd)

    # Rough per-tile VMEM working set: double-buffered streamed inputs +
    # resident weights + f32 intermediates.  Clamp to <= 48 MiB so the plan
    # also fits v7x's 64 MiB VMEM.
    est = (2 * tn * d_pad * 2          # x (bf16, x2 buffers)
           + 2 * tn * tn * 2           # adj diagonal block (bf16, x2)
           + 2 * tn * LANE * 4         # valid [TN,1] lane-padded f32, x2
           + w_emb.size * 2 + w_conv.size * 2
           + (w1a.size + w1b.size + w1c.size + w2.size) * 2
           + 4 * tn * feat * 4)        # h / xw / agg f32 intermediates
    vmem_limit = int(min(max(2 * est, 16 << 20), 48 << 20))

    grid_spec = pltpu.PrefetchScalarGridSpec(
        num_scalar_prefetch=0,
        grid=(num_tiles,),
        in_specs=[
            pl.BlockSpec((tn, d_pad), lambda t: (t, 0)),       # node features
            pl.BlockSpec((1, tn, tn), lambda t: (t, 0, 0)),    # adj diag block
            pl.BlockSpec((tn, 1), lambda t: (t, 0)),           # valid mask
            full(w_emb), full(b_emb), full(w_conv), full(b_conv),
            full(w1a), full(w1b), full(w1c), full(b1),
            full(w2), full(b2),
        ],
        out_specs=pl.BlockSpec((gpt, o_pad), lambda t: (t, 0)),
    )
    out = pl.pallas_call(
        fused_dgn_tile_kernel,
        out_shape=jax.ShapeDtypeStruct((num_graphs, o_pad), jnp.float32),
        grid_spec=grid_spec,
        compiler_params=pltpu.CompilerParams(
            dimension_semantics=("parallel",),
            vmem_limit_bytes=vmem_limit),
    )(x_pad, adj_blocks, valid, w_emb, b_emb, w_conv, b_conv,
      w1a, w1b, w1c, b1, w2, b2)
    # TODO(synk): graphs larger than one tile need a trailing 'arbitrary'
    # neighbor-block grid axis with a VMEM f32 accumulator; for very sparse
    # graphs, drive the adjacency index_map from scalar-prefetched per-tile
    # neighbor-block lists so empty blocks are never DMA'd or multiplied.
    return out[:, :output_dim]


# ------------------------------------------------------------- glue (JAX) ----

def build_norm_adj_blocks(edge_src, edge_dst, num_tiles, tile_n, valid_row):
    """Edge list -> GCN-normalized adjacency, returned as the [num_tiles,
    TN, TN] diagonal blocks only (graphs never cross tile boundaries)."""
    n = num_tiles * tile_n
    a = jnp.zeros((n, n), jnp.float32)
    a = a.at[edge_src, edge_dst].add(1.0)   # duplicates counted (like PyG)
    a = a.at[edge_dst, edge_src].add(1.0)   # symmetrize
    a = a + jnp.diag(valid_row)             # self-loops on valid nodes only
    deg = a.sum(axis=1)
    dinv = jnp.where(deg > 0.0, 1.0 / jnp.sqrt(deg), 0.0)
    a = a * dinv[:, None] * dinv[None, :]
    blocks = [a[t * tile_n:(t + 1) * tile_n, t * tile_n:(t + 1) * tile_n]
              for t in range(num_tiles)]
    return jnp.stack(blocks).astype(jnp.bfloat16)


def init_params(key, input_dim, hidden_dim, output_dim, num_layers):
    """Uniform init mimicking torch Linear default scaling (unpadded)."""
    def lin(k, fan_in, fan_out):
        kw, kb = jax.random.split(k)
        bound = 1.0 / jnp.sqrt(jnp.float32(fan_in))
        w = jax.random.uniform(kw, (fan_in, fan_out), jnp.float32, -bound, bound)
        b = jax.random.uniform(kb, (1, fan_out), jnp.float32, -bound, bound)
        return w, b

    keys = jax.random.split(key, 3 + num_layers)
    emb = lin(keys[0], input_dim, hidden_dim)
    convs = [lin(keys[1 + i], hidden_dim, hidden_dim) for i in range(num_layers)]
    inp3 = hidden_dim * 3
    ro1 = lin(keys[1 + num_layers], inp3, inp3 // 2)
    ro2 = lin(keys[2 + num_layers], inp3 // 2, output_dim)
    return emb, convs, ro1, ro2


def pad_params(emb, convs, ro1, ro2, input_dim, hidden_dim, output_dim):
    """Zero-pad weights: hidden dim to 256 (MXU), minor dims to 128 (lane).
    Zero padding keeps padded feature columns exactly zero through all layers."""
    d_pad = _round_up(input_dim, LANE)
    f_pad = _round_up(hidden_dim, MXU)
    h2 = ro1[0].shape[1]
    h2_pad = _round_up(h2, LANE)
    o_pad = _round_up(output_dim, LANE)

    def pad2(w, r, c, dtype):
        out = jnp.zeros((r, c), jnp.float32)
        out = out.at[:w.shape[0], :w.shape[1]].set(w)
        return out.astype(dtype)

    w_emb = pad2(emb[0], d_pad, f_pad, jnp.bfloat16)
    b_emb = pad2(emb[1], 1, f_pad, jnp.float32)

    w_conv = jnp.stack([pad2(w, f_pad, f_pad, jnp.bfloat16) for (w, _) in convs])
    b_conv = jnp.stack([pad2(b, 1, f_pad, jnp.float32) for (_, b) in convs])

    # Readout L1 split into [add | max | mean] row blocks so the kernel does
    # three MXU accumulates instead of a lane-axis concat; bf16 weights.
    w1_raw, b1_raw = ro1
    w1a = pad2(w1_raw[0 * hidden_dim:1 * hidden_dim], f_pad, h2_pad, jnp.bfloat16)
    w1b = pad2(w1_raw[1 * hidden_dim:2 * hidden_dim], f_pad, h2_pad, jnp.bfloat16)
    w1c = pad2(w1_raw[2 * hidden_dim:3 * hidden_dim], f_pad, h2_pad, jnp.bfloat16)
    b1 = pad2(b1_raw, 1, h2_pad, jnp.float32)

    w2 = pad2(ro2[0], h2_pad, o_pad, jnp.bfloat16)
    b2 = pad2(ro2[1], 1, o_pad, jnp.float32)
    return (w_emb, b_emb, w_conv, b_conv, w1a, w1b, w1c, b1, w2, b2)


# ------------------------------------------------------------------- main ----

if __name__ == "__main__":
    # model config (matches the PyTorch module: hidden_dim given -> emb layer)
    input_dim = 16
    hidden_dim = 32
    output_dim = 4
    num_layers = 2

    # batch layout: 16 graphs x 48 valid nodes, packed into contiguous 64-row
    # blocks; 8 graphs (512 node rows) per grid tile -> grid = (2,), tiles
    # fully independent ("parallel"), Np = 1024 padded node rows total.
    num_graphs = 16
    nodes_per_graph = 48
    npg_pad = 64
    graphs_per_tile = 8
    tile_n = graphs_per_tile * npg_pad            # 512
    num_tiles = num_graphs // graphs_per_tile     # 2
    n_pad = num_tiles * tile_n                    # 1024
    edges_per_graph = 96
    assert num_graphs % graphs_per_tile == 0 and nodes_per_graph <= npg_pad

    d_pad = _round_up(input_dim, LANE)

    key = jax.random.PRNGKey(0)
    k_x, k_s, k_d, k_p = jax.random.split(key, 4)

    # node features written directly into the padded per-graph block layout
    x_real = jax.random.normal(
        k_x, (num_graphs, nodes_per_graph, input_dim), jnp.float32)
    x_blocks = jnp.zeros((num_graphs, npg_pad, d_pad), jnp.float32)
    x_blocks = x_blocks.at[:, :nodes_per_graph, :input_dim].set(x_real)
    x_pad = x_blocks.reshape(n_pad, d_pad).astype(jnp.bfloat16)

    # random intra-graph edges (indices already in the padded layout)
    src = jax.random.randint(k_s, (num_graphs, edges_per_graph), 0, nodes_per_graph)
    dst = jax.random.randint(k_d, (num_graphs, edges_per_graph), 0, nodes_per_graph)
    offs = (jnp.arange(num_graphs) * npg_pad)[:, None]
    edge_src = (src + offs).reshape(-1)
    edge_dst = (dst + offs).reshape(-1)

    # validity mask for padded rows
    valid_row = (jnp.arange(n_pad) % npg_pad < nodes_per_graph).astype(jnp.float32)
    valid = valid_row[:, None]                                  # [Np, 1]

    adj_blocks = build_norm_adj_blocks(edge_src, edge_dst,
                                       num_tiles, tile_n, valid_row)

    emb, convs, ro1, ro2 = init_params(
        k_p, input_dim, hidden_dim, output_dim, num_layers)
    params_pad = pad_params(emb, convs, ro1, ro2,
                            input_dim, hidden_dim, output_dim)

    out = dgn_graphprop_forward(x_pad, adj_blocks, valid, params_pad,
                                graphs_per_tile, output_dim)
    out = jax.block_until_ready(out)

    assert out.shape == (num_graphs, output_dim)
    assert bool(jnp.all(jnp.isfinite(out)))
    print("KERNEL_OK")
</pallas_src>

<mosaic_0001>
module attributes {stable_mosaic.version = 11 : i64} {
  func.func @fused_dgn_tile_kernel(%arg0: i32, %arg1: memref<512x128xbf16, #tpu.memory_space<vmem>>, %arg2: memref<1x512x512xbf16, #tpu.memory_space<vmem>>, %arg3: memref<512x1xf32, #tpu.memory_space<vmem>>, %arg4: memref<128x256xbf16, #tpu.memory_space<vmem>>, %arg5: memref<1x256xf32, #tpu.memory_space<vmem>>, %arg6: memref<2x256x256xbf16, #tpu.memory_space<vmem>>, %arg7: memref<2x1x256xf32, #tpu.memory_space<vmem>>, %arg8: memref<256x128xbf16, #tpu.memory_space<vmem>>, %arg9: memref<256x128xbf16, #tpu.memory_space<vmem>>, %arg10: memref<256x128xbf16, #tpu.memory_space<vmem>>, %arg11: memref<1x128xf32, #tpu.memory_space<vmem>>, %arg12: memref<128x128xbf16, #tpu.memory_space<vmem>>, %arg13: memref<1x128xf32, #tpu.memory_space<vmem>>, %arg14: memref<8x128xf32, #tpu.memory_space<vmem>>) attributes {dimension_semantics = [#tpu.dimension_semantics<parallel>], iteration_bounds = array<i64: 2>, scalar_prefetch = 0 : i64, scratch_operands = 0 : i64, tpu.core_type = #tpu.core_type<tc>, window_params = [{transform_indices = @transform_0, window_bounds = array<i64: 512, 128>}, {transform_indices = @transform_1, window_bounds = array<i64: 1, 512, 512>}, {transform_indices = @transform_2, window_bounds = array<i64: 512, 1>}, {pipeline_mode = #tpu.pipeline_mode<synchronous>, transform_indices = @transform_3, window_bounds = array<i64: 128, 256>}, {pipeline_mode = #tpu.pipeline_mode<synchronous>, transform_indices = @transform_4, window_bounds = array<i64: 1, 256>}, {pipeline_mode = #tpu.pipeline_mode<synchronous>, transform_indices = @transform_5, window_bounds = array<i64: 2, 256, 256>}, {pipeline_mode = #tpu.pipeline_mode<synchronous>, transform_indices = @transform_6, window_bounds = array<i64: 2, 1, 256>}, {pipeline_mode = #tpu.pipeline_mode<synchronous>, transform_indices = @transform_7, window_bounds = array<i64: 256, 128>}, {pipeline_mode = #tpu.pipeline_mode<synchronous>, transform_indices = @transform_8, window_bounds = array<i64: 256, 128>}, {pipeline_mode = #tpu.pipeline_mode<synchronous>, transform_indices = @transform_9, window_bounds = array<i64: 256, 128>}, {pipeline_mode = #tpu.pipeline_mode<synchronous>, transform_indices = @transform_10, window_bounds = array<i64: 1, 128>}, {pipeline_mode = #tpu.pipeline_mode<synchronous>, transform_indices = @transform_11, window_bounds = array<i64: 128, 128>}, {pipeline_mode = #tpu.pipeline_mode<synchronous>, transform_indices = @transform_12, window_bounds = array<i64: 1, 128>}, {transform_indices = @transform_13, window_bounds = array<i64: 8, 128>}]} {
    %c0 = arith.constant 0 : index
    %c0_0 = arith.constant 0 : index
    %0 = vector.load %arg1[%c0, %c0_0] : memref<512x128xbf16, #tpu.memory_space<vmem>>, vector<512x128xbf16>
    %c0_1 = arith.constant 0 : index
    %c0_2 = arith.constant 0 : index
    %1 = vector.load %arg4[%c0_1, %c0_2] : memref<128x256xbf16, #tpu.memory_space<vmem>>, vector<128x256xbf16>
    %cst = arith.constant dense<0.000000e+00> : vector<512x256xf32>
    %2 = tpu.matmul %0, %1, %cst {dimension_numbers = #tpu.dot_dimension_numbers<[1], [0], [0], [1], [0, 0, 1, 1], [], []>} : vector<512x128xbf16>, vector<128x256xbf16>, vector<512x256xf32> -> vector<512x256xf32>
    %c0_3 = arith.constant 0 : index
    %c0_4 = arith.constant 0 : index
    %3 = vector.load %arg5[%c0_3, %c0_4] : memref<1x256xf32, #tpu.memory_space<vmem>>, vector<1x256xf32>
    %4 = vector.broadcast %3 : vector<1x256xf32> to vector<512x256xf32>
    %5 = arith.addf %2, %4 : vector<512x256xf32>
    %6 = arith.truncf %5 : vector<512x256xf32> to vector<512x256xbf16>
    %c0_5 = arith.constant 0 : index
    %c0_6 = arith.constant 0 : index
    %c0_7 = arith.constant 0 : index
    %7 = vector.load %arg2[%c0_5, %c0_6, %c0_7] : memref<1x512x512xbf16, #tpu.memory_space<vmem>>, vector<1x512x512xbf16>
    %8 = vector.shape_cast %7 : vector<1x512x512xbf16> to vector<512x512xbf16>
    %c0_8 = arith.constant 0 : index
    %c0_9 = arith.constant 0 : index
    %c0_10 = arith.constant 0 : index
    %9 = vector.load %arg6[%c0_8, %c0_9, %c0_10] : memref<2x256x256xbf16, #tpu.memory_space<vmem>>, vector<1x256x256xbf16>
    %10 = vector.shape_cast %9 : vector<1x256x256xbf16> to vector<256x256xbf16>
    %cst_11 = arith.constant dense<0.000000e+00> : vector<512x256xf32>
    %11 = tpu.matmul %6, %10, %cst_11 {dimension_numbers = #tpu.dot_dimension_numbers<[1], [0], [0], [1], [0, 0, 1, 1], [], []>} : vector<512x256xbf16>, vector<256x256xbf16>, vector<512x256xf32> -> vector<512x256xf32>
    %12 = arith.truncf %11 : vector<512x256xf32> to vector<512x256xbf16>
    %cst_12 = arith.constant dense<0.000000e+00> : vector<512x256xf32>
    %13 = tpu.matmul %8, %12, %cst_12 {dimension_numbers = #tpu.dot_dimension_numbers<[1], [0], [0], [1], [0, 0, 1, 1], [], []>} : vector<512x512xbf16>, vector<512x256xbf16>, vector<512x256xf32> -> vector<512x256xf32>
    %c0_13 = arith.constant 0 : index
    %c0_14 = arith.constant 0 : index
    %c0_15 = arith.constant 0 : index
    %14 = vector.load %arg7[%c0_13, %c0_14, %c0_15] : memref<2x1x256xf32, #tpu.memory_space<vmem>>, vector<1x1x256xf32>
    %15 = vector.shape_cast %14 : vector<1x1x256xf32> to vector<1x256xf32>
    %16 = vector.broadcast %15 : vector<1x256xf32> to vector<512x256xf32>
    %17 = arith.addf %13, %16 : vector<512x256xf32>
    %18 = math.tanh %17 : vector<512x256xf32>
    %19 = arith.truncf %18 : vector<512x256xf32> to vector<512x256xbf16>
    %c1 = arith.constant 1 : index
    %c0_16 = arith.constant 0 : index
    %c0_17 = arith.constant 0 : index
    %20 = vector.load %arg6[%c1, %c0_16, %c0_17] : memref<2x256x256xbf16, #tpu.memory_space<vmem>>, vector<1x256x256xbf16>
    %21 = vector.shape_cast %20 : vector<1x256x256xbf16> to vector<256x256xbf16>
    %cst_18 = arith.constant dense<0.000000e+00> : vector<512x256xf32>
    %22 = tpu.matmul %19, %21, %cst_18 {dimension_numbers = #tpu.dot_dimension_numbers<[1], [0], [0], [1], [0, 0, 1, 1], [], []>} : vector<512x256xbf16>, vector<256x256xbf16>, vector<512x256xf32> -> vector<512x256xf32>
    %23 = arith.truncf %22 : vector<512x256xf32> to vector<512x256xbf16>
    %cst_19 = arith.constant dense<0.000000e+00> : vector<512x256xf32>
    %24 = tpu.matmul %8, %23, %cst_19 {dimension_numbers = #tpu.dot_dimension_numbers<[1], [0], [0], [1], [0, 0, 1, 1], [], []>} : vector<512x512xbf16>, vector<512x256xbf16>, vector<512x256xf32> -> vector<512x256xf32>
    %c1_20 = arith.constant 1 : index
    %c0_21 = arith.constant 0 : index
    %c0_22 = arith.constant 0 : index
    %25 = vector.load %arg7[%c1_20, %c0_21, %c0_22] : memref<2x1x256xf32, #tpu.memory_space<vmem>>, vector<1x1x256xf32>
    %26 = vector.shape_cast %25 : vector<1x1x256xf32> to vector<1x256xf32>
    %27 = vector.broadcast %26 : vector<1x256xf32> to vector<512x256xf32>
    %28 = arith.addf %24, %27 : vector<512x256xf32>
    %29 = math.tanh %28 : vector<512x256xf32>
    %30 = arith.truncf %29 : vector<512x256xf32> to vector<512x256xbf16>
    %c0_23 = arith.constant 0 : index
    %c0_24 = arith.constant 0 : index
    %31 = vector.load %arg3[%c0_23, %c0_24] : memref<512x1xf32, #tpu.memory_space<vmem>>, vector<512x1xf32>
    %32 = arith.extf %30 : vector<512x256xbf16> to vector<512x256xf32>
    %33 = vector.shape_cast %31 : vector<512x1xf32> to vector<8x64x1xf32>
    %cst_25 = arith.constant dense<0.000000e+00> : vector<8x1xf32>
    %34 = vector.multi_reduction <add>, %33, %cst_25 [1] : vector<8x64x1xf32> to vector<8x1xf32>
    %cst_26 = arith.constant 0.000000e+00 : f32
    %35 = vector.broadcast %cst_26 : f32 to vector<8x1xf32>
    %36 = arith.cmpf ogt, %34, %35 : vector<8x1xf32>
    %cst_27 = arith.constant 1.000000e+00 : f32
    %37 = vector.broadcast %cst_27 : f32 to vector<8x1xf32>
    %38 = arith.divf %37, %34 : vector<8x1xf32>
    %cst_28 = arith.constant 0.000000e+00 : f32
    %39 = vector.broadcast %cst_28 : f32 to vector<8x1xf32>
    %40 = arith.select %36, %38, %39 : vector<8x1xi1>, vector<8x1xf32>
    %41 = vector.broadcast %31 : vector<512x1xf32> to vector<512x256xf32>
    %42 = arith.mulf %32, %41 : vector<512x256xf32>
    %43 = vector.shape_cast %42 : vector<512x256xf32> to vector<8x64x256xf32>
    %cst_29 = arith.constant dense<0.000000e+00> : vector<8x256xf32>
    %44 = vector.multi_reduction <add>, %43, %cst_29 [1] : vector<8x64x256xf32> to vector<8x256xf32>
    %45 = vector.broadcast %40 : vector<8x1xf32> to vector<8x256xf32>
    %46 = arith.mulf %44, %45 : vector<8x256xf32>
    %cst_30 = arith.constant 0.000000e+00 : f32
    %47 = vector.broadcast %cst_30 : f32 to vector<512x1xf32>
    %48 = arith.cmpf ogt, %31, %47 : vector<512x1xf32>
    %cst_31 = arith.constant -1.000000e+30 : f32
    %49 = vector.shape_cast %48 : vector<512x1xi1> to vector<512x1xi1>
    %50 = vector.broadcast %49 : vector<512x1xi1> to vector<512x256xi1>
    %51 = vector.broadcast %cst_31 : f32 to vector<512x256xf32>
    %52 = arith.select %50, %32, %51 : vector<512x256xi1>, vector<512x256xf32>
    %53 = vector.shape_cast %52 : vector<512x256xf32> to vector<8x64x256xf32>
    %cst_32 = arith.constant dense<0xFF800000> : vector<8x256xf32>
    %54 = vector.multi_reduction <maximumf>, %53, %cst_32 [1] : vector<8x64x256xf32> to vector<8x256xf32>
    %cst_33 = arith.constant 0.000000e+00 : f32
    %55 = vector.broadcast %cst_33 : f32 to vector<8x1xf32>
    %56 = arith.cmpf ogt, %34, %55 : vector<8x1xf32>
    %cst_34 = arith.constant 0.000000e+00 : f32
    %57 = vector.shape_cast %56 : vector<8x1xi1> to vector<8x1xi1>
    %58 = vector.broadcast %57 : vector<8x1xi1> to vector<8x256xi1>
    %59 = vector.broadcast %cst_34 : f32 to vector<8x256xf32>
    %60 = arith.select %58, %54, %59 : vector<8x256xi1>, vector<8x256xf32>
    %61 = arith.truncf %44 : vector<8x256xf32> to vector<8x256xbf16>
    %c0_35 = arith.constant 0 : index
    %c0_36 = arith.constant 0 : index
    %62 = vector.load %arg8[%c0_35, %c0_36] : memref<256x128xbf16, #tpu.memory_space<vmem>>, vector<256x128xbf16>
    %cst_37 = arith.constant dense<0.000000e+00> : vector<8x128xf32>
    %63 = tpu.matmul %61, %62, %cst_37 {dimension_numbers = #tpu.dot_dimension_numbers<[1], [0], [0], [1], [0, 0, 1, 1], [], []>} : vector<8x256xbf16>, vector<256x128xbf16>, vector<8x128xf32> -> vector<8x128xf32>
    %64 = arith.truncf %60 : vector<8x256xf32> to vector<8x256xbf16>
    %c0_38 = arith.constant 0 : index
    %c0_39 = arith.constant 0 : index
    %65 = vector.load %arg9[%c0_38, %c0_39] : memref<256x128xbf16, #tpu.memory_space<vmem>>, vector<256x128xbf16>
    %cst_40 = arith.constant dense<0.000000e+00> : vector<8x128xf32>
    %66 = tpu.matmul %64, %65, %cst_40 {dimension_numbers = #tpu.dot_dimension_numbers<[1], [0], [0], [1], [0, 0, 1, 1], [], []>} : vector<8x256xbf16>, vector<256x128xbf16>, vector<8x128xf32> -> vector<8x128xf32>
    %67 = arith.addf %63, %66 : vector<8x128xf32>
    %68 = arith.truncf %46 : vector<8x256xf32> to vector<8x256xbf16>
    %c0_41 = arith.constant 0 : index
    %c0_42 = arith.constant 0 : index
    %69 = vector.load %arg10[%c0_41, %c0_42] : memref<256x128xbf16, #tpu.memory_space<vmem>>, vector<256x128xbf16>
    %cst_43 = arith.constant dense<0.000000e+00> : vector<8x128xf32>
    %70 = tpu.matmul %68, %69, %cst_43 {dimension_numbers = #tpu.dot_dimension_numbers<[1], [0], [0], [1], [0, 0, 1, 1], [], []>} : vector<8x256xbf16>, vector<256x128xbf16>, vector<8x128xf32> -> vector<8x128xf32>
    %71 = arith.addf %67, %70 : vector<8x128xf32>
    %c0_44 = arith.constant 0 : index
    %c0_45 = arith.constant 0 : index
    %72 = vector.load %arg11[%c0_44, %c0_45] : memref<1x128xf32, #tpu.memory_space<vmem>>, vector<1x128xf32>
    %73 = vector.broadcast %72 : vector<1x128xf32> to vector<8x128xf32>
    %74 = arith.addf %71, %73 : vector<8x128xf32>
    %cst_46 = arith.constant 0.000000e+00 : f32
    %75 = vector.broadcast %cst_46 : f32 to vector<8x128xf32>
    %76 = arith.cmpf ogt, %74, %75 : vector<8x128xf32>
    %cst_47 = arith.constant 0.00999999977 : f32
    %77 = vector.broadcast %cst_47 : f32 to vector<8x128xf32>
    %78 = arith.mulf %77, %74 : vector<8x128xf32>
    %79 = arith.select %76, %74, %78 : vector<8x128xi1>, vector<8x128xf32>
    %80 = arith.truncf %79 : vector<8x128xf32> to vector<8x128xbf16>
    %c0_48 = arith.constant 0 : index
    %c0_49 = arith.constant 0 : index
    %81 = vector.load %arg12[%c0_48, %c0_49] : memref<128x128xbf16, #tpu.memory_space<vmem>>, vector<128x128xbf16>
    %cst_50 = arith.constant dense<0.000000e+00> : vector<8x128xf32>
    %82 = tpu.matmul %80, %81, %cst_50 {dimension_numbers = #tpu.dot_dimension_numbers<[1], [0], [0], [1], [0, 0, 1, 1], [], []>} : vector<8x128xbf16>, vector<128x128xbf16>, vector<8x128xf32> -> vector<8x128xf32>
    %c0_51 = arith.constant 0 : index
    %c0_52 = arith.constant 0 : index
    %83 = vector.load %arg13[%c0_51, %c0_52] : memref<1x128xf32, #tpu.memory_space<vmem>>, vector<1x128xf32>
    %84 = vector.broadcast %83 : vector<1x128xf32> to vector<8x128xf32>
    %85 = arith.addf %82, %84 : vector<8x128xf32>
    %cst_53 = arith.constant 0.000000e+00 : f32
    %86 = vector.broadcast %cst_53 : f32 to vector<8x128xf32>
    %87 = arith.cmpf ogt, %85, %86 : vector<8x128xf32>
    %cst_54 = arith.constant 0.00999999977 : f32
    %88 = vector.broadcast %cst_54 : f32 to vector<8x128xf32>
    %89 = arith.mulf %88, %85 : vector<8x128xf32>
    %90 = arith.select %87, %85, %89 : vector<8x128xi1>, vector<8x128xf32>
    %c0_55 = arith.constant 0 : index
    %c0_56 = arith.constant 0 : index
    %91 = vector.load %arg14[%c0_55, %c0_56] : memref<8x128xf32, #tpu.memory_space<vmem>>, vector<8x128xf32>
    tpu.vector_store %arg14[%c0_55, %c0_56], %90 {strides = array<i32>} : memref<8x128xf32, #tpu.memory_space<vmem>>, vector<8x128xf32>,
    return
  }
  func.func @transform_0(%arg0: i32) -> (i32, i32) {
    %c0_i32 = arith.constant 0 : i32
    %c0_i32_0 = arith.constant 0 : i32
    return %arg0, %c0_i32 : i32, i32
  }
  func.func @transform_1(%arg0: i32) -> (i32, i32, i32) {
    %c0_i32 = arith.constant 0 : i32
    %c0_i32_0 = arith.constant 0 : i32
    %c0_i32_1 = arith.constant 0 : i32
    return %arg0, %c0_i32, %c0_i32_0 : i32, i32, i32
  }
  func.func @transform_2(%arg0: i32) -> (i32, i32) {
    %c0_i32 = arith.constant 0 : i32
    %c0_i32_0 = arith.constant 0 : i32
    return %arg0, %c0_i32 : i32, i32
  }
  func.func @transform_3(%arg0: i32) -> (i32, i32) {
    %c0_i32 = arith.constant 0 : i32
    %c0_i32_0 = arith.constant 0 : i32
    %c0_i32_1 = arith.constant 0 : i32
    return %c0_i32, %c0_i32_0 : i32, i32
  }
  func.func @transform_4(%arg0: i32) -> (i32, i32) {
    %c0_i32 = arith.constant 0 : i32
    %c0_i32_0 = arith.constant 0 : i32
    %c0_i32_1 = arith.constant 0 : i32
    return %c0_i32, %c0_i32_0 : i32, i32
  }
  func.func @transform_5(%arg0: i32) -> (i32, i32, i32) {
    %c0_i32 = arith.constant 0 : i32
    %c0_i32_0 = arith.constant 0 : i32
    %c0_i32_1 = arith.constant 0 : i32
    %c0_i32_2 = arith.constant 0 : i32
    return %c0_i32, %c0_i32_0, %c0_i32_1 : i32, i32, i32
  }
  func.func @transform_6(%arg0: i32) -> (i32, i32, i32) {
    %c0_i32 = arith.constant 0 : i32
    %c0_i32_0 = arith.constant 0 : i32
    %c0_i32_1 = arith.constant 0 : i32
    %c0_i32_2 = arith.constant 0 : i32
    return %c0_i32, %c0_i32_0, %c0_i32_1 : i32, i32, i32
  }
  func.func @transform_7(%arg0: i32) -> (i32, i32) {
    %c0_i32 = arith.constant 0 : i32
    %c0_i32_0 = arith.constant 0 : i32
    %c0_i32_1 = arith.constant 0 : i32
    return %c0_i32, %c0_i32_0 : i32, i32
  }
  func.func @transform_8(%arg0: i32) -> (i32, i32) {
    %c0_i32 = arith.constant 0 : i32
    %c0_i32_0 = arith.constant 0 : i32
    %c0_i32_1 = arith.constant 0 : i32
    return %c0_i32, %c0_i32_0 : i32, i32
  }
  func.func @transform_9(%arg0: i32) -> (i32, i32) {
    %c0_i32 = arith.constant 0 : i32
    %c0_i32_0 = arith.constant 0 : i32
    %c0_i32_1 = arith.constant 0 : i32
    return %c0_i32, %c0_i32_0 : i32, i32
  }
  func.func @transform_10(%arg0: i32) -> (i32, i32) {
    %c0_i32 = arith.constant 0 : i32
    %c0_i32_0 = arith.constant 0 : i32
    %c0_i32_1 = arith.constant 0 : i32
    return %c0_i32, %c0_i32_0 : i32, i32
  }
  func.func @transform_11(%arg0: i32) -> (i32, i32) {
    %c0_i32 = arith.constant 0 : i32
    %c0_i32_0 = arith.constant 0 : i32
    %c0_i32_1 = arith.constant 0 : i32
    return %c0_i32, %c0_i32_0 : i32, i32
  }
  func.func @transform_12(%arg0: i32) -> (i32, i32) {
    %c0_i32 = arith.constant 0 : i32
    %c0_i32_0 = arith.constant 0 : i32
    %c0_i32_1 = arith.constant 0 : i32
    return %c0_i32, %c0_i32_0 : i32, i32
  }
  func.func @transform_13(%arg0: i32) -> (i32, i32) {
    %c0_i32 = arith.constant 0 : i32
    %c0_i32_0 = arith.constant 0 : i32
    return %arg0, %c0_i32 : i32, i32
  }
}

</mosaic_0001>

<bundles_post_ra>
// kernel: tpu_custom_call.1
= control target key start
LH: loop header
LB: loop body
LE: loop exit
PB: predicated region body
PF: predicated region fallthrough
CT: control target
= control target key end

     0   :  { %s14085_s0 = inlined_call_operand.vmem [shape: bf16[1024,128], index: 0, kind: input, shape index: {}]   ;;  %s14086_s1 = inlined_call_operand.hbm [shape: bf16[2,512,512], index: 1, kind: input, shape index: {}]   ;;  %s14087_s2 = inlined_call_operand.vmem [shape: f32[1024,1], index: 2, kind: input, shape index: {}]   ;;  %s14088_s3 = inlined_call_operand.hbm [shape: bf16[128,256], index: 3, kind: input, shape index: {}]   ;;  %s14089_s4 = inlined_call_operand.vmem [shape: f32[1,256], index: 4, kind: input, shape index: {}]   ;;  %s14090_s5 = inlined_call_operand.vmem [shape: bf16[2,256,256], index: 5, kind: input, shape index: {}]   ;;  %s14091_s6 = inlined_call_operand.vmem [shape: f32[2,1,256], index: 6, kind: input, shape index: {}]   ;;  %s14092_s7 = inlined_call_operand.hbm [shape: bf16[256,128], index: 7, kind: input, shape index: {}]   ;;  %s14093_s8 = inlined_call_operand.hbm [shape: bf16[256,128], index: 8, kind: input, shape index: {}]   ;;  %s14094_s9 = inlined_call_operand.hbm [shape: bf16[256,128], index: 9, kind: input, shape index: {}]   ;;  %s14095_s10 = inlined_call_operand.vmem [shape: f32[1,128], index: 10, kind: input, shape index: {}]   ;;  %s14096_s11 = inlined_call_operand.hbm [shape: bf16[128,128], index: 11, kind: input, shape index: {}]   ;;  %s14097_s12 = inlined_call_operand.vmem [shape: f32[1,128], index: 12, kind: input, shape index: {}]   ;;  %s14098_s13 = inlined_call_operand.hbm [shape: f32[16,128], index: 13, kind: output, shape index: {}]  }
   0x1   :  { %14211 = sst [smem:[#allocation106_spill]] %s14087_s2 }
   0x2   :  { %14212 = sst [smem:[#allocation107_spill]] %s14088_s3 }
   0x3   :  { %14213 = sst [smem:[#allocation108_spill]] %s14091_s6 }
   0x4   :  { %14214 = sst [smem:[#allocation109_spill]] %s14095_s10 }
   0x5   :  { %14215 = sst [smem:[#allocation110_spill]] %s14097_s12 }
   0x6   :  { %14216 = sst [smem:[#allocation111_spill]] %s14098_s13 }
   0x7   :  { %18 = vsyncpa [#allocation3], 0 }
   0x8   :  { %20 = vsyncpa [#allocation3 + $0x1], 0 }
   0x9   :  { %21 = vsyncpa [#allocation6], 0 }
   0xa   :  { %22 = vsyncpa [#allocation9], 0 }
   0xb   :  { %23 = vsyncpa [#allocation12], 0 }
   0xc   :  { %24 = vsyncpa [#allocation4], 0 }
   0xd   :  { %26 = vsyncpa [#allocation4 + $0x1], 0  ;;  %s10573_s25 = smov 0   ;;  %s10575_s26 = smov 0  }
   0xe   :  { %s10577_s27 = smov 0   ;;  %s10579_s28 = smov 0  }
   0xf LB: > { %s10487_s29 = smov [#allocation5]   ;;  %s10594_s14 = sadd.s32 4294967295, %s10485_s28   ;;  %s10485_s28 = sphi %s10579_s28, %s14466_s28   ;;  %s10481_s27 = sphi %s10577_s27, %s14465_s27   ;;  %s10477_s26 = sphi %s10575_s26, %s14464_s26   ;;  %s10473_s25 = sphi %s10573_s25, %s14463_s25  }
  0x10   : > { %s363_s30 = sshll.u32 %s10487_s29, 4  ;;  %p8041_p0 = scmp.ge.s32.totalorder %s10485_s28, 1  ;;  %s10599_s30 = int_to_ptr.vmem [resolvable:$true] %s363_s30 }
  0x11   : > { %p14101_p1 = scmp.eq.s32.totalorder %s10594_s14, 0  ;;  %p351_p2 = scmp.lt.s32.totalorder %s10485_s28, 3 }
  0x12   : > { %s10488_s17 = smov [#allocation8]   ;;  %s10489_s19 = smov [#allocation7]  }
  0x13   : > { %p10601_p3 = pnand %p8041_p0, %p351_p2  ;;  %s398_s18 = sshll.u32 %s10488_s17, 4  ;;  %s10614_s18 = int_to_ptr.vmem [resolvable:$true] %s398_s18 }
  0x14   : > { %s10616_s20 = sshll.u32 %s10489_s19, 4  ;;  %s14219_s3 = sld [smem:[#allocation107_spill]]  ;;  %s386_s20 = int_to_ptr.vmem [resolvable:$true] %s10616_s20 }
  0x15   : > { %s14217_s15 = scalar_select %p10601_p3, 1, 0 }
  0x16   : > { %p9062_p5 = pneg %p10601_p3 }
  0x18   : > { %p10610_p6 = pnand %p9062_p5, %p14101_p1 }
  0x1a   : > { %s10237_s23 = scalar_lea.hbm %s14219_s3, 2048  ;;  %p10626_p8 = pneg %p10610_p6 }
  0x1b   : > { %p10238_p7 = scmp.ne.s32.totalorder %s14219_s3, %s10237_s23  ;;  %p10244_p11 = scmp.lt.u32.totalorder %s10237_s23, %s14219_s3 }
  0x1d   : > { %p10240_p9 = pnand %p10626_p8, %p10238_p7 }
  0x1f   : > { %p10241_p10 = pneg %p10240_p9 }
  0x21   : > { %p10246_p12 = pnand %p10244_p11, %p10241_p10 }
  0x23   : > { %10249 = shalt.err (!%p10246_p12)
}
  0x24   : > { %s10250_s21 = scalar_lea.vmem %s10599_s30, 2048  ;;  %p10258_p5 = scmp.lt.s32.totalorder %s10599_s30, %s10599_s30 }
  0x25   : > { %p10251_p13 = scmp.ne.s32.totalorder %s10599_s30, %s10250_s21  ;;  %p10259_p4 = scmp.lt.s32.totalorder %s10250_s21, %s10250_s21 }
  0x27   : > { %p10253_p0 = pnand %p10251_p13, %p10626_p8  ;;  %p10260_p7 = por %p10259_p4, %p10258_p5 }
  0x29   : > { %p10254_p2 = pneg %p10253_p0 }
  0x2b   : > { %p10261_p9 = pnand %p10260_p7, %p10254_p2 }
  0x2d   : > { %10264 = shalt.err (!%p10261_p9)
}
  0x2e   : > { %s10490_s22 = smov 128   ;;  %s10491_s23 = smov 8  }
  0x2f   : > { %9065 = dma.hbm_to_vmem [thread:$0]  (!%p10610_p6), %s14219_s3, 2048, %s10599_s30, [#allocation6], %s10490_s22, %s10490_s22, %s10491_s23  }
  0x30   : > { %s10265_s12 = scalar_lea.hbm %s14093_s8, 2048 }
  0x31   : > { %p10266_p4 = scmp.ne.s32.totalorder %s14093_s8, %s10265_s12  ;;  %p10272_p12 = scmp.lt.u32.totalorder %s10265_s12, %s14093_s8 }
  0x33   : > { %p10268_p10 = pnand %p10266_p4, %p10626_p8 }
  0x35   : > { %p10269_p11 = pneg %p10268_p10 }
  0x37   : > { %p10274_p13 = pnand %p10272_p12, %p10269_p11 }
  0x39   : > { %10277 = shalt.err (!%p10274_p13)
}
  0x3a   : > { %s10278_s30 = scalar_lea.vmem %s10614_s18, 2048  ;;  %p10286_p7 = scmp.lt.s32.totalorder %s10614_s18, %s10614_s18 }
  0x3b   : > { %p10279_p0 = scmp.ne.s32.totalorder %s10614_s18, %s10278_s30  ;;  %p10287_p9 = scmp.lt.s32.totalorder %s10278_s30, %s10278_s30 }
  0x3d   : > { %p10281_p2 = pnand %p10279_p0, %p10626_p8  ;;  %p10288_p4 = por %p10287_p9, %p10286_p7 }
  0x3f   : > { %p10282_p5 = pneg %p10281_p2 }
  0x41   : > { %p10289_p10 = pnand %p10288_p4, %p10282_p5 }
  0x43   : > { %10292 = shalt.err (!%p10289_p10)
}
  0x44   : > { %s10492_s2 = smov 64   ;;  %s10493_s6 = smov 4  }
  0x45   : > { %9071 = dma.hbm_to_vmem [thread:$0]  (!%p10610_p6), %s14093_s8, 2048, %s10614_s18, [#allocation9], %s10492_s2, %s10492_s2, %s10493_s6  }
  0x46   : > { %s10293_s24 = scalar_lea.hbm %s14092_s7, 2048 }
  0x47   : > { %p10294_p11 = scmp.ne.s32.totalorder %s14092_s7, %s10293_s24  ;;  %p10300_p0 = scmp.lt.u32.totalorder %s10293_s24, %s14092_s7 }
  0x49   : > { %p10296_p12 = pnand %p10294_p11, %p10626_p8 }
  0x4b   : > { %p10297_p13 = pneg %p10296_p12 }
  0x4d   : > { %p10302_p2 = pnand %p10300_p0, %p10297_p13 }
  0x4f   : > { %10305 = shalt.err (!%p10302_p2)
}
  0x50   : > { %s10306_s30 = scalar_lea.vmem %s386_s20, 2048  ;;  %p10314_p4 = scmp.lt.s32.totalorder %s386_s20, %s386_s20 }
  0x51   : > { %p10307_p5 = scmp.ne.s32.totalorder %s386_s20, %s10306_s30  ;;  %p10315_p10 = scmp.lt.s32.totalorder %s10306_s30, %s10306_s30 }
  0x53   : > { %p10309_p7 = pnand %p10307_p5, %p10626_p8  ;;  %p10316_p1 = por %p10315_p10, %p10314_p4 }
  0x55   : > { %p10310_p9 = pneg %p10309_p7 }
  0x57   : > { %p10317_p3 = pnand %p10316_p1, %p10310_p9 }
  0x59   : > { %10320 = shalt.err (!%p10317_p3)
}
  0x5a   : > { %9068 = dma.hbm_to_vmem [thread:$0]  (!%p10610_p6), %s14092_s7, 2048, %s386_s20, [#allocation6], %s10492_s2, %s10492_s2, %s10493_s6  }
  0x5b   : > { %s10494_s12 = smov [#allocation10]   ;;  %s10495_s23 = smov [#allocation11]  }
  0x5c   : > { %s411_s22 = sshll.u32 %s10494_s12, 4  ;;  %s427_s24 = sshll.u32 %s10495_s23, 4  ;;  %s412_s22 = int_to_ptr.vmem [resolvable:$true] %s411_s22  ;;  %s428_s24 = int_to_ptr.vmem [resolvable:$true] %s427_s24 }
  0x5d   : > { %s10321_s19 = scalar_lea.hbm %s14094_s9, 2048 }
  0x5e   : > { %p10322_p1 = scmp.ne.s32.totalorder %s14094_s9, %s10321_s19  ;;  %p10328_p12 = scmp.lt.u32.totalorder %s10321_s19, %s14094_s9 }
  0x60   : > { %p10324_p3 = pnand %p10322_p1, %p10626_p8 }
  0x62   : > { %p10325_p11 = pneg %p10324_p3 }
  0x64   : > { %p10330_p13 = pnand %p10328_p12, %p10325_p11 }
  0x66   : > { %10333 = shalt.err (!%p10330_p13)
}
  0x67   : > { %s10334_s20 = scalar_lea.vmem %s412_s22, 2048  ;;  %p10342_p7 = scmp.lt.s32.totalorder %s412_s22, %s412_s22 }
  0x68   : > { %p10335_p0 = scmp.ne.s32.totalorder %s412_s22, %s10334_s20  ;;  %p10343_p9 = scmp.lt.s32.totalorder %s10334_s20, %s10334_s20 }
  0x6a   : > { %p10337_p2 = pnand %p10335_p0, %p10626_p8  ;;  %p10344_p4 = por %p10343_p9, %p10342_p7 }
  0x6c   : > { %p10338_p5 = pneg %p10337_p2 }
  0x6e   : > { %p10345_p10 = pnand %p10344_p4, %p10338_p5 }
  0x70   : > { %10348 = shalt.err (!%p10345_p10)
}
  0x71   : > { %9074 = dma.hbm_to_vmem [thread:$0]  (!%p10610_p6), %s14094_s9, 2048, %s412_s22, [#allocation9], %s10492_s2, %s10492_s2, %s10493_s6  }
  0x72   : > { %s10349_s29 = scalar_lea.hbm %s14096_s11, 1024 }
  0x73   : > { %p10350_p1 = scmp.ne.s32.totalorder %s14096_s11, %s10349_s29  ;;  %p10356_p12 = scmp.lt.u32.totalorder %s10349_s29, %s14096_s11 }
  0x75   : > { %p10352_p3 = pnand %p10350_p1, %p10626_p8 }
  0x77   : > { %p10353_p11 = pneg %p10352_p3 }
  0x79   : > { %p10358_p13 = pnand %p10356_p12, %p10353_p11 }
  0x7b   : > { %10361 = shalt.err (!%p10358_p13)
}
  0x7c   : > { %s10362_s18 = scalar_lea.vmem %s428_s24, 1024  ;;  %p10370_p7 = scmp.lt.s32.totalorder %s428_s24, %s428_s24 }
  0x7d   : > { %p10363_p0 = scmp.ne.s32.totalorder %s428_s24, %s10362_s18  ;;  %p10371_p9 = scmp.lt.s32.totalorder %s10362_s18, %s10362_s18 }
  0x7f   : > { %p10365_p2 = pnand %p10363_p0, %p10626_p8  ;;  %p10372_p4 = por %p10371_p9, %p10370_p7 }
  0x81   : > { %p10366_p5 = pneg %p10365_p2 }
  0x83   : > { %p10373_p10 = pnand %p10372_p4, %p10366_p5 }
  0x85   : > { %10376 = shalt.err (!%p10373_p10)
}
  0x86   : > { %9077 = dma.hbm_to_vmem [thread:$0]  (!%p10610_p6), %s14096_s11, 1024, %s428_s24, [#allocation12], %s10492_s2, %s10492_s2, %s10493_s6  }
  0x87   : > { %s8040_s13 = sadd.s32 4294967294, %s10485_s28   ;;  %s10739_s16 = sadd.s32 1, %s10485_s28  }
  0x88   : > { %s65_s3 = sadd.s32 1, %s10481_s27  ;;  %s62_s10 = ssub.s32 %s10485_s28, %s10739_s16 }
  0x89   : > { %p72_p8 = scmp.ne.s32.totalorder %s10481_s27, %s10477_s26  ;;  %p63_p1 = scmp.eq.s32.totalorder %s62_s10, 0 }
  0x8a   : > { %p73_p3 = scmp.eq.s32.totalorder %s10485_s28, 0  ;;  %p78_p11 = scmp.ne.s32.totalorder %s10477_s26, %s10473_s25 }
  0x8b   : > { %p338_p12 = scmp.eq.s32.totalorder %s10594_s14, 1  ;;  %p14221_p0 = scmp.eq.s32.totalorder %s10594_s14, 0 }
  0x8c   : > { %s10751_s12 = scalar_select %p63_p1, %s10481_s27, %s65_s3  }
  0x8d   : > { %p74_p13 = por %p73_p3, %p72_p8  ;;  %p10755_p2 = por %p14221_p0, %p78_p11 }
  0x8e   : > { %p10759_p6 = por %p338_p12, %p72_p8  ;;  %p344_p5 = scmp.eq.s32.totalorder %s8040_s13, 1 }
  0x8f   : > { %p9091_p7 = scmp.lt.s32.totalorder %s10485_s28, 2  ;;  %s453_s6 = sand.u32 1, %s10481_s27  }
  0x90   : > { %s14223_s2 = scalar_select %p10759_p6, 1, 0 }
  0x91   : > { %p10765_p9 = por %p344_p5, %p78_p11  ;;  %s8048_s29 = sshll.u32 %s453_s6, 10 }
  0x92   : > { %s8398_s17 = sshll.u32 %s10485_s28, 14  ;;  %s457_s18 = scalar_lea.vmem [#allocation2], %s8048_s29 }
  0x93   : > { %s14224_s24 = scalar_select %p10765_p9, 1, 0 }
  0x94   : > { %s10773_s30 = scalar_lea.hbm %s14086_s1, %s8398_s17  ;;  %s464_s22 = sshll.u32 %s457_s18, 4  ;;  %s10779_s22 = int_to_ptr.vmem [resolvable:$true] %s464_s22 }
  0x95   : > { %p10775_p4 = pnand %p9091_p7, %p74_p13  ;;  %s10781_s13 = scalar_lea.sflag [#allocation3], %s453_s6 }
  0x96   : > { %s10377_s3 = scalar_lea.hbm %s10773_s30, 16384  ;;  %s10382_s17 = scalar_lea.hbm %s14086_s1, 32768 }
  0x97   : > { %p10378_p10 = scmp.ne.s32.totalorder %s10773_s30, %s10377_s3  ;;  %p10379_p8 = pneg %p10775_p4 }
  0x98   : > { %p10383_p11 = scmp.lt.u32.totalorder %s10773_s30, %s14086_s1  ;;  %p10384_p12 = scmp.lt.u32.totalorder %s10382_s17, %s10377_s3 }
  0x99   : > { %p10380_p1 = pnand %p10379_p8, %p10378_p10  ;;  %p10386_p0 = scmp.lt.u32.totalorder %s10377_s3, %s10773_s30 }
  0x9a   : > { %p10385_p13 = por %p10384_p12, %p10383_p11 }
  0x9b   : > { %p10381_p3 = pneg %p10380_p1 }
  0x9c   : > { %p10387_p5 = por %p10386_p0, %p10385_p13 }
  0x9e   : > { %p10388_p7 = pnand %p10387_p5, %p10381_p3 }
  0xa0   : > { %10391 = shalt.err (!%p10388_p7)
}
  0xa1   : > { %s10392_s6 = scalar_lea.vmem %s10779_s22, 16384  ;;  %s10496_s18 = smov [#allocation2]  }
  0xa2   : > { %p10393_p10 = scmp.ne.s32.totalorder %s10779_s22, %s10392_s6  ;;  %s10397_s10 = sshll.u32 %s10496_s18, 4  ;;  %s10398_s10 = int_to_ptr.vmem [resolvable:$false] %s10397_s10 }
  0xa3   : > { %s10399_s29 = scalar_lea.vmem %s10398_s10, 32768  ;;  %p10400_p6 = scmp.lt.s32.totalorder %s10779_s22, %s10398_s10 }
  0xa4   : > { %p10395_p1 = pnand %p10393_p10, %p10379_p8  ;;  %p10401_p11 = scmp.lt.s32.totalorder %s10399_s29, %s10392_s6 }
  0xa6   : > { %p10396_p9 = pneg %p10395_p1  ;;  %p10402_p12 = por %p10401_p11, %p10400_p6 }
  0xa8   : > { %p10403_p13 = pnand %p10402_p12, %p10396_p9 }
  0xaa   : > { %10406 = shalt.err (!%p10403_p13)
}
  0xab   : > { %s10497_s3 = smov 256   ;;  %s10498_s17 = smov 16  }
  0xac   : > { %9081 = dma.hbm_to_vmem [thread:$0]  (!%p10775_p4), %s10773_s30, 16384, %s10779_s22, %s10781_s13, %s10497_s3, %s10497_s3, %s10498_s17  }
  0xad   : > { %p14226_p8 = scmp.ne.s32.totalorder %s14217_s15, 0 }
  0xaf   : > { %485 = sbr.rel (%p14226_p8) target bundleno = 2980 (0xba4), region = 72 }
  0xb6   : > { %s10812_s19 = sand.u32 1, %s10477_s26  }
  0xb7   : > { %s8052_s21 = sshll.u32 %s10812_s19, 10  ;;  %s488_s6 = scalar_lea.sflag [#allocation3], %s10812_s19 }
  0xb8   : > { %s10816_s18 = scalar_lea.vmem [#allocation2], %s8052_s21 }
  0xb9   : > { %10452 = dma.done.wait (%p10755_p2), %s488_s6, 16384  }
  0xba   : > { %10454 = vsyncadd (%p10755_p2), %s488_s6, 4294950912  ;;  %p14227_p6 = scmp.eq.s32.totalorder %s10594_s14, 0 }
  0xbc   : > { %10456 = dma.done.wait (%p14227_p6), [#allocation6], 4096   ;;  %p14228_p9 = pmov %p14227_p6 }
  0xbd   : > { %p14229_p4 = pmov %p14227_p6 }
  0xbe   : > { %10458 = vsyncadd (%p14228_p9), [#allocation6], 4294963200 }
  0xbf   : > { %10460 = dma.done.wait (%p14229_p4), [#allocation9], 4096   ;;  %p14230_p3 = pmov %p14229_p4 }
  0xc1   : > { %10462 = vsyncadd (%p14230_p3), [#allocation9], 4294963200  ;;  %p14231_p0 = pmov %p14230_p3 }
  0xc3   : > { %10464 = dma.done.wait (%p14231_p0), [#allocation12], 1024   ;;  %p14232_p5 = pmov %p14231_p0 }
  0xc4   : > { %v14104_v0 = vmov 0   ;;  %s8059_s15 = sshll.u32 %s10594_s14, 6  ;;  %v9146_v1 = vld [vmem:[#allocation5 + $0x4] ss:$8 sps:$4 sm:$0xff]   ;;  %v9148_v2 = vld [vmem:[#allocation5] ss:$8 sps:$4 sm:$0xff]  }
  0xc5   : > { %10466 = vsyncadd (%p14232_p5), [#allocation12], 4294966272  ;;  %973 = vmatprep.mubr.bf16.mxu0 %v14104_v0  ;;  %9144 = vset.pattern.permute.xlu0 %v14104_v0  ;;  %p565_p2 = scmp.lt.s32.totalorder %s8059_s15, 127  ;;  %v9149_v3 = vld [vmem:[#allocation5 + $0x14] ss:$8 sps:$4 sm:$0xff]   ;;  %s14235_s22 = sld [smem:[#allocation106_spill]] }
  0xc6   : > { %9145 = vset.pattern.permute.xlu1 %v14104_v0  ;;  %941 = vmatprep.subr.bf16.mxu0 %v9146_v1  ;;  %v9151_v4 = vld [vmem:[#allocation5 + $0x10] ss:$8 sps:$4 sm:$0xff]   ;;  %v9152_v5 = vld [vmem:[#allocation5 + $0x24] ss:$8 sps:$4 sm:$0xff]   ;;  %v9154_v6 = vld [vmem:[#allocation5 + $0x20] ss:$8 sps:$4 sm:$0xff]  }
  0xc7   : > { %s14468_s15 = smov (!%p565_p2, %s8059_s15), 127  ;;  %942 = vmatpush1.bf16.msra.mxu0 %v9148_v2  ;;  %v9155_v7 = vld [vmem:[#allocation5 + $0x34] ss:$8 sps:$4 sm:$0xff]   ;;  %v9157_v8 = vld [vmem:[#allocation5 + $0x30] ss:$8 sps:$4 sm:$0xff]   ;;  %s14457_s3 = sld [smem:[#allocation109_spill]] }
  0xc8   : > { %943 = vmatprep.subr.bf16.mxu0 %v9149_v3  ;;  %s8060_s23 = sshll.u32 %s14468_s15, 2  ;;  %v9158_v9 = vld [vmem:[#allocation5 + $0x44] ss:$8 sps:$4 sm:$0xff]   ;;  %v9160_v10 = vld [vmem:[#allocation5 + $0x40] ss:$8 sps:$4 sm:$0xff]   ;;  %s8062_s6 = sshll.u32 %s14468_s15, 3 }
  0xc9   : > { %s10844_s20 = scalar_lea.vmem %s14085_s0, %s8060_s23  ;;  %v9161_v11 = vld [vmem:[#allocation5 + $0x54] ss:$8 sps:$4 sm:$0xff]   ;;  %v9163_v12 = vld [vmem:[#allocation5 + $0x50] ss:$8 sps:$4 sm:$0xff]   ;;  %v9164_v13 = vld [vmem:[#allocation5 + $0x64] ss:$8 sps:$4 sm:$0xff]  }
  0xca   : > { %v9166_v14 = vld [vmem:[#allocation5 + $0x60] ss:$8 sps:$4 sm:$0xff]   ;;  %v9167_v15 = vld [vmem:[#allocation5 + $0x74] ss:$8 sps:$4 sm:$0xff]   ;;  %v9169_v16 = vld [vmem:[#allocation5 + $0x70] ss:$8 sps:$4 sm:$0xff]  }
  0xcb   : > { %944 = vmatpush1.bf16.msra.mxu0 %v9151_v4  ;;  %v9170_v17 = vld [vmem:[%s10844_s20] sm:$0xff]   ;;  %v9171_v20 = vld [vmem:[%s10844_s20 + $0x8] sm:$0xff]   ;;  %v9172_v21 = vld [vmem:[%s10844_s20 + $0x10] sm:$0xff]   ;;  %s11596_s13 = scalar_lea.vmem %s14235_s22, %s8062_s6  ;;  %s8058_s17 = sshll.u32 %s10812_s19, 3 }
  0xcc   : > { %945 = vmatprep.subr.bf16.mxu0 %v9152_v5  ;;  %v9187_v18 = vld [vmem:[%s14090_s5] ss:$8 sps:$4 sm:$0xff]   ;;  %v9189_v19 = vld [vmem:[%s14090_s5 + $0x4] ss:$8 sps:$4 sm:$0xff]   ;;  %v9192_v22 = vld [vmem:[%s14090_s5 + $0x10] ss:$8 sps:$4 sm:$0xff]  }
  0xcd   : > { %8494 = vmatprep.subr.bf16.mxu1 %v9189_v19  ;;  %v9194_v23 = vld [vmem:[%s14090_s5 + $0x14] ss:$8 sps:$4 sm:$0xff]   ;;  %v9174_v25 = vld [vmem:[%s10844_s20 + $0x20] sm:$0xff]   ;;  %v9175_v28 = vld [vmem:[%s10844_s20 + $0x28] sm:$0xff]   ;;  %s14458_s23 = sld [smem:[#allocation110_spill]]  ;;  %s8395_s30 = sshll.u32 %s10594_s14, 7 }
  0xce   : > { %8510 = vmatpush1.bf16.msra.mxu1 %v9187_v18  ;;  %v9173_v24 = vld [vmem:[%s10844_s20 + $0x18] sm:$0xff]   ;;  %v9197_v26 = vld [vmem:[%s14090_s5 + $0x20] ss:$8 sps:$4 sm:$0xff]   ;;  %v9199_v27 = vld [vmem:[%s14090_s5 + $0x24] ss:$8 sps:$4 sm:$0xff]   ;;  %s563_s22 = scalar_lea.vmem [#allocation13], %s8058_s17 }
  0xcf   : > { %946 = vmatpush1.bf16.msra.mxu0 %v9154_v6  ;;  %8495 = vmatprep.subr.bf16.mxu1 %v9194_v23  ;;  %v9176_v29 = vld [vmem:[%s10844_s20 + $0x30] sm:$0xff]   ;;  %v9177_v32 = vld [vmem:[%s10844_s20 + $0x38] sm:$0xff]   ;;  %v9178_v33 = vld [vmem:[%s10844_s20 + $0x40] sm:$0xff]   ;;  %p14460_p10 = scmp.ne.s32.totalorder %s14223_s2, 0  ;;  %s10502_s17 = smov [#allocation13]  }
  0xd0   : > { %947 = vmatprep.subr.bf16.mxu0 %v9155_v7  ;;  %v9202_v30 = vld [vmem:[%s14090_s5 + $0x30] ss:$8 sps:$4 sm:$0xff]   ;;  %v9204_v31 = vld [vmem:[%s14090_s5 + $0x34] ss:$8 sps:$4 sm:$0xff]   ;;  %v9207_v34 = vld [vmem:[%s14090_s5 + $0x40] ss:$8 sps:$4 sm:$0xff]  }
  0xd1   : > { %v9209_v35 = vld [vmem:[%s14090_s5 + $0x44] ss:$8 sps:$4 sm:$0xff]   ;;  %v9180_v37 = vld [vmem:[%s10844_s20 + $0x50] sm:$0xff]   ;;  %v9181_v38 = vld [vmem:[%s10844_s20 + $0x58] sm:$0xff]   ;;  %s10411_s21 = sshll.u32 %s10502_s17, 4  ;;  %s10412_s21 = int_to_ptr.vmem [resolvable:$false] %s10411_s21 }
  0xd2   : > { %8511 = vmatpush1.bf16.msra.mxu1 %v9192_v22  ;;  %v9179_v36 = vld [vmem:[%s10844_s20 + $0x48] sm:$0xff]   ;;  %v9214_v39 = vld [vmem:[%s14090_s5 + $0x54] ss:$8 sps:$4 sm:$0xff]   ;;  %v9212_v40 = vld [vmem:[%s14090_s5 + $0x50] ss:$8 sps:$4 sm:$0xff]   ;;  %s10413_s6 = scalar_lea.vmem %s10412_s21, 256 }
  0xd3   : > { %948 = vmatpush1.bf16.msra.mxu0 %v9157_v8  ;;  %8496 = vmatprep.subr.bf16.mxu1 %v9199_v27  ;;  %v9218_v41 = vld [vmem:[%s14090_s5 + $0x64] ss:$8 sps:$4 sm:$0xff]   ;;  %v9216_v42 = vld [vmem:[%s14090_s5 + $0x60] ss:$8 sps:$4 sm:$0xff]   ;;  %v9221_v44 = vld [vmem:[%s14090_s5 + $0x74] ss:$8 sps:$4 sm:$0xff]  }
  0xd4   : > { %949 = vmatprep.subr.bf16.mxu0 %v9158_v9  ;;  %v9182_v43 = vld [vmem:[%s10844_s20 + $0x60] sm:$0xff]   ;;  %v9219_v45 = vld [vmem:[%s14090_s5 + $0x70] ss:$8 sps:$4 sm:$0xff]   ;;  %v9183_v48 = vld [vmem:[%s10844_s20 + $0x68] sm:$0xff]  }
  0xd5   : > { %v9225_v46 = vld [vmem:[%s14090_s5 + $0x84] ss:$8 sps:$4 sm:$0xff]   ;;  %v9223_v47 = vld [vmem:[%s14090_s5 + $0x80] ss:$8 sps:$4 sm:$0xff]   ;;  %v9228_v49 = vld [vmem:[%s14090_s5 + $0x94] ss:$8 sps:$4 sm:$0xff]  }
  0xd6   : > { %8512 = vmatpush1.bf16.msra.mxu1 %v9197_v26  ;;  %v9226_v50 = vld [vmem:[%s14090_s5 + $0x90] ss:$8 sps:$4 sm:$0xff]   ;;  %v9232_v51 = vld [vmem:[%s14090_s5 + $0xa4] ss:$8 sps:$4 sm:$0xff]   ;;  %v9230_v52 = vld [vmem:[%s14090_s5 + $0xa0] ss:$8 sps:$4 sm:$0xff]  }
  0xd7   : > { %950 = vmatpush1.bf16.msra.mxu0 %v9160_v10  ;;  %8497 = vmatprep.subr.bf16.mxu1 %v9204_v31  ;;  %v9184_v53 = vld [vmem:[%s10844_s20 + $0x70] sm:$0xff]   ;;  %v9239_v56 = vld [vmem:[%s14090_s5 + $0xc4] ss:$8 sps:$4 sm:$0xff]   ;;  %v9237_v57 = vld [vmem:[%s14090_s5 + $0xc0] ss:$8 sps:$4 sm:$0xff]  }
  0xd8   : > { %951 = vmatprep.subr.bf16.mxu0 %v9161_v11  ;;  %v9235_v54 = vld [vmem:[%s14090_s5 + $0xb4] ss:$8 sps:$4 sm:$0xff]   ;;  %v9233_v55 = vld [vmem:[%s14090_s5 + $0xb0] ss:$8 sps:$4 sm:$0xff]   ;;  %v9246_v61 = vld [vmem:[%s14090_s5 + $0xe4] ss:$8 sps:$4 sm:$0xff]  }
  0xd9   : > { %v9185_v58 = vld [vmem:[%s10844_s20 + $0x78] sm:$0xff]   ;;  %v9244_v62 = vld [vmem:[%s14090_s5 + $0xe0] ss:$8 sps:$4 sm:$0xff]   ;;  %v9191_v4 = vld [vmem:[%s10844_s20 + $0x90] sm:$0xff]  }
  0xda   : > { %8513 = vmatpush1.bf16.msra.mxu1 %v9202_v30  ;;  %v9242_v59 = vld [vmem:[%s14090_s5 + $0xd4] ss:$8 sps:$4 sm:$0xff]   ;;  %v9240_v60 = vld [vmem:[%s14090_s5 + $0xd0] ss:$8 sps:$4 sm:$0xff]   ;;  %v9186_v2 = vld [vmem:[%s10844_s20 + $0x80] sm:$0xff]  }
  0xdb   : > { %952 = vmatpush1.bf16.msra.mxu0 %v9163_v12  ;;  %8498 = vmatprep.subr.bf16.mxu1 %v9209_v35  ;;  %v9249_v63 = vld [vmem:[%s14090_s5 + $0xf4] ss:$8 sps:$4 sm:$0xff]   ;;  %v9247_v1 = vld [vmem:[%s14090_s5 + $0xf0] ss:$8 sps:$4 sm:$0xff]   ;;  %v9190_v3 = vld [vmem:[%s10844_s20 + $0x88] sm:$0xff]   ;;  %v659_v12 = vlaneseq }
  0xdc   : > { %953 = vmatprep.subr.bf16.mxu0 %v9164_v13  ;;  %v9195_v5 = vld [vmem:[%s10844_s20 + $0x98] sm:$0xff]   ;;  %v9196_v6 = vld [vmem:[%s10844_s20 + $0xa0] sm:$0xff]   ;;  %v9200_v7 = vld [vmem:[%s10844_s20 + $0xa8] sm:$0xff]  }
  0xdd   : > { %v9201_v8 = vld [vmem:[%s10844_s20 + $0xb0] sm:$0xff]   ;;  %v9205_v9 = vld [vmem:[%s10844_s20 + $0xb8] sm:$0xff]   ;;  %v9206_v10 = vld [vmem:[%s10844_s20 + $0xc0] sm:$0xff]   ;;  %v660_v13 = vshrl.u32 %v659_v12, 7 }
  0xde   : > { %8514 = vmatpush1.bf16.msra.mxu1 %v9207_v34  ;;  %v9210_v11 = vld [vmem:[%s10844_s20 + $0xc8] sm:$0xff]  }
  0xdf   : > { %954 = vmatpush1.bf16.msra.mxu0 %v9166_v14  ;;  %8499 = vmatprep.subr.bf16.mxu1 %v9214_v39  ;;  %v9211_v14 = vld [vmem:[%s10844_s20 + $0xd0] sm:$0xff]  }
  0xe0   : > { %955 = vmatprep.subr.bf16.mxu0 %v9167_v15  ;;  %v10995_v15 = vsub.s32 0, %v660_v13 }
  0xe2   : > { %8515 = vmatpush1.bf16.msra.mxu1 %v9212_v40 }
  0xe3   : > { %956 = vmatpush1.bf16.msra.mxu0 %v9169_v16  ;;  %8500 = vmatprep.subr.bf16.mxu1 %v9218_v41  ;;  %v657_v16 = vld [vmem:[%s14089_s4] sm:$0x3] }
  0xe4   : > { %1678 = vmatprep.subr.bf16.mxu0 %v9189_v19 }
  0xe6   : > { %974 = vmatmul.mubr.bf16.vlgmr.msra.gmra.mrb[0].mxu0 %v9170_v17  ;;  %8516 = vmatpush1.bf16.msra.mxu1 %v9216_v42  ;;  %v11000_v17 = vsub.s32 1, %v660_v13 }
  0xe7   : > { %983 = vmatprep.mubr.bf16.mxu0 %v14104_v0  ;;  %1679 = vmatpush1.bf16.msra.mxu0 %v9187_v18  ;;  %v11004_v18 = vrot.slane %v657_v16, %v10995_v15 }
  0xe8   : > { %1680 = vmatprep.subr.bf16.mxu0 %v9194_v23  ;;  %8501 = vmatprep.subr.bf16.mxu1 %v9221_v44  ;;  %14233 = vst [vmem:[#allocation19_spill] sm:$0xff] %v11000_v17 }
  0xea   : > { %8517 = vmatpush1.bf16.msra.mxu1 %v9219_v45 }
  0xeb   : > { %1681 = vmatpush1.bf16.msra.mxu0 %v9192_v22  ;;  %8502 = vmatprep.subr.bf16.mxu1 %v9225_v46  ;;  %v9215_v22 = vld [vmem:[%s10844_s20 + $0xd8] sm:$0xff]  }
  0xec   : > { %1682 = vmatprep.subr.bf16.mxu0 %v9199_v27 }
  0xee   : > { %984 = vmatmul.mubr.bf16.gmra.mrb[4].mxu0 %v9171_v20  ;;  %8518 = vmatpush1.bf16.msra.mxu1 %v9223_v47  ;;  %v11007_v20 = vrot.slane %v657_v16, %v11000_v17 }
  0xef   : > { %993 = vmatprep.mubr.bf16.mxu0 %v14104_v0  ;;  %1683 = vmatpush1.bf16.msra.mxu0 %v9197_v26 }
  0xf0   : > { %1684 = vmatprep.subr.bf16.mxu0 %v9204_v31  ;;  %8503 = vmatprep.subr.bf16.mxu1 %v9228_v49 }
  0xf2   : > { %8519 = vmatpush1.bf16.msra.mxu1 %v9226_v50 }
  0xf3   : > { %1685 = vmatpush1.bf16.msra.mxu0 %v9202_v30  ;;  %8504 = vmatprep.subr.bf16.mxu1 %v9232_v51 }
  0xf4   : > { %1686 = vmatprep.subr.bf16.mxu0 %v9209_v35 }
  0xf6   : > { %994 = vmatmul.mubr.bf16.gmra.mrb[8].mxu0 %v9172_v21  ;;  %8520 = vmatpush1.bf16.msra.mxu1 %v9230_v52 }
  0xf7   : > { %1003 = vmatprep.mubr.bf16.mxu0 %v14104_v0  ;;  %1687 = vmatpush1.bf16.msra.mxu0 %v9207_v34 }
  0xf8   : > { %1688 = vmatprep.subr.bf16.mxu0 %v9214_v39  ;;  %8505 = vmatprep.subr.bf16.mxu1 %v9235_v54 }
  0xfa   : > { %8521 = vmatpush1.bf16.msra.mxu1 %v9233_v55 }
  0xfb   : > { %1689 = vmatpush1.bf16.msra.mxu0 %v9212_v40  ;;  %8506 = vmatprep.subr.bf16.mxu1 %v9239_v56 }
  0xfc   : > { %1690 = vmatprep.subr.bf16.mxu0 %v9218_v41 }
  0xfe   : > { %1004 = vmatmul.mubr.bf16.gmra.mrb[12].mxu0 %v9173_v24  ;;  %8522 = vmatpush1.bf16.msra.mxu1 %v9237_v57 }
  0xff   : > { %1013 = vmatprep.mubr.bf16.mxu0 %v14104_v0  ;;  %1691 = vmatpush1.bf16.msra.mxu0 %v9216_v42 }
 0x100   : > { %1692 = vmatprep.subr.bf16.mxu0 %v9221_v44  ;;  %8507 = vmatprep.subr.bf16.mxu1 %v9242_v59  ;;  %v9229_v44 = vld [vmem:[%s10844_s20 + $0xe8] sm:$0xff]  }
 0x102   : > { %8523 = vmatpush1.bf16.msra.mxu1 %v9240_v60 }
 0x103   : > { %1693 = vmatpush1.bf16.msra.mxu0 %v9219_v45  ;;  %8508 = vmatprep.subr.bf16.mxu1 %v9246_v61 }
 0x104   : > { %1694 = vmatprep.subr.bf16.mxu0 %v9225_v46 }
 0x106   : > { %1014 = vmatmul.mubr.bf16.gmra.mrb[16].mxu0 %v9174_v25  ;;  %8524 = vmatpush1.bf16.msra.mxu1 %v9244_v62 }
 0x107   : > { %1023 = vmatprep.mubr.bf16.mxu0 %v14104_v0  ;;  %1695 = vmatpush1.bf16.msra.mxu0 %v9223_v47 }
 0x108   : > { %1696 = vmatprep.subr.bf16.mxu0 %v9228_v49  ;;  %8509 = vmatprep.subr.bf16.mxu1 %v9249_v63 }
 0x10a   : > { %8525 = vmatpush1.bf16.msra.mxu1 %v9247_v1 }
 0x10b   : > { %1697 = vmatpush1.bf16.msra.mxu0 %v9226_v50 }
 0x10c   : > { %1698 = vmatprep.subr.bf16.mxu0 %v9232_v51 }
 0x10e   : > { %1024 = vmatmul.mubr.bf16.gmra.mrb[20].mxu0 %v9175_v28 }
 0x10f   : > { %1033 = vmatprep.mubr.bf16.mxu0 %v14104_v0  ;;  %1699 = vmatpush1.bf16.msra.mxu0 %v9230_v52 }
 0x110   : > { %1700 = vmatprep.subr.bf16.mxu0 %v9235_v54 }
 0x113   : > { %1701 = vmatpush1.bf16.msra.mxu0 %v9233_v55  ;;  %v9236_v55 = vld [vmem:[%s10844_s20 + $0xf0] sm:$0xff]  }
 0x114   : > { %1702 = vmatprep.subr.bf16.mxu0 %v9239_v56 }
 0x116   : > { %1034 = vmatmul.mubr.bf16.gmra.mrb[24].mxu0 %v9176_v29 }
 0x117   : > { %1043 = vmatprep.mubr.bf16.mxu0 %v14104_v0  ;;  %1703 = vmatpush1.bf16.msra.mxu0 %v9237_v57 }
 0x118   : > { %1704 = vmatprep.subr.bf16.mxu0 %v9242_v59 }
 0x11b   : > { %1705 = vmatpush1.bf16.msra.mxu0 %v9240_v60 }
 0x11c   : > { %1706 = vmatprep.subr.bf16.mxu0 %v9246_v61 }
 0x11e   : > { %1044 = vmatmul.mubr.bf16.gmra.mrb[28].mxu0 %v9177_v32 }
 0x11f   : > { %1053 = vmatprep.mubr.bf16.mxu0 %v14104_v0  ;;  %1707 = vmatpush1.bf16.msra.mxu0 %v9244_v62 }
 0x120   : > { %1708 = vmatprep.subr.bf16.mxu0 %v9249_v63 }
 0x123   : > { %1709 = vmatpush1.bf16.msra.mxu0 %v9247_v1 }
 0x126   : > { %1054 = vmatmul.mubr.bf16.gmra.mrb[32].mxu0 %v9178_v33  ;;  %v9222_v33 = vld [vmem:[%s10844_s20 + $0xe0] sm:$0xff]  }
 0x127   : > { %1063 = vmatprep.mubr.bf16.mxu0 %v14104_v0 }
 0x12e   : > { %1064 = vmatmul.mubr.bf16.gmra.mrb[36].mxu0 %v9179_v36 }
 0x12f   : > { %1073 = vmatprep.mubr.bf16.mxu0 %v14104_v0 }
 0x136   : > { %1074 = vmatmul.mubr.bf16.gmra.mrb[40].mxu0 %v9180_v37 }
 0x137   : > { %1083 = vmatprep.mubr.bf16.mxu0 %v14104_v0 }
 0x13e   : > { %1084 = vmatmul.mubr.bf16.gmra.mrb[44].mxu0 %v9181_v38 }
 0x13f   : > { %1093 = vmatprep.mubr.bf16.mxu0 %v14104_v0 }
 0x146   : > { %1094 = vmatmul.mubr.bf16.gmra.mrb[48].mxu0 %v9182_v43 }
 0x147   : > { %1103 = vmatprep.mubr.bf16.mxu0 %v14104_v0 }
 0x14e   : > { %1104 = vmatmul.mubr.bf16.gmra.mrb[52].mxu0 %v9183_v48 }
 0x14f   : > { %1113 = vmatprep.mubr.bf16.mxu0 %v14104_v0 }
 0x156   : > { %1114 = vmatmul.mubr.bf16.gmra.mrb[56].mxu0 %v9184_v53 }
 0x157   : > { %1123 = vmatprep.mubr.bf16.mxu0 %v14104_v0 }
 0x15e   : > { %1124 = vmatmul.mubr.bf16.gmra.mrb[60].mxu0 %v9185_v58 }
 0x15f   : > { %1133 = vmatprep.mubr.bf16.mxu0 %v14104_v0 }
 0x166   : > { %1134 = vmatmul.mubr.bf16.gmra.mrb[64].mxu0 %v9186_v2 }
 0x167   : > { %1143 = vmatprep.mubr.bf16.mxu0 %v14104_v0 }
 0x16e   : > { %1144 = vmatmul.mubr.bf16.gmra.mrb[68].mxu0 %v9190_v3  ;;  %v9243_v3 = vld [vmem:[%s10844_s20 + $0xf8] sm:$0xff]   ;;  %s14234_s20 = sld [smem:[#allocation108_spill]] }
 0x16f   : > { %1153 = vmatprep.mubr.bf16.mxu0 %v14104_v0 }
 0x176   : > { %1154 = vmatmul.mubr.bf16.gmra.mrb[72].mxu0 %v9191_v4 }
 0x177   : > { %1163 = vmatprep.mubr.bf16.mxu0 %v14104_v0 }
 0x17e   : > { %1164 = vmatmul.mubr.bf16.gmra.mrb[76].mxu0 %v9195_v5 }
 0x17f   : > { %1173 = vmatprep.mubr.bf16.mxu0 %v14104_v0 }
 0x186   : > { %1174 = vmatmul.mubr.bf16.gmra.mrb[80].mxu0 %v9196_v6 }
 0x187   : > { %1183 = vmatprep.mubr.bf16.mxu0 %v14104_v0 }
 0x18e   : > { %1184 = vmatmul.mubr.bf16.gmra.mrb[84].mxu0 %v9200_v7 }
 0x18f   : > { %1193 = vmatprep.mubr.bf16.mxu0 %v14104_v0 }
 0x196   : > { %1194 = vmatmul.mubr.bf16.gmra.mrb[88].mxu0 %v9201_v8 }
 0x197   : > { %1203 = vmatprep.mubr.bf16.mxu0 %v14104_v0 }
 0x19e   : > { %1204 = vmatmul.mubr.bf16.gmra.mrb[92].mxu0 %v9205_v9 }
 0x19f   : > { %1213 = vmatprep.mubr.bf16.mxu0 %v14104_v0 }
 0x1a6   : > { %1214 = vmatmul.mubr.bf16.gmra.mrb[96].mxu0 %v9206_v10 }
 0x1a7   : > { %1223 = vmatprep.mubr.bf16.mxu0 %v14104_v0 }
 0x1ae   : > { %1224 = vmatmul.mubr.bf16.gmra.mrb[100].mxu0 %v9210_v11 }
 0x1af   : > { %1233 = vmatprep.mubr.bf16.mxu0 %v14104_v0 }
 0x1b6   : > { %1234 = vmatmul.mubr.bf16.gmra.mrb[104].mxu0 %v9211_v14 }
 0x1b7   : > { %1243 = vmatprep.mubr.bf16.mxu0 %v14104_v0 }
 0x1b9   : > { %v975_v19 = vpop.f32.mrb[0].mxu0 }
 0x1ba   : > { %v977_v21 = vpop.f32.mrb[1].mxu0  ;;  %v11011_v24 = vadd.f32 %v975_v19, %v11004_v18 }
 0x1bb   : > { %v979_v23 = vpop.f32.mrb[2].mxu0  ;;  %v978_v27 = vadd.f32 %v977_v21, %v11007_v20 }
 0x1bc   : > { %v11014_v25 = vadd.f32 %v979_v23, %v11004_v18  ;;  %v981_v26 = vpop.f32.mrb[3].mxu0 }
 0x1bd   : > { %v982_v28 = vadd.f32 %v981_v26, %v11007_v20 }
 0x1be   : > { %v1294_v29 = vpack.c.bf16 %v11014_v25, %v11011_v24  ;;  %1244 = vmatmul.mubr.bf16.gmra.mrb[108].mxu0 %v9215_v22 }
 0x1bf   : > { %1253 = vmatprep.mubr.bf16.mxu0 %v14104_v0  ;;  %v1295_v30 = vpack.c.bf16 %v982_v28, %v978_v27 }
 0x1c1   : > { %v985_v31 = vpop.f32.mrb[4].mxu0 }
 0x1c2   : > { %v987_v32 = vpop.f32.mrb[5].mxu0  ;;  %v11023_v35 = vadd.f32 %v985_v31, %v11004_v18 }
 0x1c3   : > { %v989_v34 = vpop.f32.mrb[6].mxu0  ;;  %v988_v38 = vadd.f32 %v987_v32, %v11007_v20 }
 0x1c4   : > { %v11026_v36 = vadd.f32 %v989_v34, %v11004_v18  ;;  %v991_v37 = vpop.f32.mrb[7].mxu0 }
 0x1c5   : > { %v992_v39 = vadd.f32 %v991_v37, %v11007_v20 }
 0x1c6   : > { %1254 = vmatmul.mubr.bf16.gmra.mrb[112].mxu0 %v9222_v33  ;;  %v1296_v40 = vpack.c.bf16 %v11026_v36, %v11023_v35 }
 0x1c7   : > { %1263 = vmatprep.mubr.bf16.mxu0 %v14104_v0  ;;  %v1297_v41 = vpack.c.bf16 %v992_v39, %v988_v38 }
 0x1c9   : > { %v995_v42 = vpop.f32.mrb[8].mxu0 }
 0x1ca   : > { %v997_v43 = vpop.f32.mrb[9].mxu0  ;;  %v11035_v46 = vadd.f32 %v995_v42, %v11004_v18 }
 0x1cb   : > { %v999_v45 = vpop.f32.mrb[10].mxu0  ;;  %v998_v49 = vadd.f32 %v997_v43, %v11007_v20 }
 0x1cc   : > { %v11038_v47 = vadd.f32 %v999_v45, %v11004_v18  ;;  %v1001_v48 = vpop.f32.mrb[11].mxu0 }
 0x1cd   : > { %v1002_v50 = vadd.f32 %v1001_v48, %v11007_v20 }
 0x1ce   : > { %1264 = vmatmul.mubr.bf16.gmra.mrb[116].mxu0 %v9229_v44  ;;  %v1298_v51 = vpack.c.bf16 %v11038_v47, %v11035_v46 }
 0x1cf   : > { %1273 = vmatprep.mubr.bf16.mxu0 %v14104_v0  ;;  %v1299_v52 = vpack.c.bf16 %v1002_v50, %v998_v49 }
 0x1d1   : > { %v1005_v53 = vpop.f32.mrb[12].mxu0 }
 0x1d2   : > { %v1007_v54 = vpop.f32.mrb[13].mxu0  ;;  %v11047_v57 = vadd.f32 %v1005_v53, %v11004_v18 }
 0x1d3   : > { %v1009_v56 = vpop.f32.mrb[14].mxu0  ;;  %v1008_v60 = vadd.f32 %v1007_v54, %v11007_v20 }
 0x1d4   : > { %v11050_v58 = vadd.f32 %v1009_v56, %v11004_v18  ;;  %v1011_v59 = vpop.f32.mrb[15].mxu0 }
 0x1d5   : > { %v1012_v61 = vadd.f32 %v1011_v59, %v11007_v20 }
 0x1d6   : > { %1274 = vmatmul.mubr.bf16.gmra.mrb[120].mxu0 %v9236_v55  ;;  %v1300_v62 = vpack.c.bf16 %v11050_v58, %v11047_v57 }
 0x1d7   : > { %1283 = vmatprep.mubr.bf16.mxu0 %v14104_v0  ;;  %v1301_v63 = vpack.c.bf16 %v1012_v61, %v1008_v60 }
 0x1d9   : > { %v1015_v1 = vpop.f32.mrb[16].mxu0 }
 0x1da   : > { %v1017_v2 = vpop.f32.mrb[17].mxu0  ;;  %v11059_v5 = vadd.f32 %v1015_v1, %v11004_v18 }
 0x1db   : > { %v1019_v4 = vpop.f32.mrb[18].mxu0  ;;  %v1018_v8 = vadd.f32 %v1017_v2, %v11007_v20 }
 0x1dc   : > { %v11062_v6 = vadd.f32 %v1019_v4, %v11004_v18  ;;  %v1021_v7 = vpop.f32.mrb[19].mxu0 }
 0x1dd   : > { %v1022_v9 = vadd.f32 %v1021_v7, %v11007_v20 }
 0x1de   : > { %1284 = vmatmul.mubr.bf16.gmra.mrb[124].mxu0 %v9243_v3  ;;  %v1302_v10 = vpack.c.bf16 %v11062_v6, %v11059_v5 }
 0x1df   : > { %1710 = vmatprep.mubr.bf16.mxu0 %v1295_v30  ;;  %v1303_v11 = vpack.c.bf16 %v1022_v9, %v1018_v8 }
 0x1e1   : > { %v1025_v12 = vpop.f32.mrb[20].mxu0 }
 0x1e2   : > { %v1027_v13 = vpop.f32.mrb[21].mxu0  ;;  %v11069_v16 = vadd.f32 %v1025_v12, %v11004_v18 }
 0x1e3   : > { %v1029_v14 = vpop.f32.mrb[22].mxu0  ;;  %v1028_v22 = vadd.f32 %v1027_v13, %v11007_v20 }
 0x1e4   : > { %v11072_v19 = vadd.f32 %v1029_v14, %v11004_v18  ;;  %v1031_v21 = vpop.f32.mrb[23].mxu0 }
 0x1e5   : > { %v1032_v23 = vadd.f32 %v1031_v21, %v11007_v20 }
 0x1e6   : > { %1711 = vmatmul.mubr.bf16.vlgmr.msra.gmra.mrb[128].mxu0 %v1294_v29  ;;  %v1304_v26 = vpack.c.bf16 %v11072_v19, %v11069_v16 }
 0x1e7   : > { %1720 = vmatprep.mubr.bf16.mxu0 %v1297_v41  ;;  %v1305_v27 = vpack.c.bf16 %v1032_v23, %v1028_v22 }
 0x1e9   : > { %v1035_v28 = vpop.f32.mrb[24].mxu0 }
 0x1ea   : > { %v1037_v30 = vpop.f32.mrb[25].mxu0  ;;  %v11082_v32 = vadd.f32 %v1035_v28, %v11004_v18 }
 0x1eb   : > { %v1039_v31 = vpop.f32.mrb[26].mxu0  ;;  %v1038_v35 = vadd.f32 %v1037_v30, %v11007_v20 }
 0x1ec   : > { %v11085_v33 = vadd.f32 %v1039_v31, %v11004_v18  ;;  %v1041_v34 = vpop.f32.mrb[27].mxu0 }
 0x1ed   : > { %v1042_v24 = vadd.f32 %v1041_v34, %v11007_v20 }
 0x1ee   : > { %1721 = vmatmul.mubr.bf16.gmra.mrb[132].mxu0 %v1296_v40  ;;  %v1306_v25 = vpack.c.bf16 %v11085_v33, %v11082_v32 }
 0x1ef   : > { %1730 = vmatprep.mubr.bf16.mxu0 %v1299_v52  ;;  %v1307_v29 = vpack.c.bf16 %v1042_v24, %v1038_v35 }
 0x1f1   : > { %v1045_v36 = vpop.f32.mrb[28].mxu0 }
 0x1f2   : > { %v1047_v37 = vpop.f32.mrb[29].mxu0  ;;  %v11092_v39 = vadd.f32 %v1045_v36, %v11004_v18 }
 0x1f3   : > { %v1049_v38 = vpop.f32.mrb[30].mxu0  ;;  %v1048_v43 = vadd.f32 %v1047_v37, %v11007_v20 }
 0x1f4   : > { %v11095_v41 = vadd.f32 %v1049_v38, %v11004_v18  ;;  %v1051_v42 = vpop.f32.mrb[31].mxu0 }
 0x1f5   : > { %v1052_v44 = vadd.f32 %v1051_v42, %v11007_v20 }
 0x1f6   : > { %1731 = vmatmul.mubr.bf16.gmra.mrb[136].mxu0 %v1298_v51  ;;  %v1308_v40 = vpack.c.bf16 %v11095_v41, %v11092_v39 }
 0x1f7   : > { %1740 = vmatprep.mubr.bf16.mxu0 %v1301_v63  ;;  %v1309_v45 = vpack.c.bf16 %v1052_v44, %v1048_v43 }
 0x1f9   : > { %v1055_v46 = vpop.f32.mrb[32].mxu0 }
 0x1fa   : > { %v1057_v47 = vpop.f32.mrb[33].mxu0  ;;  %v11102_v49 = vadd.f32 %v1055_v46, %v11004_v18 }
 0x1fb   : > { %v1059_v48 = vpop.f32.mrb[34].mxu0  ;;  %v1058_v53 = vadd.f32 %v1057_v47, %v11007_v20 }
 0x1fc   : > { %v11105_v50 = vadd.f32 %v1059_v48, %v11004_v18  ;;  %v1061_v52 = vpop.f32.mrb[35].mxu0 }
 0x1fd   : > { %v1062_v54 = vadd.f32 %v1061_v52, %v11007_v20 }
 0x1fe   : > { %1741 = vmatmul.mubr.bf16.gmra.mrb[140].mxu0 %v1300_v62  ;;  %v1310_v51 = vpack.c.bf16 %v11105_v50, %v11102_v49 }
 0x1ff   : > { %1750 = vmatprep.mubr.bf16.mxu0 %v1303_v11  ;;  %v1311_v55 = vpack.c.bf16 %v1062_v54, %v1058_v53 }
 0x201   : > { %v1065_v56 = vpop.f32.mrb[36].mxu0 }
 0x202   : > { %v1067_v57 = vpop.f32.mrb[37].mxu0  ;;  %v11112_v59 = vadd.f32 %v1065_v56, %v11004_v18 }
 0x203   : > { %v1069_v58 = vpop.f32.mrb[38].mxu0  ;;  %v1068_v63 = vadd.f32 %v1067_v57, %v11007_v20 }
 0x204   : > { %v11115_v60 = vadd.f32 %v1069_v58, %v11004_v18  ;;  %v1071_v61 = vpop.f32.mrb[39].mxu0 }
 0x205   : > { %v1072_v1 = vadd.f32 %v1071_v61, %v11007_v20 }
 0x206   : > { %1751 = vmatmul.mubr.bf16.gmra.mrb[144].mxu0 %v1302_v10  ;;  %v1312_v62 = vpack.c.bf16 %v11115_v60, %v11112_v59 }
 0x207   : > { %1760 = vmatprep.mubr.bf16.mxu0 %v1305_v27  ;;  %v1313_v2 = vpack.c.bf16 %v1072_v1, %v1068_v63 }
 0x209   : > { %v1075_v3 = vpop.f32.mrb[40].mxu0 }
 0x20a   : > { %v1077_v4 = vpop.f32.mrb[41].mxu0  ;;  %v11122_v6 = vadd.f32 %v1075_v3, %v11004_v18 }
 0x20b   : > { %v1079_v5 = vpop.f32.mrb[42].mxu0  ;;  %v1078_v9 = vadd.f32 %v1077_v4, %v11007_v20 }
 0x20c   : > { %v11125_v7 = vadd.f32 %v1079_v5, %v11004_v18  ;;  %v1081_v8 = vpop.f32.mrb[43].mxu0 }
 0x20d   : > { %v1082_v11 = vadd.f32 %v1081_v8, %v11007_v20 }
 0x20e   : > { %1761 = vmatmul.mubr.bf16.gmra.mrb[148].mxu0 %v1304_v26  ;;  %v1314_v10 = vpack.c.bf16 %v11125_v7, %v11122_v6 }
 0x20f   : > { %1770 = vmatprep.mubr.bf16.mxu0 %v1307_v29  ;;  %v1315_v12 = vpack.c.bf16 %v1082_v11, %v1078_v9 }
 0x211   : > { %v1085_v13 = vpop.f32.mrb[44].mxu0 }
 0x212   : > { %v1087_v14 = vpop.f32.mrb[45].mxu0  ;;  %v1086_v19 = vadd.f32 %v1085_v13, %v11004_v18 }
 0x213   : > { %v1089_v16 = vpop.f32.mrb[46].mxu0  ;;  %v1088_v23 = vadd.f32 %v1087_v14, %v11007_v20 }
 0x214   : > { %v1090_v21 = vadd.f32 %v1089_v16, %v11004_v18  ;;  %v1091_v22 = vpop.f32.mrb[47].mxu0 }
 0x215   : > { %v1092_v27 = vadd.f32 %v1091_v22, %v11007_v20 }
 0x216   : > { %1771 = vmatmul.mubr.bf16.gmra.mrb[152].mxu0 %v1306_v25  ;;  %v1316_v28 = vpack.c.bf16 %v1090_v21, %v1086_v19 }
 0x217   : > { %1780 = vmatprep.mubr.bf16.mxu0 %v1309_v45  ;;  %v1317_v26 = vpack.c.bf16 %v1092_v27, %v1088_v23 }
 0x219   : > { %v1095_v30 = vpop.f32.mrb[48].mxu0  ;;  %1820 = vmatprep.mubr.bf16.mxu1 %v1317_v26 }
 0x21a   : > { %v1097_v31 = vpop.f32.mrb[49].mxu0  ;;  %1821 = vmatmul.mubr.bf16.vlgmr.msra.gmra.mrb[0].mxu1 %v1316_v28  ;;  %v1096_v33 = vadd.f32 %v1095_v30, %v11004_v18 }
 0x21b   : > { %v1099_v32 = vpop.f32.mrb[50].mxu0  ;;  %v1098_v24 = vadd.f32 %v1097_v31, %v11007_v20 }
 0x21c   : > { %v1100_v34 = vadd.f32 %v1099_v32, %v11004_v18  ;;  %v1101_v35 = vpop.f32.mrb[51].mxu0 }
 0x21d   : > { %v1102_v29 = vadd.f32 %v1101_v35, %v11007_v20 }
 0x21e   : > { %1781 = vmatmul.mubr.bf16.gmra.mrb[156].mxu0 %v1308_v40  ;;  %v1318_v36 = vpack.c.bf16 %v1100_v34, %v1096_v33 }
 0x21f   : > { %1790 = vmatprep.mubr.bf16.mxu0 %v1311_v55  ;;  %v1319_v25 = vpack.c.bf16 %v1102_v29, %v1098_v24 }
 0x221   : > { %v1105_v37 = vpop.f32.mrb[52].mxu0  ;;  %1830 = vmatprep.mubr.bf16.mxu1 %v1319_v25 }
 0x222   : > { %v1107_v38 = vpop.f32.mrb[53].mxu0  ;;  %1831 = vmatmul.mubr.bf16.gmra.mrb[4].mxu1 %v1318_v36  ;;  %v1106_v41 = vadd.f32 %v1105_v37, %v11004_v18 }
 0x223   : > { %v1109_v39 = vpop.f32.mrb[54].mxu0  ;;  %v1108_v44 = vadd.f32 %v1107_v38, %v11007_v20 }
 0x224   : > { %v1110_v42 = vadd.f32 %v1109_v39, %v11004_v18  ;;  %v1111_v43 = vpop.f32.mrb[55].mxu0 }
 0x225   : > { %v1112_v45 = vadd.f32 %v1111_v43, %v11007_v20 }
 0x226   : > { %1791 = vmatmul.mubr.bf16.gmra.mrb[160].mxu0 %v1310_v51  ;;  %v1320_v40 = vpack.c.bf16 %v1110_v42, %v1106_v41 }
 0x227   : > { %1800 = vmatprep.mubr.bf16.mxu0 %v1313_v2  ;;  %v1321_v46 = vpack.c.bf16 %v1112_v45, %v1108_v44 }
 0x229   : > { %v1115_v47 = vpop.f32.mrb[56].mxu0  ;;  %1840 = vmatprep.mubr.bf16.mxu1 %v1321_v46 }
 0x22a   : > { %v1117_v48 = vpop.f32.mrb[57].mxu0  ;;  %1841 = vmatmul.mubr.bf16.gmra.mrb[8].mxu1 %v1320_v40  ;;  %v1116_v53 = vadd.f32 %v1115_v47, %v11004_v18 }
 0x22b   : > { %v1119_v52 = vpop.f32.mrb[58].mxu0  ;;  %v1118_v56 = vadd.f32 %v1117_v48, %v11007_v20 }
 0x22c   : > { %v1120_v54 = vadd.f32 %v1119_v52, %v11004_v18  ;;  %v1121_v55 = vpop.f32.mrb[59].mxu0 }
 0x22d   : > { %v1122_v57 = vadd.f32 %v1121_v55, %v11007_v20 }
 0x22e   : > { %1801 = vmatmul.mubr.bf16.gmra.mrb[164].mxu0 %v1312_v62  ;;  %v1322_v49 = vpack.c.bf16 %v1120_v54, %v1116_v53 }
 0x22f   : > { %1810 = vmatprep.mubr.bf16.mxu0 %v1315_v12  ;;  %v1323_v50 = vpack.c.bf16 %v1122_v57, %v1118_v56 }
 0x231   : > { %v1125_v51 = vpop.f32.mrb[60].mxu0  ;;  %1850 = vmatprep.mubr.bf16.mxu1 %v1323_v50 }
 0x232   : > { %v1127_v58 = vpop.f32.mrb[61].mxu0  ;;  %1851 = vmatmul.mubr.bf16.gmra.mrb[12].mxu1 %v1322_v49  ;;  %v1126_v63 = vadd.f32 %v1125_v51, %v11004_v18 }
 0x233   : > { %v1129_v61 = vpop.f32.mrb[62].mxu0  ;;  %v1128_v3 = vadd.f32 %v1127_v58, %v11007_v20 }
 0x234   : > { %v1130_v1 = vadd.f32 %v1129_v61, %v11004_v18  ;;  %v1131_v2 = vpop.f32.mrb[63].mxu0 }
 0x235   : > { %v1132_v4 = vadd.f32 %v1131_v2, %v11007_v20 }
 0x236   : > { %v1324_v5 = vpack.c.bf16 %v1130_v1, %v1126_v63  ;;  %1811 = vmatmul.mubr.bf16.gmra.mrb[168].mxu0 %v1314_v10 }
 0x237   : > { %v1325_v59 = vpack.c.bf16 %v1132_v4, %v1128_v3 }
 0x239   : > { %v1135_v60 = vpop.f32.mrb[64].mxu0  ;;  %1860 = vmatprep.mubr.bf16.mxu1 %v1325_v59 }
 0x23a   : > { %v1137_v62 = vpop.f32.mrb[65].mxu0  ;;  %1861 = vmatmul.mubr.bf16.gmra.mrb[16].mxu1 %v1324_v5  ;;  %v1136_v9 = vadd.f32 %v1135_v60, %v11004_v18 }
 0x23b   : > { %v1139_v8 = vpop.f32.mrb[66].mxu0  ;;  %v1138_v13 = vadd.f32 %v1137_v62, %v11007_v20 }
 0x23c   : > { %v1140_v11 = vadd.f32 %v1139_v8, %v11004_v18  ;;  %v1141_v12 = vpop.f32.mrb[67].mxu0 }
 0x23d   : > { %v1142_v14 = vadd.f32 %v1141_v12, %v11007_v20 }
 0x23e   : > { %v1326_v16 = vpack.c.bf16 %v1140_v11, %v1136_v9 }
 0x23f   : > { %v1327_v19 = vpack.c.bf16 %v1142_v14, %v1138_v13 }
 0x241   : > { %v1145_v21 = vpop.f32.mrb[68].mxu0  ;;  %1870 = vmatprep.mubr.bf16.mxu1 %v1327_v19 }
 0x242   : > { %v1147_v6 = vpop.f32.mrb[69].mxu0  ;;  %1871 = vmatmul.mubr.bf16.gmra.mrb[20].mxu1 %v1326_v16  ;;  %v1146_v10 = vadd.f32 %v1145_v21, %v11004_v18 }
 0x243   : > { %v1149_v7 = vpop.f32.mrb[70].mxu0  ;;  %v1148_v27 = vadd.f32 %v1147_v6, %v11007_v20 }
 0x244   : > { %v1150_v22 = vadd.f32 %v1149_v7, %v11004_v18  ;;  %v1151_v23 = vpop.f32.mrb[71].mxu0 }
 0x245   : > { %v1152_v28 = vadd.f32 %v1151_v23, %v11007_v20 }
 0x246   : > { %v1328_v26 = vpack.c.bf16 %v1150_v22, %v1146_v10 }
 0x247   : > { %v1329_v30 = vpack.c.bf16 %v1152_v28, %v1148_v27 }
 0x249   : > { %v1155_v31 = vpop.f32.mrb[72].mxu0  ;;  %1880 = vmatprep.mubr.bf16.mxu1 %v1329_v30 }
 0x24a   : > { %v1157_v32 = vpop.f32.mrb[73].mxu0  ;;  %1881 = vmatmul.mubr.bf16.gmra.mrb[24].mxu1 %v1328_v26  ;;  %v1156_v34 = vadd.f32 %v1155_v31, %v11004_v18 }
 0x24b   : > { %v1159_v33 = vpop.f32.mrb[74].mxu0  ;;  %v1158_v29 = vadd.f32 %v1157_v32, %v11007_v20 }
 0x24c   : > { %v1160_v35 = vadd.f32 %v1159_v33, %v11004_v18  ;;  %v1161_v24 = vpop.f32.mrb[75].mxu0 }
 0x24d   : > { %v1162_v36 = vadd.f32 %v1161_v24, %v11007_v20 }
 0x24e   : > { %v1330_v25 = vpack.c.bf16 %v1160_v35, %v1156_v34 }
 0x24f   : > { %v1331_v37 = vpack.c.bf16 %v1162_v36, %v1158_v29 }
 0x251   : > { %v1165_v38 = vpop.f32.mrb[76].mxu0  ;;  %1890 = vmatprep.mubr.bf16.mxu1 %v1331_v37 }
 0x252   : > { %v1167_v39 = vpop.f32.mrb[77].mxu0  ;;  %1891 = vmatmul.mubr.bf16.gmra.mrb[28].mxu1 %v1330_v25  ;;  %v1166_v42 = vadd.f32 %v1165_v38, %v11004_v18 }
 0x253   : > { %v1169_v41 = vpop.f32.mrb[78].mxu0  ;;  %v1168_v45 = vadd.f32 %v1167_v39, %v11007_v20 }
 0x254   : > { %v1170_v43 = vadd.f32 %v1169_v41, %v11004_v18  ;;  %v1171_v44 = vpop.f32.mrb[79].mxu0 }
 0x255   : > { %v1172_v40 = vadd.f32 %v1171_v44, %v11007_v20 }
 0x256   : > { %v1332_v46 = vpack.c.bf16 %v1170_v43, %v1166_v42 }
 0x257   : > { %v1333_v47 = vpack.c.bf16 %v1172_v40, %v1168_v45 }
 0x259   : > { %v1175_v48 = vpop.f32.mrb[80].mxu0  ;;  %1900 = vmatprep.mubr.bf16.mxu1 %v1333_v47 }
 0x25a   : > { %v1177_v52 = vpop.f32.mrb[81].mxu0  ;;  %1901 = vmatmul.mubr.bf16.gmra.mrb[32].mxu1 %v1332_v46  ;;  %v1176_v54 = vadd.f32 %v1175_v48, %v11004_v18 }
 0x25b   : > { %v1179_v53 = vpop.f32.mrb[82].mxu0  ;;  %v1178_v57 = vadd.f32 %v1177_v52, %v11007_v20 }
 0x25c   : > { %v1180_v55 = vadd.f32 %v1179_v53, %v11004_v18  ;;  %v1181_v56 = vpop.f32.mrb[83].mxu0 }
 0x25d   : > { %v1182_v49 = vadd.f32 %v1181_v56, %v11007_v20 }
 0x25e   : > { %v1334_v50 = vpack.c.bf16 %v1180_v55, %v1176_v54 }
 0x25f   : > { %v1335_v51 = vpack.c.bf16 %v1182_v49, %v1178_v57 }
 0x261   : > { %v1185_v58 = vpop.f32.mrb[84].mxu0  ;;  %1910 = vmatprep.mubr.bf16.mxu1 %v1335_v51 }
 0x262   : > { %v1187_v61 = vpop.f32.mrb[85].mxu0  ;;  %1911 = vmatmul.mubr.bf16.gmra.mrb[36].mxu1 %v1334_v50  ;;  %v1186_v1 = vadd.f32 %v1185_v58, %v11004_v18 }
 0x263   : > { %v1189_v63 = vpop.f32.mrb[86].mxu0  ;;  %v1188_v4 = vadd.f32 %v1187_v61, %v11007_v20 }
 0x264   : > { %v1190_v2 = vadd.f32 %v1189_v63, %v11004_v18  ;;  %v1191_v3 = vpop.f32.mrb[87].mxu0 }
 0x265   : > { %v1192_v5 = vadd.f32 %v1191_v3, %v11007_v20 }
 0x266   : > { %v1336_v59 = vpack.c.bf16 %v1190_v2, %v1186_v1 }
 0x267   : > { %v1337_v60 = vpack.c.bf16 %v1192_v5, %v1188_v4 }
 0x269   : > { %v1195_v62 = vpop.f32.mrb[88].mxu0  ;;  %1920 = vmatprep.mubr.bf16.mxu1 %v1337_v60 }
 0x26a   : > { %v1197_v8 = vpop.f32.mrb[89].mxu0  ;;  %1921 = vmatmul.mubr.bf16.gmra.mrb[40].mxu1 %v1336_v59  ;;  %v1196_v11 = vadd.f32 %v1195_v62, %v11004_v18 }
 0x26b   : > { %v1199_v9 = vpop.f32.mrb[90].mxu0  ;;  %v1198_v14 = vadd.f32 %v1197_v8, %v11007_v20 }
 0x26c   : > { %v1200_v12 = vadd.f32 %v1199_v9, %v11004_v18  ;;  %v1201_v13 = vpop.f32.mrb[91].mxu0 }
 0x26d   : > { %v1202_v16 = vadd.f32 %v1201_v13, %v11007_v20 }
 0x26e   : > { %v1338_v19 = vpack.c.bf16 %v1200_v12, %v1196_v11 }
 0x26f   : > { %v1339_v21 = vpack.c.bf16 %v1202_v16, %v1198_v14 }
 0x271   : > { %v1205_v6 = vpop.f32.mrb[92].mxu0  ;;  %1930 = vmatprep.mubr.bf16.mxu1 %v1339_v21 }
 0x272   : > { %v1207_v7 = vpop.f32.mrb[93].mxu0  ;;  %1931 = vmatmul.mubr.bf16.gmra.mrb[44].mxu1 %v1338_v19  ;;  %v1206_v22 = vadd.f32 %v1205_v6, %v11004_v18 }
 0x273   : > { %v1209_v10 = vpop.f32.mrb[94].mxu0  ;;  %v1208_v28 = vadd.f32 %v1207_v7, %v11007_v20 }
 0x274   : > { %v1210_v23 = vadd.f32 %v1209_v10, %v11004_v18  ;;  %v1211_v27 = vpop.f32.mrb[95].mxu0 }
 0x275   : > { %v1212_v26 = vadd.f32 %v1211_v27, %v11007_v20 }
 0x276   : > { %v1340_v30 = vpack.c.bf16 %v1210_v23, %v1206_v22 }
 0x277   : > { %v1341_v31 = vpack.c.bf16 %v1212_v26, %v1208_v28  ;;  %v9252_v26 = vld [vmem:[%s10816_s18 + $0x4] ss:$16 sps:$4 sm:$0xff]  }
 0x278   : > { %2779 = vmatprep.mubr.bf16.mxu0 %v9252_v26 }
 0x279   : > { %v1215_v32 = vpop.f32.mrb[96].mxu0  ;;  %1940 = vmatprep.mubr.bf16.mxu1 %v1341_v31 }
 0x27a   : > { %v1217_v33 = vpop.f32.mrb[97].mxu0  ;;  %1941 = vmatmul.mubr.bf16.gmra.mrb[48].mxu1 %v1340_v30  ;;  %v1216_v35 = vadd.f32 %v1215_v32, %v11004_v18 }
 0x27b   : > { %v1219_v34 = vpop.f32.mrb[98].mxu0  ;;  %v1218_v36 = vadd.f32 %v1217_v33, %v11007_v20 }
 0x27c   : > { %v1220_v24 = vadd.f32 %v1219_v34, %v11004_v18  ;;  %v1221_v29 = vpop.f32.mrb[99].mxu0 }
 0x27d   : > { %v1222_v25 = vadd.f32 %v1221_v29, %v11007_v20 }
 0x27e   : > { %v1342_v37 = vpack.c.bf16 %v1220_v24, %v1216_v35 }
 0x27f   : > { %v1343_v38 = vpack.c.bf16 %v1222_v25, %v1218_v36 }
 0x281   : > { %v1225_v39 = vpop.f32.mrb[100].mxu0  ;;  %1950 = vmatprep.mubr.bf16.mxu1 %v1343_v38 }
 0x282   : > { %v1227_v41 = vpop.f32.mrb[101].mxu0  ;;  %1951 = vmatmul.mubr.bf16.gmra.mrb[52].mxu1 %v1342_v37  ;;  %v1226_v43 = vadd.f32 %v1225_v39, %v11004_v18 }
 0x283   : > { %v1229_v42 = vpop.f32.mrb[102].mxu0  ;;  %v1228_v40 = vadd.f32 %v1227_v41, %v11007_v20 }
 0x284   : > { %v1230_v44 = vadd.f32 %v1229_v42, %v11004_v18  ;;  %v1231_v45 = vpop.f32.mrb[103].mxu0 }
 0x285   : > { %v1232_v46 = vadd.f32 %v1231_v45, %v11007_v20 }
 0x286   : > { %v1344_v47 = vpack.c.bf16 %v1230_v44, %v1226_v43 }
 0x287   : > { %v1345_v48 = vpack.c.bf16 %v1232_v46, %v1228_v40 }
 0x289   : > { %v1235_v52 = vpop.f32.mrb[104].mxu0  ;;  %1960 = vmatprep.mubr.bf16.mxu1 %v1345_v48 }
 0x28a   : > { %v1237_v53 = vpop.f32.mrb[105].mxu0  ;;  %1961 = vmatmul.mubr.bf16.gmra.mrb[56].mxu1 %v1344_v47  ;;  %v1236_v55 = vadd.f32 %v1235_v52, %v11004_v18 }
 0x28b   : > { %v1239_v54 = vpop.f32.mrb[106].mxu0  ;;  %v1238_v49 = vadd.f32 %v1237_v53, %v11007_v20 }
 0x28c   : > { %v1240_v56 = vadd.f32 %v1239_v54, %v11004_v18  ;;  %v1241_v57 = vpop.f32.mrb[107].mxu0 }
 0x28d   : > { %v1242_v50 = vadd.f32 %v1241_v57, %v11007_v20 }
 0x28e   : > { %v1346_v51 = vpack.c.bf16 %v1240_v56, %v1236_v55 }
 0x28f   : > { %v1347_v58 = vpack.c.bf16 %v1242_v50, %v1238_v49 }
 0x291   : > { %v1245_v61 = vpop.f32.mrb[108].mxu0  ;;  %1970 = vmatprep.mubr.bf16.mxu1 %v1347_v58 }
 0x292   : > { %v1247_v63 = vpop.f32.mrb[109].mxu0  ;;  %1971 = vmatmul.mubr.bf16.gmra.mrb[60].mxu1 %v1346_v51  ;;  %v1246_v2 = vadd.f32 %v1245_v61, %v11004_v18 }
 0x293   : > { %v1249_v1 = vpop.f32.mrb[110].mxu0  ;;  %v1248_v5 = vadd.f32 %v1247_v63, %v11007_v20 }
 0x294   : > { %v1250_v3 = vadd.f32 %v1249_v1, %v11004_v18  ;;  %v1251_v4 = vpop.f32.mrb[111].mxu0 }
 0x295   : > { %v1252_v59 = vadd.f32 %v1251_v4, %v11007_v20 }
 0x296   : > { %v1348_v60 = vpack.c.bf16 %v1250_v3, %v1246_v2 }
 0x297   : > { %v1349_v62 = vpack.c.bf16 %v1252_v59, %v1248_v5 }
 0x299   : > { %v1255_v8 = vpop.f32.mrb[112].mxu0  ;;  %1980 = vmatprep.mubr.bf16.mxu1 %v1349_v62 }
 0x29a   : > { %v1257_v9 = vpop.f32.mrb[113].mxu0  ;;  %1981 = vmatmul.mubr.bf16.gmra.mrb[64].mxu1 %v1348_v60  ;;  %v1256_v12 = vadd.f32 %v1255_v8, %v11004_v18 }
 0x29b   : > { %v1259_v11 = vpop.f32.mrb[114].mxu0  ;;  %v1258_v16 = vadd.f32 %v1257_v9, %v11007_v20 }
 0x29c   : > { %v1260_v13 = vadd.f32 %v1259_v11, %v11004_v18  ;;  %v1261_v14 = vpop.f32.mrb[115].mxu0 }
 0x29d   : > { %v1262_v19 = vadd.f32 %v1261_v14, %v11007_v20 }
 0x29e   : > { %v1350_v21 = vpack.c.bf16 %v1260_v13, %v1256_v12 }
 0x29f   : > { %v1351_v6 = vpack.c.bf16 %v1262_v19, %v1258_v16 }
 0x2a1   : > { %v1265_v7 = vpop.f32.mrb[116].mxu0  ;;  %1990 = vmatprep.mubr.bf16.mxu1 %v1351_v6 }
 0x2a2   : > { %v1267_v10 = vpop.f32.mrb[117].mxu0  ;;  %1991 = vmatmul.mubr.bf16.gmra.mrb[68].mxu1 %v1350_v21  ;;  %v1266_v23 = vadd.f32 %v1265_v7, %v11004_v18 }
 0x2a3   : > { %v1269_v22 = vpop.f32.mrb[118].mxu0  ;;  %v1268_v30 = vadd.f32 %v1267_v10, %v11007_v20 }
 0x2a4   : > { %v1270_v27 = vadd.f32 %v1269_v22, %v11004_v18  ;;  %v1271_v28 = vpop.f32.mrb[119].mxu0 }
 0x2a5   : > { %v1272_v31 = vadd.f32 %v1271_v28, %v11007_v20 }
 0x2a6   : > { %v1352_v32 = vpack.c.bf16 %v1270_v27, %v1266_v23 }
 0x2a7   : > { %v1353_v33 = vpack.c.bf16 %v1272_v31, %v1268_v30 }
 0x2a9   : > { %v1275_v34 = vpop.f32.mrb[120].mxu0  ;;  %2000 = vmatprep.mubr.bf16.mxu1 %v1353_v33 }
 0x2aa   : > { %v1277_v35 = vpop.f32.mrb[121].mxu0  ;;  %2001 = vmatmul.mubr.bf16.gmra.mrb[72].mxu1 %v1352_v32  ;;  %v1276_v29 = vadd.f32 %v1275_v34, %v11004_v18 }
 0x2ab   : > { %v1279_v24 = vpop.f32.mrb[122].mxu0  ;;  %v1278_v37 = vadd.f32 %v1277_v35, %v11007_v20 }
 0x2ac   : > { %v1280_v36 = vadd.f32 %v1279_v24, %v11004_v18  ;;  %v1281_v25 = vpop.f32.mrb[123].mxu0 }
 0x2ad   : > { %v1282_v38 = vadd.f32 %v1281_v25, %v11007_v20 }
 0x2ae   : > { %v1354_v39 = vpack.c.bf16 %v1280_v36, %v1276_v29 }
 0x2af   : > { %v1355_v41 = vpack.c.bf16 %v1282_v38, %v1278_v37 }
 0x2b1   : > { %v1285_v42 = vpop.f32.mrb[124].mxu0  ;;  %2010 = vmatprep.mubr.bf16.mxu1 %v1355_v41 }
 0x2b2   : > { %v1287_v43 = vpop.f32.mrb[125].mxu0  ;;  %2011 = vmatmul.mubr.bf16.gmra.mrb[76].mxu1 %v1354_v39  ;;  %v1286_v45 = vadd.f32 %v1285_v42, %v11004_v18 }
 0x2b3   : > { %v1289_v44 = vpop.f32.mrb[126].mxu0  ;;  %v1288_v47 = vadd.f32 %v1287_v43, %v11007_v20 }
 0x2b4   : > { %v1290_v40 = vadd.f32 %v1289_v44, %v11004_v18  ;;  %v1291_v46 = vpop.f32.mrb[127].mxu0 }
 0x2b5   : > { %v1292_v48 = vadd.f32 %v1291_v46, %v11007_v20 }
 0x2b6   : > { %v1356_v52 = vpack.c.bf16 %v1290_v40, %v1286_v45 }
 0x2b7   : > { %v1357_v53 = vpack.c.bf16 %v1292_v48, %v1288_v47 }
 0x2b9   : > { %v1712_v54 = vpop.f32.mrb[128].mxu0  ;;  %2020 = vmatprep.mubr.bf16.mxu1 %v1357_v53 }
 0x2ba   : > { %v1714_v55 = vpop.f32.mrb[129].mxu0  ;;  %2021 = vmatmul.mubr.bf16.gmra.mrb[80].mxu1 %v1356_v52 }
 0x2bb   : > { %v1716_v56 = vpop.f32.mrb[130].mxu0 }
 0x2bc   : > { %v2031_v57 = vpack.c.bf16 %v1716_v56, %v1712_v54  ;;  %v1718_v49 = vpop.f32.mrb[131].mxu0 }
 0x2bd   : > { %v2032_v50 = vpack.c.bf16 %v1718_v49, %v1714_v55 }
 0x2bf   : > { %2747 = vmatprep.subr.bf16.mxu0 %v2032_v50 }
 0x2c0   : > { %2748 = vmatpush1.bf16.msra.mxu0 %v2031_v57 }
 0x2c1   : > { %v1722_v51 = vpop.f32.mrb[132].mxu0 }
 0x2c2   : > { %v1724_v58 = vpop.f32.mrb[133].mxu0 }
 0x2c3   : > { %v1726_v18 = vpop.f32.mrb[134].mxu0 }
 0x2c4   : > { %v2033_v61 = vpack.c.bf16 %v1726_v18, %v1722_v51  ;;  %v1728_v63 = vpop.f32.mrb[135].mxu0 }
 0x2c5   : > { %v2034_v1 = vpack.c.bf16 %v1728_v63, %v1724_v58 }
 0x2c7   : > { %2749 = vmatprep.subr.bf16.mxu0 %v2034_v1 }
 0x2c8   : > { %2750 = vmatpush1.bf16.msra.mxu0 %v2033_v61 }
 0x2c9   : > { %v1732_v20 = vpop.f32.mrb[136].mxu0 }
 0x2ca   : > { %v1734_v2 = vpop.f32.mrb[137].mxu0 }
 0x2cb   : > { %v1736_v3 = vpop.f32.mrb[138].mxu0 }
 0x2cc   : > { %v2035_v4 = vpack.c.bf16 %v1736_v3, %v1732_v20  ;;  %v1738_v5 = vpop.f32.mrb[139].mxu0 }
 0x2cd   : > { %v2036_v59 = vpack.c.bf16 %v1738_v5, %v1734_v2 }
 0x2cf   : > { %2751 = vmatprep.subr.bf16.mxu0 %v2036_v59 }
 0x2d0   : > { %2752 = vmatpush1.bf16.msra.mxu0 %v2035_v4 }
 0x2d1   : > { %v1742_v60 = vpop.f32.mrb[140].mxu0 }
 0x2d2   : > { %v1744_v62 = vpop.f32.mrb[141].mxu0 }
 0x2d3   : > { %v1746_v8 = vpop.f32.mrb[142].mxu0 }
 0x2d4   : > { %v2037_v9 = vpack.c.bf16 %v1746_v8, %v1742_v60  ;;  %v1748_v11 = vpop.f32.mrb[143].mxu0 }
 0x2d5   : > { %v2038_v12 = vpack.c.bf16 %v1748_v11, %v1744_v62 }
 0x2d7   : > { %2753 = vmatprep.subr.bf16.mxu0 %v2038_v12 }
 0x2d8   : > { %2754 = vmatpush1.bf16.msra.mxu0 %v2037_v9 }
 0x2d9   : > { %v1752_v13 = vpop.f32.mrb[144].mxu0 }
 0x2da   : > { %v1754_v14 = vpop.f32.mrb[145].mxu0 }
 0x2db   : > { %v1756_v16 = vpop.f32.mrb[146].mxu0 }
 0x2dc   : > { %v2039_v19 = vpack.c.bf16 %v1756_v16, %v1752_v13  ;;  %v1758_v21 = vpop.f32.mrb[147].mxu0 }
 0x2dd   : > { %v2040_v6 = vpack.c.bf16 %v1758_v21, %v1754_v14 }
 0x2df   : > { %2755 = vmatprep.subr.bf16.mxu0 %v2040_v6 }
 0x2e0   : > { %2756 = vmatpush1.bf16.msra.mxu0 %v2039_v19 }
 0x2e1   : > { %v1762_v7 = vpop.f32.mrb[148].mxu0 }
 0x2e2   : > { %v1764_v10 = vpop.f32.mrb[149].mxu0 }
 0x2e3   : > { %v1766_v22 = vpop.f32.mrb[150].mxu0 }
 0x2e4   : > { %v2041_v23 = vpack.c.bf16 %v1766_v22, %v1762_v7  ;;  %v1768_v27 = vpop.f32.mrb[151].mxu0 }
 0x2e5   : > { %v2042_v28 = vpack.c.bf16 %v1768_v27, %v1764_v10 }
 0x2e7   : > { %2757 = vmatprep.subr.bf16.mxu0 %v2042_v28 }
 0x2e8   : > { %2758 = vmatpush1.bf16.msra.mxu0 %v2041_v23 }
 0x2e9   : > { %v1772_v26 = vpop.f32.mrb[152].mxu0 }
 0x2ea   : > { %v1774_v30 = vpop.f32.mrb[153].mxu0 }
 0x2eb   : > { %v1776_v31 = vpop.f32.mrb[154].mxu0 }
 0x2ec   : > { %v2043_v32 = vpack.c.bf16 %v1776_v31, %v1772_v26  ;;  %v1778_v33 = vpop.f32.mrb[155].mxu0 }
 0x2ed   : > { %v2044_v34 = vpack.c.bf16 %v1778_v33, %v1774_v30  ;;  %v11225_v35 = vpop.f32.mrb[0].mxu1 }
 0x2ee   : > { %v1824_v24 = vpop.f32.mrb[1].mxu1 }
 0x2ef   : > { %v11227_v29 = vpop.f32.mrb[2].mxu1  ;;  %2759 = vmatprep.subr.bf16.mxu0 %v2044_v34 }
 0x2f0   : > { %v2053_v36 = vpack.c.bf16 %v11227_v29, %v11225_v35  ;;  %v1828_v25 = vpop.f32.mrb[3].mxu1  ;;  %2760 = vmatpush1.bf16.msra.mxu0 %v2043_v32 }
 0x2f1   : > { %v1782_v37 = vpop.f32.mrb[156].mxu0  ;;  %v2054_v38 = vpack.c.bf16 %v1828_v25, %v1824_v24 }
 0x2f2   : > { %v1784_v39 = vpop.f32.mrb[157].mxu0 }
 0x2f3   : > { %v1786_v41 = vpop.f32.mrb[158].mxu0 }
 0x2f4   : > { %v2045_v42 = vpack.c.bf16 %v1786_v41, %v1782_v37  ;;  %v1788_v43 = vpop.f32.mrb[159].mxu0  ;;  %v9250_v37 = vld [vmem:[%s10816_s18] ss:$16 sps:$4 sm:$0xff]  }
 0x2f5   : > { %v2046_v44 = vpack.c.bf16 %v1788_v43, %v1784_v39  ;;  %v1832_v45 = vpop.f32.mrb[4].mxu1 }
 0x2f6   : > { %v1834_v40 = vpop.f32.mrb[5].mxu1 }
 0x2f7   : > { %v1836_v46 = vpop.f32.mrb[6].mxu1  ;;  %2761 = vmatprep.subr.bf16.mxu0 %v2046_v44 }
 0x2f8   : > { %v2055_v47 = vpack.c.bf16 %v1836_v46, %v1832_v45  ;;  %v1838_v48 = vpop.f32.mrb[7].mxu1  ;;  %2762 = vmatpush1.bf16.msra.mxu0 %v2045_v42  ;;  %v9256_v46 = vld [vmem:[%s10816_s18 + $0x44] ss:$16 sps:$4 sm:$0xff]  }
 0x2f9   : > { %v1792_v52 = vpop.f32.mrb[160].mxu0  ;;  %v2056_v53 = vpack.c.bf16 %v1838_v48, %v1834_v40  ;;  %v9255_v40 = vld [vmem:[%s10816_s18 + $0x20] ss:$16 sps:$4 sm:$0xff]  }
 0x2fa   : > { %v1794_v54 = vpop.f32.mrb[161].mxu0 }
 0x2fb   : > { %v1796_v55 = vpop.f32.mrb[162].mxu0 }
 0x2fc   : > { %v2047_v56 = vpack.c.bf16 %v1796_v55, %v1792_v52  ;;  %v1798_v57 = vpop.f32.mrb[163].mxu0 }
 0x2fd   : > { %v2048_v49 = vpack.c.bf16 %v1798_v57, %v1794_v54  ;;  %v1842_v50 = vpop.f32.mrb[8].mxu1  ;;  %v9259_v57 = vld [vmem:[%s10816_s18 + $0x64] ss:$16 sps:$4 sm:$0xff]  }
 0x2fe   : > { %v1844_v51 = vpop.f32.mrb[9].mxu1 }
 0x2ff   : > { %v1846_v58 = vpop.f32.mrb[10].mxu1  ;;  %2763 = vmatprep.subr.bf16.mxu0 %v2048_v49 }
 0x300   : > { %v2057_v18 = vpack.c.bf16 %v1846_v58, %v1842_v50  ;;  %v1848_v61 = vpop.f32.mrb[11].mxu1  ;;  %2764 = vmatpush1.bf16.msra.mxu0 %v2047_v56  ;;  %v9258_v56 = vld [vmem:[%s10816_s18 + $0x40] ss:$16 sps:$4 sm:$0xff]  }
 0x301   : > { %v1802_v63 = vpop.f32.mrb[164].mxu0  ;;  %v2058_v1 = vpack.c.bf16 %v1848_v61, %v1844_v51 }
 0x302   : > { %v1804_v20 = vpop.f32.mrb[165].mxu0 }
 0x303   : > { %v1806_v2 = vpop.f32.mrb[166].mxu0 }
 0x304   : > { %v2049_v3 = vpack.c.bf16 %v1806_v2, %v1802_v63  ;;  %v1808_v4 = vpop.f32.mrb[167].mxu0  ;;  %v9261_v63 = vld [vmem:[%s10816_s18 + $0x60] ss:$16 sps:$4 sm:$0xff]  }
 0x305   : > { %v2050_v5 = vpack.c.bf16 %v1808_v4, %v1804_v20  ;;  %v1852_v59 = vpop.f32.mrb[12].mxu1 }
 0x306   : > { %v1854_v60 = vpop.f32.mrb[13].mxu1 }
 0x307   : > { %v1856_v62 = vpop.f32.mrb[14].mxu1  ;;  %2765 = vmatprep.subr.bf16.mxu0 %v2050_v5 }
 0x308   : > { %v2059_v8 = vpack.c.bf16 %v1856_v62, %v1852_v59  ;;  %v1858_v9 = vpop.f32.mrb[15].mxu1  ;;  %2766 = vmatpush1.bf16.msra.mxu0 %v2049_v3  ;;  %v9265_v62 = vld [vmem:[%s10816_s18 + $0xa4] ss:$16 sps:$4 sm:$0xff]  }
 0x309   : > { %v1812_v11 = vpop.f32.mrb[168].mxu0  ;;  %v2060_v12 = vpack.c.bf16 %v1858_v9, %v1854_v60  ;;  %v9264_v60 = vld [vmem:[%s10816_s18 + $0x80] ss:$16 sps:$4 sm:$0xff]  }
 0x30a   : > { %v1814_v13 = vpop.f32.mrb[169].mxu0 }
 0x30b   : > { %v1816_v14 = vpop.f32.mrb[170].mxu0 }
 0x30c   : > { %v2051_v16 = vpack.c.bf16 %v1816_v14, %v1812_v11  ;;  %v1818_v19 = vpop.f32.mrb[171].mxu0 }
 0x30d   : > { %v2052_v21 = vpack.c.bf16 %v1818_v19, %v1814_v13  ;;  %v1862_v6 = vpop.f32.mrb[16].mxu1  ;;  %v9268_v19 = vld [vmem:[%s10816_s18 + $0xc4] ss:$16 sps:$4 sm:$0xff]  }
 0x30e   : > { %v1864_v7 = vpop.f32.mrb[17].mxu1 }
 0x30f   : > { %v1866_v10 = vpop.f32.mrb[18].mxu1  ;;  %2767 = vmatprep.subr.bf16.mxu0 %v2052_v21 }
 0x310   : > { %v2061_v22 = vpack.c.bf16 %v1866_v10, %v1862_v6  ;;  %v1868_v23 = vpop.f32.mrb[19].mxu1  ;;  %2768 = vmatpush1.bf16.msra.mxu0 %v2051_v16  ;;  %v9267_v16 = vld [vmem:[%s10816_s18 + $0xa0] ss:$16 sps:$4 sm:$0xff]  }
 0x311   : > { %2769 = vmatprep.subr.bf16.mxu0 %v2054_v38  ;;  %v2062_v27 = vpack.c.bf16 %v1868_v23, %v1864_v7  ;;  %v9253_v38 = vld [vmem:[%s10816_s18 + $0x24] ss:$16 sps:$4 sm:$0xff]  }
 0x314   : > { %2770 = vmatpush1.bf16.msra.mxu0 %v2053_v36 }
 0x315   : > { %v1872_v28 = vpop.f32.mrb[20].mxu1  ;;  %2771 = vmatprep.subr.bf16.mxu0 %v2056_v53 }
 0x316   : > { %v1874_v26 = vpop.f32.mrb[21].mxu1 }
 0x317   : > { %v1876_v30 = vpop.f32.mrb[22].mxu1 }
 0x318   : > { %v2063_v31 = vpack.c.bf16 %v1876_v30, %v1872_v28  ;;  %v1878_v32 = vpop.f32.mrb[23].mxu1  ;;  %2772 = vmatpush1.bf16.msra.mxu0 %v2055_v47  ;;  %v9271_v28 = vld [vmem:[%s10816_s18 + $0xe4] ss:$16 sps:$4 sm:$0xff]  }
 0x319   : > { %2773 = vmatprep.subr.bf16.mxu0 %v2058_v1  ;;  %v2064_v33 = vpack.c.bf16 %v1878_v32, %v1874_v26  ;;  %v9262_v1 = vld [vmem:[%s10816_s18 + $0x84] ss:$16 sps:$4 sm:$0xff]  }
 0x31c   : > { %2774 = vmatpush1.bf16.msra.mxu0 %v2057_v18 }
 0x31d   : > { %v1882_v34 = vpop.f32.mrb[24].mxu1  ;;  %2775 = vmatprep.subr.bf16.mxu0 %v2060_v12 }
 0x31e   : > { %v1884_v35 = vpop.f32.mrb[25].mxu1 }
 0x31f   : > { %v1886_v24 = vpop.f32.mrb[26].mxu1 }
 0x320   : > { %v2065_v29 = vpack.c.bf16 %v1886_v24, %v1882_v34  ;;  %v1888_v25 = vpop.f32.mrb[27].mxu1  ;;  %2776 = vmatpush1.bf16.msra.mxu0 %v2059_v8  ;;  %v9274_v24 = vld [vmem:[%s10816_s18 + $0x104] ss:$16 sps:$4 sm:$0xff]  }
 0x321   : > { %2777 = vmatprep.subr.bf16.mxu0 %v2062_v27  ;;  %v2066_v36 = vpack.c.bf16 %v1888_v25, %v1884_v35  ;;  %v9270_v27 = vld [vmem:[%s10816_s18 + $0xc0] ss:$16 sps:$4 sm:$0xff]  }
 0x322   : > { %v9273_v35 = vld [vmem:[%s10816_s18 + $0xe0] ss:$16 sps:$4 sm:$0xff]  }
 0x324   : > { %2778 = vmatpush1.bf16.msra.mxu0 %v2061_v22 }
 0x325   : > { %v1892_v39 = vpop.f32.mrb[28].mxu1  ;;  %3100 = vmatprep.subr.bf16.mxu0 %v2064_v33 }
 0x326   : > { %v1894_v41 = vpop.f32.mrb[29].mxu1 }
 0x327   : > { %v1896_v42 = vpop.f32.mrb[30].mxu1  ;;  %2780 = vmatmul.mubr.bf16.vlgmr.msra.gmra.mrb[172].mxu0 %v9250_v37 }
 0x328   : > { %v2067_v43 = vpack.c.bf16 %v1896_v42, %v1892_v39  ;;  %v1898_v44 = vpop.f32.mrb[31].mxu1  ;;  %3101 = vmatpush1.bf16.msra.mxu0 %v2063_v31  ;;  %2789 = vmatprep.mubr.bf16.mxu0 %v9253_v38  ;;  %v9277_v42 = vld [vmem:[%s10816_s18 + $0x124] ss:$16 sps:$4 sm:$0xff]  }
 0x329   : > { %3102 = vmatprep.subr.bf16.mxu0 %v2066_v36  ;;  %v2068_v45 = vpack.c.bf16 %v1898_v44, %v1894_v41  ;;  %v9276_v41 = vld [vmem:[%s10816_s18 + $0x100] ss:$16 sps:$4 sm:$0xff]  }
 0x32c   : > { %3103 = vmatpush1.bf16.msra.mxu0 %v2065_v29 }
 0x32d   : > { %v1902_v47 = vpop.f32.mrb[32].mxu1  ;;  %3104 = vmatprep.subr.bf16.mxu0 %v2068_v45 }
 0x32e   : > { %v1904_v48 = vpop.f32.mrb[33].mxu1 }
 0x32f   : > { %v1906_v52 = vpop.f32.mrb[34].mxu1  ;;  %2790 = vmatmul.mubr.bf16.gmra.mrb[176].mxu0 %v9255_v40 }
 0x330   : > { %v2069_v53 = vpack.c.bf16 %v1906_v52, %v1902_v47  ;;  %v1908_v54 = vpop.f32.mrb[35].mxu1  ;;  %3105 = vmatpush1.bf16.msra.mxu0 %v2067_v43  ;;  %2799 = vmatprep.mubr.bf16.mxu0 %v9256_v46  ;;  %v9280_v52 = vld [vmem:[%s10816_s18 + $0x144] ss:$16 sps:$4 sm:$0xff]  }
 0x331   : > { %v2070_v55 = vpack.c.bf16 %v1908_v54, %v1904_v48  ;;  %v9279_v48 = vld [vmem:[%s10816_s18 + $0x120] ss:$16 sps:$4 sm:$0xff]  }
 0x333   : > { %3106 = vmatprep.subr.bf16.mxu0 %v2070_v55 }
 0x334   : > { %3107 = vmatpush1.bf16.msra.mxu0 %v2069_v53 }
 0x335   : > { %v1912_v49 = vpop.f32.mrb[36].mxu1 }
 0x336   : > { %v1914_v50 = vpop.f32.mrb[37].mxu1 }
 0x337   : > { %v1916_v51 = vpop.f32.mrb[38].mxu1  ;;  %2800 = vmatmul.mubr.bf16.gmra.mrb[180].mxu0 %v9258_v56 }
 0x338   : > { %v2071_v58 = vpack.c.bf16 %v1916_v51, %v1912_v49  ;;  %v1918_v18 = vpop.f32.mrb[39].mxu1  ;;  %2809 = vmatprep.mubr.bf16.mxu0 %v9259_v57  ;;  %v9283_v51 = vld [vmem:[%s10816_s18 + $0x164] ss:$16 sps:$4 sm:$0xff]  }
 0x339   : > { %v2072_v61 = vpack.c.bf16 %v1918_v18, %v1914_v50  ;;  %v9282_v50 = vld [vmem:[%s10816_s18 + $0x140] ss:$16 sps:$4 sm:$0xff]  }
 0x33b   : > { %3108 = vmatprep.subr.bf16.mxu0 %v2072_v61 }
 0x33c   : > { %3109 = vmatpush1.bf16.msra.mxu0 %v2071_v58 }
 0x33d   : > { %v1922_v20 = vpop.f32.mrb[40].mxu1 }
 0x33e   : > { %v1924_v2 = vpop.f32.mrb[41].mxu1 }
 0x33f   : > { %v1926_v3 = vpop.f32.mrb[42].mxu1  ;;  %2810 = vmatmul.mubr.bf16.gmra.mrb[184].mxu0 %v9261_v63 }
 0x340   : > { %v2073_v4 = vpack.c.bf16 %v1926_v3, %v1922_v20  ;;  %v1928_v5 = vpop.f32.mrb[43].mxu1  ;;  %2819 = vmatprep.mubr.bf16.mxu0 %v9262_v1  ;;  %v9286_v3 = vld [vmem:[%s10816_s18 + $0x184] ss:$16 sps:$4 sm:$0xff]  }
 0x341   : > { %v2074_v59 = vpack.c.bf16 %v1928_v5, %v1924_v2  ;;  %v9285_v2 = vld [vmem:[%s10816_s18 + $0x160] ss:$16 sps:$4 sm:$0xff]  }
 0x343   : > { %3110 = vmatprep.subr.bf16.mxu0 %v2074_v59 }
 0x344   : > { %3111 = vmatpush1.bf16.msra.mxu0 %v2073_v4 }
 0x345   : > { %v1932_v8 = vpop.f32.mrb[44].mxu1 }
 0x346   : > { %v1934_v9 = vpop.f32.mrb[45].mxu1 }
 0x347   : > { %v1936_v11 = vpop.f32.mrb[46].mxu1  ;;  %2820 = vmatmul.mubr.bf16.gmra.mrb[188].mxu0 %v9264_v60 }
 0x348   : > { %v2075_v12 = vpack.c.bf16 %v1936_v11, %v1932_v8  ;;  %v1938_v13 = vpop.f32.mrb[47].mxu1  ;;  %2829 = vmatprep.mubr.bf16.mxu0 %v9265_v62  ;;  %v9289_v11 = vld [vmem:[%s10816_s18 + $0x1a4] ss:$16 sps:$4 sm:$0xff]  }
 0x349   : > { %v2076_v14 = vpack.c.bf16 %v1938_v13, %v1934_v9  ;;  %v9288_v9 = vld [vmem:[%s10816_s18 + $0x180] ss:$16 sps:$4 sm:$0xff]  }
 0x34b   : > { %3112 = vmatprep.subr.bf16.mxu0 %v2076_v14 }
 0x34c   : > { %3113 = vmatpush1.bf16.msra.mxu0 %v2075_v12 }
 0x34d   : > { %v1942_v21 = vpop.f32.mrb[48].mxu1 }
 0x34e   : > { %v1944_v6 = vpop.f32.mrb[49].mxu1 }
 0x34f   : > { %v1946_v7 = vpop.f32.mrb[50].mxu1  ;;  %2830 = vmatmul.mubr.bf16.gmra.mrb[192].mxu0 %v9267_v16 }
 0x350   : > { %v2077_v10 = vpack.c.bf16 %v1946_v7, %v1942_v21  ;;  %v1948_v22 = vpop.f32.mrb[51].mxu1  ;;  %2839 = vmatprep.mubr.bf16.mxu0 %v9268_v19  ;;  %v9292_v7 = vld [vmem:[%s10816_s18 + $0x1c4] ss:$16 sps:$4 sm:$0xff]  }
 0x351   : > { %v2078_v23 = vpack.c.bf16 %v1948_v22, %v1944_v6  ;;  %v9291_v6 = vld [vmem:[%s10816_s18 + $0x1a0] ss:$16 sps:$4 sm:$0xff]  }
 0x353   : > { %3114 = vmatprep.subr.bf16.mxu0 %v2078_v23 }
 0x354   : > { %3115 = vmatpush1.bf16.msra.mxu0 %v2077_v10 }
 0x355   : > { %v1952_v26 = vpop.f32.mrb[52].mxu1 }
 0x356   : > { %v1954_v30 = vpop.f32.mrb[53].mxu1 }
 0x357   : > { %v1956_v31 = vpop.f32.mrb[54].mxu1  ;;  %2840 = vmatmul.mubr.bf16.gmra.mrb[196].mxu0 %v9270_v27 }
 0x358   : > { %v2079_v32 = vpack.c.bf16 %v1956_v31, %v1952_v26  ;;  %v1958_v33 = vpop.f32.mrb[55].mxu1  ;;  %2849 = vmatprep.mubr.bf16.mxu0 %v9271_v28  ;;  %v9295_v31 = vld [vmem:[%s10816_s18 + $0x1e4] ss:$16 sps:$4 sm:$0xff]  }
 0x359   : > { %v2080_v34 = vpack.c.bf16 %v1958_v33, %v1954_v30  ;;  %v9294_v30 = vld [vmem:[%s10816_s18 + $0x1c0] ss:$16 sps:$4 sm:$0xff]   ;;  %v9298_v33 = vld [vmem:[%s10816_s18 + $0x204] ss:$16 sps:$4 sm:$0xff]  }
 0x35b   : > { %3116 = vmatprep.subr.bf16.mxu0 %v2080_v34  ;;  %v9300_v34 = vld [vmem:[%s10816_s18 + $0x200] ss:$16 sps:$4 sm:$0xff]  }
 0x35c   : > { %3117 = vmatpush1.bf16.msra.mxu0 %v2079_v32  ;;  %v9297_v32 = vld [vmem:[%s10816_s18 + $0x1e0] ss:$16 sps:$4 sm:$0xff]  }
 0x35d   : > { %v1962_v29 = vpop.f32.mrb[56].mxu1 }
 0x35e   : > { %v1964_v25 = vpop.f32.mrb[57].mxu1 }
 0x35f   : > { %v1966_v36 = vpop.f32.mrb[58].mxu1  ;;  %2850 = vmatmul.mubr.bf16.gmra.mrb[200].mxu0 %v9273_v35  ;;  %v9301_v35 = vld [vmem:[%s10816_s18 + $0x224] ss:$16 sps:$4 sm:$0xff]  }
 0x360   : > { %v2081_v37 = vpack.c.bf16 %v1966_v36, %v1962_v29  ;;  %v1968_v38 = vpop.f32.mrb[59].mxu1  ;;  %2859 = vmatprep.mubr.bf16.mxu0 %v9274_v24  ;;  %v9303_v24 = vld [vmem:[%s10816_s18 + $0x220] ss:$16 sps:$4 sm:$0xff]   ;;  %v9304_v29 = vld [vmem:[%s10816_s18 + $0x244] ss:$16 sps:$4 sm:$0xff]  }
 0x361   : > { %v2082_v39 = vpack.c.bf16 %v1968_v38, %v1964_v25  ;;  %v9306_v25 = vld [vmem:[%s10816_s18 + $0x240] ss:$16 sps:$4 sm:$0xff]   ;;  %v9307_v36 = vld [vmem:[%s10816_s18 + $0x264] ss:$16 sps:$4 sm:$0xff]  }
 0x362   : > { %v9310_v38 = vld [vmem:[%s10816_s18 + $0x284] ss:$16 sps:$4 sm:$0xff]  }
 0x363   : > { %3118 = vmatprep.subr.bf16.mxu0 %v2082_v39  ;;  %v9312_v39 = vld [vmem:[%s10816_s18 + $0x280] ss:$16 sps:$4 sm:$0xff]  }
 0x364   : > { %3119 = vmatpush1.bf16.msra.mxu0 %v2081_v37  ;;  %v9309_v37 = vld [vmem:[%s10816_s18 + $0x260] ss:$16 sps:$4 sm:$0xff]  }
 0x365   : > { %v1972_v43 = vpop.f32.mrb[60].mxu1 }
 0x366   : > { %v1974_v44 = vpop.f32.mrb[61].mxu1 }
 0x367   : > { %v1976_v45 = vpop.f32.mrb[62].mxu1  ;;  %2860 = vmatmul.mubr.bf16.gmra.mrb[204].mxu0 %v9276_v41  ;;  %v9315_v41 = vld [vmem:[%s10816_s18 + $0x2a4] ss:$16 sps:$4 sm:$0xff]  }
 0x368   : > { %v2083_v40 = vpack.c.bf16 %v1976_v45, %v1972_v43  ;;  %v1978_v46 = vpop.f32.mrb[63].mxu1  ;;  %2869 = vmatprep.mubr.bf16.mxu0 %v9277_v42  ;;  %v9313_v42 = vld [vmem:[%s10816_s18 + $0x2a0] ss:$16 sps:$4 sm:$0xff]   ;;  %v9318_v43 = vld [vmem:[%s10816_s18 + $0x2c4] ss:$16 sps:$4 sm:$0xff]  }
 0x369   : > { %v2084_v47 = vpack.c.bf16 %v1978_v46, %v1974_v44  ;;  %v9316_v44 = vld [vmem:[%s10816_s18 + $0x2c0] ss:$16 sps:$4 sm:$0xff]   ;;  %v9321_v45 = vld [vmem:[%s10816_s18 + $0x2e4] ss:$16 sps:$4 sm:$0xff]  }
 0x36a   : > { %v9324_v46 = vld [vmem:[%s10816_s18 + $0x304] ss:$16 sps:$4 sm:$0xff]  }
 0x36b   : > { %3120 = vmatprep.subr.bf16.mxu0 %v2084_v47  ;;  %v9322_v47 = vld [vmem:[%s10816_s18 + $0x300] ss:$16 sps:$4 sm:$0xff]  }
 0x36c   : > { %3121 = vmatpush1.bf16.msra.mxu0 %v2083_v40  ;;  %v9319_v40 = vld [vmem:[%s10816_s18 + $0x2e0] ss:$16 sps:$4 sm:$0xff]  }
 0x36d   : > { %v1982_v53 = vpop.f32.mrb[64].mxu1 }
 0x36e   : > { %v1984_v54 = vpop.f32.mrb[65].mxu1 }
 0x36f   : > { %v1986_v55 = vpop.f32.mrb[66].mxu1  ;;  %2870 = vmatmul.mubr.bf16.gmra.mrb[208].mxu0 %v9279_v48  ;;  %v9327_v48 = vld [vmem:[%s10816_s18 + $0x324] ss:$16 sps:$4 sm:$0xff]  }
 0x370   : > { %v2085_v56 = vpack.c.bf16 %v1986_v55, %v1982_v53  ;;  %v1988_v57 = vpop.f32.mrb[67].mxu1  ;;  %2879 = vmatprep.mubr.bf16.mxu0 %v9280_v52  ;;  %v9325_v52 = vld [vmem:[%s10816_s18 + $0x320] ss:$16 sps:$4 sm:$0xff]   ;;  %v9330_v53 = vld [vmem:[%s10816_s18 + $0x344] ss:$16 sps:$4 sm:$0xff]  }
 0x371   : > { %v2086_v49 = vpack.c.bf16 %v1988_v57, %v1984_v54  ;;  %v9328_v54 = vld [vmem:[%s10816_s18 + $0x340] ss:$16 sps:$4 sm:$0xff]   ;;  %v9333_v55 = vld [vmem:[%s10816_s18 + $0x364] ss:$16 sps:$4 sm:$0xff]  }
 0x372   : > { %v9336_v57 = vld [vmem:[%s10816_s18 + $0x384] ss:$16 sps:$4 sm:$0xff]  }
 0x373   : > { %3122 = vmatprep.subr.bf16.mxu0 %v2086_v49  ;;  %v9334_v49 = vld [vmem:[%s10816_s18 + $0x380] ss:$16 sps:$4 sm:$0xff]  }
 0x374   : > { %3123 = vmatpush1.bf16.msra.mxu0 %v2085_v56  ;;  %v9331_v56 = vld [vmem:[%s10816_s18 + $0x360] ss:$16 sps:$4 sm:$0xff]  }
 0x375   : > { %v1992_v58 = vpop.f32.mrb[68].mxu1 }
 0x376   : > { %v1994_v18 = vpop.f32.mrb[69].mxu1 }
 0x377   : > { %v1996_v61 = vpop.f32.mrb[70].mxu1  ;;  %2880 = vmatmul.mubr.bf16.gmra.mrb[212].mxu0 %v9282_v50  ;;  %v9339_v50 = vld [vmem:[%s10816_s18 + $0x3a4] ss:$16 sps:$4 sm:$0xff]  }
 0x378   : > { %v2087_v63 = vpack.c.bf16 %v1996_v61, %v1992_v58  ;;  %v1998_v1 = vpop.f32.mrb[71].mxu1  ;;  %2889 = vmatprep.mubr.bf16.mxu0 %v9283_v51  ;;  %v9337_v51 = vld [vmem:[%s10816_s18 + $0x3a0] ss:$16 sps:$4 sm:$0xff]   ;;  %v9342_v58 = vld [vmem:[%s10816_s18 + $0x3c4] ss:$16 sps:$4 sm:$0xff]  }
 0x379   : > { %v2088_v20 = vpack.c.bf16 %v1998_v1, %v1994_v18  ;;  %v9340_v18 = vld [vmem:[%s10816_s18 + $0x3c0] ss:$16 sps:$4 sm:$0xff]   ;;  %v9345_v61 = vld [vmem:[%s10816_s18 + $0x3e4] ss:$16 sps:$4 sm:$0xff]   ;;  %v9348_v1 = vld [vmem:[%s10816_s18 + $0xc] ss:$16 sps:$4 sm:$0xff]  }
 0x37b   : > { %3124 = vmatprep.subr.bf16.mxu0 %v2088_v20  ;;  %v9346_v20 = vld [vmem:[%s10816_s18 + $0x8] ss:$16 sps:$4 sm:$0xff]  }
 0x37c   : > { %3125 = vmatpush1.bf16.msra.mxu0 %v2087_v63  ;;  %v9343_v63 = vld [vmem:[%s10816_s18 + $0x3e0] ss:$16 sps:$4 sm:$0xff]  }
 0x37d   : > { %v2002_v4 = vpop.f32.mrb[72].mxu1 }
 0x37e   : > { %v2004_v5 = vpop.f32.mrb[73].mxu1 }
 0x37f   : > { %v2006_v59 = vpop.f32.mrb[74].mxu1  ;;  %2890 = vmatmul.mubr.bf16.gmra.mrb[216].mxu0 %v9285_v2  ;;  %v9349_v2 = vld [vmem:[%s10816_s18 + $0x2c] ss:$16 sps:$4 sm:$0xff]  }
 0x380   : > { %v2089_v60 = vpack.c.bf16 %v2006_v59, %v2002_v4  ;;  %v2008_v62 = vpop.f32.mrb[75].mxu1  ;;  %2899 = vmatprep.mubr.bf16.mxu0 %v9286_v3  ;;  %v9351_v3 = vld [vmem:[%s10816_s18 + $0x28] ss:$16 sps:$4 sm:$0xff]   ;;  %v9352_v4 = vld [vmem:[%s10816_s18 + $0x4c] ss:$16 sps:$4 sm:$0xff]  }
 0x381   : > { %v2090_v8 = vpack.c.bf16 %v2008_v62, %v2004_v5  ;;  %v9354_v5 = vld [vmem:[%s10816_s18 + $0x48] ss:$16 sps:$4 sm:$0xff]   ;;  %v9355_v59 = vld [vmem:[%s10816_s18 + $0x6c] ss:$16 sps:$4 sm:$0xff]  }
 0x382   : > { %v9358_v62 = vld [vmem:[%s10816_s18 + $0x8c] ss:$16 sps:$4 sm:$0xff]  }
 0x383   : > { %3126 = vmatprep.subr.bf16.mxu0 %v2090_v8  ;;  %v9360_v8 = vld [vmem:[%s10816_s18 + $0x88] ss:$16 sps:$4 sm:$0xff]  }
 0x384   : > { %3127 = vmatpush1.bf16.msra.mxu0 %v2089_v60  ;;  %v9357_v60 = vld [vmem:[%s10816_s18 + $0x68] ss:$16 sps:$4 sm:$0xff]  }
 0x385   : > { %v2012_v12 = vpop.f32.mrb[76].mxu1 }
 0x386   : > { %v2014_v13 = vpop.f32.mrb[77].mxu1 }
 0x387   : > { %v2016_v14 = vpop.f32.mrb[78].mxu1  ;;  %2900 = vmatmul.mubr.bf16.gmra.mrb[220].mxu0 %v9288_v9  ;;  %v9361_v9 = vld [vmem:[%s10816_s18 + $0xac] ss:$16 sps:$4 sm:$0xff]  }
 0x388   : > { %v2091_v16 = vpack.c.bf16 %v2016_v14, %v2012_v12  ;;  %v2018_v19 = vpop.f32.mrb[79].mxu1  ;;  %2909 = vmatprep.mubr.bf16.mxu0 %v9289_v11  ;;  %v9412_v11 = vld [vmem:[%s14090_s5 + $0x100] ss:$8 sps:$4 sm:$0xff]   ;;  %v9414_v12 = vld [vmem:[%s14090_s5 + $0x104] ss:$8 sps:$4 sm:$0xff]  }
 0x389   : > { %v2092_v21 = vpack.c.bf16 %v2018_v19, %v2014_v13  ;;  %3838 = vmatprep.subr.bf16.mxu1 %v9414_v12  ;;  %v9363_v13 = vld [vmem:[%s10816_s18 + $0xa8] ss:$16 sps:$4 sm:$0xff]   ;;  %v9364_v14 = vld [vmem:[%s10816_s18 + $0xcc] ss:$16 sps:$4 sm:$0xff]  }
 0x38a   : > { %3839 = vmatpush1.bf16.msra.mxu1 %v9412_v11  ;;  %v9417_v19 = vld [vmem:[%s14090_s5 + $0x114] ss:$8 sps:$4 sm:$0xff]   ;;  %v9408_v12 = vld [vmem:[%s10816_s18 + $0x288] ss:$16 sps:$4 sm:$0xff]  }
 0x38b   : > { %3128 = vmatprep.subr.bf16.mxu0 %v2092_v21  ;;  %v9423_v21 = vld [vmem:[%s14090_s5 + $0x124] ss:$8 sps:$4 sm:$0xff]   ;;  %3840 = vmatprep.subr.bf16.mxu1 %v9417_v19  ;;  %v9418_v19 = vld [vmem:[%s10816_s18 + $0x2c8] ss:$16 sps:$4 sm:$0xff]  }
 0x38c   : > { %3129 = vmatpush1.bf16.msra.mxu0 %v2091_v16  ;;  %v9415_v16 = vld [vmem:[%s14090_s5 + $0x110] ss:$8 sps:$4 sm:$0xff]   ;;  %v9406_v11 = vld [vmem:[%s10816_s18 + $0x28c] ss:$16 sps:$4 sm:$0xff]  }
 0x38d   : > { %v2022_v10 = vpop.f32.mrb[80].mxu1 }
 0x38e   : > { %v2024_v22 = vpop.f32.mrb[81].mxu1  ;;  %3841 = vmatpush1.bf16.msra.mxu1 %v9415_v16  ;;  %v9420_v16 = vld [vmem:[%s10816_s18 + $0x2cc] ss:$16 sps:$4 sm:$0xff]  }
 0x38f   : > { %v2026_v23 = vpop.f32.mrb[82].mxu1  ;;  %2910 = vmatmul.mubr.bf16.gmra.mrb[224].mxu0 %v9291_v6  ;;  %v9421_v6 = vld [vmem:[%s14090_s5 + $0x120] ss:$8 sps:$4 sm:$0xff]   ;;  %3842 = vmatprep.subr.bf16.mxu1 %v9423_v21  ;;  %v9429_v21 = vld [vmem:[%s10816_s18 + $0x2ec] ss:$16 sps:$4 sm:$0xff]  }
 0x390   : > { %v2093_v27 = vpack.c.bf16 %v2026_v23, %v2022_v10  ;;  %v2028_v28 = vpop.f32.mrb[83].mxu1  ;;  %2919 = vmatprep.mubr.bf16.mxu0 %v9292_v7  ;;  %v9366_v7 = vld [vmem:[%s10816_s18 + $0xc8] ss:$16 sps:$4 sm:$0xff]   ;;  %v9367_v10 = vld [vmem:[%s10816_s18 + $0xec] ss:$16 sps:$4 sm:$0xff]  }
 0x391   : > { %v2094_v26 = vpack.c.bf16 %v2028_v28, %v2024_v22  ;;  %v9424_v22 = vld [vmem:[%s14090_s5 + $0x130] ss:$8 sps:$4 sm:$0xff]   ;;  %v9426_v23 = vld [vmem:[%s14090_s5 + $0x134] ss:$8 sps:$4 sm:$0xff]   ;;  %v9430_v28 = vld [vmem:[%s14090_s5 + $0x140] ss:$8 sps:$4 sm:$0xff]  }
 0x392   : > { %3843 = vmatpush1.bf16.msra.mxu1 %v9421_v6  ;;  %v9427_v6 = vld [vmem:[%s10816_s18 + $0x2e8] ss:$16 sps:$4 sm:$0xff]  }
 0x393   : > { %3130 = vmatprep.subr.bf16.mxu0 %v2094_v26  ;;  %3844 = vmatprep.subr.bf16.mxu1 %v9426_v23  ;;  %v9369_v26 = vld [vmem:[%s10816_s18 + $0xe8] ss:$16 sps:$4 sm:$0xff]  }
 0x394   : > { %3131 = vmatpush1.bf16.msra.mxu0 %v2093_v27  ;;  %v9432_v27 = vld [vmem:[%s14090_s5 + $0x144] ss:$8 sps:$4 sm:$0xff]   ;;  %v9445_v23 = vld [vmem:[%s10816_s18 + $0x328] ss:$16 sps:$4 sm:$0xff]  }
 0x396   : > { %3845 = vmatpush1.bf16.msra.mxu1 %v9424_v22  ;;  %v9447_v22 = vld [vmem:[%s10816_s18 + $0x32c] ss:$16 sps:$4 sm:$0xff]  }
 0x397   : > { %2920 = vmatmul.mubr.bf16.gmra.mrb[228].mxu0 %v9294_v30  ;;  %3846 = vmatprep.subr.bf16.mxu1 %v9432_v27  ;;  %v9370_v30 = vld [vmem:[%s10816_s18 + $0x10c] ss:$16 sps:$4 sm:$0xff]  }
 0x398   : > { %2929 = vmatprep.mubr.bf16.mxu0 %v9295_v31  ;;  %v9433_v31 = vld [vmem:[%s14090_s5 + $0x150] ss:$8 sps:$4 sm:$0xff]   ;;  %v9456_v27 = vld [vmem:[%s10816_s18 + $0x34c] ss:$16 sps:$4 sm:$0xff]  }
 0x39a   : > { %3847 = vmatpush1.bf16.msra.mxu1 %v9430_v28  ;;  %v9454_v28 = vld [vmem:[%s10816_s18 + $0x348] ss:$16 sps:$4 sm:$0xff]  }
 0x39f   : > { %2930 = vmatmul.mubr.bf16.gmra.mrb[232].mxu0 %v9297_v32  ;;  %v9435_v32 = vld [vmem:[%s14090_s5 + $0x154] ss:$8 sps:$4 sm:$0xff]  }
 0x3a0   : > { %2939 = vmatprep.mubr.bf16.mxu0 %v9298_v33  ;;  %v9441_v33 = vld [vmem:[%s14090_s5 + $0x164] ss:$8 sps:$4 sm:$0xff]   ;;  %3848 = vmatprep.subr.bf16.mxu1 %v9435_v32 }
 0x3a1   : > { %3849 = vmatpush1.bf16.msra.mxu1 %v9433_v31 }
 0x3a2   : > { %3850 = vmatprep.subr.bf16.mxu1 %v9441_v33 }
 0x3a7   : > { %2940 = vmatmul.mubr.bf16.gmra.mrb[236].mxu0 %v9300_v34  ;;  %v9439_v34 = vld [vmem:[%s14090_s5 + $0x160] ss:$8 sps:$4 sm:$0xff]  }
 0x3a8   : > { %2949 = vmatprep.mubr.bf16.mxu0 %v9301_v35  ;;  %v9372_v35 = vld [vmem:[%s10816_s18 + $0x108] ss:$16 sps:$4 sm:$0xff]   ;;  %3851 = vmatpush1.bf16.msra.mxu1 %v9439_v34 }
 0x3af   : > { %2950 = vmatmul.mubr.bf16.gmra.mrb[240].mxu0 %v9303_v24  ;;  %v9373_v24 = vld [vmem:[%s10816_s18 + $0x12c] ss:$16 sps:$4 sm:$0xff]  }
 0x3b0   : > { %2959 = vmatprep.mubr.bf16.mxu0 %v9304_v29  ;;  %v9442_v29 = vld [vmem:[%s14090_s5 + $0x170] ss:$8 sps:$4 sm:$0xff]  }
 0x3b7   : > { %2960 = vmatmul.mubr.bf16.gmra.mrb[244].mxu0 %v9306_v25  ;;  %v9444_v25 = vld [vmem:[%s14090_s5 + $0x174] ss:$8 sps:$4 sm:$0xff]  }
 0x3b8   : > { %2969 = vmatprep.mubr.bf16.mxu0 %v9307_v36  ;;  %v9450_v36 = vld [vmem:[%s14090_s5 + $0x184] ss:$8 sps:$4 sm:$0xff]   ;;  %3852 = vmatprep.subr.bf16.mxu1 %v9444_v25 }
 0x3b9   : > { %3853 = vmatpush1.bf16.msra.mxu1 %v9442_v29 }
 0x3ba   : > { %3854 = vmatprep.subr.bf16.mxu1 %v9450_v36  ;;  %v9474_v36 = vld [vmem:[%s10816_s18 + $0x38c] ss:$16 sps:$4 sm:$0xff]  }
 0x3bf   : > { %2970 = vmatmul.mubr.bf16.gmra.mrb[248].mxu0 %v9309_v37  ;;  %v9448_v37 = vld [vmem:[%s14090_s5 + $0x180] ss:$8 sps:$4 sm:$0xff]  }
 0x3c0   : > { %2979 = vmatprep.mubr.bf16.mxu0 %v9310_v38  ;;  %v9375_v38 = vld [vmem:[%s10816_s18 + $0x128] ss:$16 sps:$4 sm:$0xff]   ;;  %3855 = vmatpush1.bf16.msra.mxu1 %v9448_v37 }
 0x3c7   : > { %2980 = vmatmul.mubr.bf16.gmra.mrb[252].mxu0 %v9312_v39  ;;  %v9376_v39 = vld [vmem:[%s10816_s18 + $0x14c] ss:$16 sps:$4 sm:$0xff]  }
 0x3c8   : > { %2989 = vmatprep.mubr.bf16.mxu0 %v9315_v41  ;;  %v9451_v41 = vld [vmem:[%s14090_s5 + $0x190] ss:$8 sps:$4 sm:$0xff]  }
 0x3cf   : > { %2990 = vmatmul.mubr.bf16.gmra.mrb[0].mxu0 %v9313_v42  ;;  %v9453_v42 = vld [vmem:[%s14090_s5 + $0x194] ss:$8 sps:$4 sm:$0xff]  }
 0x3d0   : > { %2999 = vmatprep.mubr.bf16.mxu0 %v9318_v43  ;;  %v9459_v43 = vld [vmem:[%s14090_s5 + $0x1a4] ss:$8 sps:$4 sm:$0xff]   ;;  %3856 = vmatprep.subr.bf16.mxu1 %v9453_v42 }
 0x3d1   : > { %3857 = vmatpush1.bf16.msra.mxu1 %v9451_v41 }
 0x3d2   : > { %3858 = vmatprep.subr.bf16.mxu1 %v9459_v43 }
 0x3d7   : > { %3000 = vmatmul.mubr.bf16.gmra.mrb[4].mxu0 %v9316_v44  ;;  %v9457_v44 = vld [vmem:[%s14090_s5 + $0x1a0] ss:$8 sps:$4 sm:$0xff]  }
 0x3d8   : > { %3009 = vmatprep.mubr.bf16.mxu0 %v9321_v45  ;;  %v9378_v45 = vld [vmem:[%s10816_s18 + $0x148] ss:$16 sps:$4 sm:$0xff]   ;;  %3859 = vmatpush1.bf16.msra.mxu1 %v9457_v44 }
 0x3d9   : > { %v9472_v44 = vld [vmem:[%s10816_s18 + $0x388] ss:$16 sps:$4 sm:$0xff]  }
 0x3df   : > { %3010 = vmatmul.mubr.bf16.gmra.mrb[8].mxu0 %v9319_v40  ;;  %v9379_v40 = vld [vmem:[%s10816_s18 + $0x16c] ss:$16 sps:$4 sm:$0xff]  }
 0x3e0   : > { %3019 = vmatprep.mubr.bf16.mxu0 %v9324_v46  ;;  %v9462_v46 = vld [vmem:[%s14090_s5 + $0x1b4] ss:$8 sps:$4 sm:$0xff]  }
 0x3e1   : > { %3860 = vmatprep.subr.bf16.mxu1 %v9462_v46  ;;  %v9483_v46 = vld [vmem:[%s10816_s18 + $0x3ac] ss:$16 sps:$4 sm:$0xff]  }
 0x3e7   : > { %3020 = vmatmul.mubr.bf16.gmra.mrb[12].mxu0 %v9322_v47  ;;  %v9460_v47 = vld [vmem:[%s14090_s5 + $0x1b0] ss:$8 sps:$4 sm:$0xff]  }
 0x3e8   : > { %3029 = vmatprep.mubr.bf16.mxu0 %v9327_v48  ;;  %v9381_v48 = vld [vmem:[%s10816_s18 + $0x168] ss:$16 sps:$4 sm:$0xff]   ;;  %3861 = vmatpush1.bf16.msra.mxu1 %v9460_v47 }
 0x3ef   : > { %3030 = vmatmul.mubr.bf16.gmra.mrb[16].mxu0 %v9325_v52  ;;  %v9382_v52 = vld [vmem:[%s10816_s18 + $0x18c] ss:$16 sps:$4 sm:$0xff]  }
 0x3f0   : > { %3039 = vmatprep.mubr.bf16.mxu0 %v9330_v53  ;;  %v9468_v53 = vld [vmem:[%s14090_s5 + $0x1c4] ss:$8 sps:$4 sm:$0xff]  }
 0x3f1   : > { %3862 = vmatprep.subr.bf16.mxu1 %v9468_v53 }
 0x3f7   : > { %3040 = vmatmul.mubr.bf16.gmra.mrb[20].mxu0 %v9328_v54  ;;  %v9466_v54 = vld [vmem:[%s14090_s5 + $0x1c0] ss:$8 sps:$4 sm:$0xff]  }
 0x3f8   : > { %3049 = vmatprep.mubr.bf16.mxu0 %v9333_v55  ;;  %3863 = vmatpush1.bf16.msra.mxu1 %v9466_v54  ;;  %v9471_v55 = vld [vmem:[%s14090_s5 + $0x1d4] ss:$8 sps:$4 sm:$0xff]  }
 0x3f9   : > { %3864 = vmatprep.subr.bf16.mxu1 %v9471_v55 }
 0x3ff   : > { %3050 = vmatmul.mubr.bf16.gmra.mrb[24].mxu0 %v9331_v56  ;;  %v9469_v56 = vld [vmem:[%s14090_s5 + $0x1d0] ss:$8 sps:$4 sm:$0xff]  }
 0x400   : > { %3059 = vmatprep.mubr.bf16.mxu0 %v9336_v57  ;;  %v9384_v57 = vld [vmem:[%s10816_s18 + $0x188] ss:$16 sps:$4 sm:$0xff]   ;;  %3865 = vmatpush1.bf16.msra.mxu1 %v9469_v56 }
 0x407   : > { %3060 = vmatmul.mubr.bf16.gmra.mrb[28].mxu0 %v9334_v49  ;;  %v9385_v49 = vld [vmem:[%s10816_s18 + $0x1ac] ss:$16 sps:$4 sm:$0xff]  }
 0x408   : > { %3069 = vmatprep.mubr.bf16.mxu0 %v9339_v50  ;;  %v9477_v50 = vld [vmem:[%s14090_s5 + $0x1e4] ss:$8 sps:$4 sm:$0xff]  }
 0x409   : > { %3866 = vmatprep.subr.bf16.mxu1 %v9477_v50 }
 0x40f   : > { %3070 = vmatmul.mubr.bf16.gmra.mrb[32].mxu0 %v9337_v51  ;;  %v9475_v51 = vld [vmem:[%s14090_s5 + $0x1e0] ss:$8 sps:$4 sm:$0xff]  }
 0x410   : > { %3079 = vmatprep.mubr.bf16.mxu0 %v9342_v58  ;;  %3867 = vmatpush1.bf16.msra.mxu1 %v9475_v51  ;;  %v9480_v58 = vld [vmem:[%s14090_s5 + $0x1f4] ss:$8 sps:$4 sm:$0xff]  }
 0x411   : > { %3868 = vmatprep.subr.bf16.mxu1 %v9480_v58 }
 0x417   : > { %3080 = vmatmul.mubr.bf16.gmra.mrb[36].mxu0 %v9340_v18  ;;  %v9478_v18 = vld [vmem:[%s14090_s5 + $0x1f0] ss:$8 sps:$4 sm:$0xff]  }
 0x418   : > { %3089 = vmatprep.mubr.bf16.mxu0 %v9345_v61  ;;  %v9387_v61 = vld [vmem:[%s10816_s18 + $0x1a8] ss:$16 sps:$4 sm:$0xff]   ;;  %3869 = vmatpush1.bf16.msra.mxu1 %v9478_v18 }
 0x419   : > { %v9481_v18 = vld [vmem:[%s10816_s18 + $0x3a8] ss:$16 sps:$4 sm:$0xff]  }
 0x41f   : > { %3090 = vmatmul.mubr.bf16.gmra.mrb[40].mxu0 %v9343_v63  ;;  %v9388_v63 = vld [vmem:[%s10816_s18 + $0x1cc] ss:$16 sps:$4 sm:$0xff]  }
 0x420   : > { %3132 = vmatprep.mubr.bf16.mxu0 %v9348_v1  ;;  %v9390_v1 = vld [vmem:[%s10816_s18 + $0x1c8] ss:$16 sps:$4 sm:$0xff]  }
 0x427   : > { %3133 = vmatmul.mubr.bf16.vlgmr.msra.gmra.mrb[172].mxu0 %v9346_v20  ;;  %v9391_v20 = vld [vmem:[%s10816_s18 + $0x1ec] ss:$16 sps:$4 sm:$0xff]  }
 0x428   : > { %3142 = vmatprep.mubr.bf16.mxu0 %v9349_v2  ;;  %v9393_v2 = vld [vmem:[%s10816_s18 + $0x1e8] ss:$16 sps:$4 sm:$0xff]  }
 0x42f   : > { %3143 = vmatmul.mubr.bf16.gmra.mrb[176].mxu0 %v9351_v3  ;;  %v9394_v3 = vld [vmem:[%s10816_s18 + $0x20c] ss:$16 sps:$4 sm:$0xff]  }
 0x430   : > { %3152 = vmatprep.mubr.bf16.mxu0 %v9352_v4  ;;  %v9396_v4 = vld [vmem:[%s10816_s18 + $0x208] ss:$16 sps:$4 sm:$0xff]  }
 0x437   : > { %3153 = vmatmul.mubr.bf16.gmra.mrb[180].mxu0 %v9354_v5  ;;  %v9397_v5 = vld [vmem:[%s10816_s18 + $0x22c] ss:$16 sps:$4 sm:$0xff]  }
 0x438   : > { %3162 = vmatprep.mubr.bf16.mxu0 %v9355_v59  ;;  %v9399_v59 = vld [vmem:[%s10816_s18 + $0x228] ss:$16 sps:$4 sm:$0xff]  }
 0x43f   : > { %3163 = vmatmul.mubr.bf16.gmra.mrb[184].mxu0 %v9357_v60  ;;  %v9400_v60 = vld [vmem:[%s10816_s18 + $0x24c] ss:$16 sps:$4 sm:$0xff]  }
 0x440   : > { %3172 = vmatprep.mubr.bf16.mxu0 %v9358_v62  ;;  %v9402_v62 = vld [vmem:[%s10816_s18 + $0x248] ss:$16 sps:$4 sm:$0xff]  }
 0x447   : > { %3173 = vmatmul.mubr.bf16.gmra.mrb[188].mxu0 %v9360_v8  ;;  %v9403_v8 = vld [vmem:[%s10816_s18 + $0x26c] ss:$16 sps:$4 sm:$0xff]  }
 0x448   : > { %3182 = vmatprep.mubr.bf16.mxu0 %v9361_v9  ;;  %v9405_v9 = vld [vmem:[%s10816_s18 + $0x268] ss:$16 sps:$4 sm:$0xff]  }
 0x44f   : > { %3183 = vmatmul.mubr.bf16.gmra.mrb[192].mxu0 %v9363_v13  ;;  %v9411_v13 = vld [vmem:[%s10816_s18 + $0x2ac] ss:$16 sps:$4 sm:$0xff]  }
 0x450   : > { %3192 = vmatprep.mubr.bf16.mxu0 %v9364_v14  ;;  %v9409_v14 = vld [vmem:[%s10816_s18 + $0x2a8] ss:$16 sps:$4 sm:$0xff]  }
 0x457   : > { %3193 = vmatmul.mubr.bf16.gmra.mrb[196].mxu0 %v9366_v7  ;;  %v9438_v7 = vld [vmem:[%s10816_s18 + $0x30c] ss:$16 sps:$4 sm:$0xff]  }
 0x458   : > { %3202 = vmatprep.mubr.bf16.mxu0 %v9367_v10  ;;  %v9436_v10 = vld [vmem:[%s10816_s18 + $0x308] ss:$16 sps:$4 sm:$0xff]  }
 0x45f   : > { %3203 = vmatmul.mubr.bf16.gmra.mrb[200].mxu0 %v9369_v26  ;;  %v2095_v26 = vld [vmem:[%s14234_s20] sm:$0x3] }
 0x460   : > { %3212 = vmatprep.mubr.bf16.mxu0 %v9370_v30  ;;  %v9465_v30 = vld [vmem:[%s10816_s18 + $0x36c] ss:$16 sps:$4 sm:$0xff]   ;;  %v11449_v31 = vrot.slane %v2095_v26, %v10995_v15  ;;  %v11452_v32 = vrot.slane %v2095_v26, %v11000_v17  ;;  %v14236_v17 = vmov 0  }
 0x467   : > { %3213 = vmatmul.mubr.bf16.gmra.mrb[204].mxu0 %v9372_v35 }
 0x468   : > { %3222 = vmatprep.mubr.bf16.mxu0 %v9373_v24  ;;  %v9463_v24 = vld [vmem:[%s10816_s18 + $0x368] ss:$16 sps:$4 sm:$0xff]  }
 0x46f   : > { %3223 = vmatmul.mubr.bf16.gmra.mrb[208].mxu0 %v9375_v38 }
 0x470   : > { %3232 = vmatprep.mubr.bf16.mxu0 %v9376_v39 }
 0x477   : > { %3233 = vmatmul.mubr.bf16.gmra.mrb[212].mxu0 %v9378_v45 }
 0x478   : > { %3242 = vmatprep.mubr.bf16.mxu0 %v9379_v40 }
 0x47f   : > { %3243 = vmatmul.mubr.bf16.gmra.mrb[216].mxu0 %v9381_v48 }
 0x480   : > { %3252 = vmatprep.mubr.bf16.mxu0 %v9382_v52 }
 0x487   : > { %3253 = vmatmul.mubr.bf16.gmra.mrb[220].mxu0 %v9384_v57 }
 0x488   : > { %3262 = vmatprep.mubr.bf16.mxu0 %v9385_v49 }
 0x48f   : > { %3263 = vmatmul.mubr.bf16.gmra.mrb[224].mxu0 %v9387_v61 }
 0x490   : > { %3272 = vmatprep.mubr.bf16.mxu0 %v9388_v63 }
 0x497   : > { %3273 = vmatmul.mubr.bf16.gmra.mrb[228].mxu0 %v9390_v1  ;;  %v9486_v1 = vld [vmem:[%s10816_s18 + $0x3cc] ss:$16 sps:$4 sm:$0xff]  }
 0x498   : > { %3282 = vmatprep.mubr.bf16.mxu0 %v9391_v20 }
 0x49f   : > { %3283 = vmatmul.mubr.bf16.gmra.mrb[232].mxu0 %v9393_v2 }
 0x4a0   : > { %3292 = vmatprep.mubr.bf16.mxu0 %v9394_v3 }
 0x4a7   : > { %3293 = vmatmul.mubr.bf16.gmra.mrb[236].mxu0 %v9396_v4 }
 0x4a8   : > { %3302 = vmatprep.mubr.bf16.mxu0 %v9397_v5 }
 0x4af   : > { %3303 = vmatmul.mubr.bf16.gmra.mrb[240].mxu0 %v9399_v59 }
 0x4b0   : > { %3312 = vmatprep.mubr.bf16.mxu0 %v9400_v60 }
 0x4b7   : > { %3313 = vmatmul.mubr.bf16.gmra.mrb[244].mxu0 %v9402_v62 }
 0x4b8   : > { %3322 = vmatprep.mubr.bf16.mxu0 %v9403_v8 }
 0x4bf   : > { %3323 = vmatmul.mubr.bf16.gmra.mrb[248].mxu0 %v9405_v9 }
 0x4c0   : > { %3332 = vmatprep.mubr.bf16.mxu0 %v9406_v11 }
 0x4c7   : > { %3333 = vmatmul.mubr.bf16.gmra.mrb[252].mxu0 %v9408_v12 }
 0x4c8   : > { %3342 = vmatprep.mubr.bf16.mxu0 %v9411_v13  ;;  %v9484_v13 = vld [vmem:[%s10816_s18 + $0x3c8] ss:$16 sps:$4 sm:$0xff]  }
 0x4cf   : > { %3343 = vmatmul.mubr.bf16.gmra.mrb[0].mxu0 %v9409_v14 }
 0x4d0   : > { %3352 = vmatprep.mubr.bf16.mxu0 %v9420_v16 }
 0x4d7   : > { %3353 = vmatmul.mubr.bf16.gmra.mrb[4].mxu0 %v9418_v19  ;;  %v9489_v19 = vld [vmem:[%s10816_s18 + $0x3ec] ss:$16 sps:$4 sm:$0xff]  }
 0x4d8   : > { %3362 = vmatprep.mubr.bf16.mxu0 %v9429_v21 }
 0x4df   : > { %3363 = vmatmul.mubr.bf16.gmra.mrb[8].mxu0 %v9427_v6 }
 0x4e0   : > { %3372 = vmatprep.mubr.bf16.mxu0 %v9438_v7 }
 0x4e7   : > { %3373 = vmatmul.mubr.bf16.gmra.mrb[12].mxu0 %v9436_v10 }
 0x4e8   : > { %3382 = vmatprep.mubr.bf16.mxu0 %v9447_v22 }
 0x4ef   : > { %3383 = vmatmul.mubr.bf16.gmra.mrb[16].mxu0 %v9445_v23 }
 0x4f0   : > { %3392 = vmatprep.mubr.bf16.mxu0 %v9456_v27 }
 0x4f7   : > { %3393 = vmatmul.mubr.bf16.gmra.mrb[20].mxu0 %v9454_v28 }
 0x4f8   : > { %3402 = vmatprep.mubr.bf16.mxu0 %v9465_v30 }
 0x4fa   : > { %v3134_v33 = vpop.f32.mrb[172].mxu0 }
 0x4fb   : > { %v8526_v34 = vadd.f32 %v3134_v33, %v11449_v31  ;;  %v3136_v35 = vpop.f32.mrb[173].mxu0 }
 0x4fc   : > { %v8527_v29 = vadd.f32 %v3136_v35, %v11452_v32  ;;  %v3138_v25 = vpop.f32.mrb[174].mxu0  ;;  %v9487_v35 = vld [vmem:[%s10816_s18 + $0x3e8] ss:$16 sps:$4 sm:$0xff]  }
 0x4fd   : > { %9546 = vtanh.f32 %v8526_v34  ;;  %v8528_v37 = vadd.f32 %v3138_v25, %v11449_v31  ;;  %v3140_v38 = vpop.f32.mrb[175].mxu0 }
 0x4fe   : > { %9548 = vtanh.f32 %v8527_v29  ;;  %v8529_v39 = vadd.f32 %v3140_v38, %v11452_v32 }
 0x4ff   : > { %9550 = vtanh.f32 %v8528_v37  ;;  %3403 = vmatmul.mubr.bf16.gmra.mrb[24].mxu0 %v9463_v24 }
 0x500   : > { %9552 = vtanh.f32 %v8529_v39  ;;  %3412 = vmatprep.mubr.bf16.mxu0 %v9474_v36 }
 0x502   : > { %v3144_v41 = vpop.f32.mrb[176].mxu0 }
 0x503   : > { %v8530_v42 = vadd.f32 %v3144_v41, %v11449_v31  ;;  %v3146_v43 = vpop.f32.mrb[177].mxu0 }
 0x504   : > { %v8531_v45 = vadd.f32 %v3146_v43, %v11452_v32  ;;  %v3148_v40 = vpop.f32.mrb[178].mxu0 }
 0x505   : > { %9554 = vtanh.f32 %v8530_v42  ;;  %v8532_v47 = vadd.f32 %v3148_v40, %v11449_v31  ;;  %v3150_v48 = vpop.f32.mrb[179].mxu0 }
 0x506   : > { %9556 = vtanh.f32 %v8531_v45  ;;  %v8533_v52 = vadd.f32 %v3150_v48, %v11452_v32 }
 0x507   : > { %v9547_v53 = vpop.eup %9546  ;;  %9558 = vtanh.f32 %v8532_v47  ;;  %3413 = vmatmul.mubr.bf16.gmra.mrb[28].mxu0 %v9472_v44 }
 0x508   : > { %v9549_v54 = vpop.eup %9548  ;;  %9560 = vtanh.f32 %v8533_v52  ;;  %3422 = vmatprep.mubr.bf16.mxu0 %v9483_v46 }
 0x509   : > { %v9551_v55 = vpop.eup %9550 }
 0x50a   : > { %v9553_v56 = vpop.eup %9552  ;;  %v3154_v57 = vpop.f32.mrb[180].mxu0  ;;  %v3581_v49 = vpack.c.bf16 %v9551_v55, %v9547_v53 }
 0x50b   : > { %v8534_v50 = vadd.f32 %v3154_v57, %v11449_v31  ;;  %v3156_v51 = vpop.f32.mrb[181].mxu0  ;;  %v3582_v58 = vpack.c.bf16 %v9553_v56, %v9549_v54 }
 0x50c   : > { %v8535_v61 = vadd.f32 %v3156_v51, %v11452_v32  ;;  %v3158_v63 = vpop.f32.mrb[182].mxu0 }
 0x50d   : > { %9562 = vtanh.f32 %v8534_v50  ;;  %v8536_v20 = vadd.f32 %v3158_v63, %v11449_v31  ;;  %v3160_v2 = vpop.f32.mrb[183].mxu0  ;;  %3870 = vmatprep.mubr.bf16.mxu1 %v3582_v58 }
 0x50e   : > { %9564 = vtanh.f32 %v8535_v61  ;;  %v8537_v3 = vadd.f32 %v3160_v2, %v11452_v32  ;;  %3871 = vmatmul.mubr.bf16.vlgmr.msra.gmra.mrb[84].mxu1 %v3581_v49 }
 0x50f   : > { %v9555_v4 = vpop.eup %9554  ;;  %9566 = vtanh.f32 %v8536_v20  ;;  %3423 = vmatmul.mubr.bf16.gmra.mrb[32].mxu0 %v9481_v18 }
 0x510   : > { %v9557_v5 = vpop.eup %9556  ;;  %9568 = vtanh.f32 %v8537_v3  ;;  %3432 = vmatprep.mubr.bf16.mxu0 %v9486_v1 }
 0x511   : > { %v9559_v59 = vpop.eup %9558 }
 0x512   : > { %v9561_v60 = vpop.eup %9560  ;;  %v3164_v62 = vpop.f32.mrb[184].mxu0  ;;  %v3583_v8 = vpack.c.bf16 %v9559_v59, %v9555_v4 }
 0x513   : > { %v8538_v9 = vadd.f32 %v3164_v62, %v11449_v31  ;;  %v3166_v11 = vpop.f32.mrb[185].mxu0  ;;  %v3584_v12 = vpack.c.bf16 %v9561_v60, %v9557_v5 }
 0x514   : > { %v8539_v14 = vadd.f32 %v3166_v11, %v11452_v32  ;;  %v3168_v16 = vpop.f32.mrb[186].mxu0 }
 0x515   : > { %9570 = vtanh.f32 %v8538_v9  ;;  %v8540_v21 = vadd.f32 %v3168_v16, %v11449_v31  ;;  %v3170_v6 = vpop.f32.mrb[187].mxu0  ;;  %3880 = vmatprep.mubr.bf16.mxu1 %v3584_v12 }
 0x516   : > { %9572 = vtanh.f32 %v8539_v14  ;;  %v8541_v7 = vadd.f32 %v3170_v6, %v11452_v32  ;;  %3881 = vmatmul.mubr.bf16.gmra.mrb[88].mxu1 %v3583_v8 }
 0x517   : > { %v9563_v10 = vpop.eup %9562  ;;  %9574 = vtanh.f32 %v8540_v21  ;;  %3433 = vmatmul.mubr.bf16.gmra.mrb[36].mxu0 %v9484_v13 }
 0x518   : > { %v9565_v22 = vpop.eup %9564  ;;  %9576 = vtanh.f32 %v8541_v7  ;;  %3442 = vmatprep.mubr.bf16.mxu0 %v9489_v19 }
 0x519   : > { %v9567_v23 = vpop.eup %9566 }
 0x51a   : > { %v9569_v27 = vpop.eup %9568  ;;  %v3174_v28 = vpop.f32.mrb[188].mxu0  ;;  %v3585_v26 = vpack.c.bf16 %v9567_v23, %v9563_v10 }
 0x51b   : > { %v8542_v30 = vadd.f32 %v3174_v28, %v11449_v31  ;;  %v3176_v33 = vpop.f32.mrb[189].mxu0  ;;  %v3586_v34 = vpack.c.bf16 %v9569_v27, %v9565_v22 }
 0x51c   : > { %v8543_v24 = vadd.f32 %v3176_v33, %v11452_v32  ;;  %v3178_v29 = vpop.f32.mrb[190].mxu0 }
 0x51d   : > { %9578 = vtanh.f32 %v8542_v30  ;;  %v8544_v25 = vadd.f32 %v3178_v29, %v11449_v31  ;;  %v3180_v36 = vpop.f32.mrb[191].mxu0  ;;  %3890 = vmatprep.mubr.bf16.mxu1 %v3586_v34 }
 0x51e   : > { %9580 = vtanh.f32 %v8543_v24  ;;  %v8545_v37 = vadd.f32 %v3180_v36, %v11452_v32  ;;  %3891 = vmatmul.mubr.bf16.gmra.mrb[92].mxu1 %v3585_v26 }
 0x51f   : > { %v9571_v38 = vpop.eup %9570  ;;  %9582 = vtanh.f32 %v8544_v25  ;;  %3443 = vmatmul.mubr.bf16.gmra.mrb[40].mxu0 %v9487_v35 }
 0x520   : > { %v9573_v39 = vpop.eup %9572  ;;  %9584 = vtanh.f32 %v8545_v37 }
 0x521   : > { %v9575_v41 = vpop.eup %9574 }
 0x522   : > { %v9577_v42 = vpop.eup %9576  ;;  %v3184_v43 = vpop.f32.mrb[192].mxu0  ;;  %v3587_v44 = vpack.c.bf16 %v9575_v41, %v9571_v38 }
 0x523   : > { %v8546_v45 = vadd.f32 %v3184_v43, %v11449_v31  ;;  %v3186_v40 = vpop.f32.mrb[193].mxu0  ;;  %v3588_v46 = vpack.c.bf16 %v9577_v42, %v9573_v39 }
 0x524   : > { %v8547_v47 = vadd.f32 %v3186_v40, %v11452_v32  ;;  %v3188_v48 = vpop.f32.mrb[194].mxu0 }
 0x525   : > { %9586 = vtanh.f32 %v8546_v45  ;;  %v8548_v52 = vadd.f32 %v3188_v48, %v11449_v31  ;;  %v3190_v53 = vpop.f32.mrb[195].mxu0  ;;  %3900 = vmatprep.mubr.bf16.mxu1 %v3588_v46 }
 0x526   : > { %9588 = vtanh.f32 %v8547_v47  ;;  %v8549_v54 = vadd.f32 %v3190_v53, %v11452_v32  ;;  %3901 = vmatmul.mubr.bf16.gmra.mrb[96].mxu1 %v3587_v44 }
 0x527   : > { %v9579_v55 = vpop.eup %9578  ;;  %9590 = vtanh.f32 %v8548_v52 }
 0x528   : > { %v9581_v56 = vpop.eup %9580  ;;  %9592 = vtanh.f32 %v8549_v54 }
 0x529   : > { %v9583_v57 = vpop.eup %9582 }
 0x52a   : > { %v9585_v49 = vpop.eup %9584  ;;  %v3194_v50 = vpop.f32.mrb[196].mxu0  ;;  %v3589_v51 = vpack.c.bf16 %v9583_v57, %v9579_v55 }
 0x52b   : > { %v8550_v58 = vadd.f32 %v3194_v50, %v11449_v31  ;;  %v3196_v18 = vpop.f32.mrb[197].mxu0  ;;  %v3590_v61 = vpack.c.bf16 %v9585_v49, %v9581_v56 }
 0x52c   : > { %v8551_v63 = vadd.f32 %v3196_v18, %v11452_v32  ;;  %v3198_v1 = vpop.f32.mrb[198].mxu0 }
 0x52d   : > { %9594 = vtanh.f32 %v8550_v58  ;;  %v8552_v20 = vadd.f32 %v3198_v1, %v11449_v31  ;;  %v3200_v2 = vpop.f32.mrb[199].mxu0  ;;  %3910 = vmatprep.mubr.bf16.mxu1 %v3590_v61 }
 0x52e   : > { %9596 = vtanh.f32 %v8551_v63  ;;  %v8553_v3 = vadd.f32 %v3200_v2, %v11452_v32  ;;  %3911 = vmatmul.mubr.bf16.gmra.mrb[100].mxu1 %v3589_v51 }
 0x52f   : > { %v9587_v4 = vpop.eup %9586  ;;  %9598 = vtanh.f32 %v8552_v20 }
 0x530   : > { %v9589_v5 = vpop.eup %9588  ;;  %9600 = vtanh.f32 %v8553_v3 }
 0x531   : > { %v9591_v59 = vpop.eup %9590 }
 0x532   : > { %v9593_v60 = vpop.eup %9592  ;;  %v3204_v62 = vpop.f32.mrb[200].mxu0  ;;  %v3591_v8 = vpack.c.bf16 %v9591_v59, %v9587_v4 }
 0x533   : > { %v8554_v9 = vadd.f32 %v3204_v62, %v11449_v31  ;;  %v3206_v11 = vpop.f32.mrb[201].mxu0  ;;  %v3592_v12 = vpack.c.bf16 %v9593_v60, %v9589_v5 }
 0x534   : > { %v8555_v13 = vadd.f32 %v3206_v11, %v11452_v32  ;;  %v3208_v14 = vpop.f32.mrb[202].mxu0 }
 0x535   : > { %9602 = vtanh.f32 %v8554_v9  ;;  %v8556_v16 = vadd.f32 %v3208_v14, %v11449_v31  ;;  %v3210_v19 = vpop.f32.mrb[203].mxu0  ;;  %3920 = vmatprep.mubr.bf16.mxu1 %v3592_v12 }
 0x536   : > { %9604 = vtanh.f32 %v8555_v13  ;;  %v8557_v21 = vadd.f32 %v3210_v19, %v11452_v32  ;;  %3921 = vmatmul.mubr.bf16.gmra.mrb[104].mxu1 %v3591_v8 }
 0x537   : > { %v9595_v6 = vpop.eup %9594  ;;  %9606 = vtanh.f32 %v8556_v16 }
 0x538   : > { %v9597_v7 = vpop.eup %9596  ;;  %9608 = vtanh.f32 %v8557_v21 }
 0x539   : > { %v9599_v10 = vpop.eup %9598 }
 0x53a   : > { %v9601_v22 = vpop.eup %9600  ;;  %v3214_v23 = vpop.f32.mrb[204].mxu0  ;;  %v3593_v27 = vpack.c.bf16 %v9599_v10, %v9595_v6 }
 0x53b   : > { %v8558_v28 = vadd.f32 %v3214_v23, %v11449_v31  ;;  %v3216_v26 = vpop.f32.mrb[205].mxu0  ;;  %v3594_v30 = vpack.c.bf16 %v9601_v22, %v9597_v7 }
 0x53c   : > { %v8559_v33 = vadd.f32 %v3216_v26, %v11452_v32  ;;  %v3218_v34 = vpop.f32.mrb[206].mxu0 }
 0x53d   : > { %9610 = vtanh.f32 %v8558_v28  ;;  %v8560_v35 = vadd.f32 %v3218_v34, %v11449_v31  ;;  %v3220_v24 = vpop.f32.mrb[207].mxu0  ;;  %3930 = vmatprep.mubr.bf16.mxu1 %v3594_v30 }
 0x53e   : > { %9612 = vtanh.f32 %v8559_v33  ;;  %v8561_v29 = vadd.f32 %v3220_v24, %v11452_v32  ;;  %3931 = vmatmul.mubr.bf16.gmra.mrb[108].mxu1 %v3593_v27 }
 0x53f   : > { %v9603_v25 = vpop.eup %9602  ;;  %9614 = vtanh.f32 %v8560_v35 }
 0x540   : > { %v9605_v36 = vpop.eup %9604  ;;  %9616 = vtanh.f32 %v8561_v29 }
 0x541   : > { %v9607_v37 = vpop.eup %9606 }
 0x542   : > { %v9609_v38 = vpop.eup %9608  ;;  %v3224_v39 = vpop.f32.mrb[208].mxu0  ;;  %v3595_v41 = vpack.c.bf16 %v9607_v37, %v9603_v25 }
 0x543   : > { %v8562_v42 = vadd.f32 %v3224_v39, %v11449_v31  ;;  %v3226_v43 = vpop.f32.mrb[209].mxu0  ;;  %v3596_v44 = vpack.c.bf16 %v9609_v38, %v9605_v36 }
 0x544   : > { %v8563_v45 = vadd.f32 %v3226_v43, %v11452_v32  ;;  %v3228_v40 = vpop.f32.mrb[210].mxu0 }
 0x545   : > { %9618 = vtanh.f32 %v8562_v42  ;;  %v8564_v46 = vadd.f32 %v3228_v40, %v11449_v31  ;;  %v3230_v47 = vpop.f32.mrb[211].mxu0  ;;  %3940 = vmatprep.mubr.bf16.mxu1 %v3596_v44 }
 0x546   : > { %9620 = vtanh.f32 %v8563_v45  ;;  %v8565_v48 = vadd.f32 %v3230_v47, %v11452_v32  ;;  %3941 = vmatmul.mubr.bf16.gmra.mrb[112].mxu1 %v3595_v41 }
 0x547   : > { %v9611_v52 = vpop.eup %9610  ;;  %9622 = vtanh.f32 %v8564_v46 }
 0x548   : > { %v9613_v53 = vpop.eup %9612  ;;  %9624 = vtanh.f32 %v8565_v48 }
 0x549   : > { %v9615_v54 = vpop.eup %9614 }
 0x54a   : > { %v9617_v55 = vpop.eup %9616  ;;  %v3234_v56 = vpop.f32.mrb[212].mxu0  ;;  %v3597_v57 = vpack.c.bf16 %v9615_v54, %v9611_v52 }
 0x54b   : > { %v8566_v49 = vadd.f32 %v3234_v56, %v11449_v31  ;;  %v3236_v50 = vpop.f32.mrb[213].mxu0  ;;  %v3598_v51 = vpack.c.bf16 %v9617_v55, %v9613_v53 }
 0x54c   : > { %v8567_v58 = vadd.f32 %v3236_v50, %v11452_v32  ;;  %v3238_v18 = vpop.f32.mrb[214].mxu0 }
 0x54d   : > { %9626 = vtanh.f32 %v8566_v49  ;;  %v8568_v61 = vadd.f32 %v3238_v18, %v11449_v31  ;;  %v3240_v63 = vpop.f32.mrb[215].mxu0  ;;  %3950 = vmatprep.mubr.bf16.mxu1 %v3598_v51 }
 0x54e   : > { %9628 = vtanh.f32 %v8567_v58  ;;  %v8569_v1 = vadd.f32 %v3240_v63, %v11452_v32  ;;  %3951 = vmatmul.mubr.bf16.gmra.mrb[116].mxu1 %v3597_v57 }
 0x54f   : > { %v9619_v20 = vpop.eup %9618  ;;  %9630 = vtanh.f32 %v8568_v61 }
 0x550   : > { %v9621_v2 = vpop.eup %9620  ;;  %9632 = vtanh.f32 %v8569_v1 }
 0x551   : > { %v9623_v3 = vpop.eup %9622 }
 0x552   : > { %v9625_v4 = vpop.eup %9624  ;;  %v3244_v5 = vpop.f32.mrb[216].mxu0  ;;  %v3599_v59 = vpack.c.bf16 %v9623_v3, %v9619_v20 }
 0x553   : > { %v8570_v60 = vadd.f32 %v3244_v5, %v11449_v31  ;;  %v3246_v62 = vpop.f32.mrb[217].mxu0  ;;  %v3600_v8 = vpack.c.bf16 %v9625_v4, %v9621_v2 }
 0x554   : > { %v8571_v9 = vadd.f32 %v3246_v62, %v11452_v32  ;;  %v3248_v11 = vpop.f32.mrb[218].mxu0 }
 0x555   : > { %9634 = vtanh.f32 %v8570_v60  ;;  %v8572_v12 = vadd.f32 %v3248_v11, %v11449_v31  ;;  %v3250_v13 = vpop.f32.mrb[219].mxu0  ;;  %3960 = vmatprep.mubr.bf16.mxu1 %v3600_v8 }
 0x556   : > { %9636 = vtanh.f32 %v8571_v9  ;;  %v8573_v14 = vadd.f32 %v3250_v13, %v11452_v32  ;;  %3961 = vmatmul.mubr.bf16.gmra.mrb[120].mxu1 %v3599_v59 }
 0x557   : > { %v9627_v16 = vpop.eup %9626  ;;  %9638 = vtanh.f32 %v8572_v12 }
 0x558   : > { %v9629_v19 = vpop.eup %9628  ;;  %9640 = vtanh.f32 %v8573_v14 }
 0x559   : > { %v9631_v21 = vpop.eup %9630 }
 0x55a   : > { %v9633_v6 = vpop.eup %9632  ;;  %v3254_v7 = vpop.f32.mrb[220].mxu0  ;;  %v3601_v10 = vpack.c.bf16 %v9631_v21, %v9627_v16 }
 0x55b   : > { %v8574_v22 = vadd.f32 %v3254_v7, %v11449_v31  ;;  %v3256_v23 = vpop.f32.mrb[221].mxu0  ;;  %v3602_v27 = vpack.c.bf16 %v9633_v6, %v9629_v19 }
 0x55c   : > { %v8575_v28 = vadd.f32 %v3256_v23, %v11452_v32  ;;  %v3258_v26 = vpop.f32.mrb[222].mxu0 }
 0x55d   : > { %9642 = vtanh.f32 %v8574_v22  ;;  %v8576_v30 = vadd.f32 %v3258_v26, %v11449_v31  ;;  %v3260_v33 = vpop.f32.mrb[223].mxu0  ;;  %3970 = vmatprep.mubr.bf16.mxu1 %v3602_v27 }
 0x55e   : > { %9644 = vtanh.f32 %v8575_v28  ;;  %v8577_v34 = vadd.f32 %v3260_v33, %v11452_v32  ;;  %3971 = vmatmul.mubr.bf16.gmra.mrb[124].mxu1 %v3601_v10 }
 0x55f   : > { %v9635_v35 = vpop.eup %9634  ;;  %9646 = vtanh.f32 %v8576_v30 }
 0x560   : > { %v9637_v24 = vpop.eup %9636  ;;  %9648 = vtanh.f32 %v8577_v34 }
 0x561   : > { %v9639_v29 = vpop.eup %9638 }
 0x562   : > { %v9641_v25 = vpop.eup %9640  ;;  %v3264_v36 = vpop.f32.mrb[224].mxu0  ;;  %v3603_v37 = vpack.c.bf16 %v9639_v29, %v9635_v35 }
 0x563   : > { %v8578_v38 = vadd.f32 %v3264_v36, %v11449_v31  ;;  %v3266_v39 = vpop.f32.mrb[225].mxu0  ;;  %v3604_v41 = vpack.c.bf16 %v9641_v25, %v9637_v24 }
 0x564   : > { %v8579_v42 = vadd.f32 %v3266_v39, %v11452_v32  ;;  %v3268_v43 = vpop.f32.mrb[226].mxu0 }
 0x565   : > { %9650 = vtanh.f32 %v8578_v38  ;;  %v8580_v44 = vadd.f32 %v3268_v43, %v11449_v31  ;;  %v3270_v45 = vpop.f32.mrb[227].mxu0  ;;  %3980 = vmatprep.mubr.bf16.mxu1 %v3604_v41 }
 0x566   : > { %9652 = vtanh.f32 %v8579_v42  ;;  %v8581_v40 = vadd.f32 %v3270_v45, %v11452_v32  ;;  %3981 = vmatmul.mubr.bf16.gmra.mrb[128].mxu1 %v3603_v37 }
 0x567   : > { %v9643_v46 = vpop.eup %9642  ;;  %9654 = vtanh.f32 %v8580_v44 }
 0x568   : > { %v9645_v47 = vpop.eup %9644  ;;  %9656 = vtanh.f32 %v8581_v40 }
 0x569   : > { %v9647_v48 = vpop.eup %9646 }
 0x56a   : > { %v9649_v52 = vpop.eup %9648  ;;  %v3274_v53 = vpop.f32.mrb[228].mxu0  ;;  %v3605_v54 = vpack.c.bf16 %v9647_v48, %v9643_v46 }
 0x56b   : > { %v8582_v55 = vadd.f32 %v3274_v53, %v11449_v31  ;;  %v3276_v56 = vpop.f32.mrb[229].mxu0  ;;  %v3606_v57 = vpack.c.bf16 %v9649_v52, %v9645_v47 }
 0x56c   : > { %v8583_v49 = vadd.f32 %v3276_v56, %v11452_v32  ;;  %v3278_v50 = vpop.f32.mrb[230].mxu0 }
 0x56d   : > { %9658 = vtanh.f32 %v8582_v55  ;;  %v8584_v51 = vadd.f32 %v3278_v50, %v11449_v31  ;;  %v3280_v58 = vpop.f32.mrb[231].mxu0  ;;  %3990 = vmatprep.mubr.bf16.mxu1 %v3606_v57 }
 0x56e   : > { %9660 = vtanh.f32 %v8583_v49  ;;  %v8585_v18 = vadd.f32 %v3280_v58, %v11452_v32  ;;  %3991 = vmatmul.mubr.bf16.gmra.mrb[132].mxu1 %v3605_v54 }
 0x56f   : > { %v9651_v61 = vpop.eup %9650  ;;  %9662 = vtanh.f32 %v8584_v51 }
 0x570   : > { %v9653_v63 = vpop.eup %9652  ;;  %9664 = vtanh.f32 %v8585_v18 }
 0x571   : > { %v9655_v1 = vpop.eup %9654 }
 0x572   : > { %v9657_v20 = vpop.eup %9656  ;;  %v3284_v2 = vpop.f32.mrb[232].mxu0  ;;  %v3607_v3 = vpack.c.bf16 %v9655_v1, %v9651_v61 }
 0x573   : > { %v8586_v4 = vadd.f32 %v3284_v2, %v11449_v31  ;;  %v3286_v5 = vpop.f32.mrb[233].mxu0  ;;  %v3608_v59 = vpack.c.bf16 %v9657_v20, %v9653_v63 }
 0x574   : > { %v8587_v60 = vadd.f32 %v3286_v5, %v11452_v32  ;;  %v3288_v62 = vpop.f32.mrb[234].mxu0 }
 0x575   : > { %9666 = vtanh.f32 %v8586_v4  ;;  %v8588_v8 = vadd.f32 %v3288_v62, %v11449_v31  ;;  %v3290_v9 = vpop.f32.mrb[235].mxu0  ;;  %4000 = vmatprep.mubr.bf16.mxu1 %v3608_v59 }
 0x576   : > { %9668 = vtanh.f32 %v8587_v60  ;;  %v8589_v11 = vadd.f32 %v3290_v9, %v11452_v32  ;;  %4001 = vmatmul.mubr.bf16.gmra.mrb[136].mxu1 %v3607_v3 }
 0x577   : > { %v9659_v12 = vpop.eup %9658  ;;  %9670 = vtanh.f32 %v8588_v8 }
 0x578   : > { %v9661_v13 = vpop.eup %9660  ;;  %9672 = vtanh.f32 %v8589_v11 }
 0x579   : > { %v9663_v14 = vpop.eup %9662 }
 0x57a   : > { %v9665_v16 = vpop.eup %9664  ;;  %v3294_v19 = vpop.f32.mrb[236].mxu0  ;;  %v3609_v21 = vpack.c.bf16 %v9663_v14, %v9659_v12 }
 0x57b   : > { %v8590_v6 = vadd.f32 %v3294_v19, %v11449_v31  ;;  %v3296_v7 = vpop.f32.mrb[237].mxu0  ;;  %v3610_v10 = vpack.c.bf16 %v9665_v16, %v9661_v13 }
 0x57c   : > { %v8591_v22 = vadd.f32 %v3296_v7, %v11452_v32  ;;  %v3298_v23 = vpop.f32.mrb[238].mxu0 }
 0x57d   : > { %9674 = vtanh.f32 %v8590_v6  ;;  %v8592_v27 = vadd.f32 %v3298_v23, %v11449_v31  ;;  %v3300_v28 = vpop.f32.mrb[239].mxu0  ;;  %4010 = vmatprep.mubr.bf16.mxu1 %v3610_v10 }
 0x57e   : > { %9676 = vtanh.f32 %v8591_v22  ;;  %v8593_v26 = vadd.f32 %v3300_v28, %v11452_v32  ;;  %4011 = vmatmul.mubr.bf16.gmra.mrb[140].mxu1 %v3609_v21 }
 0x57f   : > { %v9667_v30 = vpop.eup %9666  ;;  %9678 = vtanh.f32 %v8592_v27 }
 0x580   : > { %v9669_v33 = vpop.eup %9668  ;;  %9680 = vtanh.f32 %v8593_v26 }
 0x581   : > { %v9671_v34 = vpop.eup %9670 }
 0x582   : > { %v9673_v35 = vpop.eup %9672  ;;  %v3304_v24 = vpop.f32.mrb[240].mxu0  ;;  %v3611_v29 = vpack.c.bf16 %v9671_v34, %v9667_v30 }
 0x583   : > { %v8594_v25 = vadd.f32 %v3304_v24, %v11449_v31  ;;  %v3306_v36 = vpop.f32.mrb[241].mxu0  ;;  %v3612_v37 = vpack.c.bf16 %v9673_v35, %v9669_v33 }
 0x584   : > { %v8595_v38 = vadd.f32 %v3306_v36, %v11452_v32  ;;  %v3308_v39 = vpop.f32.mrb[242].mxu0 }
 0x585   : > { %9682 = vtanh.f32 %v8594_v25  ;;  %v8596_v41 = vadd.f32 %v3308_v39, %v11449_v31  ;;  %v3310_v42 = vpop.f32.mrb[243].mxu0  ;;  %4020 = vmatprep.mubr.bf16.mxu1 %v3612_v37 }
 0x586   : > { %9684 = vtanh.f32 %v8595_v38  ;;  %v8597_v43 = vadd.f32 %v3310_v42, %v11452_v32  ;;  %4021 = vmatmul.mubr.bf16.gmra.mrb[144].mxu1 %v3611_v29 }
 0x587   : > { %v9675_v44 = vpop.eup %9674  ;;  %9686 = vtanh.f32 %v8596_v41 }
 0x588   : > { %v9677_v45 = vpop.eup %9676  ;;  %9688 = vtanh.f32 %v8597_v43 }
 0x589   : > { %v9679_v40 = vpop.eup %9678 }
 0x58a   : > { %v9681_v46 = vpop.eup %9680  ;;  %v3314_v47 = vpop.f32.mrb[244].mxu0  ;;  %v3613_v48 = vpack.c.bf16 %v9679_v40, %v9675_v44 }
 0x58b   : > { %v8598_v52 = vadd.f32 %v3314_v47, %v11449_v31  ;;  %v3316_v53 = vpop.f32.mrb[245].mxu0  ;;  %v3614_v54 = vpack.c.bf16 %v9681_v46, %v9677_v45 }
 0x58c   : > { %v8599_v55 = vadd.f32 %v3316_v53, %v11452_v32  ;;  %v3318_v56 = vpop.f32.mrb[246].mxu0 }
 0x58d   : > { %9690 = vtanh.f32 %v8598_v52  ;;  %v8600_v57 = vadd.f32 %v3318_v56, %v11449_v31  ;;  %v3320_v49 = vpop.f32.mrb[247].mxu0  ;;  %4030 = vmatprep.mubr.bf16.mxu1 %v3614_v54 }
 0x58e   : > { %9692 = vtanh.f32 %v8599_v55  ;;  %v8601_v50 = vadd.f32 %v3320_v49, %v11452_v32  ;;  %4031 = vmatmul.mubr.bf16.gmra.mrb[148].mxu1 %v3613_v48 }
 0x58f   : > { %v9683_v51 = vpop.eup %9682  ;;  %9694 = vtanh.f32 %v8600_v57 }
 0x590   : > { %v9685_v58 = vpop.eup %9684  ;;  %9696 = vtanh.f32 %v8601_v50 }
 0x591   : > { %v9687_v18 = vpop.eup %9686 }
 0x592   : > { %v9689_v61 = vpop.eup %9688  ;;  %v3324_v63 = vpop.f32.mrb[248].mxu0  ;;  %v3615_v1 = vpack.c.bf16 %v9687_v18, %v9683_v51 }
 0x593   : > { %v8602_v20 = vadd.f32 %v3324_v63, %v11449_v31  ;;  %v3326_v2 = vpop.f32.mrb[249].mxu0  ;;  %v3616_v3 = vpack.c.bf16 %v9689_v61, %v9685_v58 }
 0x594   : > { %v8603_v4 = vadd.f32 %v3326_v2, %v11452_v32  ;;  %v3328_v5 = vpop.f32.mrb[250].mxu0 }
 0x595   : > { %9698 = vtanh.f32 %v8602_v20  ;;  %v8604_v59 = vadd.f32 %v3328_v5, %v11449_v31  ;;  %v3330_v60 = vpop.f32.mrb[251].mxu0  ;;  %4040 = vmatprep.mubr.bf16.mxu1 %v3616_v3 }
 0x596   : > { %9700 = vtanh.f32 %v8603_v4  ;;  %v8605_v62 = vadd.f32 %v3330_v60, %v11452_v32  ;;  %4041 = vmatmul.mubr.bf16.gmra.mrb[152].mxu1 %v3615_v1 }
 0x597   : > { %v9691_v8 = vpop.eup %9690  ;;  %9702 = vtanh.f32 %v8604_v59 }
 0x598   : > { %v9693_v9 = vpop.eup %9692  ;;  %9704 = vtanh.f32 %v8605_v62 }
 0x599   : > { %v9695_v11 = vpop.eup %9694 }
 0x59a   : > { %v9697_v12 = vpop.eup %9696  ;;  %v3334_v13 = vpop.f32.mrb[252].mxu0  ;;  %v3617_v14 = vpack.c.bf16 %v9695_v11, %v9691_v8 }
 0x59b   : > { %v8606_v16 = vadd.f32 %v3334_v13, %v11449_v31  ;;  %v3336_v19 = vpop.f32.mrb[253].mxu0  ;;  %v3618_v21 = vpack.c.bf16 %v9697_v12, %v9693_v9 }
 0x59c   : > { %v8607_v6 = vadd.f32 %v3336_v19, %v11452_v32  ;;  %v3338_v7 = vpop.f32.mrb[254].mxu0 }
 0x59d   : > { %9706 = vtanh.f32 %v8606_v16  ;;  %v8608_v10 = vadd.f32 %v3338_v7, %v11449_v31  ;;  %v3340_v22 = vpop.f32.mrb[255].mxu0  ;;  %4050 = vmatprep.mubr.bf16.mxu1 %v3618_v21 }
 0x59e   : > { %9708 = vtanh.f32 %v8607_v6  ;;  %v8609_v23 = vadd.f32 %v3340_v22, %v11452_v32  ;;  %4051 = vmatmul.mubr.bf16.gmra.mrb[156].mxu1 %v3617_v14 }
 0x59f   : > { %v9699_v27 = vpop.eup %9698  ;;  %9710 = vtanh.f32 %v8608_v10 }
 0x5a0   : > { %v9701_v28 = vpop.eup %9700  ;;  %9712 = vtanh.f32 %v8609_v23 }
 0x5a1   : > { %v9703_v26 = vpop.eup %9702 }
 0x5a2   : > { %v9705_v30 = vpop.eup %9704  ;;  %v3344_v33 = vpop.f32.mrb[0].mxu0  ;;  %v3619_v34 = vpack.c.bf16 %v9703_v26, %v9699_v27 }
 0x5a3   : > { %v8610_v35 = vadd.f32 %v3344_v33, %v11449_v31  ;;  %v3346_v24 = vpop.f32.mrb[1].mxu0  ;;  %v3620_v29 = vpack.c.bf16 %v9705_v30, %v9701_v28 }
 0x5a4   : > { %v8611_v25 = vadd.f32 %v3346_v24, %v11452_v32  ;;  %v3348_v36 = vpop.f32.mrb[2].mxu0 }
 0x5a5   : > { %9714 = vtanh.f32 %v8610_v35  ;;  %v8612_v37 = vadd.f32 %v3348_v36, %v11449_v31  ;;  %v3350_v38 = vpop.f32.mrb[3].mxu0  ;;  %4060 = vmatprep.mubr.bf16.mxu1 %v3620_v29 }
 0x5a6   : > { %9716 = vtanh.f32 %v8611_v25  ;;  %v8613_v39 = vadd.f32 %v3350_v38, %v11452_v32  ;;  %4061 = vmatmul.mubr.bf16.gmra.mrb[160].mxu1 %v3619_v34 }
 0x5a7   : > { %v9707_v41 = vpop.eup %9706  ;;  %9718 = vtanh.f32 %v8612_v37 }
 0x5a8   : > { %v9709_v42 = vpop.eup %9708  ;;  %9720 = vtanh.f32 %v8613_v39 }
 0x5a9   : > { %v9711_v43 = vpop.eup %9710 }
 0x5aa   : > { %v9713_v44 = vpop.eup %9712  ;;  %v3354_v45 = vpop.f32.mrb[4].mxu0  ;;  %v3621_v40 = vpack.c.bf16 %v9711_v43, %v9707_v41 }
 0x5ab   : > { %v8614_v46 = vadd.f32 %v3354_v45, %v11449_v31  ;;  %v3356_v47 = vpop.f32.mrb[5].mxu0  ;;  %v3622_v48 = vpack.c.bf16 %v9713_v44, %v9709_v42 }
 0x5ac   : > { %v8615_v52 = vadd.f32 %v3356_v47, %v11452_v32  ;;  %v3358_v53 = vpop.f32.mrb[6].mxu0 }
 0x5ad   : > { %9722 = vtanh.f32 %v8614_v46  ;;  %v8616_v54 = vadd.f32 %v3358_v53, %v11449_v31  ;;  %v3360_v55 = vpop.f32.mrb[7].mxu0  ;;  %4070 = vmatprep.mubr.bf16.mxu1 %v3622_v48 }
 0x5ae   : > { %9724 = vtanh.f32 %v8615_v52  ;;  %v8617_v56 = vadd.f32 %v3360_v55, %v11452_v32  ;;  %4071 = vmatmul.mubr.bf16.gmra.mrb[164].mxu1 %v3621_v40 }
 0x5af   : > { %v9715_v57 = vpop.eup %9714  ;;  %9726 = vtanh.f32 %v8616_v54 }
 0x5b0   : > { %v9717_v49 = vpop.eup %9716  ;;  %9728 = vtanh.f32 %v8617_v56 }
 0x5b1   : > { %v9719_v50 = vpop.eup %9718 }
 0x5b2   : > { %v9721_v51 = vpop.eup %9720  ;;  %v3364_v58 = vpop.f32.mrb[8].mxu0  ;;  %v3623_v18 = vpack.c.bf16 %v9719_v50, %v9715_v57 }
 0x5b3   : > { %v8618_v61 = vadd.f32 %v3364_v58, %v11449_v31  ;;  %v3366_v63 = vpop.f32.mrb[9].mxu0  ;;  %v3624_v1 = vpack.c.bf16 %v9721_v51, %v9717_v49 }
 0x5b4   : > { %v8619_v20 = vadd.f32 %v3366_v63, %v11452_v32  ;;  %v3368_v2 = vpop.f32.mrb[10].mxu0 }
 0x5b5   : > { %9730 = vtanh.f32 %v8618_v61  ;;  %v8620_v3 = vadd.f32 %v3368_v2, %v11449_v31  ;;  %v3370_v4 = vpop.f32.mrb[11].mxu0  ;;  %4080 = vmatprep.mubr.bf16.mxu1 %v3624_v1 }
 0x5b6   : > { %9732 = vtanh.f32 %v8619_v20  ;;  %v8621_v5 = vadd.f32 %v3370_v4, %v11452_v32  ;;  %4081 = vmatmul.mubr.bf16.gmra.mrb[168].mxu1 %v3623_v18 }
 0x5b7   : > { %v9723_v59 = vpop.eup %9722  ;;  %9734 = vtanh.f32 %v8620_v3 }
 0x5b8   : > { %v9725_v60 = vpop.eup %9724  ;;  %9736 = vtanh.f32 %v8621_v5 }
 0x5b9   : > { %v9727_v62 = vpop.eup %9726 }
 0x5ba   : > { %v9729_v8 = vpop.eup %9728  ;;  %v3374_v9 = vpop.f32.mrb[12].mxu0  ;;  %v3625_v11 = vpack.c.bf16 %v9727_v62, %v9723_v59 }
 0x5bb   : > { %v8622_v12 = vadd.f32 %v3374_v9, %v11449_v31  ;;  %v3376_v13 = vpop.f32.mrb[13].mxu0  ;;  %v3626_v14 = vpack.c.bf16 %v9729_v8, %v9725_v60 }
 0x5bc   : > { %v8623_v16 = vadd.f32 %v3376_v13, %v11452_v32  ;;  %v3378_v19 = vpop.f32.mrb[14].mxu0 }
 0x5bd   : > { %9738 = vtanh.f32 %v8622_v12  ;;  %v8624_v21 = vadd.f32 %v3378_v19, %v11449_v31  ;;  %v3380_v6 = vpop.f32.mrb[15].mxu0  ;;  %4090 = vmatprep.mubr.bf16.mxu1 %v3626_v14 }
 0x5be   : > { %9740 = vtanh.f32 %v8623_v16  ;;  %v8625_v7 = vadd.f32 %v3380_v6, %v11452_v32  ;;  %4091 = vmatmul.mubr.bf16.gmra.mrb[172].mxu1 %v3625_v11 }
 0x5bf   : > { %v9731_v10 = vpop.eup %9730  ;;  %9742 = vtanh.f32 %v8624_v21 }
 0x5c0   : > { %v9733_v22 = vpop.eup %9732  ;;  %9744 = vtanh.f32 %v8625_v7 }
 0x5c1   : > { %v9735_v23 = vpop.eup %9734 }
 0x5c2   : > { %v9737_v27 = vpop.eup %9736  ;;  %v3384_v28 = vpop.f32.mrb[16].mxu0  ;;  %v3627_v26 = vpack.c.bf16 %v9735_v23, %v9731_v10 }
 0x5c3   : > { %v8626_v30 = vadd.f32 %v3384_v28, %v11449_v31  ;;  %v3386_v33 = vpop.f32.mrb[17].mxu0  ;;  %v3628_v34 = vpack.c.bf16 %v9737_v27, %v9733_v22 }
 0x5c4   : > { %v8627_v35 = vadd.f32 %v3386_v33, %v11452_v32  ;;  %v3388_v24 = vpop.f32.mrb[18].mxu0 }
 0x5c5   : > { %9746 = vtanh.f32 %v8626_v30  ;;  %v8628_v29 = vadd.f32 %v3388_v24, %v11449_v31  ;;  %v3390_v25 = vpop.f32.mrb[19].mxu0  ;;  %4100 = vmatprep.mubr.bf16.mxu1 %v3628_v34 }
 0x5c6   : > { %9748 = vtanh.f32 %v8627_v35  ;;  %v8629_v36 = vadd.f32 %v3390_v25, %v11452_v32  ;;  %4101 = vmatmul.mubr.bf16.gmra.mrb[176].mxu1 %v3627_v26 }
 0x5c7   : > { %v9739_v37 = vpop.eup %9738  ;;  %9750 = vtanh.f32 %v8628_v29 }
 0x5c8   : > { %v9741_v38 = vpop.eup %9740  ;;  %9752 = vtanh.f32 %v8629_v36 }
 0x5c9   : > { %v9743_v39 = vpop.eup %9742 }
 0x5ca   : > { %v9745_v41 = vpop.eup %9744  ;;  %v3394_v42 = vpop.f32.mrb[20].mxu0  ;;  %v3629_v43 = vpack.c.bf16 %v9743_v39, %v9739_v37 }
 0x5cb   : > { %v8630_v44 = vadd.f32 %v3394_v42, %v11449_v31  ;;  %v3396_v45 = vpop.f32.mrb[21].mxu0  ;;  %v3630_v40 = vpack.c.bf16 %v9745_v41, %v9741_v38 }
 0x5cc   : > { %v8631_v46 = vadd.f32 %v3396_v45, %v11452_v32  ;;  %v3398_v47 = vpop.f32.mrb[22].mxu0 }
 0x5cd   : > { %9754 = vtanh.f32 %v8630_v44  ;;  %v8632_v48 = vadd.f32 %v3398_v47, %v11449_v31  ;;  %v3400_v52 = vpop.f32.mrb[23].mxu0  ;;  %4110 = vmatprep.mubr.bf16.mxu1 %v3630_v40 }
 0x5ce   : > { %9756 = vtanh.f32 %v8631_v46  ;;  %v8633_v53 = vadd.f32 %v3400_v52, %v11452_v32  ;;  %4111 = vmatmul.mubr.bf16.gmra.mrb[180].mxu1 %v3629_v43 }
 0x5cf   : > { %v9747_v54 = vpop.eup %9746  ;;  %9758 = vtanh.f32 %v8632_v48 }
 0x5d0   : > { %v9749_v55 = vpop.eup %9748  ;;  %9760 = vtanh.f32 %v8633_v53 }
 0x5d1   : > { %v9751_v56 = vpop.eup %9750 }
 0x5d2   : > { %v9753_v57 = vpop.eup %9752  ;;  %v3404_v49 = vpop.f32.mrb[24].mxu0  ;;  %v3631_v50 = vpack.c.bf16 %v9751_v56, %v9747_v54 }
 0x5d3   : > { %v8634_v51 = vadd.f32 %v3404_v49, %v11449_v31  ;;  %v3406_v58 = vpop.f32.mrb[25].mxu0  ;;  %v3632_v18 = vpack.c.bf16 %v9753_v57, %v9749_v55 }
 0x5d4   : > { %v8635_v61 = vadd.f32 %v3406_v58, %v11452_v32  ;;  %v3408_v63 = vpop.f32.mrb[26].mxu0 }
 0x5d5   : > { %9762 = vtanh.f32 %v8634_v51  ;;  %v8636_v1 = vadd.f32 %v3408_v63, %v11449_v31  ;;  %v3410_v20 = vpop.f32.mrb[27].mxu0  ;;  %4120 = vmatprep.mubr.bf16.mxu1 %v3632_v18 }
 0x5d6   : > { %9764 = vtanh.f32 %v8635_v61  ;;  %v8637_v2 = vadd.f32 %v3410_v20, %v11452_v32  ;;  %4121 = vmatmul.mubr.bf16.gmra.mrb[184].mxu1 %v3631_v50 }
 0x5d7   : > { %v9755_v3 = vpop.eup %9754  ;;  %9766 = vtanh.f32 %v8636_v1 }
 0x5d8   : > { %v9757_v4 = vpop.eup %9756  ;;  %9768 = vtanh.f32 %v8637_v2 }
 0x5d9   : > { %v9759_v5 = vpop.eup %9758 }
 0x5da   : > { %v9761_v59 = vpop.eup %9760  ;;  %v3414_v60 = vpop.f32.mrb[28].mxu0  ;;  %v3633_v62 = vpack.c.bf16 %v9759_v5, %v9755_v3 }
 0x5db   : > { %v8638_v8 = vadd.f32 %v3414_v60, %v11449_v31  ;;  %v3416_v9 = vpop.f32.mrb[29].mxu0  ;;  %v3634_v11 = vpack.c.bf16 %v9761_v59, %v9757_v4 }
 0x5dc   : > { %v8639_v12 = vadd.f32 %v3416_v9, %v11452_v32  ;;  %v3418_v13 = vpop.f32.mrb[30].mxu0 }
 0x5dd   : > { %9770 = vtanh.f32 %v8638_v8  ;;  %v8640_v14 = vadd.f32 %v3418_v13, %v11449_v31  ;;  %v3420_v16 = vpop.f32.mrb[31].mxu0  ;;  %4130 = vmatprep.mubr.bf16.mxu1 %v3634_v11 }
 0x5de   : > { %9772 = vtanh.f32 %v8639_v12  ;;  %v8641_v19 = vadd.f32 %v3420_v16, %v11452_v32  ;;  %4131 = vmatmul.mubr.bf16.gmra.mrb[188].mxu1 %v3633_v62 }
 0x5df   : > { %v9763_v21 = vpop.eup %9762  ;;  %9774 = vtanh.f32 %v8640_v14 }
 0x5e0   : > { %v9765_v6 = vpop.eup %9764  ;;  %9776 = vtanh.f32 %v8641_v19 }
 0x5e1   : > { %v9767_v7 = vpop.eup %9766  ;;  %v3872_v10 = vpop.f32.mrb[84].mxu1 }
 0x5e2   : > { %v9769_v22 = vpop.eup %9768  ;;  %v3424_v23 = vpop.f32.mrb[32].mxu0  ;;  %v3635_v28 = vpack.c.bf16 %v9767_v7, %v9763_v21 }
 0x5e3   : > { %v3874_v27 = vpop.f32.mrb[85].mxu1  ;;  %v8642_v26 = vadd.f32 %v3424_v23, %v11449_v31  ;;  %v3426_v30 = vpop.f32.mrb[33].mxu0  ;;  %v3636_v34 = vpack.c.bf16 %v9769_v22, %v9765_v6 }
 0x5e4   : > { %v3876_v33 = vpop.f32.mrb[86].mxu1  ;;  %v8643_v35 = vadd.f32 %v3426_v30, %v11452_v32  ;;  %v3428_v29 = vpop.f32.mrb[34].mxu0 }
 0x5e5   : > { %v4191_v24 = vpack.c.bf16 %v3876_v33, %v3872_v10  ;;  %v3878_v25 = vpop.f32.mrb[87].mxu1  ;;  %9778 = vtanh.f32 %v8642_v26  ;;  %v8644_v36 = vadd.f32 %v3428_v29, %v11449_v31  ;;  %v3430_v38 = vpop.f32.mrb[35].mxu0  ;;  %4140 = vmatprep.mubr.bf16.mxu1 %v3636_v34 }
 0x5e6   : > { %v4192_v37 = vpack.c.bf16 %v3878_v25, %v3874_v27  ;;  %9780 = vtanh.f32 %v8643_v35  ;;  %v8645_v39 = vadd.f32 %v3430_v38, %v11452_v32  ;;  %4141 = vmatmul.mubr.bf16.gmra.mrb[192].mxu1 %v3635_v28 }
 0x5e7   : > { %v9771_v41 = vpop.eup %9770  ;;  %9782 = vtanh.f32 %v8644_v36 }
 0x5e8   : > { %4268 = vmatprep.subr.bf16.mxu1 %v4192_v37  ;;  %v9773_v42 = vpop.eup %9772  ;;  %9784 = vtanh.f32 %v8645_v39 }
 0x5e9   : > { %4269 = vmatpush1.bf16.msra.mxu1 %v4191_v24  ;;  %v9775_v43 = vpop.eup %9774  ;;  %v3882_v44 = vpop.f32.mrb[88].mxu1 }
 0x5ea   : > { %v9777_v45 = vpop.eup %9776  ;;  %v3434_v40 = vpop.f32.mrb[36].mxu0  ;;  %v3637_v47 = vpack.c.bf16 %v9775_v43, %v9771_v41 }
 0x5eb   : > { %v3884_v46 = vpop.f32.mrb[89].mxu1  ;;  %v8646_v48 = vadd.f32 %v3434_v40, %v11449_v31  ;;  %v3436_v52 = vpop.f32.mrb[37].mxu0  ;;  %v3638_v54 = vpack.c.bf16 %v9777_v45, %v9773_v42 }
 0x5ec   : > { %v3886_v53 = vpop.f32.mrb[90].mxu1  ;;  %v8647_v55 = vadd.f32 %v3436_v52, %v11452_v32  ;;  %v3438_v57 = vpop.f32.mrb[38].mxu0 }
 0x5ed   : > { %v4193_v56 = vpack.c.bf16 %v3886_v53, %v3882_v44  ;;  %v3888_v49 = vpop.f32.mrb[91].mxu1  ;;  %9786 = vtanh.f32 %v8646_v48  ;;  %v8648_v50 = vadd.f32 %v3438_v57, %v11449_v31  ;;  %v3440_v58 = vpop.f32.mrb[39].mxu0  ;;  %4150 = vmatprep.mubr.bf16.mxu1 %v3638_v54  ;;  %v10074_v44 = vld [vmem:[%s10816_s18 + $0x4] ss:$16 sps:$4 sm:$0xff]  }
 0x5ee   : > { %v4194_v51 = vpack.c.bf16 %v3888_v49, %v3884_v46  ;;  %9788 = vtanh.f32 %v8647_v55  ;;  %v8649_v18 = vadd.f32 %v3440_v58, %v11452_v32  ;;  %4151 = vmatmul.mubr.bf16.gmra.mrb[196].mxu1 %v3637_v47 }
 0x5ef   : > { %v9779_v61 = vpop.eup %9778  ;;  %9790 = vtanh.f32 %v8648_v50 }
 0x5f0   : > { %4270 = vmatprep.subr.bf16.mxu1 %v4194_v51  ;;  %v9781_v63 = vpop.eup %9780  ;;  %9792 = vtanh.f32 %v8649_v18 }
 0x5f1   : > { %4271 = vmatpush1.bf16.msra.mxu1 %v4193_v56  ;;  %v9783_v1 = vpop.eup %9782  ;;  %v3892_v20 = vpop.f32.mrb[92].mxu1 }
 0x5f2   : > { %v9785_v2 = vpop.eup %9784  ;;  %v3444_v3 = vpop.f32.mrb[40].mxu0  ;;  %v3639_v5 = vpack.c.bf16 %v9783_v1, %v9779_v61 }
 0x5f3   : > { %v3894_v4 = vpop.f32.mrb[93].mxu1  ;;  %v8650_v59 = vadd.f32 %v3444_v3, %v11449_v31  ;;  %v3446_v60 = vpop.f32.mrb[41].mxu0  ;;  %v3640_v8 = vpack.c.bf16 %v9785_v2, %v9781_v63 }
 0x5f4   : > { %v3896_v62 = vpop.f32.mrb[94].mxu1  ;;  %v8651_v9 = vadd.f32 %v3446_v60, %v11452_v32  ;;  %v3448_v12 = vpop.f32.mrb[42].mxu0 }
 0x5f5   : > { %v4195_v11 = vpack.c.bf16 %v3896_v62, %v3892_v20  ;;  %v3898_v13 = vpop.f32.mrb[95].mxu1  ;;  %9794 = vtanh.f32 %v8650_v59  ;;  %v8652_v14 = vadd.f32 %v3448_v12, %v11449_v31  ;;  %v3450_v19 = vpop.f32.mrb[43].mxu0  ;;  %4160 = vmatprep.mubr.bf16.mxu1 %v3640_v8 }
 0x5f6   : > { %v4196_v16 = vpack.c.bf16 %v3898_v13, %v3894_v4  ;;  %9796 = vtanh.f32 %v8651_v9  ;;  %v8653_v21 = vadd.f32 %v3450_v19, %v11452_v32  ;;  %4161 = vmatmul.mubr.bf16.gmra.mrb[200].mxu1 %v3639_v5 }
 0x5f7   : > { %v9787_v6 = vpop.eup %9786  ;;  %9798 = vtanh.f32 %v8652_v14 }
 0x5f8   : > { %4272 = vmatprep.subr.bf16.mxu1 %v4196_v16  ;;  %v9789_v7 = vpop.eup %9788  ;;  %9800 = vtanh.f32 %v8653_v21 }
 0x5f9   : > { %4273 = vmatpush1.bf16.msra.mxu1 %v4195_v11  ;;  %v9791_v10 = vpop.eup %9790  ;;  %v3902_v22 = vpop.f32.mrb[96].mxu1 }
 0x5fa   : > { %v9793_v23 = vpop.eup %9792  ;;  %v3904_v27 = vpop.f32.mrb[97].mxu1  ;;  %v3641_v28 = vpack.c.bf16 %v9791_v10, %v9787_v6 }
 0x5fb   : > { %v3906_v26 = vpop.f32.mrb[98].mxu1  ;;  %v3642_v31 = vpack.c.bf16 %v9793_v23, %v9789_v7  ;;  %v11599_v7 = vld [vmem:[%s11596_s13] sm:$0xff] }
 0x5fc   : > { %v4197_v30 = vpack.c.bf16 %v3906_v26, %v3902_v22  ;;  %v3908_v33 = vpop.f32.mrb[99].mxu1  ;;  %vm6271_vm0 = vcmp.gt.f32.partialorder %v11599_v7, 0.0  ;;  %v11603_v22 = vld [vmem:[%s11596_s13 + $0x40] sm:$0xff] }
 0x5fd   : > { %v4198_v34 = vpack.c.bf16 %v3908_v33, %v3904_v27  ;;  %4170 = vmatprep.mubr.bf16.mxu1 %v3642_v31  ;;  %v6335_v27 = vsel %vm6271_vm0, 1, %v14104_v0  ;;  %vm6279_vm1 = vcmp.gt.f32.partialorder %v11603_v22, 0.0  ;;  %v11609_v33 = vld [vmem:[%s11596_s13 + $0x8] sm:$0xff] }
 0x5fe   : > { %4171 = vmatmul.mubr.bf16.gmra.mrb[204].mxu1 %v3641_v28  ;;  %6400 = vperm.xlu0 %9144, %v6335_v27   ;;  %v6343_v31 = vsel %vm6279_vm1, 1, %v14104_v0  ;;  %vm6272_vm2 = vcmp.gt.f32.partialorder %v11609_v33, 0.0 }
 0x5ff   : > { %v9795_v32 = vpop.eup %9794  ;;  %4274 = vmatprep.subr.bf16.mxu1 %v4198_v34  ;;  %6424 = vperm.xlu1 %9145, %v6343_v31   ;;  %v11613_v34 = vld [vmem:[%s11596_s13 + $0x48] sm:$0xff]  ;;  %v11693_v31 = vld [vmem:[%s11596_s13 + $0x110] sm:$0xff] }
 0x600   : > { %v9797_v35 = vpop.eup %9796  ;;  %4275 = vmatpush1.bf16.msra.mxu1 %v4197_v30  ;;  %vm6280_vm3 = vcmp.gt.f32.partialorder %v11613_v34, 0.0 }
 0x601   : > { %v9799_v24 = vpop.eup %9798  ;;  %v3912_v29 = vpop.f32.mrb[100].mxu1 }
 0x602   : > { %v9801_v25 = vpop.eup %9800  ;;  %v3914_v36 = vpop.f32.mrb[101].mxu1  ;;  %v3643_v37 = vpack.c.bf16 %v9799_v24, %v9795_v32  ;;  %v6336_v32 = vsel %vm6272_vm2, 1, %v14104_v0 }
 0x603   : > { %v3916_v38 = vpop.f32.mrb[102].mxu1  ;;  %v3644_v39 = vpack.c.bf16 %v9801_v25, %v9797_v35  ;;  %6403 = vperm.xlu0 %9144, %v6336_v32   ;;  %v6344_v35 = vsel %vm6280_vm3, 1, %v14104_v0  ;;  %vm6305_vm3 = vcmp.gt.f32.partialorder %v11693_v31, 0.0 }
 0x604   : > { %v4199_v41 = vpack.c.bf16 %v3916_v38, %v3912_v29  ;;  %v3918_v42 = vpop.f32.mrb[103].mxu1  ;;  %v11619_v29 = vld [vmem:[%s11596_s13 + $0x80] sm:$0xff]  ;;  %6427 = vperm.xlu1 %9145, %v6344_v35   ;;  %v6369_v32 = vsel %vm6305_vm3, 1, %v14104_v0 }
 0x605   : > { %v4200_v43 = vpack.c.bf16 %v3918_v42, %v3914_v36  ;;  %4180 = vmatprep.mubr.bf16.mxu1 %v3644_v39  ;;  %vm6287_vm4 = vcmp.gt.f32.partialorder %v11619_v29, 0.0  ;;  %v11623_v36 = vld [vmem:[%s11596_s13 + $0x88] sm:$0xff] }
 0x606   : > { %4181 = vmatmul.mubr.bf16.gmra.mrb[208].mxu1 %v3643_v37  ;;  %v6351_v38 = vsel %vm6287_vm4, 1, %v14104_v0  ;;  %vm6288_vm5 = vcmp.gt.f32.partialorder %v11623_v36, 0.0 }
 0x607   : > { %4276 = vmatprep.subr.bf16.mxu1 %v4200_v43  ;;  %4300 = vmatprep.mubr.bf16.mxu1 %v10074_v44  ;;  %v6352_v42 = vsel %vm6288_vm5, 1, %v14104_v0  ;;  %v11629_v44 = vld [vmem:[%s11596_s13 + $0x10] sm:$0xff] }
 0x608   : > { %4277 = vmatpush1.bf16.msra.mxu1 %v4199_v41  ;;  %6448 = vperm.xlu0 %9144, %v6351_v38   ;;  %vm6273_vm6 = vcmp.gt.f32.partialorder %v11629_v44, 0.0 }
 0x609   : > { %v3922_v45 = vpop.f32.mrb[104].mxu1  ;;  %6451 = vperm.xlu1 %9145, %v6352_v42  }
 0x60a   : > { %v3924_v40 = vpop.f32.mrb[105].mxu1 }
 0x60b   : > { %v3926_v46 = vpop.f32.mrb[106].mxu1 }
 0x60c   : > { %v4201_v47 = vpack.c.bf16 %v3926_v46, %v3922_v45  ;;  %v3928_v48 = vpop.f32.mrb[107].mxu1  ;;  %v11633_v45 = vld [vmem:[%s11596_s13 + $0x50] sm:$0xff] }
 0x60d   : > { %v4202_v52 = vpack.c.bf16 %v3928_v48, %v3924_v40  ;;  %v6337_v40 = vsel %vm6273_vm6, 1, %v14104_v0  ;;  %vm6281_vm7 = vcmp.gt.f32.partialorder %v11633_v45, 0.0  ;;  %v11639_v48 = vld [vmem:[%s11596_s13 + $0xc0] sm:$0xff] }
 0x60e   : > { %6406 = vperm.xlu0 %9144, %v6337_v40   ;;  %v6345_v46 = vsel %vm6281_vm7, 1, %v14104_v0  ;;  %vm6295_vm8 = vcmp.gt.f32.partialorder %v11639_v48, 0.0  ;;  %v10076_v40 = vld [vmem:[%s10816_s18 + $0x24] ss:$16 sps:$4 sm:$0xff]  }
 0x60f   : > { %4278 = vmatprep.subr.bf16.mxu1 %v4202_v52  ;;  %6430 = vperm.xlu1 %9145, %v6345_v46  }
 0x610   : > { %4279 = vmatpush1.bf16.msra.mxu1 %v4201_v47 }
 0x611   : > { %v3932_v53 = vpop.f32.mrb[108].mxu1 }
 0x612   : > { %v3934_v54 = vpop.f32.mrb[109].mxu1 }
 0x613   : > { %v3936_v55 = vpop.f32.mrb[110].mxu1 }
 0x614   : > { %v4203_v56 = vpack.c.bf16 %v3936_v55, %v3932_v53  ;;  %v3938_v57 = vpop.f32.mrb[111].mxu1  ;;  %v11643_v53 = vld [vmem:[%s11596_s13 + $0xc8] sm:$0xff]  ;;  %v6359_v55 = vsel %vm6295_vm8, 1, %v14104_v0 }
 0x615   : > { %v4204_v49 = vpack.c.bf16 %v3938_v57, %v3934_v54  ;;  %vm6296_vm9 = vcmp.gt.f32.partialorder %v11643_v53, 0.0  ;;  %6472 = vperm.xlu0 %9144, %v6359_v55  }
 0x617   : > { %4280 = vmatprep.subr.bf16.mxu1 %v4204_v49  ;;  %v6360_v49 = vsel %vm6296_vm9, 1, %v14104_v0 }
 0x618   : > { %4281 = vmatpush1.bf16.msra.mxu1 %v4203_v56  ;;  %6475 = vperm.xlu1 %9145, %v6360_v49   ;;  %v11721_v49 = vld [vmem:[%s11596_s13 + $0xd8] sm:$0xff] }
 0x619   : > { %v3942_v50 = vpop.f32.mrb[112].mxu1  ;;  %vm6298_vm8 = vcmp.gt.f32.partialorder %v11721_v49, 0.0 }
 0x61a   : > { %v3944_v51 = vpop.f32.mrb[113].mxu1 }
 0x61b   : > { %v3946_v58 = vpop.f32.mrb[114].mxu1 }
 0x61c   : > { %v4205_v18 = vpack.c.bf16 %v3946_v58, %v3942_v50  ;;  %v3948_v61 = vpop.f32.mrb[115].mxu1  ;;  %v11653_v58 = vld [vmem:[%s11596_s13 + $0x100] sm:$0xff] }
 0x61d   : > { %v4206_v63 = vpack.c.bf16 %v3948_v61, %v3944_v51  ;;  %v11649_v51 = vld [vmem:[%s11596_s13 + $0x90] sm:$0xff]  ;;  %vm6303_vm11 = vcmp.gt.f32.partialorder %v11653_v58, 0.0 }
 0x61e   : > { %vm6289_vm10 = vcmp.gt.f32.partialorder %v11649_v51, 0.0  ;;  %v6367_v61 = vsel %vm6303_vm11, 1, %v14104_v0 }
 0x61f   : > { %4282 = vmatprep.subr.bf16.mxu1 %v4206_v63  ;;  %6496 = vperm.xlu1 %9145, %v6367_v61  }
 0x620   : > { %4283 = vmatpush1.bf16.msra.mxu1 %v4205_v18  ;;  %v6353_v18 = vsel %vm6289_vm10, 1, %v14104_v0 }
 0x621   : > { %v3952_v1 = vpop.f32.mrb[116].mxu1  ;;  %6454 = vperm.xlu0 %9144, %v6353_v18   ;;  %v11725_v18 = vld [vmem:[%s11596_s13 + $0x150] sm:$0xff] }
 0x622   : > { %v3954_v20 = vpop.f32.mrb[117].mxu1  ;;  %vm6313_vm9 = vcmp.gt.f32.partialorder %v11725_v18, 0.0 }
 0x623   : > { %v3956_v2 = vpop.f32.mrb[118].mxu1 }
 0x624   : > { %v4207_v3 = vpack.c.bf16 %v3956_v2, %v3952_v1  ;;  %v3958_v4 = vpop.f32.mrb[119].mxu1  ;;  %v11659_v1 = vld [vmem:[%s11596_s13 + $0x108] sm:$0xff]  ;;  %v11663_v2 = vld [vmem:[%s11596_s13 + $0x18] sm:$0xff] }
 0x625   : > { %v4208_v5 = vpack.c.bf16 %v3958_v4, %v3954_v20  ;;  %vm6304_vm12 = vcmp.gt.f32.partialorder %v11659_v1, 0.0  ;;  %vm6274_vm13 = vcmp.gt.f32.partialorder %v11663_v2, 0.0 }
 0x626   : > { %v6368_v4 = vsel %vm6304_vm12, 1, %v14104_v0 }
 0x627   : > { %4284 = vmatprep.subr.bf16.mxu1 %v4208_v5  ;;  %6499 = vperm.xlu0 %9144, %v6368_v4  }
 0x628   : > { %4285 = vmatpush1.bf16.msra.mxu1 %v4207_v3 }
 0x629   : > { %v3962_v59 = vpop.f32.mrb[120].mxu1 }
 0x62a   : > { %v3964_v60 = vpop.f32.mrb[121].mxu1 }
 0x62b   : > { %v3966_v62 = vpop.f32.mrb[122].mxu1 }
 0x62c   : > { %v4209_v8 = vpack.c.bf16 %v3966_v62, %v3962_v59  ;;  %v3968_v9 = vpop.f32.mrb[123].mxu1 }
 0x62d   : > { %v4210_v11 = vpack.c.bf16 %v3968_v9, %v3964_v60  ;;  %v6338_v60 = vsel %vm6274_vm13, 1, %v14104_v0  ;;  %v11673_v9 = vld [vmem:[%s11596_s13 + $0xd0] sm:$0xff] }
 0x62e   : > { %6409 = vperm.xlu1 %9145, %v6338_v60   ;;  %vm6297_vm15 = vcmp.gt.f32.partialorder %v11673_v9, 0.0 }
 0x62f   : > { %4286 = vmatprep.subr.bf16.mxu1 %v4210_v11 }
 0x630   : > { %4287 = vmatpush1.bf16.msra.mxu1 %v4209_v8  ;;  %v11669_v8 = vld [vmem:[%s11596_s13 + $0x58] sm:$0xff] }
 0x631   : > { %v3972_v12 = vpop.f32.mrb[124].mxu1  ;;  %vm6282_vm14 = vcmp.gt.f32.partialorder %v11669_v8, 0.0 }
 0x632   : > { %v3974_v13 = vpop.f32.mrb[125].mxu1  ;;  %v6346_v11 = vsel %vm6282_vm14, 1, %v14104_v0 }
 0x633   : > { %v3976_v14 = vpop.f32.mrb[126].mxu1  ;;  %6433 = vperm.xlu0 %9144, %v6346_v11   ;;  %v11737_v11 = vld [vmem:[%s11596_s13 + $0x1c8] sm:$0xff] }
 0x634   : > { %v4211_v16 = vpack.c.bf16 %v3976_v14, %v3972_v12  ;;  %v3978_v19 = vpop.f32.mrb[127].mxu1  ;;  %v6361_v12 = vsel %vm6297_vm15, 1, %v14104_v0  ;;  %v11679_v14 = vld [vmem:[%s11596_s13 + $0x140] sm:$0xff]  ;;  %vm6328_vm11 = vcmp.gt.f32.partialorder %v11737_v11, 0.0 }
 0x635   : > { %v4212_v21 = vpack.c.bf16 %v3978_v19, %v3974_v13  ;;  %6478 = vperm.xlu1 %9145, %v6361_v12   ;;  %vm6311_vm0 = vcmp.gt.f32.partialorder %v11679_v14, 0.0  ;;  %v11683_v19 = vld [vmem:[%s11596_s13 + $0x148] sm:$0xff] }
 0x636   : > { %vm6312_vm1 = vcmp.gt.f32.partialorder %v11683_v19, 0.0 }
 0x637   : > { %4288 = vmatprep.subr.bf16.mxu1 %v4212_v21  ;;  %v6376_v27 = vsel %vm6312_vm1, 1, %v14104_v0 }
 0x638   : > { %4289 = vmatpush1.bf16.msra.mxu1 %v4211_v16 }
 0x639   : > { %v3982_v6 = vpop.f32.mrb[128].mxu1  ;;  %6523 = vperm.xlu1 %9145, %v6376_v27   ;;  %v10079_v27 = vld [vmem:[%s10816_s18 + $0x40] ss:$16 sps:$4 sm:$0xff]  }
 0x63a   : > { %v3984_v10 = vpop.f32.mrb[129].mxu1 }
 0x63b   : > { %v3986_v23 = vpop.f32.mrb[130].mxu1 }
 0x63c   : > { %v4213_v28 = vpack.c.bf16 %v3986_v23, %v3982_v6  ;;  %v3988_v26 = vpop.f32.mrb[131].mxu1  ;;  %v6375_v6 = vsel %vm6311_vm0, 1, %v14104_v0 }
 0x63d   : > { %v4214_v30 = vpack.c.bf16 %v3988_v26, %v3984_v10  ;;  %6520 = vperm.xlu0 %9144, %v6375_v6   ;;  %v11689_v26 = vld [vmem:[%s11596_s13 + $0x98] sm:$0xff]  ;;  %6502 = vperm.xlu1 %9145, %v6369_v32   ;;  %v10080_v32 = vld [vmem:[%s10816_s18 + $0x64] ss:$16 sps:$4 sm:$0xff]  }
 0x63e   : > { %vm6290_vm2 = vcmp.gt.f32.partialorder %v11689_v26, 0.0 }
 0x63f   : > { %4290 = vmatprep.subr.bf16.mxu1 %v4214_v30  ;;  %v6354_v30 = vsel %vm6290_vm2, 1, %v14104_v0 }
 0x640   : > { %4291 = vmatpush1.bf16.msra.mxu1 %v4213_v28 }
 0x641   : > { %v3992_v24 = vpop.f32.mrb[132].mxu1  ;;  %6457 = vperm.xlu0 %9144, %v6354_v30  }
 0x642   : > { %v3994_v25 = vpop.f32.mrb[133].mxu1 }
 0x643   : > { %v3996_v37 = vpop.f32.mrb[134].mxu1 }
 0x644   : > { %v4215_v39 = vpack.c.bf16 %v3996_v37, %v3992_v24  ;;  %v3998_v41 = vpop.f32.mrb[135].mxu1  ;;  %v11699_v24 = vld [vmem:[%s11596_s13 + $0x180] sm:$0xff]  ;;  %v11703_v37 = vld [vmem:[%s11596_s13 + $0x188] sm:$0xff] }
 0x645   : > { %v4216_v43 = vpack.c.bf16 %v3998_v41, %v3994_v25  ;;  %vm6319_vm4 = vcmp.gt.f32.partialorder %v11699_v24, 0.0  ;;  %vm6320_vm5 = vcmp.gt.f32.partialorder %v11703_v37, 0.0 }
 0x646   : > { %v6383_v41 = vsel %vm6319_vm4, 1, %v14104_v0  ;;  %v6384_v46 = vsel %vm6320_vm5, 1, %v14104_v0 }
 0x647   : > { %4292 = vmatprep.subr.bf16.mxu1 %v4216_v43  ;;  %6544 = vperm.xlu0 %9144, %v6383_v41   ;;  %v11759_v41 = vld [vmem:[%s11596_s13 + $0x28] sm:$0xff] }
 0x648   : > { %4293 = vmatpush1.bf16.msra.mxu1 %v4215_v39  ;;  %v10075_v39 = vld [vmem:[%s10816_s18] ss:$16 sps:$4 sm:$0xff]   ;;  %6547 = vperm.xlu1 %9145, %v6384_v46   ;;  %vm6276_vm15 = vcmp.gt.f32.partialorder %v11759_v41, 0.0  ;;  %v11765_v46 = vld [vmem:[%s11596_s13 + $0x68] sm:$0xff] }
 0x649   : > { %v4002_v47 = vpop.f32.mrb[136].mxu1  ;;  %vm6284_vm0 = vcmp.gt.f32.partialorder %v11765_v46, 0.0 }
 0x64a   : > { %v4004_v52 = vpop.f32.mrb[137].mxu1 }
 0x64b   : > { %v4006_v54 = vpop.f32.mrb[138].mxu1 }
 0x64c   : > { %v4217_v56 = vpack.c.bf16 %v4006_v54, %v4002_v47  ;;  %v4008_v57 = vpop.f32.mrb[139].mxu1  ;;  %v11715_v54 = vld [vmem:[%s11596_s13 + $0x60] sm:$0xff] }
 0x64d   : > { %v4218_v50 = vpack.c.bf16 %v4008_v57, %v4004_v52  ;;  %v11711_v52 = vld [vmem:[%s11596_s13 + $0x20] sm:$0xff]  ;;  %vm6283_vm7 = vcmp.gt.f32.partialorder %v11715_v54, 0.0 }
 0x64e   : > { %vm6275_vm6 = vcmp.gt.f32.partialorder %v11711_v52, 0.0 }
 0x64f   : > { %4294 = vmatprep.subr.bf16.mxu1 %v4218_v50  ;;  %v6339_v55 = vsel %vm6275_vm6, 1, %v14104_v0 }
 0x650   : > { %4295 = vmatpush1.bf16.msra.mxu1 %v4217_v56  ;;  %6412 = vperm.xlu0 %9144, %v6339_v55   ;;  %v6347_v56 = vsel %vm6283_vm7, 1, %v14104_v0  ;;  %v11769_v55 = vld [vmem:[%s11596_s13 + $0xe0] sm:$0xff] }
 0x651   : > { %v4012_v63 = vpop.f32.mrb[140].mxu1  ;;  %6436 = vperm.xlu1 %9145, %v6347_v56   ;;  %vm6299_vm1 = vcmp.gt.f32.partialorder %v11769_v55, 0.0 }
 0x652   : > { %v4014_v20 = vpop.f32.mrb[141].mxu1 }
 0x653   : > { %v4016_v3 = vpop.f32.mrb[142].mxu1 }
 0x654   : > { %v4219_v5 = vpack.c.bf16 %v4016_v3, %v4012_v63  ;;  %v4018_v59 = vpop.f32.mrb[143].mxu1  ;;  %v10077_v63 = vld [vmem:[%s10816_s18 + $0x20] ss:$16 sps:$4 sm:$0xff]  }
 0x655   : > { %v4220_v62 = vpack.c.bf16 %v4018_v59, %v4014_v20  ;;  %v6362_v20 = vsel %vm6298_vm8, 1, %v14104_v0  ;;  %v6377_v59 = vsel %vm6313_vm9, 1, %v14104_v0  ;;  %vm5358_vm9 = vcmask 7168  }
 0x656   : > { %6481 = vperm.xlu0 %9144, %v6362_v20   ;;  %6526 = vperm.xlu1 %9145, %v6377_v59   ;;  %v6348_v20 = vsel %vm6284_vm0, 1, %v14104_v0  ;;  %v11781_v59 = vld [vmem:[%s11596_s13 + $0x1d0] sm:$0xff] }
 0x657   : > { %4296 = vmatprep.subr.bf16.mxu1 %v4220_v62  ;;  %v11733_v62 = vld [vmem:[%s11596_s13 + $0x1c0] sm:$0xff]  ;;  %vm6329_vm3 = vcmp.gt.f32.partialorder %v11781_v59, 0.0 }
 0x658   : > { %4297 = vmatpush1.bf16.msra.mxu1 %v4219_v5  ;;  %v10078_v5 = vld [vmem:[%s10816_s18 + $0x44] ss:$16 sps:$4 sm:$0xff]   ;;  %vm6327_vm10 = vcmp.gt.f32.partialorder %v11733_v62, 0.0 }
 0x659   : > { %v4022_v13 = vpop.f32.mrb[144].mxu1  ;;  %v6391_v12 = vsel %vm6327_vm10, 1, %v14104_v0 }
 0x65a   : > { %v4024_v16 = vpop.f32.mrb[145].mxu1  ;;  %6568 = vperm.xlu0 %9144, %v6391_v12   ;;  %v6393_v12 = vsel %vm6329_vm3, 1, %v14104_v0 }
 0x65b   : > { %v4026_v21 = vpop.f32.mrb[146].mxu1 }
 0x65c   : > { %v4221_v10 = vpack.c.bf16 %v4026_v21, %v4022_v13  ;;  %v4028_v23 = vpop.f32.mrb[147].mxu1  ;;  %v6392_v13 = vsel %vm6328_vm11, 1, %v14104_v0  ;;  %v11743_v21 = vld [vmem:[%s11596_s13 + $0xa0] sm:$0xff] }
 0x65d   : > { %v4222_v28 = vpack.c.bf16 %v4028_v23, %v4024_v16  ;;  %6571 = vperm.xlu1 %9145, %v6392_v13   ;;  %vm6291_vm12 = vcmp.gt.f32.partialorder %v11743_v21, 0.0 }
 0x65f   : > { %4298 = vmatprep.subr.bf16.mxu1 %v4222_v28 }
 0x660   : > { %4299 = vmatpush1.bf16.msra.mxu1 %v4221_v10  ;;  %v11747_v10 = vld [vmem:[%s11596_s13 + $0x118] sm:$0xff] }
 0x661   : > { %v4032_v35 = vpop.f32.mrb[148].mxu1  ;;  %vm6306_vm13 = vcmp.gt.f32.partialorder %v11747_v10, 0.0 }
 0x662   : > { %v4034_v25 = vpop.f32.mrb[149].mxu1 }
 0x663   : > { %v4036_v38 = vpop.f32.mrb[150].mxu1  ;;  %4301 = vmatmul.mubr.bf16.vlgmr.msra.gmra.mrb[212].mxu1 %v10075_v39  ;;  %v6370_v39 = vsel %vm6306_vm13, 1, %v14104_v0 }
 0x664   : > { %v4223_v42 = vpack.c.bf16 %v4036_v38, %v4032_v35  ;;  %v4038_v43 = vpop.f32.mrb[151].mxu1  ;;  %4310 = vmatprep.mubr.bf16.mxu1 %v10076_v40  ;;  %v6355_v35 = vsel %vm6291_vm12, 1, %v14104_v0  ;;  %v11754_v38 = vld [vmem:[%s11596_s13 + $0x190] sm:$0xff]  ;;  %6505 = vperm.xlu1 %9145, %v6370_v39  }
 0x665   : > { %v4224_v47 = vpack.c.bf16 %v4038_v43, %v4034_v25  ;;  %6460 = vperm.xlu0 %9144, %v6355_v35   ;;  %vm6321_vm14 = vcmp.gt.f32.partialorder %v11754_v38, 0.0  ;;  %v6340_v43 = vsel %vm6276_vm15, 1, %v14104_v0  ;;  %v10084_v35 = vld [vmem:[%s10816_s18 + $0xa4] ss:$16 sps:$4 sm:$0xff]  }
 0x667   : > { %4621 = vmatprep.subr.bf16.mxu1 %v4224_v47 }
 0x668   : > { %4622 = vmatpush1.bf16.msra.mxu1 %v4223_v42  ;;  %v6385_v42 = vsel %vm6321_vm14, 1, %v14104_v0  ;;  %6415 = vperm.xlu1 %9145, %v6340_v43  }
 0x669   : > { %v4042_v57 = vpop.f32.mrb[152].mxu1  ;;  %6550 = vperm.xlu0 %9144, %v6385_v42   ;;  %v11797_v42 = vld [vmem:[%s11596_s13 + $0x198] sm:$0xff] }
 0x66a   : > { %v4044_v50 = vpop.f32.mrb[153].mxu1  ;;  %vm6322_vm6 = vcmp.gt.f32.partialorder %v11797_v42, 0.0 }
 0x66b   : > { %v4046_v61 = vpop.f32.mrb[154].mxu1  ;;  %4311 = vmatmul.mubr.bf16.gmra.mrb[216].mxu1 %v10077_v63  ;;  %v10082_v63 = vld [vmem:[%s10816_s18 + $0x84] ss:$16 sps:$4 sm:$0xff]  }
 0x66c   : > { %v4225_v3 = vpack.c.bf16 %v4046_v61, %v4042_v57  ;;  %v4048_v4 = vpop.f32.mrb[155].mxu1  ;;  %4320 = vmatprep.mubr.bf16.mxu1 %v10078_v5  ;;  %v10081_v57 = vld [vmem:[%s10816_s18 + $0x60] ss:$16 sps:$4 sm:$0xff]   ;;  %v6363_v5 = vsel %vm6299_vm1, 1, %v14104_v0 }
 0x66d   : > { %v4226_v60 = vpack.c.bf16 %v4048_v4, %v4044_v50  ;;  %6439 = vperm.xlu0 %9144, %v6348_v20   ;;  %v11775_v4 = vld [vmem:[%s11596_s13 + $0x158] sm:$0xff]  ;;  %6484 = vperm.xlu1 %9145, %v6363_v5  }
 0x66e   : > { %vm6314_vm2 = vcmp.gt.f32.partialorder %v11775_v4, 0.0 }
 0x66f   : > { %4623 = vmatprep.subr.bf16.mxu1 %v4226_v60  ;;  %v6378_v60 = vsel %vm6314_vm2, 1, %v14104_v0 }
 0x670   : > { %4624 = vmatpush1.bf16.msra.mxu1 %v4225_v3 }
 0x671   : > { %v4052_v16 = vpop.f32.mrb[156].mxu1  ;;  %6529 = vperm.xlu0 %9144, %v6378_v60   ;;  %6574 = vperm.xlu1 %9145, %v6393_v12   ;;  %v10086_v12 = vld [vmem:[%s10816_s18 + $0xc4] ss:$16 sps:$4 sm:$0xff]  }
 0x672   : > { %v4054_v6 = vpop.f32.mrb[157].mxu1 }
 0x673   : > { %v4056_v23 = vpop.f32.mrb[158].mxu1  ;;  %4321 = vmatmul.mubr.bf16.gmra.mrb[220].mxu1 %v10079_v27 }
 0x674   : > { %v4227_v28 = vpack.c.bf16 %v4056_v23, %v4052_v16  ;;  %v4058_v30 = vpop.f32.mrb[159].mxu1  ;;  %4330 = vmatprep.mubr.bf16.mxu1 %v10080_v32  ;;  %v11787_v16 = vld [vmem:[%s11596_s13 + $0xa8] sm:$0xff]  ;;  %v11791_v23 = vld [vmem:[%s11596_s13 + $0x120] sm:$0xff] }
 0x675   : > { %v4228_v25 = vpack.c.bf16 %v4058_v30, %v4054_v6  ;;  %vm6292_vm4 = vcmp.gt.f32.partialorder %v11787_v16, 0.0  ;;  %vm6307_vm5 = vcmp.gt.f32.partialorder %v11791_v23, 0.0 }
 0x676   : > { %v6371_v43 = vsel %vm6307_vm5, 1, %v14104_v0 }
 0x677   : > { %4625 = vmatprep.subr.bf16.mxu1 %v4228_v25  ;;  %v6356_v25 = vsel %vm6292_vm4, 1, %v14104_v0  ;;  %6508 = vperm.xlu1 %9145, %v6371_v43  }
 0x678   : > { %4626 = vmatpush1.bf16.msra.mxu1 %v4227_v28  ;;  %v10083_v28 = vld [vmem:[%s10816_s18 + $0x80] ss:$16 sps:$4 sm:$0xff]   ;;  %6463 = vperm.xlu0 %9144, %v6356_v25   ;;  %v5360_v25 = vsel %vm5358_vm9, %v11609_v33, 0.0  ;;  %v5401_v33 = vsel %vm5358_vm9, %v11619_v29, 0.0 }
 0x679   : > { %v4062_v40 = vpop.f32.mrb[160].mxu1 }
 0x67a   : > { %v4064_v47 = vpop.f32.mrb[161].mxu1 }
 0x67b   : > { %v4066_v56 = vpop.f32.mrb[162].mxu1  ;;  %4331 = vmatmul.mubr.bf16.gmra.mrb[224].mxu1 %v10081_v57 }
 0x67c   : > { %v4229_v50 = vpack.c.bf16 %v4066_v56, %v4062_v40  ;;  %v4068_v61 = vpop.f32.mrb[163].mxu1  ;;  %4340 = vmatprep.mubr.bf16.mxu1 %v10082_v63  ;;  %v11803_v40 = vld [vmem:[%s11596_s13 + $0x30] sm:$0xff]  ;;  %v11813_v63 = vld [vmem:[%s11596_s13 + $0xe8] sm:$0xff] }
 0x67d   : > { %v4230_v3 = vpack.c.bf16 %v4068_v61, %v4064_v47  ;;  %v6386_v47 = vsel %vm6322_vm6, 1, %v14104_v0  ;;  %vm6277_vm7 = vcmp.gt.f32.partialorder %v11803_v40, 0.0  ;;  %vm6300_vm10 = vcmp.gt.f32.partialorder %v11813_v63, 0.0 }
 0x67e   : > { %v6341_v56 = vsel %vm6277_vm7, 1, %v14104_v0  ;;  %6553 = vperm.xlu0 %9144, %v6386_v47   ;;  %v11835_v47 = vld [vmem:[%s11596_s13 + $0xb0] sm:$0xff] }
 0x67f   : > { %4627 = vmatprep.subr.bf16.mxu1 %v4230_v3  ;;  %v10085_v3 = vld [vmem:[%s10816_s18 + $0xa0] ss:$16 sps:$4 sm:$0xff]   ;;  %6418 = vperm.xlu1 %9145, %v6341_v56   ;;  %vm6293_vm13 = vcmp.gt.f32.partialorder %v11835_v47, 0.0 }
 0x680   : > { %4628 = vmatpush1.bf16.msra.mxu1 %v4229_v50  ;;  %v11809_v50 = vld [vmem:[%s11596_s13 + $0x70] sm:$0xff]  ;;  %v6357_v29 = vsel %vm6293_vm13, 1, %v14104_v0 }
 0x681   : > { %v4072_v13 = vpop.f32.mrb[164].mxu1  ;;  %vm6285_vm8 = vcmp.gt.f32.partialorder %v11809_v50, 0.0 }
 0x682   : > { %v4074_v6 = vpop.f32.mrb[165].mxu1 }
 0x683   : > { %v4076_v27 = vpop.f32.mrb[166].mxu1  ;;  %4341 = vmatmul.mubr.bf16.gmra.mrb[228].mxu1 %v10083_v28  ;;  %v6364_v28 = vsel %vm6300_vm10, 1, %v14104_v0 }
 0x684   : > { %v4231_v30 = vpack.c.bf16 %v4076_v27, %v4072_v13  ;;  %v4078_v32 = vpop.f32.mrb[167].mxu1  ;;  %4350 = vmatprep.mubr.bf16.mxu1 %v10084_v35  ;;  %v6349_v13 = vsel %vm6285_vm8, 1, %v14104_v0  ;;  %v11819_v27 = vld [vmem:[%s11596_s13 + $0x160] sm:$0xff]  ;;  %6487 = vperm.xlu1 %9145, %v6364_v28   ;;  %v5359_v35 = vsel %vm5358_vm9, %v11599_v7, 0.0 }
 0x685   : > { %v4232_v39 = vpack.c.bf16 %v4078_v32, %v4074_v6  ;;  %6442 = vperm.xlu0 %9144, %v6349_v13   ;;  %vm6315_vm11 = vcmp.gt.f32.partialorder %v11819_v27, 0.0  ;;  %v5361_v7 = vadd.f32 %v5360_v25, %v5359_v35  ;;  %v5381_v13 = vsel %vm5358_vm9, %v11613_v34, 0.0  ;;  %v11857_v35 = vld [vmem:[%s11596_s13 + $0x1a0] sm:$0xff]  ;;  %v11863_v34 = vld [vmem:[%s11596_s13 + $0x38] sm:$0xff] }
 0x686   : > { %v6379_v32 = vsel %vm6315_vm11, 1, %v14104_v0  ;;  %vm6323_vm15 = vcmp.gt.f32.partialorder %v11857_v35, 0.0  ;;  %vm6278_vm0 = vcmp.gt.f32.partialorder %v11863_v34, 0.0 }
 0x687   : > { %4629 = vmatprep.subr.bf16.mxu1 %v4232_v39 }
 0x688   : > { %4630 = vmatpush1.bf16.msra.mxu1 %v4231_v30  ;;  %v11825_v30 = vld [vmem:[%s11596_s13 + $0x1d8] sm:$0xff] }
 0x689   : > { %v4082_v57 = vpop.f32.mrb[168].mxu1  ;;  %vm6330_vm12 = vcmp.gt.f32.partialorder %v11825_v30, 0.0  ;;  %6532 = vperm.xlu0 %9144, %v6379_v32   ;;  %v5362_v32 = vsel %vm5358_vm9, %v11629_v44, 0.0  ;;  %v6387_v44 = vsel %vm6323_vm15, 1, %v14104_v0 }
 0x68a   : > { %v4084_v61 = vpop.f32.mrb[169].mxu1  ;;  %v6394_v39 = vsel %vm6330_vm12, 1, %v14104_v0 }
 0x68b   : > { %v4086_v20 = vpop.f32.mrb[170].mxu1  ;;  %4351 = vmatmul.mubr.bf16.gmra.mrb[232].mxu1 %v10085_v3  ;;  %6577 = vperm.xlu1 %9145, %v6394_v39   ;;  %v5363_v39 = vadd.f32 %v5362_v32, %v5361_v7  ;;  %v5443_v7 = vsel %vm5358_vm9, %v11653_v58, 0.0  ;;  %v10090_v32 = vld [vmem:[%s10816_s18 + $0x104] ss:$16 sps:$4 sm:$0xff]  }
 0x68c   : > { %v4233_v5 = vpack.c.bf16 %v4086_v20, %v4082_v57  ;;  %v4088_v60 = vpop.f32.mrb[171].mxu1  ;;  %4360 = vmatprep.mubr.bf16.mxu1 %v10086_v12  ;;  %v11839_v57 = vld [vmem:[%s11596_s13 + $0x128] sm:$0xff]  ;;  %v10087_v20 = vld [vmem:[%s10816_s18 + $0xc0] ss:$16 sps:$4 sm:$0xff]   ;;  %v5380_v12 = vsel %vm5358_vm9, %v11603_v22, 0.0 }
 0x68d   : > { %v4234_v6 = vpack.c.bf16 %v4088_v60, %v4084_v61  ;;  %v10088_v60 = vld [vmem:[%s10816_s18 + $0xe4] ss:$16 sps:$4 sm:$0xff]   ;;  %vm6308_vm14 = vcmp.gt.f32.partialorder %v11839_v57, 0.0  ;;  %6466 = vperm.xlu0 %9144, %v6357_v29  }
 0x68e   : > { %v6372_v22 = vsel %vm6308_vm14, 1, %v14104_v0 }
 0x68f   : > { %4631 = vmatprep.subr.bf16.mxu1 %v4234_v6  ;;  %v5402_v6 = vsel %vm5358_vm9, %v11623_v36, 0.0  ;;  %v5382_v36 = vadd.f32 %v5381_v13, %v5380_v12  ;;  %6511 = vperm.xlu1 %9145, %v6372_v22   ;;  %v5464_v13 = vsel %vm5358_vm9, %v11679_v14, 0.0  ;;  %v5406_v22 = vsel %vm5358_vm9, %v11689_v26, 0.0 }
 0x690   : > { %4632 = vmatpush1.bf16.msra.mxu1 %v4233_v5  ;;  %v5403_v25 = vadd.f32 %v5402_v6, %v5401_v33  ;;  %v5422_v33 = vsel %vm5358_vm9, %v11639_v48, 0.0  ;;  %v11887_v48 = vld [vmem:[%s11596_s13 + $0xf0] sm:$0xff]  ;;  %v5366_v14 = vsel %vm5358_vm9, %v11711_v52, 0.0  ;;  %v5446_v52 = vsel %vm5358_vm9, %v11693_v31, 0.0 }
 0x691   : > { %v4092_v43 = vpop.f32.mrb[172].mxu1  ;;  %6556 = vperm.xlu0 %9144, %v6387_v44   ;;  %vm6301_vm2 = vcmp.gt.f32.partialorder %v11887_v48, 0.0  ;;  %v5427_v31 = vsel %vm5358_vm9, %v11721_v49, 0.0  ;;  %v5467_v49 = vsel %vm5358_vm9, %v11725_v18, 0.0 }
 0x692   : > { %v4094_v56 = vpop.f32.mrb[173].mxu1  ;;  %v6365_v26 = vsel %vm6301_vm2, 1, %v14236_v17 }
 0x693   : > { %v4096_v61 = vpop.f32.mrb[174].mxu1  ;;  %4361 = vmatmul.mubr.bf16.gmra.mrb[236].mxu1 %v10087_v20 }
 0x694   : > { %v4235_v3 = vpack.c.bf16 %v4096_v61, %v4092_v43  ;;  %v4098_v5 = vpop.f32.mrb[175].mxu1  ;;  %4370 = vmatprep.mubr.bf16.mxu1 %v10088_v60  ;;  %v5404_v43 = vsel %vm5358_vm9, %v11649_v51, 0.0  ;;  %v6342_v61 = vsel %vm6278_vm0, 1, %v14104_v0  ;;  %v11881_v60 = vld [vmem:[%s11596_s13 + $0x78] sm:$0xff] }
 0x695   : > { %v4236_v28 = vpack.c.bf16 %v4098_v5, %v4094_v56  ;;  %v5383_v56 = vsel %vm5358_vm9, %v11633_v45, 0.0  ;;  %v5444_v5 = vsel %vm5358_vm9, %v11659_v1, 0.0  ;;  %v5364_v45 = vsel %vm5358_vm9, %v11663_v2, 0.0  ;;  %v10089_v1 = vld [vmem:[%s10816_s18 + $0xe0] ss:$16 sps:$4 sm:$0xff]   ;;  %6421 = vperm.xlu1 %9145, %v6342_v61  }
 0x696   : > { %vm6286_vm1 = vcmp.gt.f32.partialorder %v11881_v60, 0.0  ;;  %v5384_v58 = vadd.f32 %v5383_v56, %v5382_v36  ;;  %v5405_v6 = vadd.f32 %v5404_v43, %v5403_v25  ;;  %v5445_v44 = vadd.f32 %v5444_v5, %v5443_v7  ;;  %v11901_v36 = vld [vmem:[%s11596_s13 + $0x168] sm:$0xff] }
 0x697   : > { %4633 = vmatprep.subr.bf16.mxu1 %v4236_v28  ;;  %v5365_v0 = vadd.f32 %v5364_v45, %v5363_v39  ;;  %v5425_v25 = vsel %vm5358_vm9, %v11673_v9, 0.0  ;;  %vm6316_vm3 = vcmp.gt.f32.partialorder %v11901_v36, 0.0  ;;  %v11911_v39 = vld [vmem:[%s11596_s13 + $0x1e0] sm:$0xff]  ;;  %v5465_v43 = vsel %vm5358_vm9, %v11683_v19, 0.0  ;;  %v11927_v45 = vld [vmem:[%s11596_s13 + $0xb8] sm:$0xff] }
 0x698   : > { %4634 = vmatpush1.bf16.msra.mxu1 %v4235_v3  ;;  %v5423_v3 = vsel %vm5358_vm9, %v11643_v53, 0.0  ;;  %v5385_v53 = vsel %vm5358_vm9, %v11669_v8, 0.0  ;;  %v6350_v8 = vsel %vm6286_vm1, 1, %v14236_v17  ;;  %v6380_v61 = vsel %vm6316_vm3, 1, %v14236_v17 }
 0x699   : > { %v4102_v20 = vpop.f32.mrb[176].mxu1  ;;  %v5424_v29 = vadd.f32 %v5423_v3, %v5422_v33  ;;  %6445 = vperm.xlu0 %9144, %v6350_v8   ;;  %v5386_v56 = vadd.f32 %v5385_v53, %v5384_v58  ;;  %6490 = vperm.xlu1 %9145, %v6365_v26   ;;  %vm6331_vm4 = vcmp.gt.f32.partialorder %v11911_v39, 0.0  ;;  %v5407_v9 = vadd.f32 %v5406_v22, %v5405_v6  ;;  %v10091_v58 = vld [vmem:[%s10816_s18 + $0x100] ss:$16 sps:$4 sm:$0xff]  }
 0x69a   : > { %v4104_v51 = vpop.f32.mrb[177].mxu1  ;;  %v6395_v33 = vsel %vm6331_vm4, 1, %v14236_v17  ;;  %v5485_v19 = vsel %vm5358_vm9, %v11699_v24, 0.0  ;;  %v5367_v3 = vadd.f32 %v5366_v14, %v5365_v0  ;;  %v5506_v53 = vsel %vm5358_vm9, %v11733_v62, 0.0  ;;  %v11935_v24 = vld [vmem:[%s11596_s13 + $0x130] sm:$0xff] }
 0x69b   : > { %v4106_v12 = vpop.f32.mrb[178].mxu1  ;;  %4371 = vmatmul.mubr.bf16.gmra.mrb[240].mxu1 %v10089_v1  ;;  %v5426_v7 = vadd.f32 %v5425_v25, %v5424_v29  ;;  %vm6294_vm5 = vcmp.gt.f32.partialorder %v11927_v45, 0.0  ;;  %v5408_v6 = vsel %vm5358_vm9, %v11743_v21, 0.0  ;;  %v5488_v29 = vsel %vm5358_vm9, %v11754_v38, 0.0 }
 0x69c   : > { %v4237_v28 = vpack.c.bf16 %v4106_v12, %v4102_v20  ;;  %v4108_v2 = vpop.f32.mrb[179].mxu1  ;;  %4380 = vmatprep.mubr.bf16.mxu1 %v10090_v32  ;;  %v5387_v20 = vsel %vm5358_vm9, %v11715_v54, 0.0  ;;  %v5466_v54 = vadd.f32 %v5465_v43, %v5464_v13  ;;  %v5389_v22 = vsel %vm5358_vm9, %v11765_v46, 0.0  ;;  %v11961_v46 = vld [vmem:[%s11596_s13 + $0xf8] sm:$0xff] }
 0x69d   : > { %v4238_v1 = vpack.c.bf16 %v4108_v2, %v4104_v51  ;;  %v5486_v51 = vsel %vm5358_vm9, %v11703_v37, 0.0  ;;  %6535 = vperm.xlu0 %9144, %v6380_v61   ;;  %v5447_v37 = vadd.f32 %v5446_v52, %v5445_v44  ;;  %6580 = vperm.xlu1 %9145, %v6395_v33   ;;  %v10092_v2 = vld [vmem:[%s10816_s18 + $0x124] ss:$16 sps:$4 sm:$0xff]   ;;  %v5469_v21 = vsel %vm5358_vm9, %v11775_v4, 0.0 }
 0x69e   : > { %v5487_v32 = vadd.f32 %v5486_v51, %v5485_v19  ;;  %v6358_v18 = vsel %vm6294_vm5, 1, %v14236_v17  ;;  %vm6309_vm6 = vcmp.gt.f32.partialorder %v11935_v24, 0.0  ;;  %v5468_v8 = vadd.f32 %v5467_v49, %v5466_v54 }
 0x69f   : > { %4635 = vmatprep.subr.bf16.mxu1 %v4238_v1  ;;  %v11953_v1 = vld [vmem:[%s11596_s13 + $0x1a8] sm:$0xff]  ;;  %v5507_v14 = vsel %vm5358_vm9, %v11737_v11, 0.0  ;;  %v6373_v38 = vsel %vm6309_vm6, 1, %v14236_v17  ;;  %v5368_v26 = vsel %vm5358_vm9, %v11759_v41, 0.0  ;;  %vm6302_vm8 = vcmp.gt.f32.partialorder %v11961_v46, 0.0 }
 0x6a0   : > { %4636 = vmatpush1.bf16.msra.mxu1 %v4237_v28  ;;  %v5388_v28 = vadd.f32 %v5387_v20, %v5386_v56  ;;  %vm6324_vm7 = vcmp.gt.f32.partialorder %v11953_v1, 0.0  ;;  %v5409_v11 = vadd.f32 %v5408_v6, %v5407_v9  ;;  %v5489_v56 = vadd.f32 %v5488_v29, %v5487_v32 }
 0x6a1   : > { %v4112_v5 = vpop.f32.mrb[180].mxu1  ;;  %6469 = vperm.xlu0 %9144, %v6358_v18   ;;  %v6388_v43 = vsel %vm6324_vm7, 1, %v14236_v17  ;;  %6514 = vperm.xlu1 %9145, %v6373_v38   ;;  %v5369_v61 = vadd.f32 %v5368_v26, %v5367_v3  ;;  %v6366_v52 = vsel %vm6302_vm8, 1, %v14236_v17  ;;  %v5428_v33 = vadd.f32 %v5427_v31, %v5426_v7 }
 0x6a2   : > { %v4114_v12 = vpop.f32.mrb[181].mxu1  ;;  %v5390_v25 = vadd.f32 %v5389_v22, %v5388_v28  ;;  %v5370_v19 = vsel %vm5358_vm9, %v11803_v40, 0.0  ;;  %v5470_v51 = vadd.f32 %v5469_v21, %v5468_v8  ;;  %v5429_v9 = vsel %vm5358_vm9, %v11769_v55, 0.0  ;;  %v10094_v55 = vld [vmem:[%s10816_s18 + $0x144] ss:$16 sps:$4 sm:$0xff]  }
 0x6a3   : > { %v4116_v0 = vpop.f32.mrb[182].mxu1  ;;  %4381 = vmatmul.mubr.bf16.gmra.mrb[244].mxu1 %v10091_v58  ;;  %v5371_v54 = vadd.f32 %v5370_v19, %v5369_v61  ;;  %v5410_v7 = vsel %vm5358_vm9, %v11787_v16, 0.0  ;;  %v5448_v31 = vsel %vm5358_vm9, %v11747_v10, 0.0  ;;  %v5430_v32 = vadd.f32 %v5429_v9, %v5428_v33  ;;  %v11989_v22 = vld [vmem:[%s11596_s13 + $0x170] sm:$0xff] }
 0x6a4   : > { %v4239_v13 = vpack.c.bf16 %v4116_v0, %v4112_v5  ;;  %v4118_v62 = vpop.f32.mrb[183].mxu1  ;;  %4390 = vmatprep.mubr.bf16.mxu1 %v10092_v2  ;;  %v11968_v5 = vadd.f32 %v5507_v14, %v5506_v53  ;;  %v10093_v0 = vld [vmem:[%s10816_s18 + $0x120] ss:$16 sps:$4 sm:$0xff]   ;;  %v5490_v53 = vsel %vm5358_vm9, %v11797_v42, 0.0  ;;  %v5411_v49 = vadd.f32 %v5410_v7, %v5409_v11 }
 0x6a5   : > { %v4240_v44 = vpack.c.bf16 %v4118_v62, %v4114_v12  ;;  %v5391_v12 = vsel %vm5358_vm9, %v11809_v50, 0.0  ;;  %6559 = vperm.xlu0 %9144, %v6388_v43   ;;  %6493 = vperm.xlu1 %9145, %v6366_v52   ;;  %v5491_v62 = vadd.f32 %v5490_v53, %v5489_v56  ;;  %v5412_v29 = vsel %vm5358_vm9, %v11835_v47, 0.0 }
 0x6a6   : > { %v5392_v58 = vadd.f32 %v5391_v12, %v5390_v25  ;;  %v5450_v10 = vsel %vm5358_vm9, %v11791_v23, 0.0  ;;  %v5413_v21 = vadd.f32 %v5412_v29, %v5411_v49  ;;  %v5393_v8 = vsel %vm5358_vm9, %v11881_v60, 0.0 }
 0x6a7   : > { %4637 = vmatprep.subr.bf16.mxu1 %v4240_v44  ;;  %v5471_v44 = vsel %vm5358_vm9, %v11819_v27, 0.0  ;;  %v5431_v38 = vsel %vm5358_vm9, %v11813_v63, 0.0  ;;  %v5414_v25 = vsel %vm5358_vm9, %v11927_v45, 0.0  ;;  %v5473_v26 = vsel %vm5358_vm9, %v11901_v36, 0.0 }
 0x6a8   : > { %4638 = vmatpush1.bf16.msra.mxu1 %v4239_v13  ;;  %v5449_v13 = vadd.f32 %v5448_v31, %v5447_v37  ;;  %v5472_v37 = vadd.f32 %v5471_v44, %v5470_v51  ;;  %v11995_v14 = vadd.f32 %v5393_v8, %v5392_v58  ;;  %v12003_v43 = vadd.f32 %v5414_v25, %v5413_v21  ;;  %v12035_v44 = vld [vmem:[%s11596_s13 + $0x1b8] sm:$0xff] }
 0x6a9   : > { %v4122_v20 = vpop.f32.mrb[184].mxu1  ;;  %v5452_v11 = vsel %vm5358_vm9, %v11839_v57, 0.0  ;;  %vm6317_vm10 = vcmp.gt.f32.partialorder %v11989_v22, 0.0  ;;  %v5492_v61 = vsel %vm5358_vm9, %v11857_v35, 0.0  ;;  %v5372_v12 = vsel %vm5358_vm9, %v11863_v34, 0.0 }
 0x6aa   : > { %v4124_v41 = vpop.f32.mrb[185].mxu1  ;;  %v5451_v18 = vadd.f32 %v5450_v10, %v5449_v13  ;;  %v5395_v52 = vrot.slane %v11995_v14, 4  ;;  %v5474_v33 = vadd.f32 %v5473_v26, %v5472_v37  ;;  %v5475_v9 = vsel %vm5358_vm9, %v11989_v22, 0.0  ;;  %v10096_v13 = vld [vmem:[%s10816_s18 + $0x164] ss:$16 sps:$4 sm:$0xff]  }
 0x6ab   : > { %v4126_v3 = vpop.f32.mrb[186].mxu1  ;;  %4391 = vmatmul.mubr.bf16.gmra.mrb[248].mxu1 %v10093_v0  ;;  %v10095_v0 = vld [vmem:[%s10816_s18 + $0x140] ss:$16 sps:$4 sm:$0xff]   ;;  %v5509_v7 = vsel %vm5358_vm9, %v11781_v59, 0.0  ;;  %v5494_v31 = vsel %vm5358_vm9, %v11953_v1, 0.0  ;;  %v5373_v53 = vadd.f32 %v5372_v12, %v5371_v54  ;;  %v6381_v59 = vsel %vm6317_vm10, 1, %v14236_v17 }
 0x6ac   : > { %v4241_v6 = vpack.c.bf16 %v4126_v3, %v4122_v20  ;;  %v4128_v28 = vpop.f32.mrb[187].mxu1  ;;  %4400 = vmatprep.mubr.bf16.mxu1 %v10094_v55  ;;  %v5432_v20 = vadd.f32 %v5431_v38, %v5430_v32  ;;  %v5453_v51 = vadd.f32 %v5452_v11, %v5451_v18  ;;  %v5476_v58 = vadd.f32 %v5475_v9, %v5474_v33 }
 0x6ad   : > { %v4242_v2 = vpack.c.bf16 %v4128_v28, %v4124_v41  ;;  %v5493_v41 = vadd.f32 %v5492_v61, %v5491_v62  ;;  %v12024_v28 = vld [vmem:[%s11596_s13 + $0x178] sm:$0xff]  ;;  %v5510_v62 = vadd.f32 %v5509_v7, %v11968_v5  ;;  %v5374_v29 = vrot.slane %v5373_v53, 4  ;;  %6538 = vperm.xlu0 %9144, %v6381_v59   ;;  %v12063_v7 = vld [vmem:[%s11596_s13 + $0x1b0] sm:$0xff] }
 0x6ae   : > { %v5433_v10 = vsel %vm5358_vm9, %v11887_v48, 0.0  ;;  %v5477_v5 = vsel %vm5358_vm9, %v12024_v28, 0.0  ;;  %vm6318_vm12 = vcmp.gt.f32.partialorder %v12024_v28, 0.0  ;;  %v5454_v38 = vsel %vm5358_vm9, %v11935_v24, 0.0 }
 0x6af   : > { %4639 = vmatprep.subr.bf16.mxu1 %v4242_v2  ;;  %v5416_v2 = vrot.slane %v12003_v43, 4  ;;  %v5495_v54 = vadd.f32 %v5494_v31, %v5493_v41  ;;  %v5434_v21 = vadd.f32 %v5433_v10, %v5432_v20  ;;  %v12044_v37 = vadd.f32 %v5477_v5, %v5476_v58  ;;  %v10097_v58 = vld [vmem:[%s10816_s18 + $0x160] ss:$16 sps:$4 sm:$0xff]  }
 0x6b0   : > { %4640 = vmatpush1.bf16.msra.mxu1 %v4241_v6  ;;  %v12021_v6 = vld [vmem:[%s11596_s13 + $0x138] sm:$0xff]  ;;  %v5511_v25 = vsel %vm5358_vm9, %v11825_v30, 0.0  ;;  %v6382_v26 = vsel %vm6318_vm12, 1, %v14236_v17  ;;  %v5455_v11 = vadd.f32 %v5454_v38, %v5453_v51  ;;  %vm6326_vm13 = vcmp.gt.f32.partialorder %v12035_v44, 0.0 }
 0x6b1   : > { %v4132_v56 = vpop.f32.mrb[188].mxu1  ;;  %vm6310_vm11 = vcmp.gt.f32.partialorder %v12021_v6, 0.0  ;;  %v5456_v18 = vsel %vm5358_vm9, %v12021_v6, 0.0  ;;  %v5512_v20 = vadd.f32 %v5511_v25, %v5510_v62  ;;  %v5498_v33 = vsel %vm5358_vm9, %v12035_v44, 0.0 }
 0x6b2   : > { %v4134_v19 = vpop.f32.mrb[189].mxu1  ;;  %v6374_v8 = vsel %vm6310_vm11, 1, %v14236_v17  ;;  %v5435_v41 = vsel %vm5358_vm9, %v11961_v46, 0.0  ;;  %v5513_v51 = vsel %vm5358_vm9, %v11911_v39, 0.0  ;;  %v5457_v9 = vadd.f32 %v5456_v18, %v5455_v11 }
 0x6b3   : > { %v4136_v3 = vpop.f32.mrb[190].mxu1  ;;  %4401 = vmatmul.mubr.bf16.gmra.mrb[252].mxu1 %v10095_v0  ;;  %6517 = vperm.xlu0 %9144, %v6374_v8   ;;  %v5375_v0 = vadd.f32 %v5374_v29, %v5373_v53  ;;  %vm6325_vm15 = vcmp.gt.f32.partialorder %v12063_v7, 0.0 }
 0x6b4   : > { %v4243_v55 = vpack.c.bf16 %v4136_v3, %v4132_v56  ;;  %v4138_v49 = vpop.f32.mrb[191].mxu1  ;;  %4410 = vmatprep.mubr.bf16.mxu1 %v10096_v13  ;;  %v12053_v56 = vld [vmem:[%s11596_s13 + $0x1e8] sm:$0xff]  ;;  %v5436_v3 = vadd.f32 %v5435_v41, %v5434_v21  ;;  %v5496_v13 = vsel %vm5358_vm9, %v12063_v7, 0.0  ;;  %v12074_v21 = vld [vmem:[%s11596_s13 + $0x1f0] sm:$0xff]  ;;  %v5458_v25 = vrot.slane %v5457_v9, 4 }
 0x6b5   : > { %v4244_v32 = vpack.c.bf16 %v4138_v49, %v4134_v19  ;;  %v6390_v19 = vsel %vm6326_vm13, 1, %v14236_v17  ;;  %vm6332_vm14 = vcmp.gt.f32.partialorder %v12053_v56, 0.0  ;;  %v5417_v49 = vadd.f32 %v5416_v2, %v12003_v43 }
 0x6b6   : > { %v5437_v10 = vrot.slane %v5436_v3, 4  ;;  %v5376_v53 = vrot.slane %v5375_v0, 2  ;;  %v5515_v29 = vsel %vm5358_vm9, %v12053_v56, 0.0  ;;  %v6396_v8 = vsel %vm6332_vm14, 1, %v14236_v17 }
 0x6b7   : > { %4641 = vmatprep.subr.bf16.mxu1 %v4244_v32  ;;  %v10098_v32 = vld [vmem:[%s10816_s18 + $0x184] ss:$16 sps:$4 sm:$0xff]   ;;  %6541 = vperm.xlu0 %9144, %v6382_v26   ;;  %v5418_v43 = vrot.slane %v5417_v49, 2  ;;  %v5497_v38 = vadd.f32 %v5496_v13, %v5495_v54  ;;  %vm6333_vm0 = vcmp.gt.f32.partialorder %v12074_v21, 0.0 }
 0x6b8   : > { %4642 = vmatpush1.bf16.msra.mxu1 %v4243_v55  ;;  %v5514_v55 = vadd.f32 %v5513_v51, %v5512_v20  ;;  %v5377_v2 = vadd.f32 %v5376_v53, %v5375_v0  ;;  %6583 = vperm.xlu1 %9145, %v6396_v8   ;;  %v5517_v20 = vsel %vm5358_vm9, %v12074_v21, 0.0  ;;  %v12083_v0 = vld [vmem:[%s11596_s13 + $0x1f8] sm:$0xff]  ;;  %v10099_v53 = vld [vmem:[%s10816_s18 + $0x180] ss:$16 sps:$4 sm:$0xff]  }
 0x6b9   : > { %v4142_v61 = vpop.f32.mrb[192].mxu1  ;;  %v5419_v11 = vadd.f32 %v5418_v43, %v5417_v49  ;;  %v5499_v41 = vadd.f32 %v5498_v33, %v5497_v38  ;;  %v5519_v49 = vsel %vm5358_vm9, %v12083_v0, 0.0  ;;  %vm6334_vm1 = vcmp.gt.f32.partialorder %v12083_v0, 0.0  ;;  %v10100_v43 = vld [vmem:[%s10816_s18 + $0x1a4] ss:$16 sps:$4 sm:$0xff]  }
 0x6ba   : > { %v4144_v12 = vpop.f32.mrb[193].mxu1  ;;  %v5516_v18 = vadd.f32 %v5515_v29, %v5514_v55  ;;  %v5378_v26 = vrot.slane %v5377_v2, 1  ;;  %v6397_v55 = vsel %vm6333_vm0, 1, %v14236_v17 }
 0x6bb   : > { %v4146_v31 = vpop.f32.mrb[194].mxu1  ;;  %4411 = vmatmul.mubr.bf16.gmra.mrb[0].mxu1 %v10097_v58  ;;  %6565 = vperm.xlu0 %9144, %v6390_v19   ;;  %v5420_v58 = vrot.slane %v5419_v11, 1  ;;  %v5396_v19 = vadd.f32 %v5395_v52, %v11995_v14 }
 0x6bc   : > { %v4245_v62 = vpack.c.bf16 %v4146_v31, %v4142_v61  ;;  %v4148_v59 = vpop.f32.mrb[195].mxu1  ;;  %4420 = vmatprep.mubr.bf16.mxu1 %v10098_v32  ;;  %v6389_v61 = vsel %vm6325_vm15, 1, %v14236_v17  ;;  %v5518_v51 = vadd.f32 %v5517_v20, %v5516_v18  ;;  %v5479_v31 = vrot.slane %v12044_v37, 4 }
 0x6bd   : > { %v4246_v5 = vpack.c.bf16 %v4148_v59, %v4144_v12  ;;  %v5459_v12 = vadd.f32 %v5458_v25, %v5457_v9  ;;  %6562 = vperm.xlu1 %9145, %v6389_v61   ;;  %v5500_v9 = vrot.slane %v5499_v41, 4  ;;  %v12092_v29 = vadd.f32 %v5420_v58, %v5419_v11 }
 0x6be   : > { %v5520_v59 = vadd.f32 %v5519_v49, %v5518_v51  ;;  %v6398_v20 = vsel %vm6334_vm1, 1, %v14236_v17 }
 0x6bf   : > { %4643 = vmatprep.subr.bf16.mxu1 %v4246_v5  ;;  %v5460_v33 = vrot.slane %v5459_v12, 2  ;;  %v5438_v5 = vadd.f32 %v5437_v10, %v5436_v3  ;;  %v5501_v38 = vadd.f32 %v5500_v9, %v5499_v41  ;;  %vm5529_vm2 = vcmp.gt.f32.partialorder %v12092_v29, 0.0 }
 0x6c0   : > { %4644 = vmatpush1.bf16.msra.mxu1 %v4245_v62  ;;  %v12089_v62 = vadd.f32 %v5378_v26, %v5377_v2  ;;  %v5521_v52 = vrot.slane %v5520_v59, 4  ;;  %v5397_v3 = vrot.slane %v5396_v19, 2  ;;  %v6993_v10 = vsel %vm5529_vm2, 1, %v14236_v17 }
 0x6c1   : > { %v4152_v54 = vpop.f32.mrb[196].mxu1  ;;  %v5461_v2 = vadd.f32 %v5460_v33, %v5459_v12  ;;  %6586 = vperm.xlu1 %9145, %v6397_v55   ;;  %v5502_v14 = vrot.slane %v5501_v38, 2  ;;  %v5439_v26 = vrot.slane %v5438_v5, 2  ;;  %v5480_v41 = vadd.f32 %v5479_v31, %v12044_v37  ;;  %v10101_v37 = vld [vmem:[%s10816_s18 + $0x1a0] ss:$16 sps:$4 sm:$0xff]  }
 0x6c2   : > { %v4154_v13 = vpop.f32.mrb[197].mxu1  ;;  %vm5527_vm9 = vcmp.gt.f32.partialorder %v12089_v62, 0.0  ;;  %9802 = vrcp.f32 %v12089_v62 }
 0x6c3   : > { %v4156_v32 = vpop.f32.mrb[198].mxu1  ;;  %4421 = vmatmul.mubr.bf16.gmra.mrb[4].mxu1 %v10099_v53  ;;  %v6991_v11 = vsel %vm5527_vm9, 1, %v14236_v17  ;;  %v5462_v61 = vrot.slane %v5461_v2, 1  ;;  %v5503_v51 = vadd.f32 %v5502_v14, %v5501_v38  ;;  %v5440_v55 = vadd.f32 %v5439_v26, %v5438_v5 }
 0x6c4   : > { %v4247_v18 = vpack.c.bf16 %v4156_v32, %v4152_v54  ;;  %v4158_v8 = vpop.f32.mrb[199].mxu1  ;;  %4430 = vmatprep.mubr.bf16.mxu1 %v10100_v43  ;;  %7000 = vperm.xlu0 %9144, %v6991_v11   ;;  %v5398_v54 = vadd.f32 %v5397_v3, %v5396_v19  ;;  %v5481_v49 = vrot.slane %v5480_v41, 2  ;;  %v5522_v32 = vadd.f32 %v5521_v52, %v5520_v59  ;;  %v10102_v43 = vld [vmem:[%s10816_s18 + $0x1c4] ss:$16 sps:$4 sm:$0xff]  }
 0x6c5   : > { %v4248_v25 = vpack.c.bf16 %v4158_v8, %v4154_v13  ;;  %v12111_v12 = vadd.f32 %v5462_v61, %v5461_v2  ;;  %v5504_v33 = vrot.slane %v5503_v51, 1  ;;  %6589 = vperm.xlu1 %9145, %v6398_v20   ;;  %v5441_v19 = vrot.slane %v5440_v55, 1 }
 0x6c6   : > { %v5399_v9 = vrot.slane %v5398_v54, 1  ;;  %v5523_v61 = vrot.slane %v5522_v32, 2  ;;  %9804 = vrcp.f32 %v12092_v29 }
 0x6c7   : > { %4645 = vmatprep.subr.bf16.mxu1 %v4248_v25  ;;  %vm5531_vm3 = vcmp.gt.f32.partialorder %v12111_v12, 0.0  ;;  %v12119_v2 = vadd.f32 %v5504_v33, %v5503_v51  ;;  %v12123_v11 = vadd.f32 %v5441_v19, %v5440_v55  ;;  %9806 = vrcp.f32 %v12111_v12 }
 0x6c8   : > { %4646 = vmatpush1.bf16.msra.mxu1 %v4247_v18  ;;  %7006 = vperm.xlu0 %9144, %v6993_v10   ;;  %v6995_v31 = vsel %vm5531_vm3, 1, %v14236_v17  ;;  %v5482_v18 = vadd.f32 %v5481_v49, %v5480_v41  ;;  %v12121_v38 = vadd.f32 %v5399_v9, %v5398_v54  ;;  %v5524_v41 = vadd.f32 %v5523_v61, %v5522_v32  ;;  %v10103_v54 = vld [vmem:[%s10816_s18 + $0x1c0] ss:$16 sps:$4 sm:$0xff]   ;;  %v10104_v49 = vld [vmem:[%s10816_s18 + $0x1e4] ss:$16 sps:$4 sm:$0xff]   ;;  %v10105_v9 = vld [vmem:[%s11596_s13 + $0x8] sm:$0xff] }
 0x6c9   : > { %v4162_v58 = vpop.f32.mrb[200].mxu1  ;;  %vm5533_vm4 = vcmp.gt.f32.partialorder %v12119_v2, 0.0  ;;  %vm5530_vm6 = vcmp.gt.f32.partialorder %v12123_v11, 0.0 }
 0x6ca   : > { %v4164_v13 = vpop.f32.mrb[201].mxu1  ;;  %v5483_v59 = vrot.slane %v5482_v18, 1  ;;  %vm5528_vm5 = vcmp.gt.f32.partialorder %v12121_v38, 0.0  ;;  %v6997_v14 = vsel %vm5533_vm4, 1, %v14236_v17  ;;  %v6994_v20 = vsel %vm5530_vm6, 1, %v14236_v17 }
 0x6cb   : > { %v4166_v53 = vpop.f32.mrb[202].mxu1  ;;  %4431 = vmatmul.mubr.bf16.gmra.mrb[8].mxu1 %v10101_v37  ;;  %v6992_v52 = vsel %vm5528_vm5, 1, %v14236_v17  ;;  %9808 = vrcp.f32 %v12121_v38  ;;  %v10175_v38 = vld [vmem:[%s10816_s18 + $0x2c] ss:$16 sps:$4 sm:$0xff]  }
 0x6cc   : > { %v4249_v5 = vpack.c.bf16 %v4166_v53, %v4162_v58  ;;  %v4168_v8 = vpop.f32.mrb[203].mxu1  ;;  %4440 = vmatprep.mubr.bf16.mxu1 %v10102_v43  ;;  %7012 = vperm.xlu0 %9144, %v6995_v31   ;;  %v12134_v3 = vadd.f32 %v5483_v59, %v5482_v18  ;;  %v5525_v53 = vrot.slane %v5524_v41, 1  ;;  %v10106_v31 = vld [vmem:[%s11596_s13 + $0x48] sm:$0xff]  ;;  %v10109_v59 = vld [vmem:[%s11596_s13] sm:$0xff]  ;;  %9810 = vrcp.f32 %v12119_v2 }
 0x6cd   : > { %v4250_v25 = vpack.c.bf16 %v4168_v8, %v4164_v13  ;;  %7003 = vperm.xlu1 %9145, %v6992_v52   ;;  %v10110_v52 = vld [vmem:[%s11596_s13 + $0x80] sm:$0xff]  ;;  %9812 = vrcp.f32 %v12123_v11 }
 0x6ce   : > { %vm5532_vm7 = vcmp.gt.f32.partialorder %v12134_v3, 0.0  ;;  %v12147_v19 = vadd.f32 %v5525_v53, %v5524_v41  ;;  %v10113_v41 = vld [vmem:[%s10816_s18 + $0x200] ss:$16 sps:$4 sm:$0xff]   ;;  %9814 = vrcp.f32 %v12134_v3 }
 0x6cf   : > { %4647 = vmatprep.subr.bf16.mxu1 %v4250_v25  ;;  %v6996_v33 = vsel %vm5532_vm7, 1, %v14236_v17  ;;  %v10108_v25 = vld [vmem:[%s10816_s18 + $0x204] ss:$16 sps:$4 sm:$0xff]  }
 0x6d0   : > { %4648 = vmatpush1.bf16.msra.mxu1 %v4249_v5  ;;  %7018 = vperm.xlu0 %9144, %v6997_v14   ;;  %v10107_v5 = vld [vmem:[%s10816_s18 + $0x1e0] ss:$16 sps:$4 sm:$0xff]   ;;  %v12152_v14 = vpop.permute.xlu0 %6400  ;;  %vm5534_vm8 = vcmp.gt.f32.partialorder %v12147_v19, 0.0  ;;  %9816 = vrcp.f32 %v12147_v19 }
 0x6d1   : > { %v4172_v10 = vpop.f32.mrb[204].mxu1  ;;  %7009 = vperm.xlu1 %9145, %v6994_v20   ;;  %v6998_v20 = vsel %vm5534_vm8, 1, %v14236_v17  ;;  %v10120_v53 = vld [vmem:[%s11596_s13 + $0x50] sm:$0xff]  ;;  %vm6591_vm10 = vcmp.eq.s32.totalorder %v12152_v14, 1 }
 0x6d2   : > { %v4174_v26 = vpop.f32.mrb[205].mxu1 }
 0x6d3   : > { %v4176_v51 = vpop.f32.mrb[206].mxu1  ;;  %4441 = vmatmul.mubr.bf16.gmra.mrb[12].mxu1 %v10103_v54 }
 0x6d4   : > { %v4251_v58 = vpack.c.bf16 %v4176_v51, %v4172_v10  ;;  %v4178_v55 = vpop.f32.mrb[207].mxu1  ;;  %4450 = vmatprep.mubr.bf16.mxu1 %v10104_v49  ;;  %5566 = vperm.xlu0 %9144, %v10105_v9   ;;  %v10111_v10 = vld [vmem:[%s11596_s13 + $0x40] sm:$0xff]  ;;  %v12163_v54 = vpop.permute.xlu0 %6403  ;;  %v10116_v49 = vld [vmem:[%s11596_s13 + $0x88] sm:$0xff] }
 0x6d5   : > { %v4252_v13 = vpack.c.bf16 %v4178_v55, %v4174_v26  ;;  %7015 = vperm.xlu1 %9145, %v6996_v33   ;;  %v10112_v26 = vld [vmem:[%s11596_s13 + $0x10] sm:$0xff]  ;;  %v12166_v55 = vpop.permute.xlu1 %6424  ;;  %vm6592_vm11 = vcmp.eq.s32.totalorder %v12163_v54, 1 }
 0x6d6   : > { %v10114_v51 = vld [vmem:[%s10816_s18 + $0x224] ss:$16 sps:$4 sm:$0xff]   ;;  %v10118_v33 = vld [vmem:[%s10816_s18 + $0x220] ss:$16 sps:$4 sm:$0xff]   ;;  %vm6599_vm1 = vcmp.eq.s32.totalorder %v12166_v55, 1 }
 0x6d7   : > { %4649 = vmatprep.subr.bf16.mxu1 %v4252_v13  ;;  %v10117_v13 = vld [vmem:[%s11596_s13 + $0x90] sm:$0xff] }
 0x6d8   : > { %4650 = vmatpush1.bf16.msra.mxu1 %v4251_v58  ;;  %5606 = vperm.xlu0 %9144, %v10106_v31   ;;  %v10115_v58 = vld [vmem:[%s11596_s13 + $0xc0] sm:$0xff]  ;;  %v12169_v17 = vpop.permute.xlu0 %6448 }
 0x6d9   : > { %v4182_v32 = vpop.f32.mrb[208].mxu1  ;;  %5561 = vperm.xlu1 %9145, %v10109_v59   ;;  %v10119_v9 = vld [vmem:[%s10816_s18 + $0x244] ss:$16 sps:$4 sm:$0xff]  }
 0x6da   : > { %v4184_v37 = vpop.f32.mrb[209].mxu1  ;;  %v10126_v59 = vld [vmem:[%s11596_s13 + $0x100] sm:$0xff] }
 0x6db   : > { %v4186_v18 = vpop.f32.mrb[210].mxu1  ;;  %4451 = vmatmul.mubr.bf16.gmra.mrb[16].mxu1 %v10107_v5  ;;  %v10123_v5 = vld [vmem:[%s11596_s13 + $0x58] sm:$0xff] }
 0x6dc   : > { %v4253_v8 = vpack.c.bf16 %v4186_v18, %v4182_v32  ;;  %v4188_v43 = vpop.f32.mrb[211].mxu1  ;;  %4460 = vmatprep.mubr.bf16.mxu1 %v10108_v25  ;;  %5641 = vperm.xlu0 %9144, %v10110_v52   ;;  %v12175_v32 = vpop.permute.xlu1 %6427  ;;  %v10122_v18 = vld [vmem:[%s11596_s13 + $0xc8] sm:$0xff]  ;;  %v10127_v52 = vld [vmem:[%s11596_s13 + $0x140] sm:$0xff] }
 0x6dd   : > { %v4254_v61 = vpack.c.bf16 %v4188_v43, %v4184_v37  ;;  %5601 = vperm.xlu1 %9145, %v10111_v10   ;;  %v10121_v37 = vld [vmem:[%s11596_s13 + $0x108] sm:$0xff]  ;;  %v12178_v31 = vpop.permute.xlu0 %6406  ;;  %v10125_v43 = vld [vmem:[%s10816_s18 + $0x264] ss:$16 sps:$4 sm:$0xff]   ;;  %v10128_v10 = vld [vmem:[%s11596_s13 + $0x18] sm:$0xff] }
 0x6de   : > { %vm6593_vm12 = vcmp.eq.s32.totalorder %v12178_v31, 1 }
 0x6df   : > { %4651 = vmatprep.subr.bf16.mxu1 %v4254_v61 }
 0x6e0   : > { %4652 = vmatpush1.bf16.msra.mxu1 %v4253_v8  ;;  %5571 = vperm.xlu0 %9144, %v10112_v26   ;;  %v10124_v8 = vld [vmem:[%s10816_s18 + $0x240] ss:$16 sps:$4 sm:$0xff]   ;;  %v12184_v25 = vpop.permute.xlu1 %6451  ;;  %v10129_v26 = vld [vmem:[%s11596_s13 + $0x98] sm:$0xff] }
 0x6e1   : > { %7021 = vperm.xlu1 %9145, %v6998_v20   ;;  %v12187_v61 = vpop.permute.xlu0 %6472 }
 0x6e2   : > { %14237 = vst [vmem:[#allocation20_spill] sm:$0xff] %v12187_v61 }
 0x6e3   : > { %4461 = vmatmul.mubr.bf16.gmra.mrb[20].mxu1 %v10113_v41  ;;  %v10130_v41 = vld [vmem:[%s10816_s18 + $0x260] ss:$16 sps:$4 sm:$0xff]  }
 0x6e4   : > { %4470 = vmatprep.mubr.bf16.mxu1 %v10114_v51  ;;  %5681 = vperm.xlu0 %9144, %v10115_v58   ;;  %v12191_v20 = vpop.permute.xlu1 %6430  ;;  %v10131_v51 = vld [vmem:[%s10816_s18 + $0x284] ss:$16 sps:$4 sm:$0xff]  }
 0x6e5   : > { %5646 = vperm.xlu1 %9145, %v10116_v49   ;;  %v12196_v58 = vpop.permute.xlu0 %6454  ;;  %v10132_v49 = vld [vmem:[%s11596_s13 + $0xd0] sm:$0xff] }
 0x6e8   : > { %5651 = vperm.xlu0 %9144, %v10117_v13   ;;  %v10133_v13 = vld [vmem:[%s11596_s13 + $0x180] sm:$0xff] }
 0x6e9   : > { %5611 = vperm.xlu1 %9145, %v10120_v53   ;;  %v12203_v53 = vpop.permute.xlu0 %6499 }
 0x6ea   : > { %14239 = vst [vmem:[#allocation22_spill] sm:$0xff] %v12203_v53 }
 0x6eb   : > { %4471 = vmatmul.mubr.bf16.gmra.mrb[24].mxu1 %v10118_v33  ;;  %v12200_v33 = vpop.permute.xlu1 %6475 }
 0x6ec   : > { %4480 = vmatprep.mubr.bf16.mxu1 %v10119_v9  ;;  %5726 = vperm.xlu0 %9144, %v10121_v37   ;;  %14238 = vst [vmem:[#allocation21_spill] sm:$0xff] %v12200_v33  ;;  %v10134_v9 = vld [vmem:[%s11596_s13 + $0x148] sm:$0xff]  ;;  %v10135_v37 = vld [vmem:[%s11596_s13 + $0x20] sm:$0xff] }
 0x6ed   : > { %5686 = vperm.xlu1 %9145, %v10122_v18   ;;  %v10136_v18 = vld [vmem:[%s10816_s18 + $0x280] ss:$16 sps:$4 sm:$0xff]  }
 0x6f0   : > { %5616 = vperm.xlu0 %9144, %v10123_v5   ;;  %v10137_v5 = vld [vmem:[%s10816_s18 + $0x2a4] ss:$16 sps:$4 sm:$0xff]  }
 0x6f1   : > { %5721 = vperm.xlu1 %9145, %v10126_v59   ;;  %v10139_v59 = vld [vmem:[%s11596_s13 + $0xd8] sm:$0xff] }
 0x6f3   : > { %4481 = vmatmul.mubr.bf16.gmra.mrb[28].mxu1 %v10124_v8  ;;  %v10138_v8 = vld [vmem:[%s11596_s13 + $0x110] sm:$0xff] }
 0x6f4   : > { %4490 = vmatprep.mubr.bf16.mxu1 %v10125_v43  ;;  %5761 = vperm.xlu0 %9144, %v10127_v52   ;;  %v12209_v43 = vpop.permute.xlu1 %6496  ;;  %v12212_v52 = vpop.permute.xlu0 %6433 }
 0x6f5   : > { %5576 = vperm.xlu1 %9145, %v10128_v10   ;;  %14240 = vst [vmem:[#allocation23_spill] sm:$0xff] %v12209_v43  ;;  %v10140_v10 = vld [vmem:[%s11596_s13 + $0x188] sm:$0xff] }
 0x6f6   : > { %v10224_v43 = vld [vmem:[%s10816_s18 + $0x328] ss:$16 sps:$4 sm:$0xff]  }
 0x6f8   : > { %5656 = vperm.xlu0 %9144, %v10129_v26   ;;  %v10141_v26 = vld [vmem:[%s11596_s13 + $0x1c0] sm:$0xff] }
 0x6f9   : > { %5691 = vperm.xlu1 %9145, %v10132_v49   ;;  %v12218_v49 = vpop.permute.xlu1 %6409 }
 0x6fa   : > { %vm6594_vm13 = vcmp.eq.s32.totalorder %v12218_v49, 1 }
 0x6fb   : > { %4491 = vmatmul.mubr.bf16.gmra.mrb[32].mxu1 %v10130_v41  ;;  %v10142_v41 = vld [vmem:[%s10816_s18 + $0x2a0] ss:$16 sps:$4 sm:$0xff]  }
 0x6fc   : > { %4500 = vmatprep.mubr.bf16.mxu1 %v10131_v51  ;;  %5801 = vperm.xlu0 %9144, %v10133_v13   ;;  %v10143_v51 = vld [vmem:[%s10816_s18 + $0x2c4] ss:$16 sps:$4 sm:$0xff]  }
 0x6fd   : > { %5766 = vperm.xlu1 %9145, %v10134_v9   ;;  %v10144_v13 = vld [vmem:[%s11596_s13 + $0x60] sm:$0xff]  ;;  %v12221_v9 = vpop.permute.xlu0 %6520 }
 0x6fe   : > { %14241 = vst [vmem:[#allocation24_spill] sm:$0xff] %v12221_v9  ;;  %v10211_v9 = vld [vmem:[%s10816_s18 + $0x26c] ss:$16 sps:$4 sm:$0xff]  }
 0x700   : > { %5581 = vperm.xlu0 %9144, %v10135_v37   ;;  %v10145_v37 = vld [vmem:[%s11596_s13 + $0xa0] sm:$0xff] }
 0x701   : > { %5731 = vperm.xlu1 %9145, %v10138_v8   ;;  %v10147_v8 = vld [vmem:[%s11596_s13 + $0x190] sm:$0xff] }
 0x703   : > { %4501 = vmatmul.mubr.bf16.gmra.mrb[36].mxu1 %v10136_v18  ;;  %v10146_v18 = vld [vmem:[%s11596_s13 + $0x150] sm:$0xff] }
 0x704   : > { %4510 = vmatprep.mubr.bf16.mxu1 %v10137_v5  ;;  %5696 = vperm.xlu0 %9144, %v10139_v59   ;;  %v12225_v5 = vpop.permute.xlu1 %6478  ;;  %v10148_v59 = vld [vmem:[%s10816_s18 + $0x2c0] ss:$16 sps:$4 sm:$0xff]  }
 0x705   : > { %5806 = vperm.xlu1 %9145, %v10140_v10   ;;  %14242 = vst [vmem:[#allocation25_spill] sm:$0xff] %v12225_v5  ;;  %v10149_v10 = vld [vmem:[%s10816_s18 + $0x2e4] ss:$16 sps:$4 sm:$0xff]  }
 0x708   : > { %5841 = vperm.xlu0 %9144, %v10141_v26   ;;  %v12230_v26 = vpop.permute.xlu0 %6457 }
 0x709   : > { %5621 = vperm.xlu1 %9145, %v10144_v13   ;;  %v12234_v13 = vpop.permute.xlu1 %6523 }
 0x70a   : > { %14243 = vst [vmem:[#allocation26_spill] sm:$0xff] %v12234_v13  ;;  %v10209_v13 = vld [vmem:[%s10816_s18 + $0x24c] ss:$16 sps:$4 sm:$0xff]  }
 0x70b   : > { %4511 = vmatmul.mubr.bf16.gmra.mrb[40].mxu1 %v10142_v41  ;;  %v10150_v41 = vld [vmem:[%s11596_s13 + $0x1c8] sm:$0xff] }
 0x70c   : > { %4520 = vmatprep.mubr.bf16.mxu1 %v10143_v51  ;;  %5661 = vperm.xlu0 %9144, %v10145_v37   ;;  %v10151_v51 = vld [vmem:[%s11596_s13 + $0x68] sm:$0xff]  ;;  %v10152_v37 = vld [vmem:[%s11596_s13 + $0x118] sm:$0xff] }
 0x70d   : > { %5771 = vperm.xlu1 %9145, %v10146_v18   ;;  %v12237_v18 = vpop.permute.xlu0 %6544 }
 0x70e   : > { %14244 = vst [vmem:[#allocation27_spill] sm:$0xff] %v12237_v18 }
 0x710   : > { %5811 = vperm.xlu0 %9144, %v10147_v8   ;;  %v10153_v8 = vld [vmem:[%s10816_s18 + $0x2e0] ss:$16 sps:$4 sm:$0xff]  }
 0x711   : > { %5846 = vperm.xlu1 %9145, %v10150_v41   ;;  %v12243_v41 = vpop.permute.xlu1 %6502 }
 0x712   : > { %14245 = vst [vmem:[#allocation28_spill] sm:$0xff] %v12243_v41  ;;  %v10223_v41 = vld [vmem:[%s10816_s18 + $0x32c] ss:$16 sps:$4 sm:$0xff]  }
 0x713   : > { %4521 = vmatmul.mubr.bf16.gmra.mrb[44].mxu1 %v10148_v59  ;;  %v10154_v59 = vld [vmem:[%s10816_s18 + $0x304] ss:$16 sps:$4 sm:$0xff]  }
 0x714   : > { %4530 = vmatprep.mubr.bf16.mxu1 %v10149_v10  ;;  %5626 = vperm.xlu0 %9144, %v10151_v51   ;;  %v10155_v10 = vld [vmem:[%s11596_s13 + $0x28] sm:$0xff]  ;;  %v12246_v51 = vpop.permute.xlu0 %6412 }
 0x715   : > { %5736 = vperm.xlu1 %9145, %v10152_v37   ;;  %v10156_v37 = vld [vmem:[%s11596_s13 + $0xe0] sm:$0xff]  ;;  %v12252_v18 = vpop.permute.xlu1 %6547  ;;  %vm6595_vm14 = vcmp.eq.s32.totalorder %v12246_v51, 1 }
 0x716   : > { %14246 = vst [vmem:[#allocation29_spill] sm:$0xff] %v12252_v18  ;;  %v10203_v18 = vld [vmem:[%s10816_s18 + $0x1ec] ss:$16 sps:$4 sm:$0xff]  }
 0x718   : > { %5776 = vperm.xlu0 %9144, %v11775_v4   ;;  %v10157_v4 = vld [vmem:[%s10816_s18 + $0x300] ss:$16 sps:$4 sm:$0xff]  }
 0x719   : > { %5586 = vperm.xlu1 %9145, %v10155_v10   ;;  %v12255_v10 = vpop.permute.xlu0 %6481 }
 0x71a   : > { %14247 = vst [vmem:[#allocation30_spill] sm:$0xff] %v12255_v10 }
 0x71b   : > { %4531 = vmatmul.mubr.bf16.gmra.mrb[48].mxu1 %v10153_v8  ;;  %v10158_v8 = vld [vmem:[%s10816_s18 + $0x324] ss:$16 sps:$4 sm:$0xff]  }
 0x71c   : > { %4540 = vmatprep.mubr.bf16.mxu1 %v10154_v59  ;;  %5666 = vperm.xlu0 %9144, %v11787_v16   ;;  %v10159_v59 = vld [vmem:[%s11596_s13 + $0x1d0] sm:$0xff]  ;;  %v12259_v16 = vpop.permute.xlu1 %6436  ;;  %s7898_s13 = sshll.u32 %s563_s22, 4  ;;  %s14043_s13 = int_to_ptr.vmem [resolvable:$true] %s7898_s13 }
 0x71d   : > { %5701 = vperm.xlu1 %9145, %v10156_v37   ;;  %v10161_v37 = vld [vmem:[%s10816_s18 + $0x344] ss:$16 sps:$4 sm:$0xff]   ;;  %s10407_s14 = scalar_lea.vmem %s14043_s13, 128  ;;  %p10414_p12 = scmp.lt.s32.totalorder %s14043_s13, %s10412_s21 }
 0x71e   : > { %p10408_p7 = scmp.ne.s32.totalorder %s14043_s13, %s10407_s14  ;;  %p10415_p13 = scmp.lt.s32.totalorder %s10413_s6, %s10407_s14 }
 0x720   : > { %5816 = vperm.xlu0 %9144, %v11797_v42   ;;  %v10160_v42 = vld [vmem:[%s10816_s18 + $0x320] ss:$16 sps:$4 sm:$0xff]   ;;  %p10409_p1 = pnand %p10408_p7, %p14460_p10  ;;  %p10416_p8 = por %p10415_p13, %p10414_p12 }
 0x721   : > { %5851 = vperm.xlu1 %9145, %v10159_v59  }
 0x722   : > { %p10410_p11 = pneg %p10409_p1 }
 0x723   : > { %4541 = vmatmul.mubr.bf16.gmra.mrb[52].mxu1 %v10157_v4  ;;  %v12264_v4 = vpop.permute.xlu0 %6568 }
 0x724   : > { %4550 = vmatprep.mubr.bf16.mxu1 %v10158_v8  ;;  %5631 = vperm.xlu0 %9144, %v11809_v50   ;;  %14248 = vst [vmem:[#allocation31_spill] sm:$0xff] %v12264_v4  ;;  %v12268_v8 = vpop.permute.xlu1 %6526  ;;  %v10162_v50 = vld [vmem:[%s10816_s18 + $0x340] ss:$16 sps:$4 sm:$0xff]   ;;  %v10195_v4 = vld [vmem:[%s10816_s18 + $0x16c] ss:$16 sps:$4 sm:$0xff]   ;;  %p10417_p6 = pnand %p10416_p8, %p10410_p11 }
 0x725   : > { %5741 = vperm.xlu1 %9145, %v11791_v23   ;;  %14249 = vst [vmem:[#allocation32_spill] sm:$0xff] %v12268_v8 }
 0x727   : > { %v12271_v23 = vpop.permute.xlu0 %6460 }
 0x728   : > { %5781 = vperm.xlu0 %9144, %v11819_v27   ;;  %v10163_v27 = vld [vmem:[%s10816_s18 + $0x364] ss:$16 sps:$4 sm:$0xff]   ;;  %v12277_v59 = vpop.permute.xlu1 %6571 }
 0x729   : > { %5591 = vperm.xlu1 %9145, %v11803_v40   ;;  %14250 = vst [vmem:[#allocation33_spill] sm:$0xff] %v12277_v59 }
 0x72b   : > { %4551 = vmatmul.mubr.bf16.gmra.mrb[56].mxu1 %v10160_v42  ;;  %v12280_v40 = vpop.permute.xlu0 %6550 }
 0x72c   : > { %4560 = vmatprep.mubr.bf16.mxu1 %v10161_v37  ;;  %5671 = vperm.xlu0 %9144, %v11835_v47   ;;  %14251 = vst [vmem:[#allocation34_spill] sm:$0xff] %v12280_v40  ;;  %v10165_v47 = vld [vmem:[%s10816_s18 + $0x384] ss:$16 sps:$4 sm:$0xff]  }
 0x72d   : > { %5706 = vperm.xlu1 %9145, %v11813_v63   ;;  %v10164_v63 = vld [vmem:[%s10816_s18 + $0x360] ss:$16 sps:$4 sm:$0xff]  }
 0x730   : > { %5821 = vperm.xlu0 %9144, %v11857_v35   ;;  %v12286_v35 = vpop.permute.xlu1 %6505 }
 0x731   : > { %5856 = vperm.xlu1 %9145, %v11825_v30   ;;  %14252 = vst [vmem:[#allocation35_spill] sm:$0xff] %v12286_v35  ;;  %v12289_v30 = vpop.permute.xlu0 %6439 }
 0x733   : > { %4561 = vmatmul.mubr.bf16.gmra.mrb[60].mxu1 %v10162_v50  ;;  %v10171_v50 = vld [vmem:[%s10816_s18 + $0x3e4] ss:$16 sps:$4 sm:$0xff]  }
 0x734   : > { %4570 = vmatprep.mubr.bf16.mxu1 %v10163_v27  ;;  %5636 = vperm.xlu0 %9144, %v11881_v60   ;;  %v12293_v60 = vpop.permute.xlu1 %6415 }
 0x735   : > { %5746 = vperm.xlu1 %9145, %v11839_v57   ;;  %v10166_v57 = vld [vmem:[%s10816_s18 + $0x380] ss:$16 sps:$4 sm:$0xff]   ;;  %v12298_v42 = vpop.permute.xlu0 %6529  ;;  %vm6596_vm15 = vcmp.eq.s32.totalorder %v12293_v60, 1 }
 0x736   : > { %14253 = vst [vmem:[#allocation36_spill] sm:$0xff] %v12298_v42 }
 0x738   : > { %5786 = vperm.xlu0 %9144, %v11901_v36   ;;  %v10167_v36 = vld [vmem:[%s10816_s18 + $0x3a4] ss:$16 sps:$4 sm:$0xff]  }
 0x739   : > { %5596 = vperm.xlu1 %9145, %v11863_v34   ;;  %v12303_v34 = vpop.permute.xlu1 %6484 }
 0x73a   : > { %14254 = vst [vmem:[#allocation37_spill] sm:$0xff] %v12303_v34 }
 0x73b   : > { %4571 = vmatmul.mubr.bf16.gmra.mrb[64].mxu1 %v10164_v63 }
 0x73c   : > { %4580 = vmatprep.mubr.bf16.mxu1 %v10165_v47  ;;  %5676 = vperm.xlu0 %9144, %v11927_v45   ;;  %v10168_v45 = vld [vmem:[%s10816_s18 + $0x3a0] ss:$16 sps:$4 sm:$0xff]  }
 0x73d   : > { %5711 = vperm.xlu1 %9145, %v11887_v48   ;;  %v12307_v48 = vpop.permute.xlu0 %6463  ;;  %v10172_v47 = vld [vmem:[%s10816_s18 + $0x3e0] ss:$16 sps:$4 sm:$0xff]  }
 0x73e   : > { %14255 = vst [vmem:[#allocation38_spill] sm:$0xff] %v12307_v48 }
 0x740   : > { %5826 = vperm.xlu0 %9144, %v11953_v1   ;;  %v10169_v1 = vld [vmem:[%s10816_s18 + $0x3c4] ss:$16 sps:$4 sm:$0xff]  }
 0x741   : > { %5861 = vperm.xlu1 %9145, %v11911_v39   ;;  %v12314_v39 = vpop.permute.xlu1 %6574 }
 0x742   : > { %14256 = vst [vmem:[#allocation39_spill] sm:$0xff] %v12314_v39 }
 0x743   : > { %4581 = vmatmul.mubr.bf16.gmra.mrb[68].mxu1 %v10166_v57 }
 0x744   : > { %4590 = vmatprep.mubr.bf16.mxu1 %v10167_v36  ;;  %5791 = vperm.xlu0 %9144, %v11989_v22   ;;  %v12318_v22 = vpop.permute.xlu0 %6553  ;;  %v10173_v36 = vld [vmem:[%s10816_s18 + $0xc] ss:$16 sps:$4 sm:$0xff]  }
 0x745   : > { %5751 = vperm.xlu1 %9145, %v11935_v24   ;;  %v9803_v24 = vpop.eup %9802  ;;  %14257 = vst [vmem:[#allocation40_spill] sm:$0xff] %v12318_v22 }
 0x746   : > { %v9805_v37 = vpop.eup %9804 }
 0x747   : > { %v9807_v27 = vpop.eup %9806 }
 0x748   : > { %5756 = vperm.xlu0 %9144, %v12021_v6   ;;  %v10170_v6 = vld [vmem:[%s10816_s18 + $0x3c0] ss:$16 sps:$4 sm:$0xff]   ;;  %v9809_v62 = vpop.eup %9808 }
 0x749   : > { %5716 = vperm.xlu1 %9145, %v11961_v46   ;;  %v5551_v46 = vsel %vm5527_vm9, %v9803_v24, 0.0  ;;  %v9811_v57 = vpop.eup %9810 }
 0x74a   : > { %v5557_v12 = vsel %vm5533_vm4, %v9811_v57, 0.0  ;;  %v10180_v57 = vld [vmem:[%s10816_s18 + $0x68] ss:$16 sps:$4 sm:$0xff]   ;;  %vm6601_vm4 = vcmp.eq.s32.totalorder %v12191_v20, 1 }
 0x74b   : > { %4591 = vmatmul.mubr.bf16.gmra.mrb[72].mxu1 %v10168_v45  ;;  %v9813_v45 = vpop.eup %9812 }
 0x74c   : > { %4600 = vmatprep.mubr.bf16.mxu1 %v10169_v1  ;;  %5796 = vperm.xlu0 %9144, %v12024_v28   ;;  %v12328_v28 = vpop.permute.xlu1 %6508  ;;  %v5554_v24 = vsel %vm5530_vm6, %v9813_v45, 0.0  ;;  %v10182_v45 = vld [vmem:[%s10816_s18 + $0x88] ss:$16 sps:$4 sm:$0xff]   ;;  %vm6603_vm6 = vcmp.eq.s32.totalorder %v12259_v16, 1 }
 0x74d   : > { %5866 = vperm.xlu1 %9145, %v12053_v56   ;;  %14258 = vst [vmem:[#allocation41_spill] sm:$0xff] %v12328_v28  ;;  %v12331_v56 = vpop.permute.xlu0 %6442 }
 0x750   : > { %5836 = vperm.xlu0 %9144, %v12035_v44   ;;  %v5553_v44 = vsel %vm5529_vm2, %v9805_v37, 0.0  ;;  %v12337_v63 = vpop.permute.xlu1 %6418  ;;  %vm6600_vm2 = vcmp.eq.s32.totalorder %v12175_v32, 1 }
 0x751   : > { %5831 = vperm.xlu1 %9145, %v12063_v7   ;;  %v5555_v7 = vsel %vm5531_vm3, %v9807_v27, 0.0  ;;  %v12344_v29 = vpop.permute.xlu0 %6532  ;;  %v10177_v27 = vld [vmem:[%s10816_s18 + $0x4c] ss:$16 sps:$4 sm:$0xff]   ;;  %vm6597_vm0 = vcmp.eq.s32.totalorder %v12337_v63, 1  ;;  %vm6602_vm3 = vcmp.eq.s32.totalorder %v12212_v52, 1 }
 0x752   : > { %14259 = vst [vmem:[#allocation42_spill] sm:$0xff] %v12344_v29  ;;  %v10207_v29 = vld [vmem:[%s10816_s18 + $0x22c] ss:$16 sps:$4 sm:$0xff]  }
 0x753   : > { %4601 = vmatmul.mubr.bf16.gmra.mrb[76].mxu1 %v10170_v6  ;;  %v9815_v6 = vpop.eup %9814 }
 0x754   : > { %4610 = vmatprep.mubr.bf16.mxu1 %v10171_v50  ;;  %6217 = vperm.xlu0 %9144, %v5551_v46   ;;  %v12351_v1 = vpop.permute.xlu1 %6487  ;;  %v5556_v2 = vsel %vm5532_vm7, %v9815_v6, 0.0  ;;  %v9817_v37 = vpop.eup %9816  ;;  %vm6604_vm7 = vcmp.eq.s32.totalorder %v12289_v30, 1 }
 0x755   : > { %5871 = vperm.xlu1 %9145, %v12074_v21   ;;  %v5552_v21 = vsel %vm5528_vm5, %v9809_v62, 0.0  ;;  %14260 = vst [vmem:[#allocation43_spill] sm:$0xff] %v12351_v1  ;;  %v12355_v46 = vpop.permute.xlu0 %6466  ;;  %v5558_v11 = vsel %vm5534_vm8, %v9817_v37, 0.0  ;;  %vm6605_vm8 = vcmp.eq.s32.totalorder %v12331_v56, 1 }
 0x756   : > { %14261 = vst [vmem:[#allocation44_spill] sm:$0xff] %v12355_v46 }
 0x758   : > { %6227 = vperm.xlu0 %9144, %v5553_v44   ;;  %v12361_v50 = vpop.permute.xlu1 %6577  ;;  %v10176_v44 = vld [vmem:[%s10816_s18 + $0x28] ss:$16 sps:$4 sm:$0xff]  }
 0x759   : > { %5876 = vperm.xlu1 %9145, %v12083_v0   ;;  %v10174_v0 = vld [vmem:[%s10816_s18 + $0x8] ss:$16 sps:$4 sm:$0xff]   ;;  %14262 = vst [vmem:[#allocation45_spill] sm:$0xff] %v12361_v50  ;;  %v12369_v3 = vpop.permute.xlu0 %6556  ;;  %v10193_v50 = vld [vmem:[%s10816_s18 + $0x14c] ss:$16 sps:$4 sm:$0xff]  }
 0x75a   : > { %14264 = vst [vmem:[#allocation47_spill] sm:$0xff] %v12369_v3  ;;  %v10199_v3 = vld [vmem:[%s10816_s18 + $0x1ac] ss:$16 sps:$4 sm:$0xff]  }
 0x75b   : > { %4611 = vmatmul.mubr.bf16.gmra.mrb[80].mxu1 %v10172_v47  ;;  %v10178_v47 = vld [vmem:[%s10816_s18 + $0x48] ss:$16 sps:$4 sm:$0xff]  }
 0x75c   : > { %4653 = vmatprep.mubr.bf16.mxu1 %v10173_v36  ;;  %6237 = vperm.xlu0 %9144, %v5555_v7   ;;  %v12367_v62 = vpop.permute.xlu1 %6511  ;;  %v10179_v7 = vld [vmem:[%s10816_s18 + $0x6c] ss:$16 sps:$4 sm:$0xff]  }
 0x75d   : > { %6222 = vperm.xlu1 %9145, %v5552_v21   ;;  %14263 = vst [vmem:[#allocation46_spill] sm:$0xff] %v12367_v62  ;;  %v12373_v19 = vpop.permute.xlu0 %6445  ;;  %v10181_v36 = vld [vmem:[%s10816_s18 + $0x8c] ss:$16 sps:$4 sm:$0xff]  }
 0x760   : > { %6247 = vperm.xlu0 %9144, %v5557_v12   ;;  %v10183_v12 = vld [vmem:[%s10816_s18 + $0xac] ss:$16 sps:$4 sm:$0xff]  }
 0x761   : > { %6232 = vperm.xlu1 %9145, %v5554_v24   ;;  %v12377_v21 = vpop.permute.xlu0 %6535 }
 0x762   : > { %14265 = vst [vmem:[#allocation48_spill] sm:$0xff] %v12377_v21 }
 0x763   : > { %4654 = vmatmul.mubr.bf16.vlgmr.msra.gmra.mrb[212].mxu1 %v10174_v0  ;;  %v10184_v0 = vld [vmem:[%s10816_s18 + $0xa8] ss:$16 sps:$4 sm:$0xff]  }
 0x764   : > { %4663 = vmatprep.mubr.bf16.mxu1 %v10175_v38  ;;  %v12386_v38 = vpop.permute.xlu1 %6421 }
 0x765   : > { %6242 = vperm.xlu1 %9145, %v5556_v2   ;;  %v12381_v24 = vpop.permute.xlu0 %6469  ;;  %v10185_v2 = vld [vmem:[%s10816_s18 + $0xcc] ss:$16 sps:$4 sm:$0xff]   ;;  %vm6598_vm9 = vcmp.eq.s32.totalorder %v12386_v38, 1 }
 0x766   : > { %14266 = vst [vmem:[#allocation49_spill] sm:$0xff] %v12381_v24  ;;  %v10232_v24 = vld [vmem:[%s10816_s18 + $0x3a8] ss:$16 sps:$4 sm:$0xff]  }
 0x769   : > { %6252 = vperm.xlu1 %9145, %v5558_v11   ;;  %v12383_v6 = vpop.permute.xlu0 %6559  ;;  %v12391_v11 = vpop.permute.xlu1 %6490 }
 0x76a   : > { %14267 = vst [vmem:[#allocation50_spill] sm:$0xff] %v12383_v6  ;;  %14269 = vst [vmem:[#allocation52_spill] sm:$0xff] %v12391_v11  ;;  %v10197_v6 = vld [vmem:[%s10816_s18 + $0x18c] ss:$16 sps:$4 sm:$0xff]  }
 0x76b   : > { %4664 = vmatmul.mubr.bf16.gmra.mrb[216].mxu1 %v10176_v44  ;;  %v10186_v44 = vld [vmem:[%s10816_s18 + $0xc8] ss:$16 sps:$4 sm:$0xff]  }
 0x76c   : > { %4673 = vmatprep.mubr.bf16.mxu1 %v10177_v27  ;;  %v10187_v27 = vld [vmem:[%s10816_s18 + $0xec] ss:$16 sps:$4 sm:$0xff]  }
 0x76d   : > { %v12389_v37 = vpop.permute.xlu0 %6538 }
 0x76e   : > { %14268 = vst [vmem:[#allocation51_spill] sm:$0xff] %v12389_v37  ;;  %v10205_v37 = vld [vmem:[%s10816_s18 + $0x20c] ss:$16 sps:$4 sm:$0xff]  }
 0x773   : > { %4674 = vmatmul.mubr.bf16.gmra.mrb[220].mxu1 %v10178_v47  ;;  %v12395_v47 = vpop.permute.xlu0 %6517 }
 0x774   : > { %4683 = vmatprep.mubr.bf16.mxu1 %v10179_v7  ;;  %14270 = vst [vmem:[#allocation53_spill] sm:$0xff] %v12395_v47  ;;  %v12397_v7 = vpop.permute.xlu1 %6580  ;;  %v10213_v47 = vld [vmem:[%s10816_s18 + $0x28c] ss:$16 sps:$4 sm:$0xff]  }
 0x775   : > { %14271 = vst [vmem:[#allocation54_spill] sm:$0xff] %v12397_v7 }
 0x77b   : > { %4684 = vmatmul.mubr.bf16.gmra.mrb[224].mxu1 %v10180_v57  ;;  %v10188_v57 = vld [vmem:[%s10816_s18 + $0xe8] ss:$16 sps:$4 sm:$0xff]  }
 0x77c   : > { %4693 = vmatprep.mubr.bf16.mxu1 %v10181_v36  ;;  %v10189_v36 = vld [vmem:[%s10816_s18 + $0x10c] ss:$16 sps:$4 sm:$0xff]  }
 0x783   : > { %4694 = vmatmul.mubr.bf16.gmra.mrb[228].mxu1 %v10182_v45  ;;  %v12401_v45 = vpop.permute.xlu0 %6541 }
 0x784   : > { %4703 = vmatprep.mubr.bf16.mxu1 %v10183_v12  ;;  %14272 = vst [vmem:[#allocation55_spill] sm:$0xff] %v12401_v45  ;;  %v12403_v12 = vpop.permute.xlu1 %6514 }
 0x785   : > { %14273 = vst [vmem:[#allocation56_spill] sm:$0xff] %v12403_v12  ;;  %v10215_v12 = vld [vmem:[%s10816_s18 + $0x2ac] ss:$16 sps:$4 sm:$0xff]  }
 0x78b   : > { %4704 = vmatmul.mubr.bf16.gmra.mrb[232].mxu1 %v10184_v0  ;;  %v12405_v0 = vpop.permute.xlu0 %6565 }
 0x78c   : > { %4713 = vmatprep.mubr.bf16.mxu1 %v10185_v2  ;;  %14274 = vst [vmem:[#allocation57_spill] sm:$0xff] %v12405_v0  ;;  %v10190_v2 = vld [vmem:[%s10816_s18 + $0x108] ss:$16 sps:$4 sm:$0xff]  }
 0x78f   : > { %v12411_v7 = vpop.permute.xlu0 %7000 }
 0x790   : > { %vm7023_vm5 = vcmp.eq.s32.totalorder %v12411_v7, 1 }
 0x793   : > { %4714 = vmatmul.mubr.bf16.gmra.mrb[236].mxu1 %v10186_v44  ;;  %v12408_v44 = vpop.permute.xlu1 %6493  ;;  %v12417_v39 = vpop.permute.xlu0 %7006 }
 0x794   : > { %4723 = vmatprep.mubr.bf16.mxu1 %v10187_v27  ;;  %14275 = vst [vmem:[#allocation58_spill] sm:$0xff] %v12408_v44  ;;  %v10191_v27 = vld [vmem:[%s10816_s18 + $0x12c] ss:$16 sps:$4 sm:$0xff]   ;;  %14277 = vst [vmem:[#allocation60_spill] sm:$0xff] %v12417_v39 }
 0x79b   : > { %4724 = vmatmul.mubr.bf16.gmra.mrb[240].mxu1 %v10188_v57  ;;  %v12413_v57 = vpop.permute.xlu1 %6583 }
 0x79c   : > { %4733 = vmatprep.mubr.bf16.mxu1 %v10189_v36  ;;  %14276 = vst [vmem:[#allocation59_spill] sm:$0xff] %v12413_v57  ;;  %v10192_v36 = vld [vmem:[%s10816_s18 + $0x128] ss:$16 sps:$4 sm:$0xff]  }
 0x79f   : > { %v12419_v59 = vpop.permute.xlu1 %6562 }
 0x7a0   : > { %14278 = vst [vmem:[#allocation61_spill] sm:$0xff] %v12419_v59 }
 0x7a3   : > { %4734 = vmatmul.mubr.bf16.gmra.mrb[244].mxu1 %v10190_v2  ;;  %v10194_v2 = vld [vmem:[%s10816_s18 + $0x148] ss:$16 sps:$4 sm:$0xff]   ;;  %v12425_v0 = vpop.permute.xlu1 %6586 }
 0x7a4   : > { %4743 = vmatprep.mubr.bf16.mxu1 %v10191_v27  ;;  %v12423_v27 = vpop.permute.xlu0 %7012  ;;  %14280 = vst [vmem:[#allocation63_spill] sm:$0xff] %v12425_v0 }
 0x7a5   : > { %14279 = vst [vmem:[#allocation62_spill] sm:$0xff] %v12423_v27 }
 0x7a8   : > { %v12427_v57 = vpop.permute.xlu0 %7018 }
 0x7a9   : > { %14281 = vst [vmem:[#allocation64_spill] sm:$0xff] %v12427_v57 }
 0x7ab   : > { %4744 = vmatmul.mubr.bf16.gmra.mrb[248].mxu1 %v10192_v36  ;;  %v10196_v36 = vld [vmem:[%s10816_s18 + $0x168] ss:$16 sps:$4 sm:$0xff]  }
 0x7ac   : > { %4753 = vmatprep.mubr.bf16.mxu1 %v10193_v50  ;;  %v12430_v50 = vpop.permute.xlu1 %6589  ;;  %v12433_v59 = vpop.permute.xlu0 %5566 }
 0x7ad   : > { %14282 = vst [vmem:[#allocation65_spill] sm:$0xff] %v12430_v50  ;;  %v10201_v50 = vld [vmem:[%s10816_s18 + $0x1cc] ss:$16 sps:$4 sm:$0xff]  }
 0x7b0   : > { %v12439_v0 = vpop.permute.xlu0 %5606 }
 0x7b3   : > { %4754 = vmatmul.mubr.bf16.gmra.mrb[252].mxu1 %v10194_v2  ;;  %v12435_v2 = vpop.permute.xlu1 %7003 }
 0x7b4   : > { %4763 = vmatprep.mubr.bf16.mxu1 %v10195_v4  ;;  %14283 = vst [vmem:[#allocation66_spill] sm:$0xff] %v12435_v2  ;;  %v10198_v4 = vld [vmem:[%s10816_s18 + $0x188] ss:$16 sps:$4 sm:$0xff]  }
 0x7b7   : > { %v12441_v57 = vpop.permute.xlu1 %7009 }
 0x7b8   : > { %14284 = vst [vmem:[#allocation67_spill] sm:$0xff] %v12441_v57 }
 0x7bb   : > { %4764 = vmatmul.mubr.bf16.gmra.mrb[0].mxu1 %v10196_v36  ;;  %v10200_v36 = vld [vmem:[%s10816_s18 + $0x1a8] ss:$16 sps:$4 sm:$0xff]   ;;  %v12447_v22 = vpop.permute.xlu1 %7015 }
 0x7bc   : > { %4773 = vmatprep.mubr.bf16.mxu1 %v10197_v6  ;;  %v12445_v6 = vpop.permute.xlu0 %5641  ;;  %14285 = vst [vmem:[#allocation68_spill] sm:$0xff] %v12447_v22 }
 0x7c0   : > { %v12449_v40 = vpop.permute.xlu0 %5571 }
 0x7c3   : > { %4774 = vmatmul.mubr.bf16.gmra.mrb[4].mxu1 %v10198_v4  ;;  %v10202_v4 = vld [vmem:[%s10816_s18 + $0x1c8] ss:$16 sps:$4 sm:$0xff]  }
 0x7c4   : > { %4783 = vmatprep.mubr.bf16.mxu1 %v10199_v3  ;;  %v12452_v3 = vpop.permute.xlu1 %5561  ;;  %v12455_v45 = vpop.permute.xlu0 %5681 }
 0x7c5   : > { %14286 = vst [vmem:[#allocation69_spill] sm:$0xff] %v12455_v45 }
 0x7c8   : > { %v12461_v22 = vpop.permute.xlu0 %5651 }
 0x7c9   : > { %14287 = vst [vmem:[#allocation70_spill] sm:$0xff] %v12461_v22 }
 0x7cb   : > { %4784 = vmatmul.mubr.bf16.gmra.mrb[8].mxu1 %v10200_v36  ;;  %v12457_v36 = vpop.permute.xlu1 %5601 }
 0x7cc   : > { %4793 = vmatprep.mubr.bf16.mxu1 %v10201_v50  ;;  %v10204_v50 = vld [vmem:[%s10816_s18 + $0x1e8] ss:$16 sps:$4 sm:$0xff]  }
 0x7cf   : > { %v12463_v21 = vpop.permute.xlu1 %7021 }
 0x7d0   : > { %14288 = vst [vmem:[#allocation71_spill] sm:$0xff] %v12463_v21 }
 0x7d3   : > { %4794 = vmatmul.mubr.bf16.gmra.mrb[12].mxu1 %v10202_v4  ;;  %v10206_v4 = vld [vmem:[%s10816_s18 + $0x208] ss:$16 sps:$4 sm:$0xff]   ;;  %v12469_v42 = vpop.permute.xlu1 %5646 }
 0x7d4   : > { %4803 = vmatprep.mubr.bf16.mxu1 %v10203_v18  ;;  %v12467_v18 = vpop.permute.xlu0 %5726 }
 0x7d5   : > { %14289 = vst [vmem:[#allocation72_spill] sm:$0xff] %v12467_v18 }
 0x7d8   : > { %v12471_v8 = vpop.permute.xlu0 %5616 }
 0x7db   : > { %4804 = vmatmul.mubr.bf16.gmra.mrb[16].mxu1 %v10204_v50  ;;  %v10208_v50 = vld [vmem:[%s10816_s18 + $0x228] ss:$16 sps:$4 sm:$0xff]  }
 0x7dc   : > { %4813 = vmatprep.mubr.bf16.mxu1 %v10205_v37  ;;  %v12474_v37 = vpop.permute.xlu1 %5611  ;;  %v12477_v21 = vpop.permute.xlu0 %5761 }
 0x7dd   : > { %14290 = vst [vmem:[#allocation73_spill] sm:$0xff] %v12477_v21 }
 0x7e0   : > { %v12483_v27 = vpop.permute.xlu0 %5656 }
 0x7e1   : > { %14292 = vst [vmem:[#allocation75_spill] sm:$0xff] %v12483_v27 }
 0x7e3   : > { %4814 = vmatmul.mubr.bf16.gmra.mrb[20].mxu1 %v10206_v4  ;;  %v12479_v4 = vpop.permute.xlu1 %5686 }
 0x7e4   : > { %4823 = vmatprep.mubr.bf16.mxu1 %v10207_v29  ;;  %14291 = vst [vmem:[#allocation74_spill] sm:$0xff] %v12479_v4  ;;  %v10210_v29 = vld [vmem:[%s10816_s18 + $0x248] ss:$16 sps:$4 sm:$0xff]  }
 0x7e7   : > { %v12485_v57 = vpop.permute.xlu1 %5721 }
 0x7e8   : > { %14293 = vst [vmem:[#allocation76_spill] sm:$0xff] %v12485_v57  ;;  %v10219_v57 = vld [vmem:[%s10816_s18 + $0x2ec] ss:$16 sps:$4 sm:$0xff]  }
 0x7eb   : > { %4824 = vmatmul.mubr.bf16.gmra.mrb[24].mxu1 %v10208_v50  ;;  %v10212_v50 = vld [vmem:[%s10816_s18 + $0x268] ss:$16 sps:$4 sm:$0xff]   ;;  %v12491_v21 = vpop.permute.xlu1 %5576 }
 0x7ec   : > { %4833 = vmatprep.mubr.bf16.mxu1 %v10209_v13  ;;  %v12489_v13 = vpop.permute.xlu0 %5801 }
 0x7ed   : > { %14294 = vst [vmem:[#allocation77_spill] sm:$0xff] %v12489_v13  ;;  %v10217_v13 = vld [vmem:[%s10816_s18 + $0x2cc] ss:$16 sps:$4 sm:$0xff]  }
 0x7f0   : > { %v12493_v44 = vpop.permute.xlu0 %5581 }
 0x7f3   : > { %4834 = vmatmul.mubr.bf16.gmra.mrb[28].mxu1 %v10210_v29  ;;  %v10214_v29 = vld [vmem:[%s10816_s18 + $0x288] ss:$16 sps:$4 sm:$0xff]  }
 0x7f4   : > { %4843 = vmatprep.mubr.bf16.mxu1 %v10211_v9  ;;  %v12496_v9 = vpop.permute.xlu1 %5691  ;;  %v12499_v62 = vpop.permute.xlu0 %5696 }
 0x7f5   : > { %14295 = vst [vmem:[#allocation78_spill] sm:$0xff] %v12496_v9  ;;  %14296 = vst [vmem:[#allocation79_spill] sm:$0xff] %v12499_v62 }
 0x7f8   : > { %v12505_v28 = vpop.permute.xlu0 %5841 }
 0x7f9   : > { %14298 = vst [vmem:[#allocation81_spill] sm:$0xff] %v12505_v28  ;;  %v10221_v28 = vld [vmem:[%s10816_s18 + $0x30c] ss:$16 sps:$4 sm:$0xff]  }
 0x7fb   : > { %4844 = vmatmul.mubr.bf16.gmra.mrb[32].mxu1 %v10212_v50  ;;  %v12501_v50 = vpop.permute.xlu1 %5766 }
 0x7fc   : > { %4853 = vmatprep.mubr.bf16.mxu1 %v10213_v47  ;;  %14297 = vst [vmem:[#allocation80_spill] sm:$0xff] %v12501_v50  ;;  %v10216_v47 = vld [vmem:[%s10816_s18 + $0x2a8] ss:$16 sps:$4 sm:$0xff]  }
 0x7ff   : > { %v12507_v18 = vpop.permute.xlu1 %5731 }
 0x800   : > { %14299 = vst [vmem:[#allocation82_spill] sm:$0xff] %v12507_v18 }
 0x803   : > { %4854 = vmatmul.mubr.bf16.gmra.mrb[36].mxu1 %v10214_v29  ;;  %v10218_v29 = vld [vmem:[%s10816_s18 + $0x2c8] ss:$16 sps:$4 sm:$0xff]   ;;  %v12513_v35 = vpop.permute.xlu1 %5806 }
 0x804   : > { %4863 = vmatprep.mubr.bf16.mxu1 %v10215_v12  ;;  %v12511_v12 = vpop.permute.xlu0 %5661  ;;  %14301 = vst [vmem:[#allocation84_spill] sm:$0xff] %v12513_v35 }
 0x805   : > { %14300 = vst [vmem:[#allocation83_spill] sm:$0xff] %v12511_v12 }
 0x808   : > { %v12515_v50 = vpop.permute.xlu0 %5811 }
 0x809   : > { %14302 = vst [vmem:[#allocation85_spill] sm:$0xff] %v12515_v50 }
 0x80b   : > { %4864 = vmatmul.mubr.bf16.gmra.mrb[40].mxu1 %v10216_v47  ;;  %v10220_v47 = vld [vmem:[%s10816_s18 + $0x2e8] ss:$16 sps:$4 sm:$0xff]  }
 0x80c   : > { %4873 = vmatprep.mubr.bf16.mxu1 %v10217_v13  ;;  %v12518_v13 = vpop.permute.xlu1 %5621  ;;  %v12521_v18 = vpop.permute.xlu0 %5626 }
 0x810   : > { %v12527_v35 = vpop.permute.xlu0 %5776 }
 0x811   : > { %14304 = vst [vmem:[#allocation87_spill] sm:$0xff] %v12527_v35 }
 0x813   : > { %4874 = vmatmul.mubr.bf16.gmra.mrb[44].mxu1 %v10218_v29  ;;  %v12523_v29 = vpop.permute.xlu1 %5771 }
 0x814   : > { %4883 = vmatprep.mubr.bf16.mxu1 %v10219_v57  ;;  %14303 = vst [vmem:[#allocation86_spill] sm:$0xff] %v12523_v29  ;;  %v10222_v57 = vld [vmem:[%s10816_s18 + $0x308] ss:$16 sps:$4 sm:$0xff]   ;;  %v12533_v53 = vpop.permute.xlu0 %5666  ;;  %v8335_v29 = vld [vmem:[%s14234_s20 + $0x2] sm:$0x3] }
 0x815   : > { %14306 = vst [vmem:[#allocation89_spill] sm:$0xff] %v12533_v53  ;;  %v12544_v35 = vrot.slane %v8335_v29, %v10995_v15 }
 0x817   : > { %v12529_v50 = vpop.permute.xlu1 %5846 }
 0x818   : > { %14305 = vst [vmem:[#allocation88_spill] sm:$0xff] %v12529_v50 }
 0x81b   : > { %4884 = vmatmul.mubr.bf16.gmra.mrb[48].mxu1 %v10220_v47  ;;  %v10225_v47 = vld [vmem:[%s10816_s18 + $0x34c] ss:$16 sps:$4 sm:$0xff]  }
 0x81c   : > { %4893 = vmatprep.mubr.bf16.mxu1 %v10221_v28  ;;  %v12535_v28 = vpop.permute.xlu1 %5736 }
 0x81d   : > { %14307 = vst [vmem:[#allocation90_spill] sm:$0xff] %v12535_v28 }
 0x820   : > { %v12546_v50 = vpop.permute.xlu1 %5586 }
 0x823   : > { %4894 = vmatmul.mubr.bf16.gmra.mrb[52].mxu1 %v10222_v57  ;;  %v12540_v57 = vpop.permute.xlu0 %5816 }
 0x824   : > { %4903 = vmatprep.mubr.bf16.mxu1 %v10223_v41  ;;  %14308 = vst [vmem:[#allocation91_spill] sm:$0xff] %v12540_v57  ;;  %v10226_v41 = vld [vmem:[%s10816_s18 + $0x348] ss:$16 sps:$4 sm:$0xff]   ;;  %v12557_v34 = vpop.permute.xlu1 %5701 }
 0x828   : > { %v12565_v4 = vpop.permute.xlu1 %5851 }
 0x829   : > { %14312 = vst [vmem:[#allocation93_spill] sm:$0xff] %v12565_v4 }
 0x82b   : > { %4904 = vmatmul.mubr.bf16.gmra.mrb[56].mxu1 %v10224_v43  ;;  %v14309_v43 = vld [vmem:[#allocation19_spill] sm:$0xff] }
 0x82c   : > { %4913 = vmatprep.mubr.bf16.mxu1 %v10225_v47  ;;  %v12549_v39 = vrot.slane %v8335_v29, %v14309_v43  ;;  %v10227_v47 = vld [vmem:[%s10816_s18 + $0x36c] ss:$16 sps:$4 sm:$0xff]   ;;  %14310 = vst [vmem:[#allocation19_spill] sm:$0xff] %v12557_v34  ;;  %v10228_v43 = vld [vmem:[%s10816_s18 + $0x368] ss:$16 sps:$4 sm:$0xff]  }
 0x833   : > { %4914 = vmatmul.mubr.bf16.gmra.mrb[60].mxu1 %v10226_v41  ;;  %v12554_v41 = vpop.permute.xlu0 %5631 }
 0x834   : > { %4923 = vmatprep.mubr.bf16.mxu1 %v10227_v47 }
 0x836   : > { %v4655_v28 = vpop.f32.mrb[212].mxu1 }
 0x837   : > { %v8654_v62 = vadd.f32 %v4655_v28, %v12544_v35  ;;  %v4657_v9 = vpop.f32.mrb[213].mxu1  ;;  %v10229_v28 = vld [vmem:[%s10816_s18 + $0x38c] ss:$16 sps:$4 sm:$0xff]   ;;  %v12562_v47 = vpop.permute.xlu0 %5781 }
 0x838   : > { %v8655_v57 = vadd.f32 %v4657_v9, %v12549_v39  ;;  %v4659_v11 = vpop.f32.mrb[214].mxu1  ;;  %14311 = vst [vmem:[#allocation92_spill] sm:$0xff] %v12562_v47 }
 0x839   : > { %9818 = vtanh.f32 %v8654_v62  ;;  %v8656_v15 = vadd.f32 %v4659_v11, %v12544_v35  ;;  %v4661_v1 = vpop.f32.mrb[215].mxu1 }
 0x83a   : > { %9820 = vtanh.f32 %v8655_v57  ;;  %v8657_v29 = vadd.f32 %v4661_v1, %v12549_v39 }
 0x83b   : > { %9822 = vtanh.f32 %v8656_v15  ;;  %4924 = vmatmul.mubr.bf16.gmra.mrb[64].mxu1 %v10228_v43  ;;  %v12572_v45 = vpop.permute.xlu0 %5671 }
 0x83c   : > { %9824 = vtanh.f32 %v8657_v29  ;;  %4933 = vmatprep.mubr.bf16.mxu1 %v10229_v28  ;;  %v10230_v28 = vld [vmem:[%s10816_s18 + $0x388] ss:$16 sps:$4 sm:$0xff]   ;;  %14313 = vst [vmem:[#allocation94_spill] sm:$0xff] %v12572_v45 }
 0x83e   : > { %v4665_v9 = vpop.f32.mrb[216].mxu1 }
 0x83f   : > { %v8658_v62 = vadd.f32 %v4665_v9, %v12544_v35  ;;  %v4667_v11 = vpop.f32.mrb[217].mxu1  ;;  %v10231_v9 = vld [vmem:[%s10816_s18 + $0x3ac] ss:$16 sps:$4 sm:$0xff]  }
 0x840   : > { %v8659_v57 = vadd.f32 %v4667_v11, %v12549_v39  ;;  %v4669_v34 = vpop.f32.mrb[218].mxu1  ;;  %v12574_v11 = vpop.permute.xlu1 %5741 }
 0x841   : > { %9826 = vtanh.f32 %v8658_v62  ;;  %v8660_v1 = vadd.f32 %v4669_v34, %v12544_v35  ;;  %v4671_v15 = vpop.f32.mrb[219].mxu1  ;;  %14314 = vst [vmem:[#allocation95_spill] sm:$0xff] %v12574_v11 }
 0x842   : > { %9828 = vtanh.f32 %v8659_v57  ;;  %v8661_v29 = vadd.f32 %v4671_v15, %v12549_v39 }
 0x843   : > { %v9819_v43 = vpop.eup %9818  ;;  %9830 = vtanh.f32 %v8660_v1  ;;  %4934 = vmatmul.mubr.bf16.gmra.mrb[68].mxu1 %v10230_v28 }
 0x844   : > { %v9821_v47 = vpop.eup %9820  ;;  %9832 = vtanh.f32 %v8661_v29  ;;  %4943 = vmatprep.mubr.bf16.mxu1 %v10231_v9 }
 0x845   : > { %v9823_v4 = vpop.eup %9822 }
 0x846   : > { %v9825_v62 = vpop.eup %9824  ;;  %v5102_v10 = vpack.c.bf16 %v9823_v4, %v9819_v43  ;;  %v4675_v34 = vpop.f32.mrb[220].mxu1 }
 0x847   : > { %v5103_v53 = vpack.c.bf16 %v9825_v62, %v9821_v47  ;;  %v8662_v57 = vadd.f32 %v4675_v34, %v12544_v35  ;;  %v4677_v15 = vpop.f32.mrb[221].mxu1  ;;  %v12582_v43 = vpop.permute.xlu0 %5821 }
 0x848   : > { %v5230_v1 = vunpack.c.l.bf16 %v5102_v10  ;;  %v8663_v29 = vadd.f32 %v4677_v15, %v12549_v39  ;;  %v4679_v28 = vpop.f32.mrb[222].mxu1  ;;  %v5232_v9 = vunpack.c.h.bf16 %v5102_v10  ;;  %14315 = vst [vmem:[#allocation96_spill] sm:$0xff] %v12582_v43  ;;  %v12586_v15 = vpop.permute.xlu1 %5591 }
 0x849   : > { %v5231_v45 = vunpack.c.l.bf16 %v5103_v53  ;;  %v5233_v5 = vunpack.c.h.bf16 %v5103_v53  ;;  %v8664_v11 = vadd.f32 %v4679_v28, %v12544_v35  ;;  %v4681_v4 = vpop.f32.mrb[223].mxu1  ;;  %9834 = vtanh.f32 %v8662_v57 }
 0x84a   : > { %v8665_v47 = vadd.f32 %v4681_v4, %v12549_v39  ;;  %9836 = vtanh.f32 %v8663_v29  ;;  %v10233_v4 = vld [vmem:[%s10816_s18 + $0x3cc] ss:$16 sps:$4 sm:$0xff]   ;;  %v6655_v29 = vsel %vm6591_vm10, %v5230_v1, -1e+30 }
 0x84b   : > { %v9827_v62 = vpop.eup %9826  ;;  %v5880_v34 = vmul.f32 %v12452_v3, %v5231_v45  ;;  %4944 = vmatmul.mubr.bf16.gmra.mrb[72].mxu1 %v10232_v24  ;;  %v5882_v53 = vmul.f32 %v12433_v59, %v5233_v5  ;;  %v6656_v28 = vsel %vm6591_vm10, %v5231_v45, -1e+30  ;;  %v6658_v57 = vsel %vm6592_vm11, %v5233_v5, -1e+30  ;;  %v12603_v22 = vpop.permute.xlu0 %5636 }
 0x84c   : > { %v9829_v10 = vpop.eup %9828  ;;  %9838 = vtanh.f32 %v8664_v11  ;;  %4953 = vmatprep.mubr.bf16.mxu1 %v10233_v4  ;;  %v6657_v24 = vsel %vm6592_vm11, %v5232_v9, -1e+30  ;;  %v5879_v45 = vmul.f32 %v12452_v3, %v5230_v1  ;;  %v5881_v5 = vmul.f32 %v12433_v59, %v5232_v9 }
 0x84d   : > { %v9831_v43 = vpop.eup %9830  ;;  %9840 = vtanh.f32 %v8665_v47  ;;  %v6796_v11 = vmax.f32 %v6656_v28, %v6658_v57  ;;  %v6783_v47 = vmax.f32 %v6655_v29, %v6657_v24  ;;  %vm6607_vm10 = vcmp.eq.s32.totalorder %v12169_v17, 1 }
 0x84e   : > { %v9833_v33 = vpop.eup %9832  ;;  %v5104_v61 = vpack.c.bf16 %v9831_v43, %v9827_v62  ;;  %v4685_v12 = vpop.f32.mrb[224].mxu1  ;;  %v6020_v43 = vadd.f32 %v5882_v53, %v5880_v34  ;;  %v6007_v9 = vadd.f32 %v5881_v5, %v5879_v45  ;;  %v10234_v53 = vld [vmem:[%s10816_s18 + $0x3c8] ss:$16 sps:$4 sm:$0xff]   ;;  %v10235_v45 = vld [vmem:[%s10816_s18 + $0x3ec] ss:$16 sps:$4 sm:$0xff]   ;;  %vm6608_vm11 = vcmp.eq.s32.totalorder %v12184_v25, 1 }
 0x84f   : > { %v5105_v4 = vpack.c.bf16 %v9833_v33, %v9829_v10  ;;  %v8666_v14 = vadd.f32 %v4685_v12, %v12544_v35  ;;  %v4687_v2 = vpop.f32.mrb[225].mxu1  ;;  %v12607_v33 = vpop.permute.xlu1 %5706 }
 0x850   : > { %v5234_v27 = vunpack.c.l.bf16 %v5104_v61  ;;  %v4689_v54 = vpop.f32.mrb[226].mxu1  ;;  %v5236_v46 = vunpack.c.h.bf16 %v5104_v61  ;;  %v8667_v3 = vadd.f32 %v4687_v2, %v12549_v39 }
 0x851   : > { %v5235_v62 = vunpack.c.l.bf16 %v5105_v4  ;;  %v5237_v48 = vunpack.c.h.bf16 %v5105_v4  ;;  %v8668_v59 = vadd.f32 %v4689_v54, %v12544_v35  ;;  %v4691_v1 = vpop.f32.mrb[227].mxu1  ;;  %9842 = vtanh.f32 %v8666_v14 }
 0x852   : > { %v5883_v12 = vmul.f32 %v12449_v40, %v5234_v27  ;;  %v6659_v61 = vsel %vm6593_vm12, %v5234_v27, -1e+30  ;;  %v5885_v10 = vmul.f32 %v12491_v21, %v5236_v46  ;;  %v6661_v29 = vsel %vm6594_vm13, %v5236_v46, -1e+30 }
 0x853   : > { %v6660_v34 = vsel %vm6593_vm12, %v5235_v62, -1e+30  ;;  %9844 = vtanh.f32 %v8668_v59  ;;  %v6784_v2 = vmax.f32 %v6783_v47, %v6659_v61  ;;  %4954 = vmatmul.mubr.bf16.gmra.mrb[76].mxu1 %v10234_v53  ;;  %v9835_v28 = vpop.eup %9834  ;;  %v8669_v24 = vadd.f32 %v4691_v1, %v12549_v39 }
 0x854   : > { %v6008_v57 = vadd.f32 %v6007_v9, %v5883_v12  ;;  %4963 = vmatprep.mubr.bf16.mxu1 %v10235_v45  ;;  %v5884_v27 = vmul.f32 %v12449_v40, %v5235_v62  ;;  %v9837_v5 = vpop.eup %9836  ;;  %9846 = vtanh.f32 %v8667_v3  ;;  %v5886_v4 = vmul.f32 %v12491_v21, %v5237_v48  ;;  %v12622_v12 = vpop.permute.xlu0 %5786 }
 0x855   : > { %v6785_v31 = vmax.f32 %v6784_v2, %v6661_v29  ;;  %v6797_v14 = vmax.f32 %v6796_v11, %v6660_v34  ;;  %9848 = vtanh.f32 %v8669_v24  ;;  %14316 = vst [vmem:[#allocation97_spill] sm:$0xff] %v12622_v12  ;;  %v6662_v46 = vsel %vm6594_vm13, %v5237_v48, -1e+30  ;;  %v12627_v3 = vpop.permute.xlu1 %5856 }
 0x856   : > { %v9839_v54 = vpop.eup %9838  ;;  %v6009_v47 = vadd.f32 %v6008_v57, %v5885_v10  ;;  %v4695_v59 = vpop.f32.mrb[228].mxu1  ;;  %v6021_v9 = vadd.f32 %v6020_v43, %v5884_v27  ;;  %14317 = vst [vmem:[#allocation98_spill] sm:$0xff] %v12627_v3  ;;  %vm6606_vm12 = vcmp.eq.s32.totalorder %v12373_v19, 1  ;;  %vm6609_vm13 = vcmp.eq.s32.totalorder %v12196_v58, 1 }
 0x857   : > { %v9841_v1 = vpop.eup %9840  ;;  %v5106_v61 = vpack.c.bf16 %v9839_v54, %v9835_v28  ;;  %v8670_v40 = vadd.f32 %v4695_v59, %v12544_v35  ;;  %v4697_v62 = vpop.f32.mrb[229].mxu1  ;;  %v6798_v2 = vmax.f32 %v6797_v14, %v6662_v46 }
 0x858   : > { %v5107_v21 = vpack.c.bf16 %v9841_v1, %v9837_v5  ;;  %v8671_v11 = vadd.f32 %v4697_v62, %v12549_v39  ;;  %v4699_v34 = vpop.f32.mrb[230].mxu1  ;;  %v6022_v10 = vadd.f32 %v6021_v9, %v5886_v4  ;;  %v10236_v5 = vld [vmem:[%s10816_s18 + $0x3e8] ss:$16 sps:$4 sm:$0xff]   ;;  %v12641_v59 = vpop.permute.xlu0 %5676  ;;  %s14459_s18 = sld [smem:[#allocation111_spill]] }
 0x859   : > { %v5238_v49 = vunpack.c.l.bf16 %v5106_v61  ;;  %v5240_v48 = vunpack.c.h.bf16 %v5106_v61  ;;  %v8672_v43 = vadd.f32 %v4699_v34, %v12544_v35  ;;  %v4701_v53 = vpop.f32.mrb[231].mxu1  ;;  %9850 = vtanh.f32 %v8670_v40  ;;  %v12644_v61 = vpop.permute.xlu1 %5746 }
 0x85a   : > { %v8673_v28 = vadd.f32 %v4701_v53, %v12549_v39  ;;  %v5239_v57 = vunpack.c.l.bf16 %v5107_v21  ;;  %v5241_v29 = vunpack.c.h.bf16 %v5107_v21  ;;  %9852 = vtanh.f32 %v8671_v11 }
 0x85b   : > { %v5887_v24 = vmul.f32 %v12493_v44, %v5238_v49  ;;  %v5889_v45 = vmul.f32 %v12546_v50, %v5240_v48  ;;  %v6663_v27 = vsel %vm6595_vm14, %v5238_v49, -1e+30  ;;  %4964 = vmatmul.mubr.bf16.gmra.mrb[80].mxu1 %v10236_v5  ;;  %v9843_v4 = vpop.eup %9842  ;;  %v6665_v14 = vsel %vm6596_vm15, %v5240_v48, -1e+30 }
 0x85c   : > { %v6786_v54 = vmax.f32 %v6785_v31, %v6663_v27  ;;  %9854 = vtanh.f32 %v8672_v43  ;;  %v5888_v9 = vmul.f32 %v12493_v44, %v5239_v57  ;;  %v5890_v40 = vmul.f32 %v12546_v50, %v5241_v29 }
 0x85d   : > { %v9845_v46 = vpop.eup %9844  ;;  %v6010_v1 = vadd.f32 %v6009_v47, %v5887_v24  ;;  %9856 = vtanh.f32 %v8673_v28  ;;  %v6664_v62 = vsel %vm6595_vm14, %v5239_v57, -1e+30  ;;  %v6666_v51 = vsel %vm6596_vm15, %v5241_v29, -1e+30  ;;  %v5597_v29 = vpop.permute.xlu1 %5596 }
 0x85e   : > { %v5108_v21 = vpack.c.bf16 %v9845_v46, %v9843_v4  ;;  %v6787_v11 = vmax.f32 %v6786_v54, %v6665_v14  ;;  %v4705_v34 = vpop.f32.mrb[232].mxu1  ;;  %v6023_v49 = vadd.f32 %v6022_v10, %v5888_v9  ;;  %v6799_v31 = vmax.f32 %v6798_v2, %v6664_v62  ;;  %v9847_v48 = vpop.eup %9846  ;;  %s14041_s29 = scalar_lea.hbm %s14459_s18, %s8395_s30 }
 0x85f   : > { %v6011_v43 = vadd.f32 %v6010_v1, %v5889_v45  ;;  %v8674_v44 = vadd.f32 %v4705_v34, %v12544_v35  ;;  %v4707_v47 = vpop.f32.mrb[233].mxu1  ;;  %v9849_v53 = vpop.eup %9848  ;;  %vm6610_vm14 = vcmp.eq.s32.totalorder %v12230_v26, 1  ;;  %vm6611_vm15 = vcmp.eq.s32.totalorder %v12271_v23, 1 }
 0x860   : > { %v5242_v28 = vunpack.c.l.bf16 %v5108_v21  ;;  %v4709_v24 = vpop.f32.mrb[234].mxu1  ;;  %v5244_v27 = vunpack.c.h.bf16 %v5108_v21  ;;  %v6024_v50 = vadd.f32 %v6023_v49, %v5890_v40  ;;  %v8675_v57 = vadd.f32 %v4707_v47, %v12549_v39  ;;  %v12660_v54 = vpop.permute.xlu0 %5826 }
 0x861   : > { %v8676_v10 = vadd.f32 %v4709_v24, %v12544_v35  ;;  %v5109_v2 = vpack.c.bf16 %v9849_v53, %v9847_v48  ;;  %v6800_v5 = vmax.f32 %v6799_v31, %v6666_v51  ;;  %v4711_v4 = vpop.f32.mrb[235].mxu1  ;;  %9858 = vtanh.f32 %v8674_v44  ;;  %14318 = vst [vmem:[#allocation99_spill] sm:$0xff] %v12660_v54 }
 0x862   : > { %v5891_v45 = vmul.f32 %v12586_v15, %v5242_v28  ;;  %v6667_v14 = vsel %vm6597_vm0, %v5242_v28, -1e+30  ;;  %v5893_v62 = vmul.f32 %v5597_v29, %v5244_v27  ;;  %v6669_v21 = vsel %vm6598_vm9, %v5244_v27, -1e+30 }
 0x863   : > { %v6788_v60 = vmax.f32 %v6787_v11, %v6667_v14  ;;  %9860 = vtanh.f32 %v8676_v10  ;;  %v5243_v9 = vunpack.c.l.bf16 %v5109_v2  ;;  %v5245_v46 = vunpack.c.h.bf16 %v5109_v2  ;;  %v9851_v1 = vpop.eup %9850 }
 0x864   : > { %v6012_v40 = vadd.f32 %v6011_v43, %v5891_v45  ;;  %v8677_v34 = vadd.f32 %v4711_v4, %v12549_v39  ;;  %v9853_v49 = vpop.eup %9852  ;;  %9862 = vtanh.f32 %v8675_v57  ;;  %v12671_v4 = vpop.permute.xlu0 %5791 }
 0x865   : > { %v5892_v31 = vmul.f32 %v12586_v15, %v5243_v9  ;;  %v6668_v48 = vsel %vm6597_vm0, %v5243_v9, -1e+30  ;;  %v6670_v11 = vsel %vm6598_vm9, %v5245_v46, -1e+30  ;;  %v6789_v53 = vmax.f32 %v6788_v60, %v6669_v21  ;;  %14319 = vst [vmem:[#allocation100_spill] sm:$0xff] %v12671_v4 }
 0x866   : > { %v9855_v44 = vpop.eup %9854  ;;  %v6013_v47 = vadd.f32 %v6012_v40, %v5893_v62  ;;  %v6801_v43 = vmax.f32 %v6800_v5, %v6668_v48  ;;  %9864 = vtanh.f32 %v8677_v34  ;;  %v4715_v28 = vpop.f32.mrb[236].mxu1  ;;  %v5894_v51 = vmul.f32 %v5597_v29, %v5245_v46 }
 0x867   : > { %v9857_v24 = vpop.eup %9856  ;;  %v5110_v27 = vpack.c.bf16 %v9855_v44, %v9851_v1  ;;  %v6025_v57 = vadd.f32 %v6024_v50, %v5892_v31  ;;  %v4717_v10 = vpop.f32.mrb[237].mxu1  ;;  %v6790_v2 = vrot.slane %v6789_v53, 4  ;;  %v8678_v38 = vadd.f32 %v4715_v28, %v12544_v35 }
 0x868   : > { %v5111_v15 = vpack.c.bf16 %v9857_v24, %v9853_v49  ;;  %v6802_v63 = vmax.f32 %v6801_v43, %v6670_v11  ;;  %v4719_v45 = vpop.f32.mrb[238].mxu1  ;;  %v6014_v60 = vrot.slane %v6013_v47, 4 }
 0x869   : > { %v5246_v5 = vunpack.c.l.bf16 %v5110_v27  ;;  %v5248_v14 = vunpack.c.h.bf16 %v5110_v27  ;;  %v6026_v9 = vadd.f32 %v6025_v57, %v5894_v51  ;;  %v4721_v40 = vpop.f32.mrb[239].mxu1  ;;  %v6791_v46 = vmax.f32 %v6789_v53, %v6790_v2  ;;  %v12691_v2 = vpop.permute.xlu0 %5756 }
 0x86a   : > { %v5247_v29 = vunpack.c.l.bf16 %v5111_v15  ;;  %v5249_v50 = vunpack.c.h.bf16 %v5111_v15  ;;  %9866 = vtanh.f32 %v8678_v38  ;;  %v12689_v43 = vadd.f32 %v6014_v60, %v6013_v47 }
 0x86b   : > { %v5895_v1 = vmul.f32 %v12457_v36, %v5246_v5  ;;  %v5897_v62 = vmul.f32 %v12439_v0, %v5248_v14  ;;  %v6671_v21 = vsel %vm6599_vm1, %v5246_v5, -1e+30  ;;  %v6673_v34 = vsel %vm6600_vm2, %v5248_v14, -1e+30  ;;  %v9859_v49 = vpop.eup %9858 }
 0x86c   : > { %v5896_v31 = vmul.f32 %v12457_v36, %v5247_v29  ;;  %v5898_v48 = vmul.f32 %v12439_v0, %v5249_v50  ;;  %v6672_v11 = vsel %vm6599_vm1, %v5247_v29, -1e+30  ;;  %v6674_v53 = vsel %vm6600_vm2, %v5249_v50, -1e+30 }
 0x86d   : > { %v9861_v44 = vpop.eup %9860  ;;  %v6027_v28 = vrot.slane %v6026_v9, 4  ;;  %v6792_v24 = vrot.slane %v6791_v46, 2  ;;  %v6033_v27 = vadd.f32 %v5897_v62, %v5895_v1  ;;  %v6809_v51 = vmax.f32 %v6671_v21, %v6673_v34 }
 0x86e   : > { %v5112_v57 = vpack.c.bf16 %v9861_v44, %v9859_v49  ;;  %v6803_v15 = vrot.slane %v6802_v63, 4  ;;  %v4725_v36 = vpop.f32.mrb[240].mxu1  ;;  %v9863_v0 = vpop.eup %9862  ;;  %v6046_v5 = vadd.f32 %v5898_v48, %v5896_v31  ;;  %v6822_v55 = vmax.f32 %v6672_v11, %v6674_v53 }
 0x86f   : > { %v12693_v14 = vadd.f32 %v6027_v28, %v6026_v9  ;;  %v6793_v38 = vmax.f32 %v6791_v46, %v6792_v24  ;;  %v4727_v29 = vpop.f32.mrb[241].mxu1  ;;  %v8680_v3 = vadd.f32 %v4719_v45, %v12544_v35  ;;  %v8679_v34 = vadd.f32 %v4717_v10, %v12549_v39 }
 0x870   : > { %v9865_v32 = vpop.eup %9864  ;;  %v5250_v50 = vunpack.c.l.bf16 %v5112_v57  ;;  %v5252_v47 = vunpack.c.h.bf16 %v5112_v57  ;;  %v6804_v60 = vmax.f32 %v6802_v63, %v6803_v15  ;;  %v4729_v1 = vpop.f32.mrb[242].mxu1  ;;  %v8681_v49 = vadd.f32 %v4721_v40, %v12549_v39 }
 0x871   : > { %v6794_v62 = vrot.slane %v6793_v38, 1  ;;  %v5113_v21 = vpack.c.bf16 %v9865_v32, %v9863_v0  ;;  %v4731_v44 = vpop.f32.mrb[243].mxu1  ;;  %v8682_v63 = vadd.f32 %v4725_v36, %v12544_v35  ;;  %9868 = vtanh.f32 %v8680_v3  ;;  %v12708_v40 = vpop.permute.xlu0 %5796 }
 0x872   : > { %v5899_v31 = vmul.f32 %v12474_v37, %v5250_v50  ;;  %v6675_v9 = vsel %vm6601_vm4, %v5250_v50, -1e+30  ;;  %v12703_v46 = vsel %vm6602_vm3, %v5252_v47, -1e+30  ;;  %v6805_v11 = vrot.slane %v6804_v60, 2  ;;  %14320 = vst [vmem:[#allocation101_spill] sm:$0xff] %v12708_v40 }
 0x873   : > { %v12706_v45 = vmax.f32 %v6809_v51, %v6675_v9  ;;  %v6795_v48 = vmax.f32 %v6793_v38, %v6794_v62  ;;  %v5251_v53 = vunpack.c.l.bf16 %v5113_v21  ;;  %v5253_v28 = vunpack.c.h.bf16 %v5113_v21 }
 0x874   : > { %v6034_v10 = vadd.f32 %v6033_v27, %v5899_v31  ;;  %v8683_v24 = vadd.f32 %v4727_v29, %v12549_v39  ;;  %v6806_v15 = vmax.f32 %v6804_v60, %v6805_v11  ;;  %v9867_v36 = vpop.eup %9866  ;;  %v5901_v38 = vmul.f32 %v12471_v8, %v5252_v47 }
 0x875   : > { %v6811_v57 = vmax.f32 %v12706_v45, %v12703_v46  ;;  %v7031_v0 = vsel %vm7023_vm5, %v6795_v48, 0.0  ;;  %v5900_v51 = vmul.f32 %v12474_v37, %v5251_v53  ;;  %v5902_v27 = vmul.f32 %v12471_v8, %v5253_v28  ;;  %v12733_v31 = vpop.permute.xlu0 %5836 }
 0x876   : > { %v6676_v3 = vsel %vm6601_vm4, %v5251_v53, -1e+30  ;;  %9870 = vtanh.f32 %v8679_v34  ;;  %v4735_v32 = vpop.f32.mrb[244].mxu1  ;;  %v6807_v29 = vrot.slane %v6806_v15, 1  ;;  %v12724_v21 = vsel %vm6602_vm3, %v5253_v28, -1e+30 }
 0x877   : > { %v6047_v50 = vadd.f32 %v6046_v5, %v5900_v51  ;;  %v12720_v62 = vmax.f32 %v6822_v55, %v6676_v3  ;;  %9872 = vtanh.f32 %v8681_v49  ;;  %v4737_v60 = vpop.f32.mrb[245].mxu1  ;;  %v8684_v37 = vadd.f32 %v4729_v1, %v12544_v35  ;;  %v12730_v5 = vpop.permute.xlu1 %5711  ;;  %14321 = vst [vmem:[#allocation102_spill] sm:$0xff] %v12733_v31  ;;  %v14351_v31 = vld [vmem:[#allocation37_spill] sm:$0xff] }
 0x878   : > { %9874 = vtanh.f32 %v8682_v63  ;;  %v8685_v8 = vadd.f32 %v4731_v44, %v12549_v39  ;;  %v4739_v47 = vpop.f32.mrb[246].mxu1  ;;  %v6808_v20 = vmax.f32 %v6806_v15, %v6807_v29  ;;  %v6016_v55 = vrot.slane %v12689_v43, 2 }
 0x879   : > { %v6824_v34 = vmax.f32 %v12720_v62, %v12724_v21  ;;  %9876 = vtanh.f32 %v8683_v24  ;;  %v4741_v49 = vpop.f32.mrb[247].mxu1  ;;  %v6029_v52 = vrot.slane %v12693_v14, 2  ;;  %v8686_v1 = vadd.f32 %v4735_v32, %v12544_v35 }
 0x87a   : > { %9878 = vtanh.f32 %v8684_v37  ;;  %v8687_v44 = vadd.f32 %v4737_v60, %v12549_v39  ;;  %v7032_v9 = vsel %vm7023_vm5, %v6808_v20, 0.0  ;;  %v6017_v63 = vadd.f32 %v6016_v55, %v12689_v43 }
 0x87b   : > { %9880 = vtanh.f32 %v8685_v8  ;;  %v8688_v48 = vadd.f32 %v4739_v47, %v12544_v35  ;;  %v7095_v11 = vpack.c.bf16 %v7031_v0, %v7031_v0  ;;  %v6030_v53 = vadd.f32 %v6029_v52, %v12693_v14  ;;  %v9869_v3 = vpop.eup %9868  ;;  %v12751_v14 = vpop.permute.xlu1 %5861 }
 0x87c   : > { %9882 = vtanh.f32 %v8686_v1  ;;  %v8689_v28 = vadd.f32 %v4741_v49, %v12549_v39  ;;  %v6018_v24 = vrot.slane %v6017_v63, 1  ;;  %v12744_v15 = vadd.f32 %v6034_v10, %v5901_v38  ;;  %14322 = vst [vmem:[#allocation103_spill] sm:$0xff] %v12751_v14 }
 0x87d   : > { %9884 = vtanh.f32 %v8687_v44  ;;  %v12746_v51 = vadd.f32 %v6047_v50, %v5902_v27  ;;  %v7096_v7 = vpack.c.bf16 %v7032_v9, %v7032_v9  ;;  %v6031_v32 = vrot.slane %v6030_v53, 1  ;;  %v6218_v27 = vpop.permute.xlu0 %6217 }
 0x87e   : > { %9886 = vtanh.f32 %v8688_v48  ;;  %v4745_v43 = vpop.f32.mrb[248].mxu1  ;;  %v12749_v29 = vpack.c.bf16 %v9869_v3, %v9867_v36  ;;  %v6019_v0 = vadd.f32 %v6018_v24, %v6017_v63  ;;  %v12756_v38 = vunpack.c.l.b16 %v7095_v11 }
 0x87f   : > { %9888 = vtanh.f32 %v8689_v28  ;;  %v8690_v60 = vadd.f32 %v4745_v43, %v12544_v35  ;;  %v4747_v37 = vpop.f32.mrb[249].mxu1  ;;  %v6032_v50 = vadd.f32 %v6031_v32, %v6030_v53  ;;  %v12765_v28 = vunpack.c.l.b16 %v7096_v7 }
 0x880   : > { %v9871_v10 = vpop.eup %9870  ;;  %v4749_v8 = vpop.f32.mrb[250].mxu1  ;;  %v5254_v36 = vunpack.c.l.bf16 %v12749_v29  ;;  %v14186_v20 = vunpack.c.h.bf16 %v12749_v29  ;;  %v6255_v55 = vmul.f32 %v6218_v27, %v6019_v0  ;;  %v7047_v49 = vpack.c.bf16 %v6019_v0, %v6019_v0 }
 0x881   : > { %v9873_v47 = vpop.eup %9872  ;;  %v4751_v52 = vpop.f32.mrb[251].mxu1  ;;  %v12762_v9 = vmul.f32 %v6218_v27, %v6032_v50  ;;  %v7048_v63 = vpack.c.bf16 %v6032_v50, %v6032_v50  ;;  %v8691_v48 = vadd.f32 %v4747_v37, %v12549_v39  ;;  %14323 = vst [vmem:[#allocation104_spill] sm:$0xff] %v12765_v28  ;;  %9890 = vtanh.f32 %v8690_v60 }
 0x882   : > { %v9875_v1 = vpop.eup %9874  ;;  %v12760_v44 = vpack.c.bf16 %v9873_v47, %v9871_v10  ;;  %v12768_v53 = vmul.f32 %v12518_v13, %v5254_v36  ;;  %v6679_v24 = vsel %vm6603_vm6, %v5254_v36, -1e+30  ;;  %v6681_v32 = vsel %vm6604_vm7, %v14186_v20, -1e+30  ;;  %v12789_v47 = vpop.permute.xlu1 %5751 }
 0x883   : > { %v9877_v11 = vpop.eup %9876  ;;  %v6812_v7 = vmax.f32 %v6811_v57, %v6679_v24  ;;  %v12785_v10 = vunpack.c.l.b16 %v7047_v49  ;;  %v12787_v27 = vunpack.c.l.b16 %v7048_v63  ;;  %v7522_v50 = vpack.c.bf16 %v6255_v55, %v6255_v55 }
 0x884   : > { %v9879_v3 = vpop.eup %9878  ;;  %v5255_v43 = vunpack.c.l.bf16 %v12760_v44  ;;  %v14187_v0 = vunpack.c.h.bf16 %v12760_v44  ;;  %v7523_v45 = vpack.c.bf16 %v12762_v9, %v12762_v9  ;;  %9892 = vtanh.f32 %v8691_v48 }
 0x885   : > { %v9881_v37 = vpop.eup %9880  ;;  %v12783_v60 = vpack.c.bf16 %v9879_v3, %v9875_v1  ;;  %v6813_v20 = vmax.f32 %v6812_v7, %v6681_v32  ;;  %v12808_v48 = vunpack.c.l.b16 %v7522_v50  ;;  %v8693_v32 = vadd.f32 %v4751_v52, %v12549_v39 }
 0x886   : > { %v9883_v36 = vpop.eup %9882  ;;  %v6680_v46 = vsel %vm6603_vm6, %v5255_v43, -1e+30  ;;  %v4755_v57 = vpop.f32.mrb[252].mxu1  ;;  %v12796_v1 = vmul.f32 %v12518_v13, %v5255_v43  ;;  %v12802_v63 = vpack.c.bf16 %v9881_v37, %v9877_v11  ;;  %v6682_v9 = vsel %vm6604_vm7, %v14187_v0, -1e+30 }
 0x887   : > { %v9885_v24 = vpop.eup %9884  ;;  %v6825_v55 = vmax.f32 %v6824_v34, %v6680_v46  ;;  %v5258_v49 = vunpack.c.l.bf16 %v12783_v60  ;;  %v4757_v3 = vpop.f32.mrb[253].mxu1  ;;  %v8692_v13 = vadd.f32 %v4749_v8, %v12544_v35  ;;  %v8694_v8 = vadd.f32 %v4755_v57, %v12544_v35 }
 0x888   : > { %v9887_v16 = vpop.eup %9886  ;;  %v4759_v7 = vpop.f32.mrb[254].mxu1  ;;  %v5259_v11 = vunpack.c.l.bf16 %v12802_v63  ;;  %v5260_v25 = vunpack.c.h.bf16 %v12783_v60  ;;  %vm7175_vm2 = vcmask 1041409  }
 0x889   : > { %v9889_v62 = vpop.eup %9888  ;;  %v6826_v21 = vmax.f32 %v6825_v55, %v6682_v9  ;;  %v6683_v34 = vsel %vm6605_vm8, %v5258_v49, -1e+30  ;;  %v5118_v43 = vpack.c.bf16 %v9887_v16, %v9883_v36  ;;  %v4761_v37 = vpop.f32.mrb[255].mxu1  ;;  %9894 = vtanh.f32 %v8692_v13 }
 0x88a   : > { %v12817_v30 = vmax.f32 %v6813_v20, %v6683_v34  ;;  %v5119_v50 = vpack.c.bf16 %v9889_v62, %v9885_v24  ;;  %v6684_v52 = vsel %vm6605_vm8, %v5259_v11, -1e+30  ;;  %v12822_v9 = vpop.permute.xlu1 %5716  ;;  %9896 = vtanh.f32 %v8693_v32 }
 0x88b   : > { %v5262_v46 = vunpack.c.l.bf16 %v5118_v43  ;;  %v5264_v55 = vunpack.c.h.bf16 %v5118_v43  ;;  %v12825_v0 = vmax.f32 %v6826_v21, %v6684_v52  ;;  %v8695_v20 = vadd.f32 %v4757_v3, %v12549_v39  ;;  %v9891_v24 = vpop.eup %9890 }
 0x88c   : > { %v5263_v36 = vunpack.c.l.bf16 %v5119_v50  ;;  %v5265_v16 = vunpack.c.h.bf16 %v5119_v50  ;;  %v12838_v62 = vunpack.c.l.b16 %v7523_v45  ;;  %9898 = vtanh.f32 %v8694_v8 }
 0x88d   : > { %v5911_v13 = vmul.f32 %v12445_v6, %v5262_v46  ;;  %v5913_v57 = vmul.f32 %v12469_v42, %v5264_v55  ;;  %v12832_v56 = vsel %vm6607_vm10, %v5262_v46, -1e+30  ;;  %v12836_v32 = vsel %vm6608_vm11, %v5264_v55, -1e+30 }
 0x88e   : > { %v5912_v21 = vmul.f32 %v12445_v6, %v5263_v36  ;;  %v5914_v34 = vmul.f32 %v12469_v42, %v5265_v16  ;;  %v4765_v3 = vpop.f32.mrb[0].mxu1  ;;  %v6835_v50 = vmax.f32 %v12832_v56, %v12836_v32  ;;  %v12848_v52 = vsel %vm6607_vm10, %v5263_v36, -1e+30  ;;  %v9893_v45 = vpop.eup %9892 }
 0x88f   : > { %v12842_v43 = vadd.f32 %v5913_v57, %v5911_v13  ;;  %v8696_v46 = vadd.f32 %v4759_v7, %v12544_v35  ;;  %v4767_v55 = vpop.f32.mrb[1].mxu1  ;;  %v12854_v42 = vsel %vm6608_vm11, %v5265_v16, -1e+30  ;;  %9900 = vtanh.f32 %v8695_v20  ;;  %v12859_v17 = vpop.permute.xlu1 %5866 }
 0x890   : > { %v8697_v6 = vadd.f32 %v4761_v37, %v12549_v39  ;;  %v8698_v8 = vadd.f32 %v4765_v3, %v12544_v35  ;;  %v4769_v13 = vpop.f32.mrb[2].mxu1  ;;  %14324 = vst [vmem:[#allocation105_spill] sm:$0xff] %v12859_v17  ;;  %v8699_v7 = vadd.f32 %v4767_v55, %v12549_v39  ;;  %v6072_v16 = vadd.f32 %v5914_v34, %v5912_v21 }
 0x891   : > { %9902 = vtanh.f32 %v8696_v46  ;;  %v8700_v36 = vadd.f32 %v4769_v13, %v12544_v35  ;;  %v4771_v57 = vpop.f32.mrb[3].mxu1  ;;  %v5261_v37 = vunpack.c.h.bf16 %v12802_v63  ;;  %v6848_v56 = vmax.f32 %v12848_v52, %v12854_v42 }
 0x892   : > { %9904 = vtanh.f32 %v8697_v6  ;;  %v8701_v20 = vadd.f32 %v4771_v57, %v12549_v39  ;;  %v14325_v32 = vunpack.c.h.bf16 %v12749_v29  ;;  %v5907_v46 = vmul.f32 %v12554_v41, %v5258_v49 }
 0x893   : > { %9906 = vtanh.f32 %v8698_v8  ;;  %v9895_v55 = vpop.eup %9894  ;;  %v14326_v21 = vunpack.c.h.bf16 %v12760_v44  ;;  %v5908_v63 = vmul.f32 %v12554_v41, %v5259_v11  ;;  %v6036_v52 = vadd.f32 %v12744_v15, %v12768_v53  ;;  %v14327_v15 = vld [vmem:[#allocation38_spill] sm:$0xff] }
 0x894   : > { %v5905_v3 = vmul.f32 %v12521_v18, %v14325_v32  ;;  %9908 = vtanh.f32 %v8699_v7  ;;  %v9897_v42 = vpop.eup %9896  ;;  %v12880_v6 = vpack.c.bf16 %v9895_v55, %v9891_v24  ;;  %v6049_v29 = vadd.f32 %v12746_v51, %v12796_v1  ;;  %v12896_v1 = vpop.permute.xlu1 %5831 }
 0x895   : > { %v5906_v34 = vmul.f32 %v12521_v18, %v14326_v21  ;;  %9910 = vtanh.f32 %v8700_v36  ;;  %v6685_v60 = vsel %vm6606_vm12, %v5260_v25, -1e+30  ;;  %v12886_v49 = vpack.c.bf16 %v9897_v42, %v9893_v45  ;;  %14328 = vst [vmem:[#allocation38_spill] sm:$0xff] %v12896_v1 }
 0x896   : > { %9912 = vtanh.f32 %v8701_v20  ;;  %v6037_v44 = vadd.f32 %v6036_v52, %v5905_v3  ;;  %v6686_v18 = vsel %vm6606_vm12, %v5261_v37, -1e+30  ;;  %v12890_v41 = vpop.f32.mrb[4].mxu1  ;;  %vm6612_vm0 = vcmp.eq.s32.totalorder %v14327_v15, 1  ;;  %v9899_v8 = vpop.eup %9898  ;;  %v14329_v20 = vld [vmem:[#allocation70_spill] sm:$0xff] }
 0x897   : > { %v5266_v53 = vunpack.c.l.bf16 %v12880_v6  ;;  %v5268_v51 = vunpack.c.h.bf16 %v12880_v6  ;;  %v6050_v11 = vadd.f32 %v6049_v29, %v5906_v34  ;;  %v6815_v24 = vmax.f32 %v12817_v30, %v6685_v60  ;;  %v12899_v45 = vpop.f32.mrb[5].mxu1  ;;  %v14330_v29 = vld [vmem:[#allocation44_spill] sm:$0xff] }
 0x898   : > { %v5267_v19 = vunpack.c.l.bf16 %v12886_v49  ;;  %v5269_v13 = vunpack.c.h.bf16 %v12886_v49  ;;  %v6038_v7 = vadd.f32 %v6037_v44, %v5907_v46  ;;  %v6828_v36 = vmax.f32 %v12825_v0, %v6686_v18  ;;  %v12904_v57 = vpop.f32.mrb[6].mxu1 }
 0x899   : > { %v5915_v32 = vmul.f32 %v14329_v20, %v5266_v53  ;;  %v6691_v3 = vsel %vm6609_vm13, %v5266_v53, -1e+30  ;;  %v5909_v55 = vmul.f32 %v12603_v22, %v5260_v25  ;;  %v5910_v30 = vmul.f32 %v12603_v22, %v5261_v37  ;;  %v12911_v21 = vpop.f32.mrb[7].mxu1  ;;  %v9901_v34 = vpop.eup %9900 }
 0x89a   : > { %v6693_v52 = vsel %vm6610_vm14, %v5268_v51, -1e+30  ;;  %v6836_v46 = vmax.f32 %v6835_v50, %v6691_v3  ;;  %v5916_v0 = vmul.f32 %v14329_v20, %v5267_v19  ;;  %v6692_v42 = vsel %vm6609_vm13, %v5267_v19, -1e+30  ;;  %v12930_v3 = vpop.permute.xlu1 %5871 }
 0x89b   : > { %v9903_v6 = vpop.eup %9902  ;;  %vm6613_vm1 = vcmp.eq.s32.totalorder %v14330_v29, 1  ;;  %v12920_v60 = vadd.f32 %v12842_v43, %v5915_v32  ;;  %v6694_v22 = vsel %vm6610_vm14, %v5269_v13, -1e+30  ;;  %v6849_v25 = vmax.f32 %v6848_v56, %v6692_v42  ;;  %14331 = vst [vmem:[#allocation70_spill] sm:$0xff] %v12930_v3  ;;  %v14332_v42 = vld [vmem:[#allocation75_spill] sm:$0xff] }
 0x89c   : > { %v6039_v37 = vadd.f32 %v6038_v7, %v5909_v55  ;;  %v9905_v49 = vpop.eup %9904  ;;  %v6837_v44 = vmax.f32 %v6836_v46, %v6693_v52  ;;  %v12924_v18 = vadd.f32 %v6072_v16, %v5916_v0  ;;  %v12926_v50 = vpack.c.bf16 %v9903_v6, %v9899_v8 }
 0x89d   : > { %v6051_v53 = vadd.f32 %v6050_v11, %v5908_v63  ;;  %v9907_v58 = vpop.eup %9906  ;;  %v6850_v19 = vmax.f32 %v6849_v25, %v6694_v22  ;;  %v12928_v20 = vpack.c.bf16 %v9905_v49, %v9901_v34  ;;  %v6816_v32 = vrot.slane %v6815_v24, 4 }
 0x89e   : > { %v6040_v43 = vrot.slane %v6039_v37, 4  ;;  %v9909_v28 = vpop.eup %9908  ;;  %v5270_v26 = vunpack.c.l.bf16 %v12926_v50  ;;  %v14188_v56 = vunpack.c.h.bf16 %v12926_v50  ;;  %v6829_v55 = vrot.slane %v6828_v36, 4  ;;  %v12934_v16 = vpop.f32.mrb[8].mxu1 }
 0x89f   : > { %v6052_v7 = vadd.f32 %v6051_v53, %v5910_v30  ;;  %v9911_v8 = vpop.eup %9910  ;;  %v14189_v63 = vunpack.c.l.bf16 %v12928_v20  ;;  %v14191_v11 = vunpack.c.h.bf16 %v12928_v20  ;;  %v6817_v52 = vmax.f32 %v6815_v24, %v6816_v32  ;;  %v12938_v46 = vpop.f32.mrb[9].mxu1  ;;  %v14333_v32 = vld [vmem:[#allocation66_spill] sm:$0xff] }
 0x8a0   : > { %v6041_v34 = vadd.f32 %v6040_v43, %v6039_v37  ;;  %v9913_v0 = vpop.eup %9912  ;;  %v12941_v6 = vmul.f32 %v14332_v42, %v5268_v51  ;;  %v6695_v22 = vsel %vm6611_vm15, %v5270_v26, -1e+30  ;;  %v6697_v30 = vsel %vm6612_vm0, %v14188_v56, -1e+30  ;;  %v12951_v49 = vpop.f32.mrb[10].mxu1 }
 0x8a1   : > { %v12949_v25 = vpack.c.bf16 %v9911_v8, %v9907_v58  ;;  %v12954_v24 = vmul.f32 %v14332_v42, %v5269_v13  ;;  %v6838_v37 = vmax.f32 %v6837_v44, %v6695_v22  ;;  %v6696_v51 = vsel %vm6611_vm15, %v14189_v63, -1e+30  ;;  %v4791_v43 = vpop.f32.mrb[11].mxu1  ;;  %v12968_v42 = vpop.permute.xlu1 %5876 }
 0x8a2   : > { %v6698_v53 = vsel %vm6612_vm0, %v14191_v11, -1e+30  ;;  %vm7024_vm9 = vcmp.eq.s32.totalorder %v14333_v32, 1  ;;  %v6851_v58 = vmax.f32 %v6850_v19, %v6696_v51  ;;  %v12966_v56 = vpack.c.bf16 %v9913_v0, %v9909_v28  ;;  %14334 = vst [vmem:[#allocation44_spill] sm:$0xff] %v12968_v42  ;;  %v9491_v42 = vld [vmem:[#allocation8] sm:$0xff]  }
 0x8a3   : > { %v14194_v8 = vunpack.c.l.bf16 %v12949_v25  ;;  %v6042_v13 = vrot.slane %v6041_v34, 2  ;;  %v6839_v44 = vmax.f32 %v6838_v37, %v6697_v30  ;;  %v6053_v23 = vrot.slane %v6052_v7, 4  ;;  %v9490_v37 = vld [vmem:[#allocation8 + $0x40] sm:$0xff]  }
 0x8a4   : > { %v6818_v22 = vrot.slane %v6817_v52, 2  ;;  %v6830_v63 = vmax.f32 %v6828_v36, %v6829_v55  ;;  %v6852_v3 = vmax.f32 %v6851_v58, %v6698_v53  ;;  %v14193_v19 = vunpack.c.l.bf16 %v12966_v56  ;;  %8399 = vmatprep.subr.bf16.mxu0 %v9490_v37 }
 0x8a5   : > { %v6699_v15 = vsel %vm6613_vm1, %v14194_v8, -1e+30  ;;  %v6043_v51 = vadd.f32 %v6042_v13, %v6041_v34  ;;  %v6054_v28 = vadd.f32 %v6053_v23, %v6052_v7  ;;  %v8702_v53 = vadd.f32 %v12890_v41, %v12544_v35  ;;  %8400 = vmatpush3.bf16.msra.mxu0 %v9491_v42 }
 0x8a6   : > { %v12975_v11 = vmax.f32 %v6839_v44, %v6699_v15  ;;  %v6819_v0 = vmax.f32 %v6817_v52, %v6818_v22  ;;  %v6831_v30 = vrot.slane %v6830_v63, 2  ;;  %v6700_v36 = vsel %vm6613_vm1, %v14193_v19, -1e+30  ;;  %v4795_v34 = vpop.f32.mrb[12].mxu1  ;;  %v14335_v19 = vld [vmem:[#allocation83_spill] sm:$0xff] }
 0x8a7   : > { %v6044_v55 = vrot.slane %v6043_v51, 1  ;;  %v8703_v58 = vadd.f32 %v12899_v45, %v12549_v39  ;;  %v12985_v13 = vmax.f32 %v6852_v3, %v6700_v36  ;;  %v6055_v7 = vrot.slane %v6054_v28, 2  ;;  %v4797_v23 = vpop.f32.mrb[13].mxu1  ;;  %v6223_v3 = vpop.permute.xlu1 %6222 }
 0x8a8   : > { %v6820_v52 = vrot.slane %v6819_v0, 1  ;;  %v6832_v44 = vmax.f32 %v6830_v63, %v6831_v30  ;;  %9914 = vtanh.f32 %v8702_v53  ;;  %v8704_v29 = vadd.f32 %v12904_v57, %v12544_v35  ;;  %v4799_v41 = vpop.f32.mrb[14].mxu1 }
 0x8a9   : > { %v6045_v22 = vadd.f32 %v6044_v55, %v6043_v51  ;;  %v8705_v15 = vadd.f32 %v12911_v21, %v12549_v39  ;;  %v12992_v45 = vmul.f32 %v14335_v19, %v5270_v26  ;;  %v6056_v36 = vadd.f32 %v6055_v7, %v6054_v28  ;;  %v4801_v63 = vpop.f32.mrb[15].mxu1 }
 0x8aa   : > { %v6821_v8 = vmax.f32 %v6819_v0, %v6820_v52  ;;  %9916 = vtanh.f32 %v8703_v58  ;;  %v8706_v51 = vadd.f32 %v12934_v16, %v12544_v35  ;;  %v6833_v55 = vrot.slane %v6832_v44, 1 }
 0x8ab   : > { %v6257_v30 = vmul.f32 %v6223_v3, %v6045_v22  ;;  %v7049_v37 = vpack.c.bf16 %v6045_v22, %v6045_v22  ;;  %9918 = vtanh.f32 %v8704_v29  ;;  %v6057_v57 = vrot.slane %v6056_v36, 1 }
 0x8ac   : > { %v7033_v21 = vsel %vm7024_vm9, %v6821_v8, 0.0  ;;  %9920 = vtanh.f32 %v8705_v15  ;;  %v8707_v0 = vadd.f32 %v12938_v46, %v12549_v39  ;;  %v8708_v58 = vadd.f32 %v12951_v49, %v12544_v35  ;;  %v14337_v49 = vld [vmem:[#allocation21_spill] sm:$0xff] }
 0x8ad   : > { %v7097_v42 = vpack.c.bf16 %v7033_v21, %v7033_v21  ;;  %v7354_v26 = vunpack.c.l.b16 %v7049_v37  ;;  %v7524_v53 = vpack.c.bf16 %v6257_v30, %v6257_v30  ;;  %9922 = vtanh.f32 %v8706_v51  ;;  %v14336_v37 = vld [vmem:[#allocation20_spill] sm:$0xff] }
 0x8ae   : > { %v6058_v28 = vadd.f32 %v6057_v57, %v6056_v36  ;;  %v8709_v7 = vadd.f32 %v4791_v43, %v12549_v39  ;;  %v8710_v22 = vadd.f32 %v4795_v34, %v12544_v35  ;;  %v4805_v29 = vpop.f32.mrb[16].mxu1  ;;  %9924 = vtanh.f32 %v8707_v0 }
 0x8af   : > { %v7161_v16 = vunpack.c.l.b16 %v7097_v42  ;;  %v13005_v52 = vsel %vm7175_vm2, %v7354_v26, %v12785_v10  ;;  %v7588_v8 = vunpack.c.l.b16 %v7524_v53  ;;  %v8711_v36 = vadd.f32 %v4797_v23, %v12549_v39  ;;  %v4807_v46 = vpop.f32.mrb[17].mxu1 }
 0x8b0   : > { %v6258_v15 = vmul.f32 %v6223_v3, %v6058_v28  ;;  %v7050_v30 = vpack.c.bf16 %v6058_v28, %v6058_v28  ;;  %vm6615_vm3 = vcmp.eq.s32.totalorder %v14336_v37, 1  ;;  %vm6616_vm4 = vcmp.eq.s32.totalorder %v14337_v49, 1  ;;  %v4809_v3 = vpop.f32.mrb[18].mxu1 }
 0x8b1   : > { %v13013_v43 = vsel %vm7175_vm2, %v7161_v16, %v12756_v38  ;;  %v13017_v10 = vsel %vm7175_vm2, %v7588_v8, %v12808_v48  ;;  %9926 = vtanh.f32 %v8708_v58  ;;  %v8712_v34 = vadd.f32 %v4799_v41, %v12544_v35  ;;  %v4811_v21 = vpop.f32.mrb[19].mxu1 }
 0x8b2   : > { %v7355_v51 = vunpack.c.l.b16 %v7050_v30  ;;  %v7525_v57 = vpack.c.bf16 %v6258_v15, %v6258_v15  ;;  %9928 = vtanh.f32 %v8709_v7  ;;  %v8713_v23 = vadd.f32 %v4801_v63, %v12549_v39  ;;  %v9915_v42 = vpop.eup %9914  ;;  %v14340_v7 = vld [vmem:[#allocation49_spill] sm:$0xff] }
 0x8b3   : > { %v14338_v26 = vunpack.c.l.bf16 %v12928_v20  ;;  %v13026_v53 = vmax.f32 %v6832_v44, %v6833_v55  ;;  %9930 = vtanh.f32 %v8710_v22  ;;  %v8714_v48 = vadd.f32 %v4805_v29, %v12544_v35  ;;  %v14341_v15 = vld [vmem:[#allocation25_spill] sm:$0xff] }
 0x8b4   : > { %v9917_v28 = vpop.eup %9916  ;;  %v13031_v41 = vsel %vm7175_vm2, %v7355_v51, %v12787_v27  ;;  %v7589_v0 = vunpack.c.l.b16 %v7525_v57  ;;  %9932 = vtanh.f32 %v8711_v36  ;;  %v8715_v63 = vadd.f32 %v4807_v46, %v12549_v39  ;;  %v14343_v46 = vld [vmem:[#allocation89_spill] sm:$0xff]  ;;  %v14345_v57 = vld [vmem:[#allocation30_spill] sm:$0xff] }
 0x8b5   : > { %v13024_v38 = vmul.f32 %v14335_v19, %v14338_v26  ;;  %14339 = vst [vmem:[#allocation75_spill] sm:$0xff] %v13026_v53  ;;  %v9919_v58 = vpop.eup %9918  ;;  %vm6614_vm5 = vcmp.eq.s32.totalorder %v14340_v7, 1  ;;  %9934 = vtanh.f32 %v8712_v34  ;;  %v8716_v19 = vadd.f32 %v4809_v3, %v12544_v35  ;;  %v14347_v26 = vld [vmem:[#allocation94_spill] sm:$0xff] }
 0x8b6   : > { %v8717_v44 = vadd.f32 %v4811_v21, %v12549_v39  ;;  %v5276_v55 = vunpack.c.h.bf16 %v12949_v25  ;;  %v9921_v16 = vpop.eup %9920  ;;  %v13040_v8 = vsel %vm7175_vm2, %v7589_v0, %v12838_v62  ;;  %v5126_v27 = vpack.c.bf16 %v9919_v58, %v9915_v42  ;;  %v13054_v62 = vpop.f32.mrb[20].mxu1 }
 0x8b7   : > { %9936 = vtanh.f32 %v8713_v23  ;;  %v5277_v22 = vunpack.c.h.bf16 %v12966_v56  ;;  %v9923_v29 = vpop.eup %9922  ;;  %vm6617_vm6 = vcmp.eq.s32.totalorder %v14341_v15, 1  ;;  %v5127_v30 = vpack.c.bf16 %v9921_v16, %v9917_v28 }
 0x8b8   : > { %9938 = vtanh.f32 %v8714_v48  ;;  %v14342_v36 = vunpack.c.h.bf16 %v12926_v50  ;;  %v14344_v3 = vunpack.c.h.bf16 %v12928_v20  ;;  %vm6618_vm7 = vcmp.eq.s32.totalorder %v14345_v57, 1  ;;  %v13062_v50 = vpop.f32.mrb[21].mxu1 }
 0x8b9   : > { %v5278_v23 = vunpack.c.l.bf16 %v5126_v27  ;;  %v5280_v21 = vunpack.c.h.bf16 %v5126_v27  ;;  %9940 = vtanh.f32 %v8715_v63  ;;  %v14346_v42 = vunpack.c.l.bf16 %v12949_v25  ;;  %v13069_v16 = vpop.f32.mrb[22].mxu1  ;;  %v14349_v27 = vld [vmem:[#allocation69_spill] sm:$0xff] }
 0x8ba   : > { %v13047_v34 = vmul.f32 %v14343_v46, %v14342_v36  ;;  %v13052_v51 = vmul.f32 %v14343_v46, %v14344_v3  ;;  %v5279_v28 = vunpack.c.l.bf16 %v5127_v30  ;;  %v5281_v0 = vunpack.c.h.bf16 %v5127_v30  ;;  %v9925_v36 = vpop.eup %9924  ;;  %v14350_v46 = vld [vmem:[#allocation74_spill] sm:$0xff]  ;;  %v13077_v30 = vpop.f32.mrb[23].mxu1 }
 0x8bb   : > { %v13060_v48 = vmul.f32 %v14347_v26, %v14346_v42  ;;  %9942 = vtanh.f32 %v8716_v19  ;;  %v14348_v20 = vunpack.c.l.bf16 %v12966_v56  ;;  %v5927_v63 = vmul.f32 %v14349_v27, %v5278_v23  ;;  %v9927_v19 = vpop.eup %9926 }
 0x8bc   : > { %v5929_v25 = vmul.f32 %v14350_v46, %v5280_v21  ;;  %v6703_v3 = vsel %vm6615_vm3, %v5278_v23, -1e+30  ;;  %v6705_v42 = vsel %vm6616_vm4, %v5280_v21, -1e+30  ;;  %v13084_v17 = vmul.f32 %v12641_v59, %v5277_v22  ;;  %v9929_v14 = vpop.eup %9928 }
 0x8bd   : > { %v13067_v58 = vmul.f32 %v14347_v26, %v14348_v20  ;;  %v6861_v56 = vmax.f32 %v6703_v3, %v6705_v42  ;;  %v5928_v26 = vmul.f32 %v14349_v27, %v5279_v28  ;;  %v13081_v20 = vmul.f32 %v12641_v59, %v5276_v55  ;;  %v9931_v21 = vpop.eup %9930  ;;  %v14352_v3 = vld [vmem:[#allocation43_spill] sm:$0xff] }
 0x8be   : > { %v5930_v32 = vmul.f32 %v14350_v46, %v5281_v0  ;;  %v6704_v23 = vsel %vm6615_vm3, %v5279_v28, -1e+30  ;;  %v5128_v53 = vpack.c.bf16 %v9927_v19, %v9923_v29  ;;  %9944 = vtanh.f32 %v8717_v44  ;;  %v9933_v54 = vpop.eup %9932  ;;  %v14353_v28 = vld [vmem:[#allocation52_spill] sm:$0xff] }
 0x8bf   : > { %vm6619_vm8 = vcmp.eq.s32.totalorder %v14351_v31, 1  ;;  %vm6620_vm10 = vcmp.eq.s32.totalorder %v14352_v3, 1  ;;  %v6085_v27 = vadd.f32 %v5929_v25, %v5927_v63  ;;  %v6706_v42 = vsel %vm6616_vm4, %v5281_v0, -1e+30  ;;  %v9935_v29 = vpop.eup %9934 }
 0x8c0   : > { %v5129_v1 = vpack.c.bf16 %v9929_v14, %v9925_v36  ;;  %v6061_v59 = vadd.f32 %v12920_v60, %v12941_v6  ;;  %v5282_v46 = vunpack.c.l.bf16 %v5128_v53  ;;  %v5284_v40 = vunpack.c.h.bf16 %v5128_v53  ;;  %v13103_v60 = vpop.f32.mrb[24].mxu1  ;;  %v14354_v36 = vld [vmem:[#allocation78_spill] sm:$0xff] }
 0x8c1   : > { %v6074_v37 = vadd.f32 %v12924_v18, %v12954_v24  ;;  %v6701_v44 = vsel %vm6614_vm5, %v5276_v55, -1e+30  ;;  %vm6621_vm11 = vcmp.eq.s32.totalorder %v14353_v28, 1  ;;  %v6702_v14 = vsel %vm6614_vm5, %v5277_v22, -1e+30  ;;  %v9937_v6 = vpop.eup %9936  ;;  %v13108_v55 = vpop.f32.mrb[25].mxu1 }
 0x8c2   : > { %v5283_v63 = vunpack.c.l.bf16 %v5129_v1  ;;  %v5285_v25 = vunpack.c.h.bf16 %v5129_v1  ;;  %v6062_v49 = vadd.f32 %v6061_v59, %v12992_v45  ;;  %v6098_v53 = vadd.f32 %v5930_v32, %v5928_v26  ;;  %v9939_v19 = vpop.eup %9938  ;;  %v13115_v59 = vpop.f32.mrb[26].mxu1 }
 0x8c3   : > { %v6874_v0 = vmax.f32 %v6704_v23, %v6706_v42  ;;  %v5931_v18 = vmul.f32 %v14354_v36, %v5282_v46  ;;  %v6707_v24 = vsel %vm6617_vm6, %v5282_v46, -1e+30  ;;  %v6709_v1 = vsel %vm6618_vm7, %v5284_v40, -1e+30  ;;  %v9941_v32 = vpop.eup %9940  ;;  %v13123_v4 = vpop.f32.mrb[27].mxu1 }
 0x8c4   : > { %v6862_v45 = vmax.f32 %v6861_v56, %v6707_v24  ;;  %v5932_v7 = vmul.f32 %v14354_v36, %v5283_v63  ;;  %v6708_v22 = vsel %vm6617_vm6, %v5283_v63, -1e+30  ;;  %v6710_v23 = vsel %vm6618_vm7, %v5285_v25, -1e+30 }
 0x8c5   : > { %v13117_v26 = vadd.f32 %v6085_v27, %v5931_v18  ;;  %v6875_v42 = vmax.f32 %v6874_v0, %v6708_v22  ;;  %v13121_v46 = vpack.c.bf16 %v9935_v29, %v9931_v21  ;;  %v9943_v12 = vpop.eup %9942  ;;  %v13127_v36 = vpack.c.bf16 %v9937_v6, %v9933_v54  ;;  %v14355_v54 = vld [vmem:[#allocation79_spill] sm:$0xff] }
 0x8c6   : > { %v6863_v56 = vmax.f32 %v6862_v45, %v6709_v1  ;;  %v13125_v24 = vadd.f32 %v6098_v53, %v5932_v7  ;;  %v6063_v15 = vadd.f32 %v6062_v49, %v13047_v34  ;;  %v13132_v57 = vpack.c.bf16 %v9943_v12, %v9939_v19  ;;  %v4835_v19 = vpop.f32.mrb[28].mxu1 }
 0x8c7   : > { %v6876_v63 = vmax.f32 %v6875_v42, %v6710_v23  ;;  %v5286_v27 = vunpack.c.l.bf16 %v13121_v46  ;;  %v14207_v18 = vunpack.c.h.bf16 %v13121_v46  ;;  %v5287_v21 = vunpack.c.l.bf16 %v13127_v36  ;;  %v4837_v23 = vpop.f32.mrb[29].mxu1 }
 0x8c8   : > { %v14206_v29 = vunpack.c.h.bf16 %v13127_v36  ;;  %v6064_v0 = vadd.f32 %v6063_v15, %v13060_v48  ;;  %v6075_v53 = vadd.f32 %v6074_v37, %v13024_v38  ;;  %v9945_v1 = vpop.eup %9944  ;;  %v13139_v6 = vmul.f32 %v14355_v54, %v5284_v40  ;;  %v4839_v15 = vpop.f32.mrb[30].mxu1 }
 0x8c9   : > { %v6711_v34 = vsel %vm6619_vm8, %v5286_v27, -1e+30  ;;  %v6713_v12 = vsel %vm6620_vm10, %v14207_v18, -1e+30  ;;  %v14204_v49 = vunpack.c.l.bf16 %v13132_v57  ;;  %v13151_v48 = vmul.f32 %v14355_v54, %v5285_v25 }
 0x8ca   : > { %v6864_v38 = vmax.f32 %v6863_v56, %v6711_v34  ;;  %v6712_v40 = vsel %vm6619_vm8, %v5287_v21, -1e+30  ;;  %v6714_v37 = vsel %vm6620_vm10, %v14206_v29, -1e+30  ;;  %v13165_v25 = vpack.c.bf16 %v9945_v1, %v9941_v32  ;;  %v4841_v32 = vpop.f32.mrb[31].mxu1  ;;  %v9492_v1 = vld [vmem:[#allocation8 + $0x48] sm:$0xff]  }
 0x8cb   : > { %v6877_v45 = vmax.f32 %v6876_v63, %v6712_v40  ;;  %v6715_v7 = vsel %vm6621_vm11, %v14204_v49, -1e+30  ;;  %v6065_v22 = vadd.f32 %v6064_v0, %v13081_v20  ;;  %v6076_v31 = vadd.f32 %v6075_v53, %v13052_v51  ;;  %v9493_v49 = vld [vmem:[#allocation8 + $0x8] sm:$0xff]   ;;  %8401 = vmatprep.subr.bf16.mxu0 %v9492_v1 }
 0x8cc   : > { %v6865_v42 = vmax.f32 %v6864_v38, %v6713_v12  ;;  %v6841_v56 = vmax.f32 %v12975_v11, %v6701_v44  ;;  %v6854_v3 = vmax.f32 %v12985_v13, %v6702_v14  ;;  %v14205_v63 = vunpack.c.l.bf16 %v13165_v25  ;;  %8402 = vmatpush3.bf16.msra.mxu0 %v9493_v49 }
 0x8cd   : > { %v6878_v54 = vmax.f32 %v6877_v45, %v6714_v37  ;;  %v6066_v34 = vrot.slane %v6065_v22, 4  ;;  %v8718_v40 = vadd.f32 %v13054_v62, %v12544_v35  ;;  %v6077_v0 = vadd.f32 %v6076_v31, %v13067_v58  ;;  %v14356_v58 = vld [vmem:[#allocation60_spill] sm:$0xff] }
 0x8ce   : > { %v13174_v20 = vmax.f32 %v6865_v42, %v6715_v7  ;;  %v6842_v51 = vrot.slane %v6841_v56, 4  ;;  %v6855_v53 = vrot.slane %v6854_v3, 4  ;;  %v6716_v11 = vsel %vm6621_vm11, %v14205_v63, -1e+30  ;;  %v4845_v42 = vpop.f32.mrb[32].mxu1 }
 0x8cf   : > { %v6067_v13 = vadd.f32 %v6066_v34, %v6065_v22  ;;  %9946 = vtanh.f32 %v8718_v40  ;;  %v8719_v44 = vadd.f32 %v13062_v50, %v12549_v39  ;;  %v13183_v62 = vmax.f32 %v6878_v54, %v6716_v11 }
 0x8d0   : > { %v6078_v14 = vadd.f32 %v6077_v0, %v13084_v17  ;;  %v6843_v12 = vmax.f32 %v6841_v56, %v6842_v51  ;;  %v6856_v38 = vmax.f32 %v6854_v3, %v6855_v53  ;;  %vm7025_vm12 = vcmp.eq.s32.totalorder %v14356_v58, 1 }
 0x8d1   : > { %v6068_v37 = vrot.slane %v6067_v13, 2  ;;  %9948 = vtanh.f32 %v8719_v44  ;;  %v8720_v28 = vadd.f32 %v13069_v16, %v12544_v35  ;;  %v8721_v45 = vadd.f32 %v13077_v30, %v12549_v39  ;;  %v4847_v16 = vpop.f32.mrb[33].mxu1  ;;  %v14357_v30 = vld [vmem:[#allocation19_spill] sm:$0xff]  ;;  %v6228_v44 = vpop.permute.xlu0 %6227 }
 0x8d2   : > { %vm7177_vm13 = vcmask 1042434   ;;  %v6079_v50 = vrot.slane %v6078_v14, 4  ;;  %v6844_v7 = vrot.slane %v6843_v12, 2  ;;  %v6857_v22 = vrot.slane %v6856_v38, 2  ;;  %v4849_v40 = vpop.f32.mrb[34].mxu1 }
 0x8d3   : > { %v8722_v17 = vadd.f32 %v13103_v60, %v12544_v35  ;;  %v6069_v31 = vadd.f32 %v6068_v37, %v6067_v13  ;;  %9950 = vtanh.f32 %v8720_v28  ;;  %v8723_v49 = vadd.f32 %v13108_v55, %v12549_v39  ;;  %v4851_v0 = vpop.f32.mrb[35].mxu1 }
 0x8d4   : > { %v8724_v56 = vadd.f32 %v13115_v59, %v12544_v35  ;;  %v13200_v3 = vmul.f32 %v14357_v30, %v5286_v27  ;;  %v6080_v54 = vadd.f32 %v6079_v50, %v6078_v14  ;;  %v6845_v34 = vmax.f32 %v6843_v12, %v6844_v7  ;;  %v14360_v50 = vld [vmem:[#allocation23_spill] sm:$0xff] }
 0x8d5   : > { %9952 = vtanh.f32 %v8721_v45  ;;  %v6070_v60 = vrot.slane %v6069_v31, 1  ;;  %v8725_v1 = vadd.f32 %v13123_v4, %v12549_v39  ;;  %v8726_v55 = vadd.f32 %v4835_v19, %v12544_v35  ;;  %v14359_v45 = vld [vmem:[#allocation22_spill] sm:$0xff] }
 0x8d6   : > { %9954 = vtanh.f32 %v8722_v17  ;;  %v6081_v51 = vrot.slane %v6080_v54, 2  ;;  %v6846_v59 = vrot.slane %v6845_v34, 1  ;;  %v13205_v53 = vmax.f32 %v6856_v38, %v6857_v22  ;;  %v13216_v22 = vpop.f32.mrb[36].mxu1 }
 0x8d7   : > { %9956 = vtanh.f32 %v8723_v49  ;;  %v6071_v11 = vadd.f32 %v6070_v60, %v6069_v31  ;;  %v8727_v27 = vadd.f32 %v4837_v23, %v12549_v39  ;;  %v8728_v13 = vadd.f32 %v4839_v15, %v12544_v35 }
 0x8d8   : > { %14358 = vst [vmem:[#allocation83_spill] sm:$0xff] %v13205_v53  ;;  %9958 = vtanh.f32 %v8724_v56  ;;  %v6082_v14 = vadd.f32 %v6081_v51, %v6080_v54  ;;  %v6847_v12 = vmax.f32 %v6845_v34, %v6846_v59  ;;  %v8729_v4 = vadd.f32 %v4841_v32, %v12549_v39  ;;  %v13218_v56 = vpop.f32.mrb[37].mxu1 }
 0x8d9   : > { %9960 = vtanh.f32 %v8725_v1  ;;  %v9947_v37 = vpop.eup %9946  ;;  %v6259_v19 = vmul.f32 %v6228_v44, %v6071_v11  ;;  %v7051_v28 = vpack.c.bf16 %v6071_v11, %v6071_v11  ;;  %v8730_v38 = vadd.f32 %v4845_v42, %v12544_v35  ;;  %v13222_v60 = vpop.f32.mrb[38].mxu1 }
 0x8da   : > { %9962 = vtanh.f32 %v8726_v55  ;;  %vm6624_vm14 = vcmp.eq.s32.totalorder %v14359_v45, 1  ;;  %vm6623_vm15 = vcmp.eq.s32.totalorder %v14360_v50, 1  ;;  %v6083_v7 = vrot.slane %v6082_v14, 1  ;;  %v13228_v59 = vpop.f32.mrb[39].mxu1 }
 0x8db   : > { %v7035_v23 = vsel %vm7025_vm12, %v6847_v12, 0.0  ;;  %9964 = vtanh.f32 %v8727_v27  ;;  %v8731_v15 = vadd.f32 %v4847_v16, %v12549_v39  ;;  %v9949_v32 = vpop.eup %9948  ;;  %v7356_v31 = vunpack.c.l.b16 %v7051_v28 }
 0x8dc   : > { %v7099_v17 = vpack.c.bf16 %v7035_v23, %v7035_v23  ;;  %v7526_v49 = vpack.c.bf16 %v6259_v19, %v6259_v19  ;;  %9966 = vtanh.f32 %v8728_v13  ;;  %v6084_v42 = vadd.f32 %v6083_v7, %v6082_v14  ;;  %v14361_v19 = vld [vmem:[#allocation28_spill] sm:$0xff] }
 0x8dd   : > { %9968 = vtanh.f32 %v8729_v4  ;;  %v8732_v54 = vadd.f32 %v4849_v40, %v12544_v35  ;;  %v8733_v34 = vadd.f32 %v4851_v0, %v12549_v39  ;;  %v9951_v1 = vpop.eup %9950  ;;  %v13226_v16 = vsel %vm7177_vm13, %v7356_v31, %v13005_v52 }
 0x8de   : > { %v7163_v55 = vunpack.c.l.b16 %v7099_v17  ;;  %v7590_v51 = vunpack.c.l.b16 %v7526_v49  ;;  %9970 = vtanh.f32 %v8730_v38  ;;  %v6260_v27 = vmul.f32 %v6228_v44, %v6084_v42  ;;  %v14362_v17 = vld [vmem:[#allocation35_spill] sm:$0xff]  ;;  %v14363_v49 = vld [vmem:[#allocation76_spill] sm:$0xff] }
 0x8df   : > { %v9953_v11 = vpop.eup %9952  ;;  %v7052_v13 = vpack.c.bf16 %v6084_v42, %v6084_v42  ;;  %v5134_v14 = vpack.c.bf16 %v9951_v1, %v9947_v37  ;;  %9972 = vtanh.f32 %v8731_v15  ;;  %vm6625_vm0 = vcmp.eq.s32.totalorder %v14361_v19, 1 }
 0x8e0   : > { %v9955_v40 = vpop.eup %9954  ;;  %v13232_v0 = vsel %vm7177_vm13, %v7163_v55, %v13013_v43  ;;  %v13236_v12 = vsel %vm7177_vm13, %v7590_v51, %v13017_v10  ;;  %v5135_v52 = vpack.c.bf16 %v9953_v11, %v9949_v32  ;;  %9974 = vtanh.f32 %v8732_v54  ;;  %v14364_v54 = vld [vmem:[#allocation72_spill] sm:$0xff]  ;;  %v13251_v55 = vpop.f32.mrb[40].mxu1 }
 0x8e1   : > { %v9957_v4 = vpop.eup %9956  ;;  %v7357_v28 = vunpack.c.l.b16 %v7052_v13  ;;  %v7527_v38 = vpack.c.bf16 %v6260_v27, %v6260_v27  ;;  %v5294_v44 = vunpack.c.l.bf16 %v5134_v14  ;;  %v5296_v7 = vunpack.c.h.bf16 %v5134_v14  ;;  %v13260_v27 = vpop.f32.mrb[41].mxu1 }
 0x8e2   : > { %v9959_v37 = vpop.eup %9958  ;;  %v13242_v23 = vmul.f32 %v14357_v30, %v5287_v21  ;;  %v5295_v43 = vunpack.c.l.bf16 %v5135_v52  ;;  %v5297_v15 = vunpack.c.h.bf16 %v5135_v52  ;;  %9976 = vtanh.f32 %v8733_v34  ;;  %v14365_v21 = vld [vmem:[#allocation41_spill] sm:$0xff] }
 0x8e3   : > { %v9961_v10 = vpop.eup %9960  ;;  %vm6626_vm1 = vcmp.eq.s32.totalorder %v14362_v17, 1  ;;  %v13247_v32 = vsel %vm7177_vm13, %v7357_v28, %v13031_v41  ;;  %v7591_v31 = vunpack.c.l.b16 %v7527_v38  ;;  %v5943_v42 = vmul.f32 %v14363_v49, %v5294_v44 }
 0x8e4   : > { %v5945_v1 = vmul.f32 %v14364_v54, %v5296_v7  ;;  %v9963_v51 = vpop.eup %9962  ;;  %vm6627_vm3 = vcmp.eq.s32.totalorder %v14365_v21, 1  ;;  %v6719_v30 = vsel %vm6623_vm15, %v5294_v44, -1e+30  ;;  %v6721_v34 = vsel %vm6624_vm14, %v5296_v7, -1e+30  ;;  %v13268_v44 = vpop.f32.mrb[42].mxu1 }
 0x8e5   : > { %v5944_v11 = vmul.f32 %v14363_v49, %v5295_v43  ;;  %v5946_v41 = vmul.f32 %v14364_v54, %v5297_v15  ;;  %v9965_v13 = vpop.eup %9964  ;;  %v13265_v52 = vsel %vm7177_vm13, %v7591_v31, %v13040_v8  ;;  %14367 = vst [vmem:[#allocation21_spill] sm:$0xff] %v13268_v44  ;;  %v14368_v7 = vld [vmem:[#allocation46_spill] sm:$0xff]  ;;  %v6720_v49 = vsel %vm6623_vm15, %v5295_v43, -1e+30  ;;  %v13275_v18 = vpop.f32.mrb[43].mxu1 }
 0x8e6   : > { %14366 = vst [vmem:[#allocation20_spill] sm:$0xff] %v13265_v52  ;;  %v6111_v28 = vadd.f32 %v5945_v1, %v5943_v42  ;;  %v9967_v63 = vpop.eup %9966  ;;  %vm6628_vm4 = vcmp.eq.s32.totalorder %v14368_v7, 1  ;;  %v6722_v54 = vsel %vm6624_vm14, %v5297_v15, -1e+30  ;;  %v5136_v29 = vpack.c.bf16 %v9959_v37, %v9955_v40  ;;  %14369 = vst [vmem:[#allocation49_spill] sm:$0xff] %v13275_v18  ;;  %v14371_v40 = vld [vmem:[#allocation56_spill] sm:$0xff] }
 0x8e7   : > { %v5137_v14 = vpack.c.bf16 %v9961_v10, %v9957_v4  ;;  %v9969_v8 = vpop.eup %9968  ;;  %v6887_v31 = vmax.f32 %v6719_v30, %v6721_v34  ;;  %v6124_v42 = vadd.f32 %v5946_v41, %v5944_v11  ;;  %v13277_v1 = vpack.c.bf16 %v9967_v63, %v9963_v51  ;;  %v14373_v30 = vld [vmem:[#allocation82_spill] sm:$0xff]  ;;  %v13303_v63 = vpop.f32.mrb[44].mxu1 }
 0x8e8   : > { %v14370_v38 = vunpack.c.h.bf16 %v13121_v46  ;;  %v9971_v53 = vpop.eup %9970  ;;  %v5298_v50 = vunpack.c.l.bf16 %v5136_v29  ;;  %v5300_v43 = vunpack.c.h.bf16 %v5136_v29  ;;  %vm6629_vm5 = vcmp.eq.s32.totalorder %v14371_v40, 1  ;;  %v14372_v46 = vld [vmem:[#allocation58_spill] sm:$0xff] }
 0x8e9   : > { %v5299_v44 = vunpack.c.l.bf16 %v5137_v14  ;;  %v5301_v45 = vunpack.c.h.bf16 %v5137_v14  ;;  %v9973_v15 = vpop.eup %9972  ;;  %v6900_v4 = vmax.f32 %v6720_v49, %v6722_v54  ;;  %v5302_v37 = vunpack.c.l.bf16 %v13277_v1 }
 0x8ea   : > { %v13282_v58 = vmul.f32 %v12607_v33, %v14370_v38  ;;  %v13286_v10 = vpack.c.bf16 %v9969_v8, %v9965_v13  ;;  %v9975_v51 = vpop.eup %9974  ;;  %vm6622_vm6 = vcmp.eq.s32.totalorder %v14372_v46, 1  ;;  %v5947_v34 = vmul.f32 %v14373_v30, %v5298_v50  ;;  %v14375_v38 = vld [vmem:[#allocation90_spill] sm:$0xff] }
 0x8eb   : > { %v6723_v29 = vsel %vm6625_vm0, %v5298_v50, -1e+30  ;;  %v5304_v11 = vunpack.c.h.bf16 %v13277_v1  ;;  %v14374_v41 = vunpack.c.h.bf16 %v13127_v36  ;;  %v13298_v49 = vmul.f32 %v14375_v38, %v5300_v43 }
 0x8ec   : > { %v6888_v13 = vmax.f32 %v6887_v31, %v6723_v29  ;;  %v5948_v54 = vmul.f32 %v14373_v30, %v5299_v44  ;;  %v6724_v8 = vsel %vm6625_vm0, %v5299_v44, -1e+30  ;;  %v9977_v18 = vpop.eup %9976  ;;  %v13305_v52 = vadd.f32 %v6111_v28, %v5947_v34 }
 0x8ed   : > { %v5938_v14 = vmul.f32 %v12607_v33, %v14374_v41  ;;  %v6725_v50 = vsel %vm6626_vm1, %v5300_v43, -1e+30  ;;  %v13310_v36 = vmul.f32 %v14375_v38, %v5301_v45  ;;  %v6901_v33 = vmax.f32 %v6900_v4, %v6724_v8  ;;  %v13312_v41 = vpop.f32.mrb[45].mxu1 }
 0x8ee   : > { %v6889_v31 = vmax.f32 %v6888_v13, %v6725_v50  ;;  %v13314_v29 = vadd.f32 %v6124_v42, %v5948_v54  ;;  %v6726_v19 = vsel %vm6626_vm1, %v5301_v45, -1e+30  ;;  %v6727_v44 = vsel %vm6627_vm3, %v5302_v37, -1e+30  ;;  %v13320_v28 = vpop.f32.mrb[46].mxu1  ;;  %v14377_v13 = vld [vmem:[#allocation95_spill] sm:$0xff] }
 0x8ef   : > { %v6902_v30 = vmax.f32 %v6901_v33, %v6726_v19  ;;  %v5303_v43 = vunpack.c.l.bf16 %v13286_v10  ;;  %v5305_v34 = vunpack.c.h.bf16 %v13286_v10  ;;  %v13324_v38 = vpack.c.bf16 %v9975_v51, %v9971_v53  ;;  %v13326_v4 = vpop.f32.mrb[47].mxu1  ;;  %v9494_v33 = vld [vmem:[#allocation8 + $0x50] sm:$0xff]  }
 0x8f0   : > { %14376 = vst [vmem:[#allocation25_spill] sm:$0xff] %v13326_v4  ;;  %v13329_v42 = vmul.f32 %v14377_v13, %v5302_v37  ;;  %v6729_v17 = vsel %vm6628_vm4, %v5304_v11, -1e+30  ;;  %v6890_v45 = vmax.f32 %v6889_v31, %v6727_v44  ;;  %v13335_v54 = vpack.c.bf16 %v9977_v18, %v9973_v15  ;;  %v9495_v19 = vld [vmem:[#allocation8 + $0x10] sm:$0xff]   ;;  %8403 = vmatprep.subr.bf16.mxu0 %v9494_v33 }
 0x8f1   : > { %v6728_v8 = vsel %vm6627_vm3, %v5303_v43, -1e+30  ;;  %v5306_v10 = vunpack.c.l.bf16 %v13324_v38  ;;  %v14378_v53 = vunpack.c.l.bf16 %v13132_v57  ;;  %v14379_v37 = vunpack.c.l.bf16 %v13165_v25  ;;  %8404 = vmatpush3.bf16.msra.mxu0 %v9495_v19 }
 0x8f2   : > { %v6891_v4 = vmax.f32 %v6890_v45, %v6729_v17  ;;  %v13347_v31 = vmul.f32 %v14377_v13, %v5303_v43  ;;  %v6903_v18 = vmax.f32 %v6902_v30, %v6728_v8  ;;  %v5307_v21 = vunpack.c.l.bf16 %v13335_v54  ;;  %v13364_v13 = vpop.f32.mrb[48].mxu1  ;;  %v14381_v8 = vld [vmem:[#allocation53_spill] sm:$0xff] }
 0x8f3   : > { %v5939_v51 = vmul.f32 %v12730_v5, %v14378_v53  ;;  %v5940_v50 = vmul.f32 %v12730_v5, %v14379_v37  ;;  %v6730_v15 = vsel %vm6628_vm4, %v5305_v34, -1e+30  ;;  %v6731_v44 = vsel %vm6629_vm5, %v5306_v10, -1e+30 }
 0x8f4   : > { %v6087_v53 = vadd.f32 %v13117_v26, %v13139_v6  ;;  %v6100_v5 = vadd.f32 %v13125_v24, %v13151_v48  ;;  %v6904_v17 = vmax.f32 %v6903_v18, %v6730_v15  ;;  %v6892_v45 = vmax.f32 %v6891_v4, %v6731_v44  ;;  %v13374_v4 = vpop.f32.mrb[49].mxu1 }
 0x8f5   : > { %v6732_v30 = vsel %vm6629_vm5, %v5307_v21, -1e+30  ;;  %v14380_v43 = vunpack.c.h.bf16 %v13132_v57  ;;  %vm6630_vm7 = vcmp.eq.s32.totalorder %v14381_v8, 1  ;;  %v14382_v6 = vunpack.c.h.bf16 %v13165_v25  ;;  %v13381_v18 = vpop.f32.mrb[50].mxu1 }
 0x8f6   : > { %v6088_v26 = vadd.f32 %v6087_v53, %v13200_v3  ;;  %v6101_v24 = vadd.f32 %v6100_v5, %v13242_v23  ;;  %v6905_v37 = vmax.f32 %v6904_v17, %v6732_v30  ;;  %v8734_v19 = vadd.f32 %v13216_v22, %v12544_v35  ;;  %v13387_v53 = vpop.f32.mrb[51].mxu1 }
 0x8f7   : > { %v6717_v7 = vsel %vm6622_vm6, %v14380_v43, -1e+30  ;;  %v6718_v48 = vsel %vm6622_vm6, %v14382_v6, -1e+30  ;;  %v8735_v3 = vadd.f32 %v13218_v56, %v12549_v39  ;;  %v14383_v23 = vmov %v14380_v43 }
 0x8f8   : > { %v6867_v40 = vmax.f32 %v13174_v20, %v6717_v7  ;;  %v6880_v33 = vmax.f32 %v13183_v62, %v6718_v48  ;;  %v5941_v46 = vmul.f32 %v12822_v9, %v14383_v23  ;;  %v6089_v15 = vadd.f32 %v6088_v26, %v13282_v58  ;;  %v14385_v7 = vld [vmem:[#allocation67_spill] sm:$0xff]  ;;  %v13404_v48 = vpop.f32.mrb[52].mxu1 }
 0x8f9   : > { %v6102_v20 = vadd.f32 %v6101_v24, %v5938_v14  ;;  %v14384_v62 = vmov %v14382_v6  ;;  %9978 = vtanh.f32 %v8734_v19  ;;  %v5308_v56 = vunpack.c.h.bf16 %v13324_v38 }
 0x8fa   : > { %v6868_v44 = vrot.slane %v6867_v40, 4  ;;  %v5942_v5 = vmul.f32 %v12822_v9, %v14384_v62  ;;  %v6881_v22 = vrot.slane %v6880_v33, 4  ;;  %v6090_v17 = vadd.f32 %v6089_v15, %v5939_v51 }
 0x8fb   : > { %v6103_v30 = vadd.f32 %v6102_v20, %v5940_v50  ;;  %v5309_v57 = vunpack.c.h.bf16 %v13335_v54  ;;  %vm7026_vm8 = vcmp.eq.s32.totalorder %v14385_v7, 1  ;;  %9980 = vtanh.f32 %v8735_v3 }
 0x8fc   : > { %v6869_v43 = vmax.f32 %v6867_v40, %v6868_v44  ;;  %v6882_v58 = vmax.f32 %v6880_v33, %v6881_v22  ;;  %v5953_v14 = vmul.f32 %v12644_v61, %v5304_v11  ;;  %v5954_v25 = vmul.f32 %v12644_v61, %v5305_v34  ;;  %v13408_v34 = vpop.f32.mrb[53].mxu1 }
 0x8fd   : > { %v6091_v9 = vadd.f32 %v6090_v17, %v5941_v46  ;;  %v6104_v26 = vadd.f32 %v6103_v30, %v5942_v5  ;;  %v5955_v38 = vmul.f32 %v12789_v47, %v5306_v10  ;;  %v5956_v50 = vmul.f32 %v12789_v47, %v5307_v21 }
 0x8fe   : > { %v6870_v24 = vrot.slane %v6869_v43, 2  ;;  %v6883_v51 = vrot.slane %v6882_v58, 2  ;;  %v5957_v54 = vmul.f32 %v12691_v2, %v5308_v56  ;;  %v6113_v6 = vadd.f32 %v13305_v52, %v13298_v49  ;;  %v13416_v49 = vpop.f32.mrb[54].mxu1 }
 0x8ff   : > { %vm7179_vm10 = vcmask 1043459   ;;  %v6092_v1 = vrot.slane %v6091_v9, 4  ;;  %v6105_v11 = vrot.slane %v6104_v26, 4  ;;  %v6126_v61 = vadd.f32 %v13314_v29, %v13310_v36  ;;  %v13419_v36 = vpop.f32.mrb[55].mxu1 }
 0x900   : > { %v6871_v40 = vmax.f32 %v6869_v43, %v6870_v24  ;;  %v5958_v10 = vmul.f32 %v12691_v2, %v5309_v57  ;;  %v6114_v47 = vadd.f32 %v6113_v6, %v13329_v42  ;;  %v6733_v21 = vsel %vm6630_vm7, %v5308_v56, -1e+30  ;;  %v14386_v24 = vld [vmem:[#allocation62_spill] sm:$0xff] }
 0x901   : > { %v6734_v52 = vsel %vm6630_vm7, %v5309_v57, -1e+30  ;;  %v6093_v33 = vadd.f32 %v6092_v1, %v6091_v9  ;;  %v6106_v19 = vadd.f32 %v6105_v11, %v6104_v26  ;;  %v6127_v23 = vadd.f32 %v6126_v61, %v13347_v31  ;;  %v9497_v26 = vld [vmem:[#allocation8 + $0x18] sm:$0xff]  }
 0x902   : > { %v6872_v3 = vrot.slane %v6871_v40, 1  ;;  %v6115_v29 = vadd.f32 %v6114_v47, %v5953_v14  ;;  %v6893_v46 = vmax.f32 %v6892_v45, %v6733_v21  ;;  %v6906_v2 = vmax.f32 %v6905_v37, %v6734_v52  ;;  %v9496_v37 = vld [vmem:[#allocation8 + $0x58] sm:$0xff]  }
 0x903   : > { %v8736_v42 = vadd.f32 %v13222_v60, %v12544_v35  ;;  %v6094_v15 = vrot.slane %v6093_v33, 2  ;;  %v6107_v20 = vrot.slane %v6106_v19, 2  ;;  %v6128_v8 = vadd.f32 %v6127_v23, %v5954_v25  ;;  %v13423_v62 = vpop.eup %9978  ;;  %v13431_v25 = vpop.f32.mrb[56].mxu1  ;;  %8405 = vmatprep.subr.bf16.mxu0 %v9496_v37  ;;  %v9498_v23 = vld [vmem:[#allocation8 + $0x60] sm:$0xff]  }
 0x904   : > { %v6873_v44 = vmax.f32 %v6871_v40, %v6872_v3  ;;  %v6116_v5 = vadd.f32 %v6115_v29, %v5955_v38  ;;  %v6894_v22 = vrot.slane %v6893_v46, 4  ;;  %v6907_v56 = vrot.slane %v6906_v2, 4  ;;  %8406 = vmatpush3.bf16.msra.mxu0 %v9497_v26 }
 0x905   : > { %9982 = vtanh.f32 %v8736_v42  ;;  %v6095_v17 = vadd.f32 %v6094_v15, %v6093_v33  ;;  %v6108_v31 = vadd.f32 %v6107_v20, %v6106_v19  ;;  %v6129_v45 = vadd.f32 %v6128_v8, %v5956_v50  ;;  %v13427_v43 = vpop.eup %9980  ;;  %v13436_v50 = vpop.f32.mrb[57].mxu1  ;;  %8407 = vmatprep.subr.bf16.mxu0 %v9498_v23 }
 0x906   : > { %v7037_v30 = vsel %vm7026_vm8, %v6873_v44, 0.0  ;;  %v6117_v57 = vadd.f32 %v6116_v5, %v5957_v54  ;;  %v6895_v14 = vmax.f32 %v6893_v46, %v6894_v22  ;;  %v13429_v9 = vmax.f32 %v6906_v2, %v6907_v56  ;;  %v13440_v21 = vpop.f32.mrb[58].mxu1  ;;  %v9499_v46 = vld [vmem:[#allocation8 + $0x20] sm:$0xff]   ;;  %v14387_v44 = vld [vmem:[#allocation24_spill] sm:$0xff] }
 0x907   : > { %v7101_v60 = vpack.c.bf16 %v7037_v30, %v7037_v30  ;;  %vm7027_vm11 = vcmp.eq.s32.totalorder %v14386_v24, 1  ;;  %v6096_v38 = vrot.slane %v6095_v17, 1  ;;  %v6109_v6 = vrot.slane %v6108_v31, 1 }
 0x908   : > { %v6130_v1 = vadd.f32 %v6129_v45, %v5958_v10  ;;  %v8737_v11 = vadd.f32 %v13228_v59, %v12549_v39  ;;  %v13438_v40 = vmax.f32 %v6882_v58, %v6883_v51  ;;  %v6118_v61 = vrot.slane %v6117_v57, 4  ;;  %v13443_v10 = vpop.f32.mrb[59].mxu1  ;;  %v6233_v59 = vpop.permute.xlu1 %6232  ;;  %8408 = vmatpush3.bf16.msra.mxu0 %v9499_v46  ;;  %v9500_v45 = vld [vmem:[#allocation8 + $0x68] sm:$0xff]  }
 0x909   : > { %v7165_v54 = vunpack.c.l.b16 %v7101_v60  ;;  %v6896_v47 = vrot.slane %v6895_v14, 2  ;;  %v6097_v52 = vadd.f32 %v6096_v38, %v6095_v17  ;;  %v6110_v33 = vadd.f32 %v6109_v6, %v6108_v31  ;;  %v14388_v60 = vld [vmem:[#allocation26_spill] sm:$0xff]  ;;  %v13455_v6 = vpop.f32.mrb[60].mxu1  ;;  %8409 = vmatprep.subr.bf16.mxu0 %v9500_v45 }
 0x90a   : > { %v6131_v19 = vrot.slane %v6130_v1, 4  ;;  %vm7181_vm14 = vcmask 1044484   ;;  %v6119_v58 = vadd.f32 %v6118_v61, %v6117_v57  ;;  %9984 = vtanh.f32 %v8737_v11  ;;  %v9502_v11 = vld [vmem:[#allocation8 + $0x70] sm:$0xff]  }
 0x90b   : > { %v13447_v29 = vsel %vm7179_vm10, %v7165_v54, %v13232_v0  ;;  %v6897_v51 = vmax.f32 %v6895_v14, %v6896_v47  ;;  %v6261_v2 = vmul.f32 %v6233_v59, %v6097_v52  ;;  %v6262_v42 = vmul.f32 %v6233_v59, %v6110_v33 }
 0x90c   : > { %v7053_v15 = vpack.c.bf16 %v6097_v52, %v6097_v52  ;;  %v7054_v20 = vpack.c.bf16 %v6110_v33, %v6110_v33  ;;  %vm6631_vm15 = vcmp.eq.s32.totalorder %v14387_v44, 1  ;;  %v6120_v8 = vrot.slane %v6119_v58, 2  ;;  %v13463_v52 = vpop.f32.mrb[61].mxu1  ;;  %v14399_v44 = vld [vmem:[#allocation25_spill] sm:$0xff] }
 0x90d   : > { %v6132_v5 = vadd.f32 %v6131_v19, %v6130_v1  ;;  %v6898_v22 = vrot.slane %v6897_v51, 1  ;;  %v8738_v56 = vadd.f32 %v13251_v55, %v12544_v35  ;;  %v7528_v31 = vpack.c.bf16 %v6261_v2, %v6261_v2  ;;  %v9501_v1 = vld [vmem:[#allocation8 + $0x28] sm:$0xff]   ;;  %v13468_v59 = vpop.f32.mrb[62].mxu1 }
 0x90e   : > { %v7358_v0 = vunpack.c.l.b16 %v7053_v15  ;;  %v7359_v17 = vunpack.c.l.b16 %v7054_v20  ;;  %v7529_v30 = vpack.c.bf16 %v6262_v42, %v6262_v42  ;;  %vm6632_vm0 = vcmp.eq.s32.totalorder %v14388_v60, 1  ;;  %8410 = vmatpush3.bf16.msra.mxu0 %v9501_v1  ;;  %v13474_v2 = vpop.f32.mrb[63].mxu1  ;;  %v9504_v42 = vld [vmem:[#allocation8 + $0x78] sm:$0xff]  }
 0x90f   : > { %v9983_v37 = vpop.eup %9982  ;;  %v6121_v57 = vadd.f32 %v6120_v8, %v6119_v58  ;;  %v6133_v14 = vrot.slane %v6132_v5, 2  ;;  %v6899_v26 = vmax.f32 %v6897_v51, %v6898_v22  ;;  %v8739_v38 = vadd.f32 %v13260_v27, %v12549_v39  ;;  %v14389_v58 = vld [vmem:[#allocation20_spill] sm:$0xff]  ;;  %8411 = vmatprep.subr.bf16.mxu0 %v9502_v11 }
 0x910   : > { %v7370_v55 = vsel %vm7179_vm10, %v7358_v0, %v13226_v16  ;;  %v13461_v54 = vsel %vm7179_vm10, %v7359_v17, %v13247_v32  ;;  %v7592_v61 = vunpack.c.l.b16 %v7528_v31  ;;  %v7593_v47 = vunpack.c.l.b16 %v7529_v30  ;;  %v9503_v16 = vld [vmem:[#allocation8 + $0x30] sm:$0xff]   ;;  %v14390_v0 = vld [vmem:[#allocation21_spill] sm:$0xff]  ;;  %v14393_v11 = vld [vmem:[#allocation80_spill] sm:$0xff] }
 0x911   : > { %v6122_v33 = vrot.slane %v6121_v57, 1  ;;  %v6134_v19 = vadd.f32 %v6133_v14, %v6132_v5  ;;  %v7039_v27 = vsel %vm7027_vm11, %v6899_v26, 0.0  ;;  %v5142_v23 = vpack.c.bf16 %v9983_v37, %v13423_v62  ;;  %v6238_v5 = vpop.permute.xlu0 %6237  ;;  %v14392_v14 = vld [vmem:[#allocation73_spill] sm:$0xff] }
 0x912   : > { %v7604_v32 = vsel %vm7179_vm10, %v7592_v61, %v13236_v12  ;;  %v7611_v51 = vsel %vm7179_vm10, %v7593_v47, %v14389_v58  ;;  %v7103_v46 = vpack.c.bf16 %v7039_v27, %v7039_v27  ;;  %9986 = vtanh.f32 %v8738_v56  ;;  %v14391_v12 = vld [vmem:[#allocation49_spill] sm:$0xff]  ;;  %8412 = vmatpush3.bf16.msra.mxu0 %v9503_v16  ;;  %v13492_v58 = vpop.f32.mrb[64].mxu1 }
 0x913   : > { %v6123_v15 = vadd.f32 %v6122_v33, %v6121_v57  ;;  %v6135_v20 = vrot.slane %v6134_v19, 1  ;;  %v5310_v8 = vunpack.c.l.bf16 %v5142_v23  ;;  %v5312_v62 = vunpack.c.h.bf16 %v5142_v23  ;;  %v9505_v57 = vld [vmem:[#allocation8 + $0x38] sm:$0xff]   ;;  %8413 = vmatprep.subr.bf16.mxu0 %v9504_v42  ;;  %v9506_v33 = vld [vmem:[#allocation7 + $0x40] sm:$0xff]  }
 0x914   : > { %v7167_v22 = vunpack.c.l.b16 %v7103_v46  ;;  %9988 = vtanh.f32 %v8739_v38  ;;  %v8740_v17 = vadd.f32 %v14390_v0, %v12544_v35  ;;  %v8741_v31 = vadd.f32 %v14391_v12, %v12549_v39  ;;  %v9985_v30 = vpop.eup %9984 }
 0x915   : > { %v6136_v45 = vadd.f32 %v6135_v20, %v6134_v19  ;;  %v6263_v56 = vmul.f32 %v6238_v5, %v6123_v15  ;;  %v7055_v37 = vpack.c.bf16 %v6123_v15, %v6123_v15  ;;  %v5959_v26 = vmul.f32 %v14392_v14, %v5310_v8  ;;  %v4927_v20 = vpop.f32.mrb[65].mxu1 }
 0x916   : > { %v13483_v1 = vsel %vm7181_vm14, %v7167_v22, %v13447_v29  ;;  %v5961_v38 = vmul.f32 %v14393_v11, %v5312_v62  ;;  %v13488_v61 = vsel %vm6631_vm15, %v5310_v8, -1e+30  ;;  %v8742_v47 = vadd.f32 %v13303_v63, %v12544_v35  ;;  %v13504_v22 = vpop.f32.mrb[66].mxu1  ;;  %8414 = vmatpush3.bf16.msra.mxu0 %v9505_v57 }
 0x917   : > { %v6264_v19 = vmul.f32 %v6238_v5, %v6136_v45  ;;  %v7056_v27 = vpack.c.bf16 %v6136_v45, %v6136_v45  ;;  %v7360_v23 = vunpack.c.l.b16 %v7055_v37  ;;  %v7530_v16 = vpack.c.bf16 %v6263_v56, %v6263_v56  ;;  %v4931_v45 = vpop.f32.mrb[67].mxu1  ;;  %8421 = vmatprep.subr.bf16.mxu0 %v9506_v33 }
 0x918   : > { %v13494_v46 = vadd.f32 %v5961_v38, %v5959_v26  ;;  %v13498_v29 = vsel %vm6632_vm0, %v5312_v62, -1e+30  ;;  %v5143_v15 = vpack.c.bf16 %v9985_v30, %v13427_v43  ;;  %9990 = vtanh.f32 %v8740_v17 }
 0x919   : > { %v7361_v8 = vunpack.c.l.b16 %v7056_v27  ;;  %v13502_v63 = vsel %vm7181_vm14, %v7360_v23, %v7370_v55  ;;  %v7531_v42 = vpack.c.bf16 %v6264_v19, %v6264_v19  ;;  %v7594_v5 = vunpack.c.l.b16 %v7530_v16  ;;  %v4935_v19 = vpop.f32.mrb[68].mxu1  ;;  %v14400_v27 = vld [vmem:[#allocation36_spill] sm:$0xff] }
 0x91a   : > { %14394 = vst [vmem:[#allocation89_spill] sm:$0xff] %v13502_v63  ;;  %v5311_v0 = vunpack.c.l.bf16 %v5143_v15  ;;  %v5313_v12 = vunpack.c.h.bf16 %v5143_v15  ;;  %9992 = vtanh.f32 %v8741_v31  ;;  %v8743_v62 = vadd.f32 %v13312_v41, %v12549_v39  ;;  %v4937_v16 = vpop.f32.mrb[69].mxu1 }
 0x91b   : > { %v13510_v43 = vsel %vm7181_vm14, %v7361_v8, %v13461_v54  ;;  %v7595_v17 = vunpack.c.l.b16 %v7531_v42  ;;  %v13513_v55 = vsel %vm7181_vm14, %v7594_v5, %v7604_v32  ;;  %v6913_v30 = vmax.f32 %v13488_v61, %v13498_v29  ;;  %v14405_v61 = vld [vmem:[#allocation51_spill] sm:$0xff] }
 0x91c   : > { %14395 = vst [vmem:[#allocation30_spill] sm:$0xff] %v13510_v43  ;;  %14396 = vst [vmem:[#allocation94_spill] sm:$0xff] %v13513_v55  ;;  %v9987_v56 = vpop.eup %9986  ;;  %v5960_v37 = vmul.f32 %v14392_v14, %v5311_v0  ;;  %v5962_v31 = vmul.f32 %v14393_v11, %v5313_v12  ;;  %v13521_v41 = vsel %vm6631_vm15, %v5311_v0, -1e+30  ;;  %v13525_v54 = vsel %vm6632_vm0, %v5313_v12, -1e+30 }
 0x91d   : > { %v13528_v26 = vsel %vm7181_vm14, %v7595_v17, %v7611_v51  ;;  %v6926_v32 = vmax.f32 %v13521_v41, %v13525_v54  ;;  %9994 = vtanh.f32 %v8742_v47  ;;  %v8744_v14 = vadd.f32 %v13320_v28, %v12544_v35  ;;  %v14398_v11 = vld [vmem:[#allocation32_spill] sm:$0xff]  ;;  %v14401_v17 = vld [vmem:[#allocation42_spill] sm:$0xff] }
 0x91e   : > { %14397 = vst [vmem:[#allocation69_spill] sm:$0xff] %v13528_v26  ;;  %v9989_v57 = vpop.eup %9988  ;;  %vm6633_vm1 = vcmp.eq.s32.totalorder %v14398_v11, 1  ;;  %9996 = vtanh.f32 %v8743_v62  ;;  %v8745_v38 = vadd.f32 %v14399_v44, %v12549_v39  ;;  %v8746_v60 = vadd.f32 %v13364_v13, %v12544_v35 }
 0x91f   : > { %v8747_v51 = vadd.f32 %v13374_v4, %v12549_v39  ;;  %v13541_v33 = vadd.f32 %v5962_v31, %v5960_v37  ;;  %9998 = vtanh.f32 %v8744_v14  ;;  %v8748_v47 = vadd.f32 %v13381_v18, %v12544_v35  ;;  %v14403_v37 = vld [vmem:[#allocation86_spill] sm:$0xff]  ;;  %v14404_v14 = vld [vmem:[#allocation87_spill] sm:$0xff] }
 0x920   : > { %v8749_v28 = vadd.f32 %v13387_v53, %v12549_v39  ;;  %vm6634_vm3 = vcmp.eq.s32.totalorder %v14400_v27, 1  ;;  %10000 = vtanh.f32 %v8745_v38  ;;  %v8750_v23 = vadd.f32 %v13404_v48, %v12544_v35  ;;  %v4939_v48 = vpop.f32.mrb[70].mxu1 }
 0x921   : > { %v8751_v13 = vadd.f32 %v13408_v34, %v12549_v39  ;;  %v8752_v4 = vadd.f32 %v13416_v49, %v12544_v35  ;;  %10002 = vtanh.f32 %v8746_v60  ;;  %v8753_v18 = vadd.f32 %v13419_v36, %v12549_v39 }
 0x922   : > { %v13558_v53 = vadd.f32 %v13431_v25, %v12544_v35  ;;  %v13562_v15 = vadd.f32 %v13436_v50, %v12549_v39  ;;  %v9991_v8 = vpop.eup %9990  ;;  %10004 = vtanh.f32 %v8747_v51  ;;  %v13566_v34 = vadd.f32 %v13440_v21, %v12544_v35  ;;  %v4941_v25 = vpop.f32.mrb[71].mxu1 }
 0x923   : > { %v13570_v49 = vadd.f32 %v13443_v10, %v12549_v39  ;;  %v13574_v36 = vadd.f32 %v13455_v6, %v12544_v35  ;;  %v5144_v42 = vpack.c.bf16 %v9991_v8, %v9987_v56  ;;  %10006 = vtanh.f32 %v8748_v47  ;;  %v13614_v60 = vpop.f32.mrb[72].mxu1 }
 0x924   : > { %v13578_v50 = vadd.f32 %v13463_v52, %v12549_v39  ;;  %v13582_v5 = vadd.f32 %v13468_v59, %v12544_v35  ;;  %v9993_v21 = vpop.eup %9992  ;;  %10008 = vtanh.f32 %v8749_v28  ;;  %v13586_v10 = vadd.f32 %v13474_v2, %v12549_v39  ;;  %v14402_v59 = vld [vmem:[#allocation48_spill] sm:$0xff]  ;;  %v13619_v28 = vpop.f32.mrb[73].mxu1 }
 0x925   : > { %v13590_v6 = vadd.f32 %v13492_v58, %v12544_v35  ;;  %v13593_v0 = vadd.f32 %v4927_v20, %v12549_v39  ;;  %v5314_v12 = vunpack.c.l.bf16 %v5144_v42  ;;  %v5316_v52 = vunpack.c.h.bf16 %v5144_v42  ;;  %v13627_v8 = vpop.f32.mrb[74].mxu1 }
 0x926   : > { %v5145_v62 = vpack.c.bf16 %v9993_v21, %v9989_v57  ;;  %10010 = vtanh.f32 %v8750_v23  ;;  %vm6635_vm4 = vcmp.eq.s32.totalorder %v14401_v17, 1  ;;  %vm6636_vm5 = vcmp.eq.s32.totalorder %v14402_v59, 1  ;;  %v13636_v21 = vpop.f32.mrb[75].mxu1 }
 0x927   : > { %10012 = vtanh.f32 %v8751_v13  ;;  %v13599_v2 = vadd.f32 %v13504_v22, %v12544_v35  ;;  %v13602_v56 = vadd.f32 %v4931_v45, %v12549_v39  ;;  %v13605_v58 = vadd.f32 %v4935_v19, %v12544_v35  ;;  %v9995_v20 = vpop.eup %9994 }
 0x928   : > { %v5963_v31 = vmul.f32 %v14403_v37, %v5314_v12  ;;  %v5965_v57 = vmul.f32 %v14404_v14, %v5316_v52  ;;  %v6739_v44 = vsel %vm6633_vm1, %v5314_v12, -1e+30  ;;  %v13612_v38 = vadd.f32 %v4937_v16, %v12549_v39  ;;  %v9997_v22 = vpop.eup %9996  ;;  %v14406_v12 = vld [vmem:[#allocation55_spill] sm:$0xff] }
 0x929   : > { %v6914_v45 = vmax.f32 %v6913_v30, %v6739_v44  ;;  %v5315_v51 = vunpack.c.l.bf16 %v5145_v62  ;;  %v5317_v47 = vunpack.c.h.bf16 %v5145_v62  ;;  %10014 = vtanh.f32 %v8752_v4  ;;  %v9999_v19 = vpop.eup %9998 }
 0x92a   : > { %v6138_v23 = vadd.f32 %v13494_v46, %v5963_v31  ;;  %v6741_v13 = vsel %vm6634_vm3, %v5316_v52, -1e+30  ;;  %10016 = vtanh.f32 %v8753_v18  ;;  %v13625_v16 = vadd.f32 %v4939_v48, %v12544_v35  ;;  %v10001_v42 = vpop.eup %10000 }
 0x92b   : > { %vm6637_vm6 = vcmp.eq.s32.totalorder %v14405_v61, 1  ;;  %v6915_v29 = vmax.f32 %v6914_v45, %v6741_v13  ;;  %v5964_v30 = vmul.f32 %v14403_v37, %v5315_v51  ;;  %v6740_v4 = vsel %vm6633_vm1, %v5315_v51, -1e+30  ;;  %v10003_v18 = vpop.eup %10002  ;;  %v14413_v61 = vld [vmem:[#allocation77_spill] sm:$0xff] }
 0x92c   : > { %v13634_v46 = vadd.f32 %v4941_v25, %v12549_v39  ;;  %vm6638_vm7 = vcmp.eq.s32.totalorder %v14406_v12, 1  ;;  %v6139_v48 = vadd.f32 %v6138_v23, %v5965_v57  ;;  %v5966_v52 = vmul.f32 %v14404_v14, %v5317_v47  ;;  %v10005_v37 = vpop.eup %10004  ;;  %v14414_v12 = vld [vmem:[#allocation68_spill] sm:$0xff] }
 0x92d   : > { %v6927_v62 = vmax.f32 %v6926_v32, %v6740_v4  ;;  %v5146_v31 = vpack.c.bf16 %v9999_v19, %v9995_v20  ;;  %v6151_v11 = vadd.f32 %v13541_v33, %v5964_v30  ;;  %v6742_v25 = vsel %vm6634_vm3, %v5317_v47, -1e+30  ;;  %v10007_v45 = vpop.eup %10006  ;;  %v14407_v19 = vld [vmem:[#allocation92_spill] sm:$0xff]  ;;  %v14408_v30 = vld [vmem:[#allocation97_spill] sm:$0xff]  ;;  %v13654_v47 = vpop.f32.mrb[76].mxu1 }
 0x92e   : > { %v5147_v44 = vpack.c.bf16 %v10001_v42, %v9997_v22  ;;  %10018 = vtanh.f32 %v13558_v53  ;;  %v10009_v14 = vpop.eup %10008  ;;  %v5148_v32 = vpack.c.bf16 %v10007_v45, %v10003_v18  ;;  %vm7028_vm1 = vcmp.eq.s32.totalorder %v14414_v12, 1 }
 0x92f   : > { %v6928_v51 = vmax.f32 %v6927_v62, %v6742_v25  ;;  %v5318_v13 = vunpack.c.l.bf16 %v5146_v31  ;;  %v5320_v57 = vunpack.c.h.bf16 %v5146_v31  ;;  %10020 = vtanh.f32 %v13562_v15  ;;  %v13660_v62 = vpop.f32.mrb[77].mxu1  ;;  %v14409_v31 = vld [vmem:[#allocation27_spill] sm:$0xff] }
 0x930   : > { %v6152_v23 = vadd.f32 %v6151_v11, %v5966_v52  ;;  %v5319_v41 = vunpack.c.l.bf16 %v5147_v44  ;;  %v5321_v54 = vunpack.c.h.bf16 %v5147_v44  ;;  %v10011_v20 = vpop.eup %10010  ;;  %vm6639_vm15 = vcmp.eq.s32.totalorder %v14409_v31, 1 }
 0x931   : > { %v5967_v33 = vmul.f32 %v14407_v19, %v5318_v13  ;;  %v5969_v27 = vmul.f32 %v14408_v30, %v5320_v57  ;;  %v6743_v22 = vsel %vm6635_vm4, %v5318_v13, -1e+30  ;;  %v6745_v53 = vsel %vm6636_vm5, %v5320_v57, -1e+30  ;;  %v10013_v42 = vpop.eup %10012  ;;  %v13665_v13 = vpop.f32.mrb[78].mxu1  ;;  %v14410_v57 = vld [vmem:[#allocation29_spill] sm:$0xff] }
 0x932   : > { %v6916_v15 = vmax.f32 %v6915_v29, %v6743_v22  ;;  %v5968_v4 = vmul.f32 %v14407_v19, %v5319_v41  ;;  %v5970_v52 = vmul.f32 %v14408_v30, %v5321_v54  ;;  %v6744_v18 = vsel %vm6635_vm4, %v5319_v41, -1e+30  ;;  %v13668_v41 = vpop.f32.mrb[79].mxu1 }
 0x933   : > { %v6140_v11 = vadd.f32 %v6139_v48, %v5967_v33  ;;  %v6746_v25 = vsel %vm6636_vm5, %v5321_v54, -1e+30  ;;  %v6929_v44 = vmax.f32 %v6928_v51, %v6744_v18  ;;  %v5322_v45 = vunpack.c.l.bf16 %v5148_v32  ;;  %v10015_v29 = vpop.eup %10014  ;;  %v14411_v48 = vld [vmem:[#allocation100_spill] sm:$0xff]  ;;  %v14412_v54 = vld [vmem:[#allocation101_spill] sm:$0xff] }
 0x934   : > { %vm6640_vm0 = vcmp.eq.s32.totalorder %v14410_v57, 1  ;;  %v6917_v19 = vmax.f32 %v6916_v15, %v6745_v53  ;;  %v6153_v30 = vadd.f32 %v6152_v23, %v5968_v4  ;;  %v5324_v22 = vunpack.c.h.bf16 %v5148_v32  ;;  %v10017_v3 = vpop.eup %10016 }
 0x935   : > { %v5149_v17 = vpack.c.bf16 %v10009_v14, %v10005_v37  ;;  %v6141_v26 = vadd.f32 %v6140_v11, %v5969_v27  ;;  %v6930_v43 = vmax.f32 %v6929_v44, %v6746_v25  ;;  %v5971_v33 = vmul.f32 %v14411_v48, %v5322_v45 }
 0x936   : > { %v6747_v59 = vsel %vm6637_vm6, %v5322_v45, -1e+30  ;;  %v6154_v51 = vadd.f32 %v6153_v30, %v5970_v52  ;;  %v5973_v18 = vmul.f32 %v14412_v54, %v5324_v22  ;;  %v6749_v55 = vsel %vm6638_vm7, %v5324_v22, -1e+30 }
 0x937   : > { %v6918_v53 = vmax.f32 %v6917_v19, %v6747_v59  ;;  %v6142_v23 = vadd.f32 %v6141_v26, %v5971_v33  ;;  %v5323_v32 = vunpack.c.l.bf16 %v5149_v17  ;;  %v5325_v37 = vunpack.c.h.bf16 %v5149_v17 }
 0x938   : > { %v5150_v14 = vpack.c.bf16 %v10015_v29, %v10011_v20  ;;  %v10019_v15 = vpop.eup %10018  ;;  %v5151_v27 = vpack.c.bf16 %v10017_v3, %v10013_v42  ;;  %10022 = vtanh.f32 %v13566_v34  ;;  %v13679_v11 = vadd.f32 %v13614_v60, %v12544_v35  ;;  %v13687_v20 = vpop.f32.mrb[80].mxu1 }
 0x939   : > { %v6919_v4 = vmax.f32 %v6918_v53, %v6749_v55  ;;  %v13681_v52 = vpop.eup %10020  ;;  %v6143_v25 = vadd.f32 %v6142_v23, %v5973_v18  ;;  %v5972_v44 = vmul.f32 %v14411_v48, %v5323_v32  ;;  %v5974_v45 = vmul.f32 %v14412_v54, %v5325_v37  ;;  %v13691_v60 = vpop.f32.mrb[81].mxu1  ;;  %v14415_v23 = vld [vmem:[#allocation84_spill] sm:$0xff] }
 0x93a   : > { %v6748_v26 = vsel %vm6637_vm6, %v5323_v32, -1e+30  ;;  %v6750_v3 = vsel %vm6638_vm7, %v5325_v37, -1e+30  ;;  %v5326_v42 = vunpack.c.l.bf16 %v5150_v14  ;;  %v5328_v30 = vunpack.c.h.bf16 %v5150_v14  ;;  %v13693_v17 = vpop.f32.mrb[82].mxu1 }
 0x93b   : > { %v6920_v55 = vrot.slane %v6919_v4, 4  ;;  %v6931_v34 = vmax.f32 %v6930_v43, %v6748_v26  ;;  %v6144_v29 = vrot.slane %v6143_v25, 4  ;;  %v6155_v19 = vadd.f32 %v6154_v51, %v5972_v44  ;;  %v13698_v18 = vpop.f32.mrb[83].mxu1  ;;  %v14416_v26 = vld [vmem:[#allocation34_spill] sm:$0xff] }
 0x93c   : > { %v5327_v22 = vunpack.c.l.bf16 %v5151_v27  ;;  %v5975_v59 = vmul.f32 %v14413_v61, %v5326_v42  ;;  %v6751_v54 = vsel %vm6639_vm15, %v5326_v42, -1e+30  ;;  %v5977_v51 = vmul.f32 %v14415_v23, %v5328_v30 }
 0x93d   : > { %v6921_v48 = vmax.f32 %v6919_v4, %v6920_v55  ;;  %v6932_v33 = vmax.f32 %v6931_v34, %v6750_v3  ;;  %v6145_v43 = vadd.f32 %v6144_v29, %v6143_v25  ;;  %v13701_v53 = vadd.f32 %v6155_v19, %v5974_v45  ;;  %v14417_v55 = vld [vmem:[#allocation40_spill] sm:$0xff] }
 0x93e   : > { %v6753_v32 = vsel %vm6640_vm0, %v5328_v30, -1e+30  ;;  %v5329_v4 = vunpack.c.h.bf16 %v5151_v27  ;;  %v13708_v44 = vadd.f32 %v13619_v28, %v12549_v39  ;;  %vm6641_vm3 = vcmp.eq.s32.totalorder %v14416_v26, 1 }
 0x93f   : > { %v6922_v37 = vrot.slane %v6921_v48, 2  ;;  %v6933_v14 = vrot.slane %v6932_v33, 4  ;;  %vm6642_vm4 = vcmp.eq.s32.totalorder %v14417_v55, 1  ;;  %v6146_v3 = vrot.slane %v6145_v43, 2 }
 0x940   : > { %v6157_v25 = vrot.slane %v13701_v53, 4  ;;  %v6939_v45 = vmax.f32 %v6751_v54, %v6753_v32  ;;  %v5976_v34 = vmul.f32 %v14413_v61, %v5327_v22  ;;  %v6163_v29 = vadd.f32 %v5977_v51, %v5975_v59 }
 0x941   : > { %v6923_v42 = vmax.f32 %v6921_v48, %v6922_v37  ;;  %v5978_v19 = vmul.f32 %v14415_v23, %v5329_v4  ;;  %v13717_v27 = vsel %vm6639_vm15, %v5327_v22, -1e+30  ;;  %v6147_v28 = vadd.f32 %v6146_v3, %v6145_v43  ;;  %v13746_v23 = vpop.permute.xlu1 %6242 }
 0x942   : > { %v13719_v30 = vmax.f32 %v6932_v33, %v6933_v14  ;;  %v13723_v63 = vsel %vm6640_vm0, %v5329_v4, -1e+30  ;;  %10024 = vtanh.f32 %v13570_v49  ;;  %v10023_v54 = vpop.eup %10022  ;;  %v13731_v31 = vadd.f32 %v13627_v8, %v12544_v35  ;;  %v14419_v14 = vld [vmem:[#allocation91_spill] sm:$0xff] }
 0x943   : > { %v6924_v32 = vrot.slane %v6923_v42, 1  ;;  %v13726_v61 = vadd.f32 %v5978_v19, %v5976_v34  ;;  %10026 = vtanh.f32 %v13574_v36  ;;  %v6148_v22 = vrot.slane %v6147_v28, 1  ;;  %v14420_v19 = vld [vmem:[#allocation47_spill] sm:$0xff] }
 0x944   : > { %v6952_v48 = vmax.f32 %v13717_v27, %v13723_v63  ;;  %v5152_v33 = vpack.c.bf16 %v10023_v54, %v10019_v15  ;;  %10028 = vtanh.f32 %v13578_v50  ;;  %v13739_v49 = vadd.f32 %v13636_v21, %v12549_v39 }
 0x945   : > { %v6925_v57 = vmax.f32 %v6923_v42, %v6924_v32  ;;  %10030 = vtanh.f32 %v13582_v5  ;;  %v13743_v36 = vadd.f32 %v13654_v47, %v12544_v35  ;;  %v6149_v8 = vadd.f32 %v6148_v22, %v6147_v28 }
 0x946   : > { %v5330_v59 = vunpack.c.l.bf16 %v5152_v33  ;;  %v5332_v43 = vunpack.c.h.bf16 %v5152_v33  ;;  %10032 = vtanh.f32 %v13586_v10  ;;  %v13753_v5 = vadd.f32 %v13660_v62, %v12549_v39  ;;  %v14418_v10 = vld [vmem:[#allocation85_spill] sm:$0xff] }
 0x947   : > { %v7041_v50 = vsel %vm7028_vm1, %v6925_v57, 0.0  ;;  %10034 = vtanh.f32 %v13590_v6  ;;  %v13757_v21 = vadd.f32 %v13665_v13, %v12544_v35  ;;  %v6265_v47 = vmul.f32 %v13746_v23, %v6149_v8 }
 0x948   : > { %v7057_v15 = vpack.c.bf16 %v6149_v8, %v6149_v8  ;;  %v7105_v51 = vpack.c.bf16 %v7041_v50, %v7041_v50  ;;  %v5979_v37 = vmul.f32 %v14418_v10, %v5330_v59  ;;  %v5981_v4 = vmul.f32 %v14419_v14, %v5332_v43 }
 0x949   : > { %v6755_v3 = vsel %vm6641_vm3, %v5330_v59, -1e+30  ;;  %v6757_v6 = vsel %vm6642_vm4, %v5332_v43, -1e+30  ;;  %v13768_v62 = vadd.f32 %v13668_v41, %v12549_v39  ;;  %v7532_v34 = vpack.c.bf16 %v6265_v47, %v6265_v47  ;;  %v14421_v41 = vld [vmem:[#allocation50_spill] sm:$0xff] }
 0x94a   : > { %v13770_v13 = vunpack.c.l.b16 %v7105_v51  ;;  %v6164_v42 = vadd.f32 %v6163_v29, %v5979_v37  ;;  %10036 = vtanh.f32 %v13593_v0  ;;  %vm6643_vm5 = vcmp.eq.s32.totalorder %v14420_v19, 1 }
 0x94b   : > { %v13774_v28 = vunpack.c.l.b16 %v7057_v15  ;;  %v6940_v54 = vmax.f32 %v6939_v45, %v6755_v3  ;;  %10038 = vtanh.f32 %v13599_v2  ;;  %v13779_v32 = vadd.f32 %v13687_v20, %v12544_v35  ;;  %v14425_v3 = vld [vmem:[#allocation61_spill] sm:$0xff] }
 0x94c   : > { %v10025_v22 = vpop.eup %10024  ;;  %vm6644_vm6 = vcmp.eq.s32.totalorder %v14421_v41, 1  ;;  %v13782_v33 = vunpack.c.l.b16 %v7532_v34  ;;  %v6165_v57 = vadd.f32 %v6164_v42, %v5981_v4  ;;  %10040 = vtanh.f32 %v13602_v56 }
 0x94d   : > { %v13787_v0 = vadd.f32 %v13691_v60, %v12549_v39  ;;  %v10027_v29 = vpop.eup %10026  ;;  %v6941_v45 = vmax.f32 %v6940_v54, %v6757_v6  ;;  %v5153_v2 = vpack.c.bf16 %v10025_v22, %v13681_v52  ;;  %10042 = vtanh.f32 %v13605_v58  ;;  %v14426_v54 = vld [vmem:[#allocation57_spill] sm:$0xff] }
 0x94e   : > { %v13793_v20 = vadd.f32 %v13693_v17, %v12544_v35  ;;  %v10029_v8 = vpop.eup %10028  ;;  %10044 = vtanh.f32 %v13612_v38  ;;  %v13798_v56 = vadd.f32 %v13698_v18, %v12549_v39  ;;  %v6885_v60 = vrot.slane %v13438_v40, 1  ;;  %v14423_v35 = vld [vmem:[#allocation83_spill] sm:$0xff] }
 0x94f   : > { %v14422_v59 = vrot.slane %v13429_v9, 2  ;;  %v10031_v52 = vpop.eup %10030  ;;  %v5331_v50 = vunpack.c.l.bf16 %v5153_v2  ;;  %v5333_v58 = vunpack.c.h.bf16 %v5153_v2  ;;  %10046 = vtanh.f32 %v13625_v16 }
 0x950   : > { %v14424_v17 = vrot.slane %v14423_v35, 1  ;;  %v10033_v38 = vpop.eup %10032  ;;  %v5154_v15 = vpack.c.bf16 %v10031_v52, %v10027_v29  ;;  %10048 = vtanh.f32 %v13634_v46  ;;  %v6935_v18 = vrot.slane %v13719_v30, 2  ;;  %v14427_v29 = vld [vmem:[#allocation96_spill] sm:$0xff] }
 0x951   : > { %v6910_v43 = vmax.f32 %v13429_v9, %v14422_v59  ;;  %v10035_v51 = vpop.eup %10034  ;;  %v5980_v9 = vmul.f32 %v14418_v10, %v5331_v50  ;;  %v5982_v37 = vmul.f32 %v14419_v14, %v5333_v58  ;;  %v6756_v16 = vsel %vm6641_vm3, %v5331_v50, -1e+30  ;;  %v14428_v59 = vld [vmem:[#allocation99_spill] sm:$0xff] }
 0x952   : > { %v13808_v47 = vmax.f32 %v14423_v35, %v14424_v17  ;;  %v13817_v4 = vmax.f32 %v13438_v40, %v6885_v60  ;;  %vm6645_vm7 = vcmp.eq.s32.totalorder %v14425_v3, 1  ;;  %v6953_v46 = vmax.f32 %v6952_v48, %v6756_v16 }
 0x953   : > { %v6911_v39 = vrot.slane %v6910_v43, 1  ;;  %v5334_v6 = vunpack.c.l.bf16 %v5154_v15  ;;  %v5336_v34 = vunpack.c.h.bf16 %v5154_v15  ;;  %v5155_v42 = vpack.c.bf16 %v10033_v38, %v10029_v8 }
 0x954   : > { %vm6646_vm15 = vcmp.eq.s32.totalorder %v14426_v54, 1  ;;  %v6177_v10 = vadd.f32 %v13726_v61, %v5980_v9  ;;  %v6758_v26 = vsel %vm6642_vm4, %v5333_v58, -1e+30  ;;  %10050 = vtanh.f32 %v13679_v11  ;;  %v10037_v14 = vpop.eup %10036 }
 0x955   : > { %v13828_v40 = vmax.f32 %v6910_v43, %v6911_v39  ;;  %v6954_v22 = vmax.f32 %v6953_v46, %v6758_v26  ;;  %v5983_v2 = vmul.f32 %v14427_v29, %v5334_v6  ;;  %v6759_v63 = vsel %vm6643_vm5, %v5334_v6, -1e+30  ;;  %v10039_v48 = vpop.eup %10038 }
 0x956   : > { %v13834_v27 = vmax.f32 %v13719_v30, %v6935_v18  ;;  %v6178_v8 = vadd.f32 %v6177_v10, %v5982_v37  ;;  %v6761_v55 = vsel %vm6644_vm6, %v5336_v34, -1e+30  ;;  %v6942_v61 = vmax.f32 %v6941_v45, %v6759_v63  ;;  %v10041_v11 = vpop.eup %10040  ;;  %v14429_v18 = vld [vmem:[#allocation31_spill] sm:$0xff] }
 0x957   : > { %v5335_v60 = vunpack.c.l.bf16 %v5155_v42  ;;  %v5985_v43 = vmul.f32 %v14428_v59, %v5336_v34  ;;  %v6166_v52 = vadd.f32 %v6165_v57, %v5983_v2  ;;  %v5337_v50 = vunpack.c.h.bf16 %v5155_v42  ;;  %v10043_v35 = vpop.eup %10042  ;;  %v14431_v2 = vld [vmem:[#allocation38_spill] sm:$0xff] }
 0x958   : > { %v5156_v58 = vpack.c.bf16 %v10039_v48, %v10035_v51  ;;  %v6943_v17 = vmax.f32 %v6942_v61, %v6761_v55  ;;  %v5157_v15 = vpack.c.bf16 %v10041_v11, %v10037_v14  ;;  %v10045_v39 = vpop.eup %10044  ;;  %vm6647_vm0 = vcmp.eq.s32.totalorder %v14429_v18, 1  ;;  %v14430_v51 = vld [vmem:[#allocation33_spill] sm:$0xff]  ;;  %v14432_v48 = vld [vmem:[#allocation102_spill] sm:$0xff] }
 0x959   : > { %v5984_v38 = vmul.f32 %v14427_v29, %v5335_v60  ;;  %v6760_v30 = vsel %vm6643_vm5, %v5335_v60, -1e+30  ;;  %v6167_v9 = vadd.f32 %v6166_v52, %v5985_v43  ;;  %v5986_v45 = vmul.f32 %v14428_v59, %v5337_v50  ;;  %v10047_v16 = vpop.eup %10046 }
 0x95a   : > { %v6762_v37 = vsel %vm6644_vm6, %v5337_v50, -1e+30  ;;  %v6955_v57 = vmax.f32 %v6954_v22, %v6760_v30  ;;  %vm6648_vm3 = vcmp.eq.s32.totalorder %v14430_v51, 1  ;;  %v5338_v6 = vunpack.c.l.bf16 %v5156_v58  ;;  %v10049_v19 = vpop.eup %10048 }
 0x95b   : > { %v6179_v46 = vadd.f32 %v6178_v8, %v5984_v38  ;;  %v5340_v34 = vunpack.c.h.bf16 %v5156_v58  ;;  %v5339_v42 = vunpack.c.l.bf16 %v5157_v15  ;;  %v5341_v26 = vunpack.c.h.bf16 %v5157_v15  ;;  %v14433_v15 = vld [vmem:[#allocation81_spill] sm:$0xff] }
 0x95c   : > { %v6956_v10 = vmax.f32 %v6955_v57, %v6762_v37  ;;  %v5158_v14 = vpack.c.bf16 %v10047_v16, %v10043_v35  ;;  %10052 = vtanh.f32 %v13731_v31  ;;  %v5987_v63 = vmul.f32 %v14431_v2, %v5338_v6  ;;  %v14434_v37 = vld [vmem:[#allocation39_spill] sm:$0xff]  ;;  %v14435_v16 = vld [vmem:[#allocation88_spill] sm:$0xff] }
 0x95d   : > { %v6180_v29 = vadd.f32 %v6179_v46, %v5986_v45  ;;  %v5989_v41 = vmul.f32 %v14432_v48, %v5340_v34  ;;  %v6763_v22 = vsel %vm6645_vm7, %v5338_v6, -1e+30  ;;  %v6765_v8 = vsel %vm6646_vm15, %v5340_v34, -1e+30 }
 0x95e   : > { %v6944_v55 = vmax.f32 %v6943_v17, %v6763_v22  ;;  %v5988_v61 = vmul.f32 %v14431_v2, %v5339_v42  ;;  %v5990_v60 = vmul.f32 %v14432_v48, %v5341_v26  ;;  %v10051_v11 = vpop.eup %10050  ;;  %v6168_v59 = vadd.f32 %v6167_v9, %v5987_v63 }
 0x95f   : > { %v6764_v31 = vsel %vm6645_vm7, %v5339_v42, -1e+30  ;;  %v6766_v43 = vsel %vm6646_vm15, %v5341_v26, -1e+30  ;;  %v5342_v52 = vunpack.c.l.bf16 %v5158_v14  ;;  %v5344_v38 = vunpack.c.h.bf16 %v5158_v14  ;;  %v14437_v14 = vld [vmem:[#allocation64_spill] sm:$0xff] }
 0x960   : > { %v6945_v50 = vmax.f32 %v6944_v55, %v6765_v8  ;;  %v6181_v58 = vadd.f32 %v6180_v29, %v5988_v61  ;;  %v6957_v35 = vmax.f32 %v6956_v10, %v6764_v31  ;;  %v6169_v30 = vadd.f32 %v6168_v59, %v5989_v41  ;;  %v14436_v10 = vld [vmem:[#allocation45_spill] sm:$0xff] }
 0x961   : > { %v5991_v17 = vmul.f32 %v14433_v15, %v5342_v52  ;;  %v5159_v45 = vpack.c.bf16 %v10049_v19, %v10045_v39  ;;  %10054 = vtanh.f32 %v13708_v44  ;;  %vm6649_vm4 = vcmp.eq.s32.totalorder %v14434_v37, 1 }
 0x962   : > { %v6946_v9 = vrot.slane %v6945_v50, 4  ;;  %v13863_v57 = vadd.f32 %v6181_v58, %v5990_v60  ;;  %v6958_v3 = vmax.f32 %v6957_v35, %v6766_v43  ;;  %v5993_v54 = vmul.f32 %v14435_v16, %v5344_v38 }
 0x963   : > { %v6170_v46 = vrot.slane %v6169_v30, 4  ;;  %v6767_v6 = vsel %vm6647_vm0, %v5342_v52, -1e+30  ;;  %v5343_v34 = vunpack.c.l.bf16 %v5159_v45  ;;  %v5345_v42 = vunpack.c.h.bf16 %v5159_v45 }
 0x964   : > { %vm6650_vm5 = vcmp.eq.s32.totalorder %v14436_v10, 1  ;;  %v6947_v26 = vmax.f32 %v6945_v50, %v6946_v9  ;;  %v6959_v39 = vrot.slane %v6958_v3, 4  ;;  %v6189_v19 = vadd.f32 %v5993_v54, %v5991_v17  ;;  %v14440_v9 = vld [vmem:[#allocation93_spill] sm:$0xff]  ;;  %v14441_v54 = vld [vmem:[#allocation98_spill] sm:$0xff] }
 0x965   : > { %v6769_v44 = vsel %vm6648_vm3, %v5344_v38, -1e+30  ;;  %vm7029_vm6 = vcmp.eq.s32.totalorder %v14437_v14, 1  ;;  %v6171_v29 = vadd.f32 %v6170_v46, %v6169_v30  ;;  %v5992_v2 = vmul.f32 %v14433_v15, %v5343_v34  ;;  %v14438_v30 = vld [vmem:[#allocation75_spill] sm:$0xff] }
 0x966   : > { %v5994_v63 = vmul.f32 %v14435_v16, %v5345_v42  ;;  %v13876_v48 = vsel %vm6647_vm0, %v5343_v34, -1e+30  ;;  %v10053_v41 = vpop.eup %10052  ;;  %v6948_v22 = vrot.slane %v6947_v26, 2  ;;  %v13880_v8 = vsel %vm6648_vm3, %v5345_v42, -1e+30 }
 0x967   : > { %10056 = vtanh.f32 %v13739_v49  ;;  %v6937_v55 = vrot.slane %v13834_v27, 1  ;;  %v6172_v61 = vrot.slane %v6171_v29, 2  ;;  %v6965_v60 = vmax.f32 %v6767_v6, %v6769_v44 }
 0x968   : > { %v13884_v59 = vadd.f32 %v5994_v63, %v5992_v2  ;;  %v5160_v31 = vpack.c.bf16 %v10053_v41, %v10051_v11  ;;  %v6949_v43 = vmax.f32 %v6947_v26, %v6948_v22  ;;  %v6978_v18 = vmax.f32 %v13876_v48, %v13880_v8  ;;  %v13906_v26 = vpop.permute.xlu0 %6247 }
 0x969   : > { %10058 = vtanh.f32 %v13743_v36  ;;  %v6960_v52 = vmax.f32 %v6958_v3, %v6959_v39  ;;  %v6173_v50 = vadd.f32 %v6172_v61, %v6171_v29  ;;  %v6938_v35 = vmax.f32 %v13834_v27, %v6937_v55  ;;  %v14443_v61 = vld [vmem:[#allocation54_spill] sm:$0xff] }
 0x96a   : > { %v5346_v51 = vunpack.c.l.bf16 %v5160_v31  ;;  %v5348_v58 = vunpack.c.h.bf16 %v5160_v31  ;;  %v6950_v49 = vrot.slane %v6949_v43, 1  ;;  %10060 = vtanh.f32 %v13757_v21 }
 0x96b   : > { %v6961_v38 = vrot.slane %v6960_v52, 2  ;;  %v7034_v11 = vsel %vm7024_vm9, %v14438_v30, 0.0  ;;  %v10055_v17 = vpop.eup %10054  ;;  %v6174_v45 = vrot.slane %v6173_v50, 1  ;;  %10062 = vtanh.f32 %v13753_v5 }
 0x96c   : > { %v5995_v16 = vmul.f32 %v14440_v9, %v5346_v51  ;;  %v6771_v36 = vsel %vm6649_vm4, %v5346_v51, -1e+30  ;;  %v6951_v3 = vmax.f32 %v6949_v43, %v6950_v49  ;;  %v5997_v27 = vmul.f32 %v14441_v54, %v5348_v58 }
 0x96d   : > { %v13899_v46 = vmax.f32 %v6965_v60, %v6771_v36  ;;  %10064 = vtanh.f32 %v13768_v62  ;;  %v6175_v21 = vadd.f32 %v6174_v45, %v6173_v50  ;;  %v13904_v34 = vsel %vm6650_vm5, %v5348_v58, -1e+30 }
 0x96e   : > { %v6190_v6 = vadd.f32 %v6189_v19, %v5995_v16  ;;  %v6962_v42 = vmax.f32 %v6960_v52, %v6961_v38  ;;  %v7043_v39 = vsel %vm7029_vm6, %v6951_v3, 0.0  ;;  %10066 = vtanh.f32 %v13779_v32  ;;  %v14445_v3 = vld [vmem:[#allocation63_spill] sm:$0xff] }
 0x96f   : > { %v6967_v5 = vmax.f32 %v13899_v46, %v13904_v34  ;;  %v7036_v62 = vsel %vm7025_vm12, %v13808_v47, 0.0  ;;  %v6267_v19 = vmul.f32 %v13906_v26, %v6175_v21  ;;  %v7059_v29 = vpack.c.bf16 %v6175_v21, %v6175_v21  ;;  %v14444_v47 = vld [vmem:[#allocation59_spill] sm:$0xff] }
 0x970   : > { %v7107_v2 = vpack.c.bf16 %v7043_v39, %v7043_v39  ;;  %v6191_v63 = vadd.f32 %v6190_v6, %v5997_v27  ;;  %10068 = vtanh.f32 %v13793_v20  ;;  %v6963_v22 = vrot.slane %v6962_v42, 1  ;;  %v14446_v27 = vld [vmem:[#allocation65_spill] sm:$0xff] }
 0x971   : > { %v10057_v41 = vpop.eup %10056  ;;  %v7038_v55 = vsel %vm7026_vm8, %v13817_v4, 0.0  ;;  %v7040_v32 = vsel %vm7027_vm11, %v13828_v40, 0.0  ;;  %vm6651_vm9 = vcmp.eq.s32.totalorder %v14443_v61, 1  ;;  %vm6652_vm12 = vcmp.eq.s32.totalorder %v14444_v47, 1 }
 0x972   : > { %v13926_v60 = vunpack.c.l.b16 %v7107_v2  ;;  %v7534_v31 = vpack.c.bf16 %v6267_v19, %v6267_v19  ;;  %v5161_v43 = vpack.c.bf16 %v10057_v41, %v10055_v17  ;;  %10070 = vtanh.f32 %v13787_v0 }
 0x973   : > { %v10059_v20 = vpop.eup %10058  ;;  %v13929_v52 = vunpack.c.l.b16 %v7059_v29  ;;  %10072 = vtanh.f32 %v13798_v56  ;;  %v6964_v7 = vmax.f32 %v6962_v42, %v6963_v22  ;;  %v7042_v24 = vsel %vm7028_vm1, %v6938_v35, 0.0  ;;  %v14447_v29 = vld [vmem:[#allocation103_spill] sm:$0xff] }
 0x974   : > { %v5347_v4 = vunpack.c.l.bf16 %v5161_v43  ;;  %v5349_v40 = vunpack.c.h.bf16 %v5161_v43  ;;  %v7098_v50 = vpack.c.bf16 %v7034_v11, %v7034_v11  ;;  %v7100_v51 = vpack.c.bf16 %v7036_v62, %v7036_v62  ;;  %v10061_v58 = vpop.eup %10060 }
 0x975   : > { %v13934_v49 = vunpack.c.l.b16 %v7534_v31  ;;  %v7044_v38 = vsel %vm7029_vm6, %v6964_v7, 0.0  ;;  %v7102_v0 = vpack.c.bf16 %v7038_v55, %v7038_v55  ;;  %v7104_v30 = vpack.c.bf16 %v7040_v32, %v7040_v32  ;;  %v10063_v15 = vpop.eup %10062  ;;  %v14448_v32 = vld [vmem:[#allocation105_spill] sm:$0xff] }
 0x976   : > { %v5996_v17 = vmul.f32 %v14440_v9, %v5347_v4  ;;  %v5998_v56 = vmul.f32 %v14441_v54, %v5349_v40  ;;  %v6772_v12 = vsel %vm6649_vm4, %v5347_v4, -1e+30  ;;  %v7106_v35 = vpack.c.bf16 %v7042_v24, %v7042_v24 }
 0x977   : > { %v10065_v45 = vpop.eup %10064  ;;  %v6774_v11 = vsel %vm6650_vm5, %v5349_v40, -1e+30  ;;  %v6979_v14 = vmax.f32 %v6978_v18, %v6772_v12  ;;  %v5162_v16 = vpack.c.bf16 %v10061_v58, %v10059_v20  ;;  %v7108_v36 = vpack.c.bf16 %v7044_v38, %v7044_v38  ;;  %v14449_v12 = vld [vmem:[#allocation70_spill] sm:$0xff] }
 0x978   : > { %vm6653_vm8 = vcmp.eq.s32.totalorder %v14445_v3, 1  ;;  %vm6654_vm11 = vcmp.eq.s32.totalorder %v14446_v27, 1  ;;  %v6203_v9 = vadd.f32 %v13884_v59, %v5996_v17  ;;  %v5163_v54 = vpack.c.bf16 %v10065_v45, %v10063_v15  ;;  %v10067_v6 = vpop.eup %10066 }
 0x979   : > { %v7162_v37 = vunpack.c.l.b16 %v7098_v50  ;;  %v7164_v21 = vunpack.c.l.b16 %v7100_v51  ;;  %v6980_v42 = vmax.f32 %v6979_v14, %v6774_v11  ;;  %v5350_v39 = vunpack.c.l.bf16 %v5162_v16  ;;  %v14450_v11 = vld [vmem:[#allocation44_spill] sm:$0xff] }
 0x97a   : > { %v5352_v10 = vunpack.c.h.bf16 %v5162_v16  ;;  %v7166_v44 = vunpack.c.l.b16 %v7102_v0  ;;  %v6204_v62 = vadd.f32 %v6203_v9, %v5998_v56  ;;  %v5351_v19 = vunpack.c.l.bf16 %v5163_v54  ;;  %v10069_v18 = vpop.eup %10068 }
 0x97b   : > { %v5353_v48 = vunpack.c.h.bf16 %v5163_v54  ;;  %v7168_v8 = vunpack.c.l.b16 %v7104_v30  ;;  %v5999_v2 = vmul.f32 %v14447_v29, %v5350_v39  ;;  %v6775_v41 = vsel %vm6651_vm9, %v5350_v39, -1e+30 }
 0x97c   : > { %v6777_v59 = vsel %vm6652_vm12, %v5352_v10, -1e+30  ;;  %v7170_v22 = vunpack.c.l.b16 %v7106_v35  ;;  %v10071_v55 = vpop.eup %10070  ;;  %v6001_v31 = vmul.f32 %v14448_v32, %v5352_v10  ;;  %v6968_v43 = vmax.f32 %v6967_v5, %v6775_v41 }
 0x97d   : > { %v6000_v20 = vmul.f32 %v14447_v29, %v5351_v19  ;;  %v6776_v7 = vsel %vm6651_vm9, %v5351_v19, -1e+30  ;;  %v10073_v24 = vpop.eup %10072  ;;  %v6192_v4 = vadd.f32 %v6191_v63, %v5999_v2  ;;  %v6778_v40 = vsel %vm6652_vm12, %v5353_v48, -1e+30  ;;  %v14451_v29 = vld [vmem:[#allocation104_spill] sm:$0xff] }
 0x97e   : > { %v6981_v50 = vmax.f32 %v6980_v42, %v6776_v7  ;;  %v5164_v51 = vpack.c.bf16 %v10069_v18, %v10067_v6  ;;  %v6969_v58 = vmax.f32 %v6968_v43, %v6777_v59  ;;  %v6002_v38 = vmul.f32 %v14448_v32, %v5353_v48  ;;  %v14452_v59 = vld [vmem:[#allocation89_spill] sm:$0xff] }
 0x97f   : > { %v6205_v0 = vadd.f32 %v6204_v62, %v6000_v20  ;;  %v5165_v30 = vpack.c.bf16 %v10073_v24, %v10071_v55  ;;  %v6193_v15 = vadd.f32 %v6192_v4, %v6001_v31  ;;  %vm7183_vm1 = vcmask 1045509  }
 0x980   : > { %v6982_v46 = vmax.f32 %v6981_v50, %v6778_v40  ;;  %v5354_v34 = vunpack.c.l.bf16 %v5164_v51  ;;  %v5356_v5 = vunpack.c.h.bf16 %v5164_v51  ;;  %v7172_v45 = vunpack.c.l.b16 %v7108_v36 }
 0x981   : > { %v6206_v17 = vadd.f32 %v6205_v0, %v6002_v38  ;;  %v5355_v56 = vunpack.c.l.bf16 %v5165_v30  ;;  %v5357_v61 = vunpack.c.h.bf16 %v5165_v30  ;;  %v7184_v10 = vsel %vm7183_vm1, %v13770_v13, %v13483_v1  ;;  %v14453_v13 = vld [vmem:[#allocation94_spill] sm:$0xff] }
 0x982   : > { %v6003_v63 = vmul.f32 %v14449_v12, %v5354_v34  ;;  %v6779_v47 = vsel %vm6653_vm8, %v5354_v34, -1e+30  ;;  %v6781_v35 = vsel %vm6654_vm11, %v5356_v5, -1e+30  ;;  %v6005_v14 = vmul.f32 %v14450_v11, %v5356_v5 }
 0x983   : > { %v6970_v16 = vmax.f32 %v6969_v58, %v6779_v47  ;;  %v6004_v9 = vmul.f32 %v14449_v12, %v5355_v56  ;;  %v6780_v54 = vsel %vm6653_vm8, %v5355_v56, -1e+30  ;;  %v6782_v42 = vsel %vm6654_vm11, %v5357_v61, -1e+30  ;;  %v14454_v56 = vld [vmem:[#allocation71_spill] sm:$0xff] }
 0x984   : > { %v6194_v6 = vadd.f32 %v6193_v15, %v6003_v63  ;;  %v6983_v39 = vmax.f32 %v6982_v46, %v6780_v54  ;;  %v6006_v36 = vmul.f32 %v14450_v11, %v5357_v61  ;;  %vm7185_vm7 = vcmask 1046534  }
 0x985   : > { %v6971_v62 = vmax.f32 %v6970_v16, %v6781_v35  ;;  %v6207_v19 = vadd.f32 %v6206_v17, %v6004_v9  ;;  %v13982_v3 = vsel %vm7185_vm7, %v13926_v60, %v7184_v10  ;;  %v7189_v27 = vsel %vm7175_vm2, %v7162_v37, %v14451_v29 }
 0x986   : > { %v6195_v48 = vadd.f32 %v6194_v6, %v6005_v14  ;;  %v6984_v18 = vmax.f32 %v6983_v39, %v6782_v42  ;;  %v7190_v41 = vsel %vm7177_vm13, %v7164_v21, %v7189_v27  ;;  %v7372_v1 = vsel %vm7183_vm1, %v13774_v28, %v14452_v59 }
 0x987   : > { %v6972_v2 = vrot.slane %v6971_v62, 4  ;;  %v7606_v55 = vsel %vm7183_vm1, %v13782_v33, %v14453_v13  ;;  %v7191_v43 = vsel %vm7179_vm10, %v7166_v44, %v7190_v41  ;;  %v7373_v60 = vsel %vm7185_vm7, %v13929_v52, %v7372_v1  ;;  %v14455_v1 = vld [vmem:[#allocation30_spill] sm:$0xff] }
 0x988   : > { %v6196_v32 = vrot.slane %v6195_v48, 4  ;;  %v6985_v31 = vrot.slane %v6984_v18, 4  ;;  %v7192_v37 = vsel %vm7181_vm14, %v7168_v8, %v7191_v43  ;;  %v7607_v21 = vsel %vm7185_vm7, %v13934_v49, %v7606_v55 }
 0x989   : > { %v6973_v20 = vmax.f32 %v6971_v62, %v6972_v2  ;;  %v6158_v28 = vadd.f32 %v6157_v25, %v13701_v53  ;;  %v7193_v33 = vsel %vm7183_vm1, %v7170_v22, %v7192_v37  ;;  %v6183_v4 = vrot.slane %v13863_v57, 4 }
 0x98a   : > { %v6197_v7 = vadd.f32 %v6196_v32, %v6195_v48  ;;  %v6986_v24 = vmax.f32 %v6984_v18, %v6985_v31  ;;  %v7194_v40 = vsel %vm7185_vm7, %v7172_v45, %v7193_v33  ;;  %v6208_v50 = vadd.f32 %v6207_v19, %v6006_v36  ;;  %v6253_v45 = vpop.permute.xlu1 %6252 }
 0x98b   : > { %v6974_v44 = vrot.slane %v6973_v20, 2  ;;  %v6159_v52 = vrot.slane %v6158_v28, 2  ;;  %v6184_v58 = vadd.f32 %v6183_v4, %v13863_v57  ;;  %vm7030_vm2 = vcmp.eq.s32.totalorder %v14454_v56, 1  ;;  %v9518_v56 = vld [vmem:[#allocation7 + $0x70] sm:$0xff]  }
 0x98c   : > { %v6198_v51 = vrot.slane %v6197_v7, 2  ;;  %v6987_v8 = vrot.slane %v6986_v24, 2  ;;  %v6209_v0 = vrot.slane %v6208_v50, 4  ;;  %vm7187_vm13 = vcmask 1047559  }
 0x98d   : > { %v6975_v49 = vmax.f32 %v6973_v20, %v6974_v44  ;;  %v6160_v38 = vadd.f32 %v6159_v52, %v6158_v28  ;;  %v6185_v25 = vrot.slane %v6184_v58, 2  ;;  %v9508_v52 = vld [vmem:[#allocation7 + $0x48] sm:$0xff]   ;;  %vm10501_vm10 = vmmov 0  }
 0x98e   : > { %v6199_v30 = vadd.f32 %v6198_v51, %v6197_v7  ;;  %v6988_v53 = vmax.f32 %v6986_v24, %v6987_v8  ;;  %v6210_v22 = vadd.f32 %v6209_v0, %v6208_v50  ;;  %v9507_v7 = vld [vmem:[#allocation7] sm:$0xff]   ;;  %v9510_v0 = vld [vmem:[#allocation7 + $0x50] sm:$0xff]  }
 0x98f   : > { %v6976_v15 = vrot.slane %v6975_v49, 1  ;;  %v6161_v46 = vrot.slane %v6160_v38, 1  ;;  %v6186_v17 = vadd.f32 %v6185_v25, %v6184_v58  ;;  %v14456_v8 = vld [vmem:[#allocation69_spill] sm:$0xff]  ;;  %v9511_v25 = vld [vmem:[#allocation7 + $0x10] sm:$0xff]  }
 0x990   : > { %v6200_v34 = vrot.slane %v6199_v30, 1  ;;  %v6989_v5 = vrot.slane %v6988_v53, 1  ;;  %v6211_v63 = vrot.slane %v6210_v22, 2 }
 0x991   : > { %v6977_v61 = vmax.f32 %v6975_v49, %v6976_v15  ;;  %v6162_v12 = vadd.f32 %v6161_v46, %v6160_v38  ;;  %v6187_v57 = vrot.slane %v6186_v17, 1  ;;  %v9509_v49 = vld [vmem:[#allocation7 + $0x8] sm:$0xff]   ;;  %v9512_v15 = vld [vmem:[#allocation7 + $0x58] sm:$0xff]  }
 0x992   : > { %v6201_v47 = vadd.f32 %v6200_v34, %v6199_v30  ;;  %v6990_v35 = vmax.f32 %v6988_v53, %v6989_v5  ;;  %v6212_v14 = vadd.f32 %v6211_v63, %v6210_v22  ;;  %v9513_v46 = vld [vmem:[#allocation7 + $0x18] sm:$0xff]   ;;  %v9514_v22 = vld [vmem:[#allocation7 + $0x60] sm:$0xff]   ;;  %v9516_v5 = vld [vmem:[#allocation7 + $0x68] sm:$0xff]  }
 0x993   : > { %v7045_v11 = vsel %vm7030_vm2, %v6977_v61, 0.0  ;;  %v7058_v16 = vpack.c.bf16 %v6162_v12, %v6162_v12  ;;  %v6266_v9 = vmul.f32 %v13746_v23, %v6162_v12  ;;  %v6188_v62 = vadd.f32 %v6187_v57, %v6186_v17  ;;  %v9515_v34 = vld [vmem:[#allocation7 + $0x20] sm:$0xff]   ;;  %v9517_v17 = vld [vmem:[#allocation7 + $0x28] sm:$0xff]   ;;  %v9519_v61 = vld [vmem:[#allocation7 + $0x30] sm:$0xff]  }
 0x994   : > { %v6269_v54 = vmul.f32 %v6253_v45, %v6201_v47  ;;  %v7061_v6 = vpack.c.bf16 %v6201_v47, %v6201_v47  ;;  %v7109_v42 = vpack.c.bf16 %v7045_v11, %v7045_v11  ;;  %v7046_v39 = vsel %vm7030_vm2, %v6990_v35, 0.0  ;;  %v9520_v12 = vld [vmem:[#allocation7 + $0x78] sm:$0xff]   ;;  %v9522_v47 = vld [vmem:[#allocation10 + $0x40] sm:$0xff]  }
 0x995   : > { %v7110_v10 = vpack.c.bf16 %v7046_v39, %v7046_v39  ;;  %v6213_v36 = vrot.slane %v6212_v14, 1  ;;  %v7363_v19 = vunpack.c.l.b16 %v7058_v16  ;;  %v7533_v27 = vpack.c.bf16 %v6266_v9, %v6266_v9  ;;  %v9521_v63 = vld [vmem:[#allocation7 + $0x38] sm:$0xff]   ;;  %v9523_v35 = vld [vmem:[#allocation10] sm:$0xff]   ;;  %v9526_v16 = vld [vmem:[#allocation10 + $0x50] sm:$0xff]  }
 0x996   : > { %v7173_v48 = vunpack.c.l.b16 %v7109_v42  ;;  %v7366_v18 = vunpack.c.l.b16 %v7061_v6  ;;  %v7536_v29 = vpack.c.bf16 %v6269_v54, %v6269_v54  ;;  %v7060_v59 = vpack.c.bf16 %v6188_v62, %v6188_v62  ;;  %v9527_v9 = vld [vmem:[#allocation10 + $0x10] sm:$0xff]   ;;  %v9528_v54 = vld [vmem:[#allocation10 + $0x58] sm:$0xff]   ;;  %v9530_v42 = vld [vmem:[#allocation10 + $0x60] sm:$0xff]  }
 0x997   : > { %v7174_v2 = vunpack.c.l.b16 %v7110_v10  ;;  %v6214_v41 = vadd.f32 %v6213_v36, %v6212_v14  ;;  %v7379_v23 = vsel %vm7183_vm1, %v7363_v19, %v14455_v1  ;;  %v6268_v31 = vmul.f32 %v13906_v26, %v6188_v62  ;;  %v9525_v14 = vld [vmem:[#allocation10 + $0x8] sm:$0xff]   ;;  %v9529_v6 = vld [vmem:[#allocation10 + $0x18] sm:$0xff]   ;;  %v9531_v39 = vld [vmem:[#allocation10 + $0x20] sm:$0xff]  }
 0x998   : > { %v7188_v13 = vsel %vm7187_vm13, %v7173_v48, %v13982_v3  ;;  %v7374_v55 = vsel %vm7187_vm13, %v7366_v18, %v7373_v60  ;;  %v7600_v32 = vunpack.c.l.b16 %v7536_v29  ;;  %v7365_v24 = vunpack.c.l.b16 %v7060_v59  ;;  %v9532_v10 = vld [vmem:[#allocation10 + $0x68] sm:$0xff]   ;;  %v9534_v36 = vld [vmem:[#allocation10 + $0x70] sm:$0xff]   ;;  %v9536_v48 = vld [vmem:[#allocation10 + $0x78] sm:$0xff]  }
 0x999   : > { %v7195_v43 = vsel %vm7187_vm13, %v7174_v2, %v7194_v40  ;;  %v7062_v20 = vpack.c.bf16 %v6214_v41, %v6214_v41  ;;  %v6270_v33 = vmul.f32 %v6253_v45, %v6214_v41  ;;  %v7196_v4 = vpack.c.b16 %v7188_v13, %v7188_v13  ;;  %v9524_v45 = vld [vmem:[#allocation10 + $0x48] sm:$0xff]   ;;  %v9535_v19 = vld [vmem:[#allocation10 + $0x30] sm:$0xff]   ;;  %v9537_v18 = vld [vmem:[#allocation10 + $0x38] sm:$0xff]  }
 0x99a   : > { %v7197_v37 = vpack.c.b16 %v7195_v43, %v7195_v43  ;;  %v14020_v28 = vsel %vm7187_vm13, %v7600_v32, %v7607_v21  ;;  %v7535_v50 = vpack.c.bf16 %v6268_v31, %v6268_v31  ;;  %v7597_v3 = vunpack.c.l.b16 %v7533_v27  ;;  %v9533_v62 = vld [vmem:[#allocation10 + $0x28] sm:$0xff]   ;;  %v9538_v27 = vld [vmem:[#allocation11] sm:$0xff]   ;;  %v9540_v59 = vld [vmem:[#allocation11 + $0x10] sm:$0xff]  }
 0x99b   : > { %v7367_v44 = vunpack.c.l.b16 %v7062_v20  ;;  %v7380_v60 = vsel %vm7185_vm7, %v7365_v24, %v7379_v23  ;;  %v7537_v51 = vpack.c.bf16 %v6270_v33, %v6270_v33  ;;  %v7382_v57 = vpack.c.b16 %v7374_v55, %v7374_v55  ;;  %v9539_v41 = vld [vmem:[#allocation11 + $0x8] sm:$0xff]   ;;  %v9541_v1 = vld [vmem:[#allocation11 + $0x18] sm:$0xff]   ;;  %v9542_v23 = vld [vmem:[#allocation11 + $0x20] sm:$0xff]  }
 0x99c   : > { %7328 = vmatprep.mubr.bf16.mxu0 %v7197_v37  ;;  %v7599_v40 = vunpack.c.l.b16 %v7535_v50  ;;  %v7613_v21 = vsel %vm7183_vm1, %v7597_v3, %v14456_v8  ;;  %v7616_v29 = vpack.c.b16 %v14020_v28, %v14020_v28  ;;  %v10500_v2 = vmov 0.0   ;;  %v9543_v13 = vld [vmem:[#allocation11 + $0x28] sm:$0xff]   ;;  %v9544_v55 = vld [vmem:[#allocation11 + $0x30] sm:$0xff]   ;;  %v9545_v32 = vld [vmem:[#allocation11 + $0x38] sm:$0xff]  }
 0x99d   : > { %7329 = vmatmul.mubr.bf16.vlgmr.msra.gmra.mrb[44].mxu0 %v7196_v4  ;;  %v7381_v26 = vsel %vm7187_vm13, %v7367_v44, %v7380_v60  ;;  %v7601_v38 = vunpack.c.l.b16 %v7537_v51 }
 0x99e   : > { %8422 = vmatpush3.bf16.msra.mxu0 %v9507_v7  ;;  %v7383_v58 = vpack.c.b16 %v7381_v26, %v7381_v26  ;;  %v7614_v30 = vsel %vm7185_vm7, %v7599_v40, %v7613_v21  ;;  %v8384_v26 = vld [vmem:[%s14457_s3] ss:$0 sm:$0xff]  ;;  %s7885_s3 = scalar_lea.sflag [#allocation4], %s10812_s19 }
 0x99f   : > { %8423 = vmatprep.subr.bf16.mxu0 %v9508_v52  ;;  %v7615_v53 = vsel %vm7187_vm13, %v7601_v38, %v7614_v30 }
 0x9a0   : > { %7514 = vmatprep.mubr.bf16.mxu0 %v7383_v58  ;;  %v7617_v11 = vpack.c.b16 %v7615_v53, %v7615_v53 }
 0x9a2   : > { %8424 = vmatpush3.bf16.msra.mxu0 %v9509_v49 }
 0x9a3   : > { %8425 = vmatprep.subr.bf16.mxu0 %v9510_v0  ;;  %v8385_v0 = vld [vmem:[%s14458_s23] ss:$0 sm:$0xff] }
 0x9a6   : > { %8426 = vmatpush3.bf16.msra.mxu0 %v9511_v25 }
 0x9a7   : > { %8427 = vmatprep.subr.bf16.mxu0 %v9512_v15 }
 0x9aa   : > { %8428 = vmatpush3.bf16.msra.mxu0 %v9513_v46 }
 0x9ab   : > { %8429 = vmatprep.subr.bf16.mxu0 %v9514_v22 }
 0x9ae   : > { %8430 = vmatpush3.bf16.msra.mxu0 %v9515_v34 }
 0x9af   : > { %8431 = vmatprep.subr.bf16.mxu0 %v9516_v5 }
 0x9b2   : > { %8432 = vmatpush3.bf16.msra.mxu0 %v9517_v17 }
 0x9b3   : > { %8433 = vmatprep.subr.bf16.mxu0 %v9518_v56 }
 0x9b6   : > { %8434 = vmatpush3.bf16.msra.mxu0 %v9519_v61 }
 0x9b7   : > { %8435 = vmatprep.subr.bf16.mxu0 %v9520_v12 }
 0x9ba   : > { %8436 = vmatpush3.bf16.msra.mxu0 %v9521_v63 }
 0x9bb   : > { %8443 = vmatprep.subr.bf16.mxu0 %v9522_v47 }
 0x9bd   : > { %7515 = vmatmul.mubr.bf16.vlgmr.msra.gmra.mrb[48].mxu0 %v7382_v57 }
 0x9be   : > { %8444 = vmatpush3.bf16.msra.mxu0 %v9523_v35  ;;  %7748 = vmatprep.mubr.bf16.mxu0 %v7617_v11 }
 0x9bf   : > { %8445 = vmatprep.subr.bf16.mxu0 %v9524_v45 }
 0x9c2   : > { %8446 = vmatpush3.bf16.msra.mxu0 %v9525_v14 }
 0x9c3   : > { %8447 = vmatprep.subr.bf16.mxu0 %v9526_v16 }
 0x9c6   : > { %8448 = vmatpush3.bf16.msra.mxu0 %v9527_v9 }
 0x9c7   : > { %8449 = vmatprep.subr.bf16.mxu0 %v9528_v54 }
 0x9ca   : > { %8450 = vmatpush3.bf16.msra.mxu0 %v9529_v6 }
 0x9cb   : > { %8451 = vmatprep.subr.bf16.mxu0 %v9530_v42 }
 0x9ce   : > { %8452 = vmatpush3.bf16.msra.mxu0 %v9531_v39 }
 0x9cf   : > { %8453 = vmatprep.subr.bf16.mxu0 %v9532_v10 }
 0x9d2   : > { %8454 = vmatpush3.bf16.msra.mxu0 %v9533_v62 }
 0x9d3   : > { %8455 = vmatprep.subr.bf16.mxu0 %v9534_v36 }
 0x9d6   : > { %8456 = vmatpush3.bf16.msra.mxu0 %v9535_v19 }
 0x9d7   : > { %8457 = vmatprep.subr.bf16.mxu0 %v9536_v48 }
 0x9da   : > { %8458 = vmatpush3.bf16.msra.mxu0 %v9537_v18 }
 0x9db   : > { %8474 = vmatprep.subr.bf16.mxu0 %v10500_v2 }
 0x9dd   : > { %7749 = vmatmul.mubr.bf16.vlgmr.msra.gmra.mrb[52].mxu0 %v7616_v29 }
 0x9de   : > { %8475 = vmatpush3.bf16.msra.mxu0 %v9538_v27  ;;  %8490 = vmatprep.mubr.msk.bf16.mxu0 %vm10501_vm10, %v10500_v2 }
 0x9df   : > { %8476 = vmatprep.subr.bf16.mxu0 %v10500_v2 }
 0x9e2   : > { %8477 = vmatpush3.bf16.msra.mxu0 %v9539_v41 }
 0x9e3   : > { %8478 = vmatprep.subr.bf16.mxu0 %v10500_v2 }
 0x9e6   : > { %8479 = vmatpush3.bf16.msra.mxu0 %v9540_v59 }
 0x9e7   : > { %8480 = vmatprep.subr.bf16.mxu0 %v10500_v2 }
 0x9ea   : > { %8481 = vmatpush3.bf16.msra.mxu0 %v9541_v1 }
 0x9eb   : > { %8482 = vmatprep.subr.bf16.mxu0 %v10500_v2 }
 0x9ee   : > { %8483 = vmatpush3.bf16.msra.mxu0 %v9542_v23 }
 0x9ef   : > { %8484 = vmatprep.subr.bf16.mxu0 %v10500_v2 }
 0x9f2   : > { %8485 = vmatpush3.bf16.msra.mxu0 %v9543_v13 }
 0x9f3   : > { %8486 = vmatprep.subr.bf16.mxu0 %v10500_v2 }
 0x9f6   : > { %8487 = vmatpush3.bf16.msra.mxu0 %v9544_v55 }
 0x9f7   : > { %8488 = vmatprep.subr.bf16.mxu0 %v10500_v2 }
 0x9fa   : > { %8489 = vmatpush3.bf16.msra.mxu0 %v9545_v32 }
 0xa70   : > { %v8415_v31 = vpop.f32.mrb[44].mxu0 }
 0xa71   : > { %v8416_v43 = vpop.f32.mrb[45].mxu0 }
 0xa72   : > { %v8417_v20 = vadd.f32 %v8416_v43, %v8415_v31  ;;  %v8418_v37 = vpop.f32.mrb[46].mxu0 }
 0xa73   : > { %v8419_v28 = vpop.f32.mrb[47].mxu0 }
 0xa90   : > { %v8437_v7 = vpop.f32.mrb[48].mxu0 }
 0xa91   : > { %v8438_v24 = vpop.f32.mrb[49].mxu0 }
 0xa92   : > { %v8439_v33 = vadd.f32 %v8438_v24, %v8437_v7  ;;  %v8440_v4 = vpop.f32.mrb[50].mxu0 }
 0xa93   : > { %v8441_v44 = vpop.f32.mrb[51].mxu0 }
 0xa94   : > { %v7517_v52 = vadd.f32 %v8439_v33, %v8417_v20 }
 0xab0   : > { %v8459_v50 = vpop.f32.mrb[52].mxu0 }
 0xab1   : > { %v8460_v3 = vpop.f32.mrb[53].mxu0 }
 0xab2   : > { %v8461_v60 = vadd.f32 %v8460_v3, %v8459_v50  ;;  %v8462_v51 = vpop.f32.mrb[54].mxu0 }
 0xab3   : > { %v8463_v40 = vpop.f32.mrb[55].mxu0 }
 0xab4   : > { %v7756_v8 = vadd.f32 %v8461_v60, %v7517_v52 }
 0xab6   : > { %v7764_v21 = vadd.f32 %v8384_v26, %v7756_v8 }
 0xab8   : > { %vm7765_vm14 = vcmp.gt.f32.partialorder %v7764_v21, 0.0  ;;  %v7766_v58 = vmul.f32 0.01, %v7764_v21 }
 0xaba   : > { %v7767_v49 = vsel %vm7765_vm14, %v7764_v21, %v7766_v58 }
 0xabb   : > { %v7768_v38 = vpack.c.bf16 %v7767_v49, %v7767_v49 }
 0xabd   : > { %8491 = vmatmul.mubr.bf16.vlgmr.msra.gmra.mrb[56].mxu0 %v7768_v38 }
 0xb90   : > { %v7874_v30 = vpop.f32.mrb[56].mxu0 }
 0xb91   : > { %v7875_v53 = vadd.f32 %v8385_v0, %v7874_v30  ;;  %v8492_v25 = vpop.f32.mrb[57].mxu0 }
 0xb92   : > { %v7877_v15 = vpop.f32.mrb[58].mxu0 }
 0xb93   : > { %vm7880_vm15 = vcmp.gt.f32.partialorder %v7875_v53, 0.0  ;;  %v7881_v46 = vmul.f32 0.01, %v7875_v53  ;;  %v8493_v22 = vpop.f32.mrb[59].mxu0 }
 0xb95   : > { %v7882_v34 = vsel %vm7880_vm15, %v7875_v53, %v7881_v46 }
 0xb96   : > { %7883 = vst [vmem:[%s563_s22] sm:$0xff] %v7882_v34 }
 0xb97   : > { %10420 = shalt.err (!%p10417_p6)
}
 0xb98   : > { %s10421_s19 = scalar_lea.hbm %s14041_s29, 128  ;;  %s10425_s22 = scalar_lea.hbm %s14459_s18, 256 }
 0xb99   : > { %p10422_p9 = scmp.ne.s32.totalorder %s14041_s29, %s10421_s19  ;;  %p10426_p0 = scmp.lt.u32.totalorder %s14041_s29, %s14459_s18 }
 0xb9a   : > { %p10427_p5 = scmp.lt.u32.totalorder %s10425_s22, %s10421_s19  ;;  %p10429_p7 = scmp.lt.u32.totalorder %s10421_s19, %s14041_s29 }
 0xb9b   : > { %p10423_p4 = pnand %p10422_p9, %p14460_p10 }
 0xb9c   : > { %p10428_p2 = por %p10427_p5, %p10426_p0 }
 0xb9d   : > { %p10424_p3 = pneg %p10423_p4 }
 0xb9e   : > { %p10430_p1 = por %p10429_p7, %p10428_p2 }
 0xba0   : > { %p10431_p11 = pnand %p10430_p1, %p10424_p3 }
 0xba2   : > { %10434 = shalt.err (!%p10431_p11)
}
 0xba3   : > { %9060 = dma.vmem_to_hbm [thread:$0]  (%p14460_p10), %s14043_s13, 128, %s14041_s29, %s7885_s3  }
 0xba4 PF: > { %s7910_s14 = sand.u32 1, %s10473_s25   ;;  %p14461_p12 = scmp.ne.s32.totalorder %s14224_s24, 0 }
 0xba5   : > { %p14462_p13 = scmp.ge.s32.totalorder %s10485_s28, 2  ;;  %s7911_s17 = scalar_lea.sflag [#allocation4], %s7910_s14 }
 0xba7   : > { %p9083_p8 = pnand %p14462_p13, %p14461_p12 }
 0xba9   : > { %10468 = dma.done.wait (!%p9083_p8), %s7911_s17, 128  }
 0xbaa   : > { %10470 = vsyncadd (!%p9083_p8), %s7911_s17, 4294967168  ;;  %p29_p6 = scmp.ge.s32.totalorder %s10739_s16, 4   ;;  %s14463_s25 = smov %s10477_s26 }
 0xbab   : > { %s14464_s26 = smov %s10481_s27  ;;  %s14465_s27 = smov %s10751_s12 }
 0xbac   : > { %s14466_s28 = smov %s10739_s16  ;;  %31 = sbr.rel (!%p29_p6) target bundleno = 15 (0xf), region = 145 }
 0xbb3   :  { %7916 = vsyncpa [#allocation3], 1 }
 0xbb4   :  { %7918 = vsyncpa [#allocation3 + $0x1], 1 }
 0xbb5   :  { %7919 = vsyncpa [#allocation6], 1 }
 0xbb6   :  { %7920 = vsyncpa [#allocation9], 1 }
 0xbb7   :  { %7921 = vsyncpa [#allocation12], 1 }
 0xbb8   :  { %7922 = vsyncpa [#allocation4], 1 }
 0xbb9   :  { %7924 = vsyncpa [#allocation4 + $0x1], 1 }

</bundles_post_ra>
